<compile_context>
chip_gen: v7x
topology: tpu7x:2x2x1
jax: 0.10.0
libtpu: 0.0.40
codegen_flags: <defaults>
</compile_context>

<pallas_src>
import functools

import numpy as np
import jax
import jax.numpy as jnp
from jax.experimental import pallas as pl
from jax.experimental.pallas import tpu as pltpu

LANE = 128
BN_EPS = 1e-5


def _vmem_spec():
    # whole-array block resident in VMEM (all per-layer tensors are < ~1 MiB)
    return pl.BlockSpec(memory_space=pltpu.MemorySpace.VMEM)


# ----------------------------- Pallas kernels ------------------------------ #

def _initial_kernel(z_ref, w_ref, g_ref, b_ref, o_ref):
    """ConvTranspose2d(latent, C0, k, 1, 0) on a 1x1 input == z @ W, fused with
    training-mode BatchNorm + ReLU.

    z: (N, L) bf16;  w: (L, S*C0) bf16, columns ordered (ky, kx, c);
    g/b: (1, C0) f32;  o: (N, S*C0) bf16.
    Channel c occupies lane blocks {s*C0 + c : s}, so per-channel statistics
    are the sum over the S 128-wide lane blocks reduced over rows (no in-kernel
    reshape needed).
    """
    c0 = g_ref.shape[1]
    s = w_ref.shape[1] // c0
    nrows = z_ref.shape[0]

    y = jnp.dot(z_ref[...], w_ref[...], preferred_element_type=jnp.float32)

    tot = float(nrows * s)
    mean = sum(jnp.sum(y[:, i * c0:(i + 1) * c0], axis=0, keepdims=True)
               for i in range(s)) / tot
    var = sum(jnp.sum(jnp.square(y[:, i * c0:(i + 1) * c0] - mean),
                      axis=0, keepdims=True) for i in range(s)) / tot
    scale = jax.lax.rsqrt(var + BN_EPS) * g_ref[...]
    shift = b_ref[...] - mean * scale
    for i in range(s):
        blk = y[:, i * c0:(i + 1) * c0] * scale + shift
        o_ref[:, i * c0:(i + 1) * c0] = jnp.maximum(blk, 0.0).astype(o_ref.dtype)


def _upsample_kernel(a_ref, w_ref, g_ref, b_ref, o_ref):
    """4-phase (sub-pixel) ConvTranspose2d(k=4, s=2, p=1) + BatchNorm + ReLU.

    a: (4, M, 4*Cin) bf16 zero-free per-phase patches;
    w: (4, 4*Cin, Cpad) bf16 (Cout lane-padded to 128);
    g/b: (1, Cpad) f32;  o: (4, M, Cpad) bf16.
    BN stats are accumulated over all phases x rows, i.e. over every output
    pixel of the layer (biased, training-mode) - padded channels stay 0.
    """
    nphase, mrows, _ = a_ref.shape
    ys = [jnp.dot(a_ref[p], w_ref[p], preferred_element_type=jnp.float32)
          for p in range(nphase)]
    tot = float(nphase * mrows)
    mean = sum(jnp.sum(y, axis=0, keepdims=True) for y in ys) / tot
    var = sum(jnp.sum(jnp.square(y - mean), axis=0, keepdims=True)
              for y in ys) / tot
    scale = jax.lax.rsqrt(var + BN_EPS) * g_ref[...]
    shift = b_ref[...] - mean * scale
    for p in range(nphase):
        o_ref[p, :, :] = jnp.maximum(ys[p] * scale + shift, 0.0).astype(o_ref.dtype)


def _final_kernel(w_ref, a_ref, o_ref):
    """Transposed GEMM for the last Conv2d(3,1,1) with fused tanh.

    w: (Cout, 9*Cin) bf16;  a: (9*Cin, M) bf16 (M = N*H*W is the lane axis,
    so the Cout=3 output is stored lane-dense);  o: (Cout, M) f32.
    """
    y = jnp.dot(w_ref[...], a_ref[...], preferred_element_type=jnp.float32)
    o_ref[...] = jnp.tanh(y)


# ------------------------------- JAX glue ----------------------------------- #

def _upsample_layer(x, wstack, g, b, cout):
    """x: (N,H,W,Cin) bf16 -> (N,2H,2W,cout) bf16 via one fused pallas_call."""
    n, h, w, cin = x.shape
    m = n * h * w
    cpad = wstack.shape[-1]
    xp = jnp.pad(x, ((0, 0), (1, 1), (1, 1), (0, 0)))          # spatial pad 1
    phases = []
    for ro in (0, 1):                  # output-row parity
        for co in (0, 1):              # output-col parity
            taps = [xp[:, ro + dy:ro + dy + h, co + dx:co + dx + w, :]
                    for dy in (0, 1) for dx in (0, 1)]
            phases.append(jnp.concatenate(taps, axis=-1).reshape(m, 4 * cin))
    a = jnp.stack(phases, axis=0)                              # (4, M, 4*Cin)
    yp = pl.pallas_call(
        _upsample_kernel,
        out_shape=jax.ShapeDtypeStruct((4, m, cpad), jnp.bfloat16),
        in_specs=[_vmem_spec()] * 4,
        out_specs=_vmem_spec(),
    )(a, wstack, g, b)
    y = yp[:, :, :cout]                                        # drop lane padding
    # interleave phases: (ro, co, n, a, b, c) -> (n, 2a+ro, 2b+co, c)
    return (y.reshape(2, 2, n, h, w, cout)
              .transpose(2, 3, 0, 4, 1, 5)
              .reshape(n, 2 * h, 2 * w, cout))


def _final_layer(x, wf, cf):
    """Conv2d(Cin, cf, 3, 1, 1) + tanh; x: (N,H,W,Cin) bf16 -> (N,cf,H,W) f32."""
    n, h, w, cin = x.shape
    m = n * h * w
    xp = jnp.pad(x, ((0, 0), (1, 1), (1, 1), (0, 0)))
    taps = [xp[:, dy:dy + h, dx:dx + w, :] for dy in range(3) for dx in range(3)]
    patches = jnp.concatenate(taps, axis=-1).reshape(m, 9 * cin)
    at = jnp.transpose(patches)                                # (9*Cin, M)
    y = pl.pallas_call(
        _final_kernel,
        out_shape=jax.ShapeDtypeStruct((cf, m), jnp.float32),
        in_specs=[_vmem_spec()] * 2,
        out_specs=_vmem_spec(),
    )(wf, at)
    return y.reshape(cf, n, h, w).transpose(1, 0, 2, 3)        # NCHW


@functools.partial(jax.jit, static_argnums=(0,))
def _forward_jit(meta, tensors, z):
    k0, c0, couts, cf = meta
    n = z.shape[0]
    y0 = pl.pallas_call(
        _initial_kernel,
        out_shape=jax.ShapeDtypeStruct((n, k0 * k0 * c0), jnp.bfloat16),
        in_specs=[_vmem_spec()] * 4,
        out_specs=_vmem_spec(),
    )(z.astype(jnp.bfloat16), tensors["w0"], tensors["g0"], tensors["b0"])
    x = y0.reshape(n, k0, k0, c0)                              # NHWC
    for i, cout in enumerate(couts):
        x = _upsample_layer(x, tensors["up_w"][i], tensors["up_g"][i],
                            tensors["up_b"][i], cout)
    return _final_layer(x, tensors["wf"], cf)


def generator_forward(prep, z, labels=None):
    # `labels` is accepted but unused, matching the PyTorch Generator.forward.
    del labels
    meta, tensors = prep
    return _forward_jit(meta, tensors, z)


# ---------------------- parameter preparation (host side) ------------------- #

def _prep_upsample_w(w, cpad):
    """(Cin, Cout, 4, 4) PyTorch ConvTranspose weight -> (4, 4*Cin, cpad) bf16
    per-phase sub-kernels.  For phase (ro, co) and tap (dy, dx):
    ky = 3 - 2*dy - ro, kx = 3 - 2*dx - co."""
    cin, cout = int(w.shape[0]), int(w.shape[1])
    mats = []
    for ro in (0, 1):
        for co in (0, 1):
            sub = w[:, :, (3 - ro)::-2, (3 - co)::-2]          # (Cin,Cout,dy,dx)
            mats.append(jnp.transpose(sub, (2, 3, 0, 1)).reshape(4 * cin, cout))
    wstack = jnp.stack(mats, axis=0)                           # (4, 4*Cin, Cout)
    if cpad > cout:
        wstack = jnp.pad(wstack, ((0, 0), (0, 0), (0, cpad - cout)))
    return wstack.astype(jnp.bfloat16)


def _prep_final_w(w):
    """(Cout, Cin, 3, 3) Conv2d weight -> (Cout, 9*Cin) bf16, cols (ky,kx,ci)."""
    cout, cin, kh, kw = w.shape
    return jnp.transpose(w, (0, 2, 3, 1)).reshape(cout, kh * kw * cin).astype(jnp.bfloat16)


def prepare_params(params):
    """PyTorch-layout f32 params -> (static meta, kernel-ready bf16 tensors)."""
    latent, c0, kh, kw = params["w0"].shape
    couts, up_w, up_g, up_b = [], [], [], []
    for w, g, b in zip(params["up_w"], params["up_g"], params["up_b"]):
        cout = int(w.shape[1])
        cpad = max(LANE, ((cout + LANE - 1) // LANE) * LANE)
        couts.append(cout)
        up_w.append(_prep_upsample_w(w, cpad))
        up_g.append(jnp.pad(g, (0, cpad - cout)).reshape(1, cpad).astype(jnp.float32))
        up_b.append(jnp.pad(b, (0, cpad - cout)).reshape(1, cpad).astype(jnp.float32))
    meta = (int(kh), int(c0), tuple(couts), int(params["wf"].shape[0]))
    tensors = {
        "w0": jnp.transpose(params["w0"], (0, 2, 3, 1))
                 .reshape(latent, kh * kw * c0).astype(jnp.bfloat16),
        "g0": params["g0"].reshape(1, c0).astype(jnp.float32),
        "b0": params["b0"].reshape(1, c0).astype(jnp.float32),
        "up_w": tuple(up_w), "up_g": tuple(up_g), "up_b": tuple(up_b),
        "wf": _prep_final_w(params["wf"]),
    }
    return meta, tensors


# ------------------------ deterministic parameter init ---------------------- #

def init_params(key, channels=3, latent_dim=16, ngf=8, img_size=32):
    initial_size = img_size // 16
    num_upsamples = int(np.log2(img_size / initial_size))
    chs = [ngf * 16, ngf * 8, ngf * 4, ngf * 2, ngf]
    keys = jax.random.split(key, 2 + num_upsamples)
    params = {
        "w0": 0.05 * jax.random.normal(
            keys[0], (latent_dim, chs[0], initial_size, initial_size), jnp.float32),
        "g0": jnp.ones((chs[0],), jnp.float32),
        "b0": jnp.zeros((chs[0],), jnp.float32),
        "up_w": [], "up_g": [], "up_b": [],
    }
    for i in range(num_upsamples):
        params["up_w"].append(
            0.05 * jax.random.normal(keys[1 + i], (chs[i], chs[i + 1], 4, 4), jnp.float32))
        params["up_g"].append(jnp.ones((chs[i + 1],), jnp.float32))
        params["up_b"].append(jnp.zeros((chs[i + 1],), jnp.float32))
    params["wf"] = 0.05 * jax.random.normal(keys[-1], (channels, chs[-1], 3, 3), jnp.float32)
    return params


# --------------------------- pure-JAX reference ------------------------------ #

def _ref_bn_relu(x, gamma, beta):
    mean = jnp.mean(x, axis=(0, 1, 2), keepdims=True)
    var = jnp.mean(jnp.square(x - mean), axis=(0, 1, 2), keepdims=True)
    xn = (x - mean) * jax.lax.rsqrt(var + BN_EPS)
    return jnp.maximum(xn * gamma + beta, 0.0)


def reference_forward(params, z):
    dn = ("NHWC", "HWIO", "NHWC")
    x = jnp.einsum("nl,lcij->nijc", z, params["w0"],
                   precision=jax.lax.Precision.HIGHEST)
    x = _ref_bn_relu(x, params["g0"], params["b0"])
    for w, g, b in zip(params["up_w"], params["up_g"], params["up_b"]):
        wh = jnp.transpose(w[:, :, ::-1, ::-1], (2, 3, 0, 1))  # HWIO
        x = jax.lax.conv_general_dilated(
            x, wh, window_strides=(1, 1), padding=[(2, 2), (2, 2)],
            lhs_dilation=(2, 2), dimension_numbers=dn,
            precision=jax.lax.Precision.HIGHEST)
        x = _ref_bn_relu(x, g, b)
    wfh = jnp.transpose(params["wf"], (2, 3, 1, 0))
    x = jax.lax.conv_general_dilated(
        x, wfh, window_strides=(1, 1), padding=[(1, 1), (1, 1)],
        dimension_numbers=dn, precision=jax.lax.Precision.HIGHEST)
    return jnp.transpose(jnp.tanh(x), (0, 3, 1, 2))


# ----------------------------------- main ------------------------------------ #

if __name__ == "__main__":
    key = jax.random.PRNGKey(0)
    pkey, zkey = jax.random.split(key)

    # Generator(channels=3, latent_dim=16, num_classes=10, ngf=8, img_size=32)
    batch, latent_dim, channels, ngf, img_size = 2, 16, 3, 8, 32
    params = init_params(pkey, channels=channels, latent_dim=latent_dim,
                         ngf=ngf, img_size=img_size)
    prep = prepare_params(params)

    z = jax.random.normal(zkey, (batch, latent_dim), jnp.float32)
    labels = jnp.zeros((batch,), jnp.int32)  # ignored by forward, as in PyTorch

    out = jax.block_until_ready(generator_forward(prep, z, labels))
    assert out.shape == (batch, channels, img_size, img_size), out.shape
    assert bool(jnp.all(jnp.isfinite(out)))

    # Kernel uses single-pass bf16 MXU operands (f32 accumulation); compare
    # against a full-f32 HIGHEST-precision reference with a matching tolerance.
    ref = jax.block_until_ready(reference_forward(params, z))
    max_err = float(jnp.max(jnp.abs(out - ref)))
    assert max_err < 5e-2, f"mismatch vs reference: {max_err}"

    print("KERNEL_OK")
</pallas_src>

<mosaic_0001>
module attributes {stable_mosaic.version = 11 : i64} {
  func.func @_initial_kernel(%arg0: memref<2x16xbf16, #tpu.memory_space<vmem>>, %arg1: memref<16x512xbf16, #tpu.memory_space<vmem>>, %arg2: memref<1x128xf32, #tpu.memory_space<vmem>>, %arg3: memref<1x128xf32, #tpu.memory_space<vmem>>, %arg4: memref<2x512xbf16, #tpu.memory_space<vmem>>) attributes {dimension_semantics = [], scalar_prefetch = 0 : i64, scratch_operands = 0 : i64, tpu.core_type = #tpu.core_type<tc>} {
    %c0 = arith.constant 0 : index
    %c0_0 = arith.constant 0 : index
    %0 = vector.load %arg0[%c0, %c0_0] : memref<2x16xbf16, #tpu.memory_space<vmem>>, vector<2x16xbf16>
    %c0_1 = arith.constant 0 : index
    %c0_2 = arith.constant 0 : index
    %1 = vector.load %arg1[%c0_1, %c0_2] : memref<16x512xbf16, #tpu.memory_space<vmem>>, vector<16x512xbf16>
    %cst = arith.constant dense<0.000000e+00> : vector<2x512xf32>
    %2 = tpu.matmul %0, %1, %cst {dimension_numbers = #tpu.dot_dimension_numbers<[1], [0], [0], [1], [0, 0, 1, 1], [], []>} : vector<2x16xbf16>, vector<16x512xbf16>, vector<2x512xf32> -> vector<2x512xf32>
    %3 = vector.extract_strided_slice %2 {offsets = [0, 0], sizes = [2, 128], strides = [1, 1]} : vector<2x512xf32> to vector<2x128xf32>
    %cst_3 = arith.constant dense<0.000000e+00> : vector<128xf32>
    %4 = vector.multi_reduction <add>, %3, %cst_3 [0] : vector<2x128xf32> to vector<128xf32>
    %5 = vector.shape_cast %4 : vector<128xf32> to vector<1x128xf32>
    %cst_4 = arith.constant 0.000000e+00 : f32
    %6 = vector.broadcast %cst_4 : f32 to vector<1x128xf32>
    %7 = arith.addf %6, %5 : vector<1x128xf32>
    %8 = vector.extract_strided_slice %2 {offsets = [0, 128], sizes = [2, 128], strides = [1, 1]} : vector<2x512xf32> to vector<2x128xf32>
    %cst_5 = arith.constant dense<0.000000e+00> : vector<128xf32>
    %9 = vector.multi_reduction <add>, %8, %cst_5 [0] : vector<2x128xf32> to vector<128xf32>
    %10 = vector.shape_cast %9 : vector<128xf32> to vector<1x128xf32>
    %11 = arith.addf %7, %10 : vector<1x128xf32>
    %12 = vector.extract_strided_slice %2 {offsets = [0, 256], sizes = [2, 128], strides = [1, 1]} : vector<2x512xf32> to vector<2x128xf32>
    %cst_6 = arith.constant dense<0.000000e+00> : vector<128xf32>
    %13 = vector.multi_reduction <add>, %12, %cst_6 [0] : vector<2x128xf32> to vector<128xf32>
    %14 = vector.shape_cast %13 : vector<128xf32> to vector<1x128xf32>
    %15 = arith.addf %11, %14 : vector<1x128xf32>
    %16 = vector.extract_strided_slice %2 {offsets = [0, 384], sizes = [2, 128], strides = [1, 1]} : vector<2x512xf32> to vector<2x128xf32>
    %cst_7 = arith.constant dense<0.000000e+00> : vector<128xf32>
    %17 = vector.multi_reduction <add>, %16, %cst_7 [0] : vector<2x128xf32> to vector<128xf32>
    %18 = vector.shape_cast %17 : vector<128xf32> to vector<1x128xf32>
    %19 = arith.addf %15, %18 : vector<1x128xf32>
    %cst_8 = arith.constant 8.000000e+00 : f32
    %20 = vector.broadcast %cst_8 : f32 to vector<1x128xf32>
    %21 = arith.divf %19, %20 : vector<1x128xf32>
    %22 = vector.extract_strided_slice %2 {offsets = [0, 0], sizes = [2, 128], strides = [1, 1]} : vector<2x512xf32> to vector<2x128xf32>
    %23 = vector.broadcast %21 : vector<1x128xf32> to vector<2x128xf32>
    %24 = arith.subf %22, %23 : vector<2x128xf32>
    %25 = arith.mulf %24, %24 : vector<2x128xf32>
    %cst_9 = arith.constant dense<0.000000e+00> : vector<128xf32>
    %26 = vector.multi_reduction <add>, %25, %cst_9 [0] : vector<2x128xf32> to vector<128xf32>
    %27 = vector.shape_cast %26 : vector<128xf32> to vector<1x128xf32>
    %cst_10 = arith.constant 0.000000e+00 : f32
    %28 = vector.broadcast %cst_10 : f32 to vector<1x128xf32>
    %29 = arith.addf %28, %27 : vector<1x128xf32>
    %30 = vector.extract_strided_slice %2 {offsets = [0, 128], sizes = [2, 128], strides = [1, 1]} : vector<2x512xf32> to vector<2x128xf32>
    %31 = vector.broadcast %21 : vector<1x128xf32> to vector<2x128xf32>
    %32 = arith.subf %30, %31 : vector<2x128xf32>
    %33 = arith.mulf %32, %32 : vector<2x128xf32>
    %cst_11 = arith.constant dense<0.000000e+00> : vector<128xf32>
    %34 = vector.multi_reduction <add>, %33, %cst_11 [0] : vector<2x128xf32> to vector<128xf32>
    %35 = vector.shape_cast %34 : vector<128xf32> to vector<1x128xf32>
    %36 = arith.addf %29, %35 : vector<1x128xf32>
    %37 = vector.extract_strided_slice %2 {offsets = [0, 256], sizes = [2, 128], strides = [1, 1]} : vector<2x512xf32> to vector<2x128xf32>
    %38 = vector.broadcast %21 : vector<1x128xf32> to vector<2x128xf32>
    %39 = arith.subf %37, %38 : vector<2x128xf32>
    %40 = arith.mulf %39, %39 : vector<2x128xf32>
    %cst_12 = arith.constant dense<0.000000e+00> : vector<128xf32>
    %41 = vector.multi_reduction <add>, %40, %cst_12 [0] : vector<2x128xf32> to vector<128xf32>
    %42 = vector.shape_cast %41 : vector<128xf32> to vector<1x128xf32>
    %43 = arith.addf %36, %42 : vector<1x128xf32>
    %44 = vector.extract_strided_slice %2 {offsets = [0, 384], sizes = [2, 128], strides = [1, 1]} : vector<2x512xf32> to vector<2x128xf32>
    %45 = vector.broadcast %21 : vector<1x128xf32> to vector<2x128xf32>
    %46 = arith.subf %44, %45 : vector<2x128xf32>
    %47 = arith.mulf %46, %46 : vector<2x128xf32>
    %cst_13 = arith.constant dense<0.000000e+00> : vector<128xf32>
    %48 = vector.multi_reduction <add>, %47, %cst_13 [0] : vector<2x128xf32> to vector<128xf32>
    %49 = vector.shape_cast %48 : vector<128xf32> to vector<1x128xf32>
    %50 = arith.addf %43, %49 : vector<1x128xf32>
    %cst_14 = arith.constant 8.000000e+00 : f32
    %51 = vector.broadcast %cst_14 : f32 to vector<1x128xf32>
    %52 = arith.divf %50, %51 : vector<1x128xf32>
    %cst_15 = arith.constant 9.99999974E-6 : f32
    %53 = vector.broadcast %cst_15 : f32 to vector<1x128xf32>
    %54 = arith.addf %52, %53 : vector<1x128xf32>
    %55 = math.rsqrt %54 : vector<1x128xf32>
    %c0_16 = arith.constant 0 : index
    %c0_17 = arith.constant 0 : index
    %56 = vector.load %arg2[%c0_16, %c0_17] : memref<1x128xf32, #tpu.memory_space<vmem>>, vector<1x128xf32>
    %57 = arith.mulf %55, %56 : vector<1x128xf32>
    %c0_18 = arith.constant 0 : index
    %c0_19 = arith.constant 0 : index
    %58 = vector.load %arg3[%c0_18, %c0_19] : memref<1x128xf32, #tpu.memory_space<vmem>>, vector<1x128xf32>
    %59 = arith.mulf %21, %57 : vector<1x128xf32>
    %60 = arith.subf %58, %59 : vector<1x128xf32>
    %61 = vector.extract_strided_slice %2 {offsets = [0, 0], sizes = [2, 128], strides = [1, 1]} : vector<2x512xf32> to vector<2x128xf32>
    %62 = vector.broadcast %57 : vector<1x128xf32> to vector<2x128xf32>
    %63 = arith.mulf %61, %62 : vector<2x128xf32>
    %64 = vector.broadcast %60 : vector<1x128xf32> to vector<2x128xf32>
    %65 = arith.addf %63, %64 : vector<2x128xf32>
    %cst_20 = arith.constant 0.000000e+00 : f32
    %66 = vector.broadcast %cst_20 : f32 to vector<2x128xf32>
    %67 = arith.maximumf %65, %66 : vector<2x128xf32>
    %68 = arith.truncf %67 : vector<2x128xf32> to vector<2x128xbf16>
    %c0_21 = arith.constant 0 : index
    %c0_22 = arith.constant 0 : index
    %69 = vector.load %arg4[%c0_21, %c0_22] : memref<2x512xbf16, #tpu.memory_space<vmem>>, vector<2x128xbf16>
    tpu.vector_store %arg4[%c0_21, %c0_22], %68 {strides = array<i32>} : memref<2x512xbf16, #tpu.memory_space<vmem>>, vector<2x128xbf16>,
    %70 = vector.extract_strided_slice %2 {offsets = [0, 128], sizes = [2, 128], strides = [1, 1]} : vector<2x512xf32> to vector<2x128xf32>
    %71 = vector.broadcast %57 : vector<1x128xf32> to vector<2x128xf32>
    %72 = arith.mulf %70, %71 : vector<2x128xf32>
    %73 = vector.broadcast %60 : vector<1x128xf32> to vector<2x128xf32>
    %74 = arith.addf %72, %73 : vector<2x128xf32>
    %cst_23 = arith.constant 0.000000e+00 : f32
    %75 = vector.broadcast %cst_23 : f32 to vector<2x128xf32>
    %76 = arith.maximumf %74, %75 : vector<2x128xf32>
    %77 = arith.truncf %76 : vector<2x128xf32> to vector<2x128xbf16>
    %c0_24 = arith.constant 0 : index
    %c128 = arith.constant 128 : index
    %78 = vector.load %arg4[%c0_24, %c128] : memref<2x512xbf16, #tpu.memory_space<vmem>>, vector<2x128xbf16>
    tpu.vector_store %arg4[%c0_24, %c128], %77 {strides = array<i32>} : memref<2x512xbf16, #tpu.memory_space<vmem>>, vector<2x128xbf16>,
    %79 = vector.extract_strided_slice %2 {offsets = [0, 256], sizes = [2, 128], strides = [1, 1]} : vector<2x512xf32> to vector<2x128xf32>
    %80 = vector.broadcast %57 : vector<1x128xf32> to vector<2x128xf32>
    %81 = arith.mulf %79, %80 : vector<2x128xf32>
    %82 = vector.broadcast %60 : vector<1x128xf32> to vector<2x128xf32>
    %83 = arith.addf %81, %82 : vector<2x128xf32>
    %cst_25 = arith.constant 0.000000e+00 : f32
    %84 = vector.broadcast %cst_25 : f32 to vector<2x128xf32>
    %85 = arith.maximumf %83, %84 : vector<2x128xf32>
    %86 = arith.truncf %85 : vector<2x128xf32> to vector<2x128xbf16>
    %c0_26 = arith.constant 0 : index
    %c256 = arith.constant 256 : index
    %87 = vector.load %arg4[%c0_26, %c256] : memref<2x512xbf16, #tpu.memory_space<vmem>>, vector<2x128xbf16>
    tpu.vector_store %arg4[%c0_26, %c256], %86 {strides = array<i32>} : memref<2x512xbf16, #tpu.memory_space<vmem>>, vector<2x128xbf16>,
    %88 = vector.extract_strided_slice %2 {offsets = [0, 384], sizes = [2, 128], strides = [1, 1]} : vector<2x512xf32> to vector<2x128xf32>
    %89 = vector.broadcast %57 : vector<1x128xf32> to vector<2x128xf32>
    %90 = arith.mulf %88, %89 : vector<2x128xf32>
    %91 = vector.broadcast %60 : vector<1x128xf32> to vector<2x128xf32>
    %92 = arith.addf %90, %91 : vector<2x128xf32>
    %cst_27 = arith.constant 0.000000e+00 : f32
    %93 = vector.broadcast %cst_27 : f32 to vector<2x128xf32>
    %94 = arith.maximumf %92, %93 : vector<2x128xf32>
    %95 = arith.truncf %94 : vector<2x128xf32> to vector<2x128xbf16>
    %c0_28 = arith.constant 0 : index
    %c384 = arith.constant 384 : index
    %96 = vector.load %arg4[%c0_28, %c384] : memref<2x512xbf16, #tpu.memory_space<vmem>>, vector<2x128xbf16>
    tpu.vector_store %arg4[%c0_28, %c384], %95 {strides = array<i32>} : memref<2x512xbf16, #tpu.memory_space<vmem>>, vector<2x128xbf16>,
    return
  }
}

module attributes {stable_mosaic.version = 11 : i64} {
  func.func @_upsample_kernel(%arg0: memref<4x8x512xbf16, #tpu.memory_space<vmem>>, %arg1: memref<4x512x128xbf16, #tpu.memory_space<vmem>>, %arg2: memref<1x128xf32, #tpu.memory_space<vmem>>, %arg3: memref<1x128xf32, #tpu.memory_space<vmem>>, %arg4: memref<4x8x128xbf16, #tpu.memory_space<vmem>>) attributes {dimension_semantics = [], scalar_prefetch = 0 : i64, scratch_operands = 0 : i64, tpu.core_type = #tpu.core_type<tc>} {
    %c0 = arith.constant 0 : index
    %c0_0 = arith.constant 0 : index
    %c0_1 = arith.constant 0 : index
    %0 = vector.load %arg0[%c0, %c0_0, %c0_1] : memref<4x8x512xbf16, #tpu.memory_space<vmem>>, vector<1x8x512xbf16>
    %1 = vector.shape_cast %0 : vector<1x8x512xbf16> to vector<8x512xbf16>
    %c0_2 = arith.constant 0 : index
    %c0_3 = arith.constant 0 : index
    %c0_4 = arith.constant 0 : index
    %2 = vector.load %arg1[%c0_2, %c0_3, %c0_4] : memref<4x512x128xbf16, #tpu.memory_space<vmem>>, vector<1x512x128xbf16>
    %3 = vector.shape_cast %2 : vector<1x512x128xbf16> to vector<512x128xbf16>
    %cst = arith.constant dense<0.000000e+00> : vector<8x128xf32>
    %4 = tpu.matmul %1, %3, %cst {dimension_numbers = #tpu.dot_dimension_numbers<[1], [0], [0], [1], [0, 0, 1, 1], [], []>} : vector<8x512xbf16>, vector<512x128xbf16>, vector<8x128xf32> -> vector<8x128xf32>
    %c1 = arith.constant 1 : index
    %c0_5 = arith.constant 0 : index
    %c0_6 = arith.constant 0 : index
    %5 = vector.load %arg0[%c1, %c0_5, %c0_6] : memref<4x8x512xbf16, #tpu.memory_space<vmem>>, vector<1x8x512xbf16>
    %6 = vector.shape_cast %5 : vector<1x8x512xbf16> to vector<8x512xbf16>
    %c1_7 = arith.constant 1 : index
    %c0_8 = arith.constant 0 : index
    %c0_9 = arith.constant 0 : index
    %7 = vector.load %arg1[%c1_7, %c0_8, %c0_9] : memref<4x512x128xbf16, #tpu.memory_space<vmem>>, vector<1x512x128xbf16>
    %8 = vector.shape_cast %7 : vector<1x512x128xbf16> to vector<512x128xbf16>
    %cst_10 = arith.constant dense<0.000000e+00> : vector<8x128xf32>
    %9 = tpu.matmul %6, %8, %cst_10 {dimension_numbers = #tpu.dot_dimension_numbers<[1], [0], [0], [1], [0, 0, 1, 1], [], []>} : vector<8x512xbf16>, vector<512x128xbf16>, vector<8x128xf32> -> vector<8x128xf32>
    %c2 = arith.constant 2 : index
    %c0_11 = arith.constant 0 : index
    %c0_12 = arith.constant 0 : index
    %10 = vector.load %arg0[%c2, %c0_11, %c0_12] : memref<4x8x512xbf16, #tpu.memory_space<vmem>>, vector<1x8x512xbf16>
    %11 = vector.shape_cast %10 : vector<1x8x512xbf16> to vector<8x512xbf16>
    %c2_13 = arith.constant 2 : index
    %c0_14 = arith.constant 0 : index
    %c0_15 = arith.constant 0 : index
    %12 = vector.load %arg1[%c2_13, %c0_14, %c0_15] : memref<4x512x128xbf16, #tpu.memory_space<vmem>>, vector<1x512x128xbf16>
    %13 = vector.shape_cast %12 : vector<1x512x128xbf16> to vector<512x128xbf16>
    %cst_16 = arith.constant dense<0.000000e+00> : vector<8x128xf32>
    %14 = tpu.matmul %11, %13, %cst_16 {dimension_numbers = #tpu.dot_dimension_numbers<[1], [0], [0], [1], [0, 0, 1, 1], [], []>} : vector<8x512xbf16>, vector<512x128xbf16>, vector<8x128xf32> -> vector<8x128xf32>
    %c3 = arith.constant 3 : index
    %c0_17 = arith.constant 0 : index
    %c0_18 = arith.constant 0 : index
    %15 = vector.load %arg0[%c3, %c0_17, %c0_18] : memref<4x8x512xbf16, #tpu.memory_space<vmem>>, vector<1x8x512xbf16>
    %16 = vector.shape_cast %15 : vector<1x8x512xbf16> to vector<8x512xbf16>
    %c3_19 = arith.constant 3 : index
    %c0_20 = arith.constant 0 : index
    %c0_21 = arith.constant 0 : index
    %17 = vector.load %arg1[%c3_19, %c0_20, %c0_21] : memref<4x512x128xbf16, #tpu.memory_space<vmem>>, vector<1x512x128xbf16>
    %18 = vector.shape_cast %17 : vector<1x512x128xbf16> to vector<512x128xbf16>
    %cst_22 = arith.constant dense<0.000000e+00> : vector<8x128xf32>
    %19 = tpu.matmul %16, %18, %cst_22 {dimension_numbers = #tpu.dot_dimension_numbers<[1], [0], [0], [1], [0, 0, 1, 1], [], []>} : vector<8x512xbf16>, vector<512x128xbf16>, vector<8x128xf32> -> vector<8x128xf32>
    %cst_23 = arith.constant dense<0.000000e+00> : vector<128xf32>
    %20 = vector.multi_reduction <add>, %4, %cst_23 [0] : vector<8x128xf32> to vector<128xf32>
    %21 = vector.shape_cast %20 : vector<128xf32> to vector<1x128xf32>
    %cst_24 = arith.constant 0.000000e+00 : f32
    %22 = vector.broadcast %cst_24 : f32 to vector<1x128xf32>
    %23 = arith.addf %22, %21 : vector<1x128xf32>
    %cst_25 = arith.constant dense<0.000000e+00> : vector<128xf32>
    %24 = vector.multi_reduction <add>, %9, %cst_25 [0] : vector<8x128xf32> to vector<128xf32>
    %25 = vector.shape_cast %24 : vector<128xf32> to vector<1x128xf32>
    %26 = arith.addf %23, %25 : vector<1x128xf32>
    %cst_26 = arith.constant dense<0.000000e+00> : vector<128xf32>
    %27 = vector.multi_reduction <add>, %14, %cst_26 [0] : vector<8x128xf32> to vector<128xf32>
    %28 = vector.shape_cast %27 : vector<128xf32> to vector<1x128xf32>
    %29 = arith.addf %26, %28 : vector<1x128xf32>
    %cst_27 = arith.constant dense<0.000000e+00> : vector<128xf32>
    %30 = vector.multi_reduction <add>, %19, %cst_27 [0] : vector<8x128xf32> to vector<128xf32>
    %31 = vector.shape_cast %30 : vector<128xf32> to vector<1x128xf32>
    %32 = arith.addf %29, %31 : vector<1x128xf32>
    %cst_28 = arith.constant 3.200000e+01 : f32
    %33 = vector.broadcast %cst_28 : f32 to vector<1x128xf32>
    %34 = arith.divf %32, %33 : vector<1x128xf32>
    %35 = vector.broadcast %34 : vector<1x128xf32> to vector<8x128xf32>
    %36 = arith.subf %4, %35 : vector<8x128xf32>
    %37 = arith.mulf %36, %36 : vector<8x128xf32>
    %cst_29 = arith.constant dense<0.000000e+00> : vector<128xf32>
    %38 = vector.multi_reduction <add>, %37, %cst_29 [0] : vector<8x128xf32> to vector<128xf32>
    %39 = vector.shape_cast %38 : vector<128xf32> to vector<1x128xf32>
    %cst_30 = arith.constant 0.000000e+00 : f32
    %40 = vector.broadcast %cst_30 : f32 to vector<1x128xf32>
    %41 = arith.addf %40, %39 : vector<1x128xf32>
    %42 = vector.broadcast %34 : vector<1x128xf32> to vector<8x128xf32>
    %43 = arith.subf %9, %42 : vector<8x128xf32>
    %44 = arith.mulf %43, %43 : vector<8x128xf32>
    %cst_31 = arith.constant dense<0.000000e+00> : vector<128xf32>
    %45 = vector.multi_reduction <add>, %44, %cst_31 [0] : vector<8x128xf32> to vector<128xf32>
    %46 = vector.shape_cast %45 : vector<128xf32> to vector<1x128xf32>
    %47 = arith.addf %41, %46 : vector<1x128xf32>
    %48 = vector.broadcast %34 : vector<1x128xf32> to vector<8x128xf32>
    %49 = arith.subf %14, %48 : vector<8x128xf32>
    %50 = arith.mulf %49, %49 : vector<8x128xf32>
    %cst_32 = arith.constant dense<0.000000e+00> : vector<128xf32>
    %51 = vector.multi_reduction <add>, %50, %cst_32 [0] : vector<8x128xf32> to vector<128xf32>
    %52 = vector.shape_cast %51 : vector<128xf32> to vector<1x128xf32>
    %53 = arith.addf %47, %52 : vector<1x128xf32>
    %54 = vector.broadcast %34 : vector<1x128xf32> to vector<8x128xf32>
    %55 = arith.subf %19, %54 : vector<8x128xf32>
    %56 = arith.mulf %55, %55 : vector<8x128xf32>
    %cst_33 = arith.constant dense<0.000000e+00> : vector<128xf32>
    %57 = vector.multi_reduction <add>, %56, %cst_33 [0] : vector<8x128xf32> to vector<128xf32>
    %58 = vector.shape_cast %57 : vector<128xf32> to vector<1x128xf32>
    %59 = arith.addf %53, %58 : vector<1x128xf32>
    %cst_34 = arith.constant 3.200000e+01 : f32
    %60 = vector.broadcast %cst_34 : f32 to vector<1x128xf32>
    %61 = arith.divf %59, %60 : vector<1x128xf32>
    %cst_35 = arith.constant 9.99999974E-6 : f32
    %62 = vector.broadcast %cst_35 : f32 to vector<1x128xf32>
    %63 = arith.addf %61, %62 : vector<1x128xf32>
    %64 = math.rsqrt %63 : vector<1x128xf32>
    %c0_36 = arith.constant 0 : index
    %c0_37 = arith.constant 0 : index
    %65 = vector.load %arg2[%c0_36, %c0_37] : memref<1x128xf32, #tpu.memory_space<vmem>>, vector<1x128xf32>
    %66 = arith.mulf %64, %65 : vector<1x128xf32>
    %c0_38 = arith.constant 0 : index
    %c0_39 = arith.constant 0 : index
    %67 = vector.load %arg3[%c0_38, %c0_39] : memref<1x128xf32, #tpu.memory_space<vmem>>, vector<1x128xf32>
    %68 = arith.mulf %34, %66 : vector<1x128xf32>
    %69 = arith.subf %67, %68 : vector<1x128xf32>
    %70 = vector.broadcast %66 : vector<1x128xf32> to vector<8x128xf32>
    %71 = arith.mulf %4, %70 : vector<8x128xf32>
    %72 = vector.broadcast %69 : vector<1x128xf32> to vector<8x128xf32>
    %73 = arith.addf %71, %72 : vector<8x128xf32>
    %cst_40 = arith.constant 0.000000e+00 : f32
    %74 = vector.broadcast %cst_40 : f32 to vector<8x128xf32>
    %75 = arith.maximumf %73, %74 : vector<8x128xf32>
    %76 = arith.truncf %75 : vector<8x128xf32> to vector<8x128xbf16>
    %c0_41 = arith.constant 0 : index
    %c0_42 = arith.constant 0 : index
    %c0_43 = arith.constant 0 : index
    %77 = vector.load %arg4[%c0_41, %c0_42, %c0_43] : memref<4x8x128xbf16, #tpu.memory_space<vmem>>, vector<1x8x128xbf16>
    %78 = vector.shape_cast %77 : vector<1x8x128xbf16> to vector<8x128xbf16>
    %79 = vector.shape_cast %76 : vector<8x128xbf16> to vector<1x8x128xbf16>
    tpu.vector_store %arg4[%c0_41, %c0_42, %c0_43], %79 {strides = array<i32>} : memref<4x8x128xbf16, #tpu.memory_space<vmem>>, vector<1x8x128xbf16>,
    %80 = vector.broadcast %66 : vector<1x128xf32> to vector<8x128xf32>
    %81 = arith.mulf %9, %80 : vector<8x128xf32>
    %82 = vector.broadcast %69 : vector<1x128xf32> to vector<8x128xf32>
    %83 = arith.addf %81, %82 : vector<8x128xf32>
    %cst_44 = arith.constant 0.000000e+00 : f32
    %84 = vector.broadcast %cst_44 : f32 to vector<8x128xf32>
    %85 = arith.maximumf %83, %84 : vector<8x128xf32>
    %86 = arith.truncf %85 : vector<8x128xf32> to vector<8x128xbf16>
    %c1_45 = arith.constant 1 : index
    %c0_46 = arith.constant 0 : index
    %c0_47 = arith.constant 0 : index
    %87 = vector.load %arg4[%c1_45, %c0_46, %c0_47] : memref<4x8x128xbf16, #tpu.memory_space<vmem>>, vector<1x8x128xbf16>
    %88 = vector.shape_cast %87 : vector<1x8x128xbf16> to vector<8x128xbf16>
    %89 = vector.shape_cast %86 : vector<8x128xbf16> to vector<1x8x128xbf16>
    tpu.vector_store %arg4[%c1_45, %c0_46, %c0_47], %89 {strides = array<i32>} : memref<4x8x128xbf16, #tpu.memory_space<vmem>>, vector<1x8x128xbf16>,
    %90 = vector.broadcast %66 : vector<1x128xf32> to vector<8x128xf32>
    %91 = arith.mulf %14, %90 : vector<8x128xf32>
    %92 = vector.broadcast %69 : vector<1x128xf32> to vector<8x128xf32>
    %93 = arith.addf %91, %92 : vector<8x128xf32>
    %cst_48 = arith.constant 0.000000e+00 : f32
    %94 = vector.broadcast %cst_48 : f32 to vector<8x128xf32>
    %95 = arith.maximumf %93, %94 : vector<8x128xf32>
    %96 = arith.truncf %95 : vector<8x128xf32> to vector<8x128xbf16>
    %c2_49 = arith.constant 2 : index
    %c0_50 = arith.constant 0 : index
    %c0_51 = arith.constant 0 : index
    %97 = vector.load %arg4[%c2_49, %c0_50, %c0_51] : memref<4x8x128xbf16, #tpu.memory_space<vmem>>, vector<1x8x128xbf16>
    %98 = vector.shape_cast %97 : vector<1x8x128xbf16> to vector<8x128xbf16>
    %99 = vector.shape_cast %96 : vector<8x128xbf16> to vector<1x8x128xbf16>
    tpu.vector_store %arg4[%c2_49, %c0_50, %c0_51], %99 {strides = array<i32>} : memref<4x8x128xbf16, #tpu.memory_space<vmem>>, vector<1x8x128xbf16>,
    %100 = vector.broadcast %66 : vector<1x128xf32> to vector<8x128xf32>
    %101 = arith.mulf %19, %100 : vector<8x128xf32>
    %102 = vector.broadcast %69 : vector<1x128xf32> to vector<8x128xf32>
    %103 = arith.addf %101, %102 : vector<8x128xf32>
    %cst_52 = arith.constant 0.000000e+00 : f32
    %104 = vector.broadcast %cst_52 : f32 to vector<8x128xf32>
    %105 = arith.maximumf %103, %104 : vector<8x128xf32>
    %106 = arith.truncf %105 : vector<8x128xf32> to vector<8x128xbf16>
    %c3_53 = arith.constant 3 : index
    %c0_54 = arith.constant 0 : index
    %c0_55 = arith.constant 0 : index
    %107 = vector.load %arg4[%c3_53, %c0_54, %c0_55] : memref<4x8x128xbf16, #tpu.memory_space<vmem>>, vector<1x8x128xbf16>
    %108 = vector.shape_cast %107 : vector<1x8x128xbf16> to vector<8x128xbf16>
    %109 = vector.shape_cast %106 : vector<8x128xbf16> to vector<1x8x128xbf16>
    tpu.vector_store %arg4[%c3_53, %c0_54, %c0_55], %109 {strides = array<i32>} : memref<4x8x128xbf16, #tpu.memory_space<vmem>>, vector<1x8x128xbf16>,
    return
  }
}

module attributes {stable_mosaic.version = 11 : i64} {
  func.func @_upsample_kernel(%arg0: memref<4x32x256xbf16, #tpu.memory_space<vmem>>, %arg1: memref<4x256x128xbf16, #tpu.memory_space<vmem>>, %arg2: memref<1x128xf32, #tpu.memory_space<vmem>>, %arg3: memref<1x128xf32, #tpu.memory_space<vmem>>, %arg4: memref<4x32x128xbf16, #tpu.memory_space<vmem>>) attributes {dimension_semantics = [], scalar_prefetch = 0 : i64, scratch_operands = 0 : i64, tpu.core_type = #tpu.core_type<tc>} {
    %c0 = arith.constant 0 : index
    %c0_0 = arith.constant 0 : index
    %c0_1 = arith.constant 0 : index
    %0 = vector.load %arg0[%c0, %c0_0, %c0_1] : memref<4x32x256xbf16, #tpu.memory_space<vmem>>, vector<1x32x256xbf16>
    %1 = vector.shape_cast %0 : vector<1x32x256xbf16> to vector<32x256xbf16>
    %c0_2 = arith.constant 0 : index
    %c0_3 = arith.constant 0 : index
    %c0_4 = arith.constant 0 : index
    %2 = vector.load %arg1[%c0_2, %c0_3, %c0_4] : memref<4x256x128xbf16, #tpu.memory_space<vmem>>, vector<1x256x128xbf16>
    %3 = vector.shape_cast %2 : vector<1x256x128xbf16> to vector<256x128xbf16>
    %cst = arith.constant dense<0.000000e+00> : vector<32x128xf32>
    %4 = tpu.matmul %1, %3, %cst {dimension_numbers = #tpu.dot_dimension_numbers<[1], [0], [0], [1], [0, 0, 1, 1], [], []>} : vector<32x256xbf16>, vector<256x128xbf16>, vector<32x128xf32> -> vector<32x128xf32>
    %c1 = arith.constant 1 : index
    %c0_5 = arith.constant 0 : index
    %c0_6 = arith.constant 0 : index
    %5 = vector.load %arg0[%c1, %c0_5, %c0_6] : memref<4x32x256xbf16, #tpu.memory_space<vmem>>, vector<1x32x256xbf16>
    %6 = vector.shape_cast %5 : vector<1x32x256xbf16> to vector<32x256xbf16>
    %c1_7 = arith.constant 1 : index
    %c0_8 = arith.constant 0 : index
    %c0_9 = arith.constant 0 : index
    %7 = vector.load %arg1[%c1_7, %c0_8, %c0_9] : memref<4x256x128xbf16, #tpu.memory_space<vmem>>, vector<1x256x128xbf16>
    %8 = vector.shape_cast %7 : vector<1x256x128xbf16> to vector<256x128xbf16>
    %cst_10 = arith.constant dense<0.000000e+00> : vector<32x128xf32>
    %9 = tpu.matmul %6, %8, %cst_10 {dimension_numbers = #tpu.dot_dimension_numbers<[1], [0], [0], [1], [0, 0, 1, 1], [], []>} : vector<32x256xbf16>, vector<256x128xbf16>, vector<32x128xf32> -> vector<32x128xf32>
    %c2 = arith.constant 2 : index
    %c0_11 = arith.constant 0 : index
    %c0_12 = arith.constant 0 : index
    %10 = vector.load %arg0[%c2, %c0_11, %c0_12] : memref<4x32x256xbf16, #tpu.memory_space<vmem>>, vector<1x32x256xbf16>
    %11 = vector.shape_cast %10 : vector<1x32x256xbf16> to vector<32x256xbf16>
    %c2_13 = arith.constant 2 : index
    %c0_14 = arith.constant 0 : index
    %c0_15 = arith.constant 0 : index
    %12 = vector.load %arg1[%c2_13, %c0_14, %c0_15] : memref<4x256x128xbf16, #tpu.memory_space<vmem>>, vector<1x256x128xbf16>
    %13 = vector.shape_cast %12 : vector<1x256x128xbf16> to vector<256x128xbf16>
    %cst_16 = arith.constant dense<0.000000e+00> : vector<32x128xf32>
    %14 = tpu.matmul %11, %13, %cst_16 {dimension_numbers = #tpu.dot_dimension_numbers<[1], [0], [0], [1], [0, 0, 1, 1], [], []>} : vector<32x256xbf16>, vector<256x128xbf16>, vector<32x128xf32> -> vector<32x128xf32>
    %c3 = arith.constant 3 : index
    %c0_17 = arith.constant 0 : index
    %c0_18 = arith.constant 0 : index
    %15 = vector.load %arg0[%c3, %c0_17, %c0_18] : memref<4x32x256xbf16, #tpu.memory_space<vmem>>, vector<1x32x256xbf16>
    %16 = vector.shape_cast %15 : vector<1x32x256xbf16> to vector<32x256xbf16>
    %c3_19 = arith.constant 3 : index
    %c0_20 = arith.constant 0 : index
    %c0_21 = arith.constant 0 : index
    %17 = vector.load %arg1[%c3_19, %c0_20, %c0_21] : memref<4x256x128xbf16, #tpu.memory_space<vmem>>, vector<1x256x128xbf16>
    %18 = vector.shape_cast %17 : vector<1x256x128xbf16> to vector<256x128xbf16>
    %cst_22 = arith.constant dense<0.000000e+00> : vector<32x128xf32>
    %19 = tpu.matmul %16, %18, %cst_22 {dimension_numbers = #tpu.dot_dimension_numbers<[1], [0], [0], [1], [0, 0, 1, 1], [], []>} : vector<32x256xbf16>, vector<256x128xbf16>, vector<32x128xf32> -> vector<32x128xf32>
    %cst_23 = arith.constant dense<0.000000e+00> : vector<128xf32>
    %20 = vector.multi_reduction <add>, %4, %cst_23 [0] : vector<32x128xf32> to vector<128xf32>
    %21 = vector.shape_cast %20 : vector<128xf32> to vector<1x128xf32>
    %cst_24 = arith.constant 0.000000e+00 : f32
    %22 = vector.broadcast %cst_24 : f32 to vector<1x128xf32>
    %23 = arith.addf %22, %21 : vector<1x128xf32>
    %cst_25 = arith.constant dense<0.000000e+00> : vector<128xf32>
    %24 = vector.multi_reduction <add>, %9, %cst_25 [0] : vector<32x128xf32> to vector<128xf32>
    %25 = vector.shape_cast %24 : vector<128xf32> to vector<1x128xf32>
    %26 = arith.addf %23, %25 : vector<1x128xf32>
    %cst_26 = arith.constant dense<0.000000e+00> : vector<128xf32>
    %27 = vector.multi_reduction <add>, %14, %cst_26 [0] : vector<32x128xf32> to vector<128xf32>
    %28 = vector.shape_cast %27 : vector<128xf32> to vector<1x128xf32>
    %29 = arith.addf %26, %28 : vector<1x128xf32>
    %cst_27 = arith.constant dense<0.000000e+00> : vector<128xf32>
    %30 = vector.multi_reduction <add>, %19, %cst_27 [0] : vector<32x128xf32> to vector<128xf32>
    %31 = vector.shape_cast %30 : vector<128xf32> to vector<1x128xf32>
    %32 = arith.addf %29, %31 : vector<1x128xf32>
    %cst_28 = arith.constant 1.280000e+02 : f32
    %33 = vector.broadcast %cst_28 : f32 to vector<1x128xf32>
    %34 = arith.divf %32, %33 : vector<1x128xf32>
    %35 = vector.broadcast %34 : vector<1x128xf32> to vector<32x128xf32>
    %36 = arith.subf %4, %35 : vector<32x128xf32>
    %37 = arith.mulf %36, %36 : vector<32x128xf32>
    %cst_29 = arith.constant dense<0.000000e+00> : vector<128xf32>
    %38 = vector.multi_reduction <add>, %37, %cst_29 [0] : vector<32x128xf32> to vector<128xf32>
    %39 = vector.shape_cast %38 : vector<128xf32> to vector<1x128xf32>
    %cst_30 = arith.constant 0.000000e+00 : f32
    %40 = vector.broadcast %cst_30 : f32 to vector<1x128xf32>
    %41 = arith.addf %40, %39 : vector<1x128xf32>
    %42 = vector.broadcast %34 : vector<1x128xf32> to vector<32x128xf32>
    %43 = arith.subf %9, %42 : vector<32x128xf32>
    %44 = arith.mulf %43, %43 : vector<32x128xf32>
    %cst_31 = arith.constant dense<0.000000e+00> : vector<128xf32>
    %45 = vector.multi_reduction <add>, %44, %cst_31 [0] : vector<32x128xf32> to vector<128xf32>
    %46 = vector.shape_cast %45 : vector<128xf32> to vector<1x128xf32>
    %47 = arith.addf %41, %46 : vector<1x128xf32>
    %48 = vector.broadcast %34 : vector<1x128xf32> to vector<32x128xf32>
    %49 = arith.subf %14, %48 : vector<32x128xf32>
    %50 = arith.mulf %49, %49 : vector<32x128xf32>
    %cst_32 = arith.constant dense<0.000000e+00> : vector<128xf32>
    %51 = vector.multi_reduction <add>, %50, %cst_32 [0] : vector<32x128xf32> to vector<128xf32>
    %52 = vector.shape_cast %51 : vector<128xf32> to vector<1x128xf32>
    %53 = arith.addf %47, %52 : vector<1x128xf32>
    %54 = vector.broadcast %34 : vector<1x128xf32> to vector<32x128xf32>
    %55 = arith.subf %19, %54 : vector<32x128xf32>
    %56 = arith.mulf %55, %55 : vector<32x128xf32>
    %cst_33 = arith.constant dense<0.000000e+00> : vector<128xf32>
    %57 = vector.multi_reduction <add>, %56, %cst_33 [0] : vector<32x128xf32> to vector<128xf32>
    %58 = vector.shape_cast %57 : vector<128xf32> to vector<1x128xf32>
    %59 = arith.addf %53, %58 : vector<1x128xf32>
    %cst_34 = arith.constant 1.280000e+02 : f32
    %60 = vector.broadcast %cst_34 : f32 to vector<1x128xf32>
    %61 = arith.divf %59, %60 : vector<1x128xf32>
    %cst_35 = arith.constant 9.99999974E-6 : f32
    %62 = vector.broadcast %cst_35 : f32 to vector<1x128xf32>
    %63 = arith.addf %61, %62 : vector<1x128xf32>
    %64 = math.rsqrt %63 : vector<1x128xf32>
    %c0_36 = arith.constant 0 : index
    %c0_37 = arith.constant 0 : index
    %65 = vector.load %arg2[%c0_36, %c0_37] : memref<1x128xf32, #tpu.memory_space<vmem>>, vector<1x128xf32>
    %66 = arith.mulf %64, %65 : vector<1x128xf32>
    %c0_38 = arith.constant 0 : index
    %c0_39 = arith.constant 0 : index
    %67 = vector.load %arg3[%c0_38, %c0_39] : memref<1x128xf32, #tpu.memory_space<vmem>>, vector<1x128xf32>
    %68 = arith.mulf %34, %66 : vector<1x128xf32>
    %69 = arith.subf %67, %68 : vector<1x128xf32>
    %70 = vector.broadcast %66 : vector<1x128xf32> to vector<32x128xf32>
    %71 = arith.mulf %4, %70 : vector<32x128xf32>
    %72 = vector.broadcast %69 : vector<1x128xf32> to vector<32x128xf32>
    %73 = arith.addf %71, %72 : vector<32x128xf32>
    %cst_40 = arith.constant 0.000000e+00 : f32
    %74 = vector.broadcast %cst_40 : f32 to vector<32x128xf32>
    %75 = arith.maximumf %73, %74 : vector<32x128xf32>
    %76 = arith.truncf %75 : vector<32x128xf32> to vector<32x128xbf16>
    %c0_41 = arith.constant 0 : index
    %c0_42 = arith.constant 0 : index
    %c0_43 = arith.constant 0 : index
    %77 = vector.load %arg4[%c0_41, %c0_42, %c0_43] : memref<4x32x128xbf16, #tpu.memory_space<vmem>>, vector<1x32x128xbf16>
    %78 = vector.shape_cast %77 : vector<1x32x128xbf16> to vector<32x128xbf16>
    %79 = vector.shape_cast %76 : vector<32x128xbf16> to vector<1x32x128xbf16>
    tpu.vector_store %arg4[%c0_41, %c0_42, %c0_43], %79 {strides = array<i32>} : memref<4x32x128xbf16, #tpu.memory_space<vmem>>, vector<1x32x128xbf16>,
    %80 = vector.broadcast %66 : vector<1x128xf32> to vector<32x128xf32>
    %81 = arith.mulf %9, %80 : vector<32x128xf32>
    %82 = vector.broadcast %69 : vector<1x128xf32> to vector<32x128xf32>
    %83 = arith.addf %81, %82 : vector<32x128xf32>
    %cst_44 = arith.constant 0.000000e+00 : f32
    %84 = vector.broadcast %cst_44 : f32 to vector<32x128xf32>
    %85 = arith.maximumf %83, %84 : vector<32x128xf32>
    %86 = arith.truncf %85 : vector<32x128xf32> to vector<32x128xbf16>
    %c1_45 = arith.constant 1 : index
    %c0_46 = arith.constant 0 : index
    %c0_47 = arith.constant 0 : index
    %87 = vector.load %arg4[%c1_45, %c0_46, %c0_47] : memref<4x32x128xbf16, #tpu.memory_space<vmem>>, vector<1x32x128xbf16>
    %88 = vector.shape_cast %87 : vector<1x32x128xbf16> to vector<32x128xbf16>
    %89 = vector.shape_cast %86 : vector<32x128xbf16> to vector<1x32x128xbf16>
    tpu.vector_store %arg4[%c1_45, %c0_46, %c0_47], %89 {strides = array<i32>} : memref<4x32x128xbf16, #tpu.memory_space<vmem>>, vector<1x32x128xbf16>,
    %90 = vector.broadcast %66 : vector<1x128xf32> to vector<32x128xf32>
    %91 = arith.mulf %14, %90 : vector<32x128xf32>
    %92 = vector.broadcast %69 : vector<1x128xf32> to vector<32x128xf32>
    %93 = arith.addf %91, %92 : vector<32x128xf32>
    %cst_48 = arith.constant 0.000000e+00 : f32
    %94 = vector.broadcast %cst_48 : f32 to vector<32x128xf32>
    %95 = arith.maximumf %93, %94 : vector<32x128xf32>
    %96 = arith.truncf %95 : vector<32x128xf32> to vector<32x128xbf16>
    %c2_49 = arith.constant 2 : index
    %c0_50 = arith.constant 0 : index
    %c0_51 = arith.constant 0 : index
    %97 = vector.load %arg4[%c2_49, %c0_50, %c0_51] : memref<4x32x128xbf16, #tpu.memory_space<vmem>>, vector<1x32x128xbf16>
    %98 = vector.shape_cast %97 : vector<1x32x128xbf16> to vector<32x128xbf16>
    %99 = vector.shape_cast %96 : vector<32x128xbf16> to vector<1x32x128xbf16>
    tpu.vector_store %arg4[%c2_49, %c0_50, %c0_51], %99 {strides = array<i32>} : memref<4x32x128xbf16, #tpu.memory_space<vmem>>, vector<1x32x128xbf16>,
    %100 = vector.broadcast %66 : vector<1x128xf32> to vector<32x128xf32>
    %101 = arith.mulf %19, %100 : vector<32x128xf32>
    %102 = vector.broadcast %69 : vector<1x128xf32> to vector<32x128xf32>
    %103 = arith.addf %101, %102 : vector<32x128xf32>
    %cst_52 = arith.constant 0.000000e+00 : f32
    %104 = vector.broadcast %cst_52 : f32 to vector<32x128xf32>
    %105 = arith.maximumf %103, %104 : vector<32x128xf32>
    %106 = arith.truncf %105 : vector<32x128xf32> to vector<32x128xbf16>
    %c3_53 = arith.constant 3 : index
    %c0_54 = arith.constant 0 : index
    %c0_55 = arith.constant 0 : index
    %107 = vector.load %arg4[%c3_53, %c0_54, %c0_55] : memref<4x32x128xbf16, #tpu.memory_space<vmem>>, vector<1x32x128xbf16>
    %108 = vector.shape_cast %107 : vector<1x32x128xbf16> to vector<32x128xbf16>
    %109 = vector.shape_cast %106 : vector<32x128xbf16> to vector<1x32x128xbf16>
    tpu.vector_store %arg4[%c3_53, %c0_54, %c0_55], %109 {strides = array<i32>} : memref<4x32x128xbf16, #tpu.memory_space<vmem>>, vector<1x32x128xbf16>,
    return
  }
}

module attributes {stable_mosaic.version = 11 : i64} {
  func.func @_upsample_kernel(%arg0: memref<4x128x128xbf16, #tpu.memory_space<vmem>>, %arg1: memref<4x128x128xbf16, #tpu.memory_space<vmem>>, %arg2: memref<1x128xf32, #tpu.memory_space<vmem>>, %arg3: memref<1x128xf32, #tpu.memory_space<vmem>>, %arg4: memref<4x128x128xbf16, #tpu.memory_space<vmem>>) attributes {dimension_semantics = [], scalar_prefetch = 0 : i64, scratch_operands = 0 : i64, tpu.core_type = #tpu.core_type<tc>} {
    %c0 = arith.constant 0 : index
    %c0_0 = arith.constant 0 : index
    %c0_1 = arith.constant 0 : index
    %0 = vector.load %arg0[%c0, %c0_0, %c0_1] : memref<4x128x128xbf16, #tpu.memory_space<vmem>>, vector<1x128x128xbf16>
    %1 = vector.shape_cast %0 : vector<1x128x128xbf16> to vector<128x128xbf16>
    %c0_2 = arith.constant 0 : index
    %c0_3 = arith.constant 0 : index
    %c0_4 = arith.constant 0 : index
    %2 = vector.load %arg1[%c0_2, %c0_3, %c0_4] : memref<4x128x128xbf16, #tpu.memory_space<vmem>>, vector<1x128x128xbf16>
    %3 = vector.shape_cast %2 : vector<1x128x128xbf16> to vector<128x128xbf16>
    %cst = arith.constant dense<0.000000e+00> : vector<128x128xf32>
    %4 = tpu.matmul %1, %3, %cst {dimension_numbers = #tpu.dot_dimension_numbers<[1], [0], [0], [1], [0, 0, 1, 1], [], []>} : vector<128x128xbf16>, vector<128x128xbf16>, vector<128x128xf32> -> vector<128x128xf32>
    %c1 = arith.constant 1 : index
    %c0_5 = arith.constant 0 : index
    %c0_6 = arith.constant 0 : index
    %5 = vector.load %arg0[%c1, %c0_5, %c0_6] : memref<4x128x128xbf16, #tpu.memory_space<vmem>>, vector<1x128x128xbf16>
    %6 = vector.shape_cast %5 : vector<1x128x128xbf16> to vector<128x128xbf16>
    %c1_7 = arith.constant 1 : index
    %c0_8 = arith.constant 0 : index
    %c0_9 = arith.constant 0 : index
    %7 = vector.load %arg1[%c1_7, %c0_8, %c0_9] : memref<4x128x128xbf16, #tpu.memory_space<vmem>>, vector<1x128x128xbf16>
    %8 = vector.shape_cast %7 : vector<1x128x128xbf16> to vector<128x128xbf16>
    %cst_10 = arith.constant dense<0.000000e+00> : vector<128x128xf32>
    %9 = tpu.matmul %6, %8, %cst_10 {dimension_numbers = #tpu.dot_dimension_numbers<[1], [0], [0], [1], [0, 0, 1, 1], [], []>} : vector<128x128xbf16>, vector<128x128xbf16>, vector<128x128xf32> -> vector<128x128xf32>
    %c2 = arith.constant 2 : index
    %c0_11 = arith.constant 0 : index
    %c0_12 = arith.constant 0 : index
    %10 = vector.load %arg0[%c2, %c0_11, %c0_12] : memref<4x128x128xbf16, #tpu.memory_space<vmem>>, vector<1x128x128xbf16>
    %11 = vector.shape_cast %10 : vector<1x128x128xbf16> to vector<128x128xbf16>
    %c2_13 = arith.constant 2 : index
    %c0_14 = arith.constant 0 : index
    %c0_15 = arith.constant 0 : index
    %12 = vector.load %arg1[%c2_13, %c0_14, %c0_15] : memref<4x128x128xbf16, #tpu.memory_space<vmem>>, vector<1x128x128xbf16>
    %13 = vector.shape_cast %12 : vector<1x128x128xbf16> to vector<128x128xbf16>
    %cst_16 = arith.constant dense<0.000000e+00> : vector<128x128xf32>
    %14 = tpu.matmul %11, %13, %cst_16 {dimension_numbers = #tpu.dot_dimension_numbers<[1], [0], [0], [1], [0, 0, 1, 1], [], []>} : vector<128x128xbf16>, vector<128x128xbf16>, vector<128x128xf32> -> vector<128x128xf32>
    %c3 = arith.constant 3 : index
    %c0_17 = arith.constant 0 : index
    %c0_18 = arith.constant 0 : index
    %15 = vector.load %arg0[%c3, %c0_17, %c0_18] : memref<4x128x128xbf16, #tpu.memory_space<vmem>>, vector<1x128x128xbf16>
    %16 = vector.shape_cast %15 : vector<1x128x128xbf16> to vector<128x128xbf16>
    %c3_19 = arith.constant 3 : index
    %c0_20 = arith.constant 0 : index
    %c0_21 = arith.constant 0 : index
    %17 = vector.load %arg1[%c3_19, %c0_20, %c0_21] : memref<4x128x128xbf16, #tpu.memory_space<vmem>>, vector<1x128x128xbf16>
    %18 = vector.shape_cast %17 : vector<1x128x128xbf16> to vector<128x128xbf16>
    %cst_22 = arith.constant dense<0.000000e+00> : vector<128x128xf32>
    %19 = tpu.matmul %16, %18, %cst_22 {dimension_numbers = #tpu.dot_dimension_numbers<[1], [0], [0], [1], [0, 0, 1, 1], [], []>} : vector<128x128xbf16>, vector<128x128xbf16>, vector<128x128xf32> -> vector<128x128xf32>
    %cst_23 = arith.constant dense<0.000000e+00> : vector<128xf32>
    %20 = vector.multi_reduction <add>, %4, %cst_23 [0] : vector<128x128xf32> to vector<128xf32>
    %21 = vector.shape_cast %20 : vector<128xf32> to vector<1x128xf32>
    %cst_24 = arith.constant 0.000000e+00 : f32
    %22 = vector.broadcast %cst_24 : f32 to vector<1x128xf32>
    %23 = arith.addf %22, %21 : vector<1x128xf32>
    %cst_25 = arith.constant dense<0.000000e+00> : vector<128xf32>
    %24 = vector.multi_reduction <add>, %9, %cst_25 [0] : vector<128x128xf32> to vector<128xf32>
    %25 = vector.shape_cast %24 : vector<128xf32> to vector<1x128xf32>
    %26 = arith.addf %23, %25 : vector<1x128xf32>
    %cst_26 = arith.constant dense<0.000000e+00> : vector<128xf32>
    %27 = vector.multi_reduction <add>, %14, %cst_26 [0] : vector<128x128xf32> to vector<128xf32>
    %28 = vector.shape_cast %27 : vector<128xf32> to vector<1x128xf32>
    %29 = arith.addf %26, %28 : vector<1x128xf32>
    %cst_27 = arith.constant dense<0.000000e+00> : vector<128xf32>
    %30 = vector.multi_reduction <add>, %19, %cst_27 [0] : vector<128x128xf32> to vector<128xf32>
    %31 = vector.shape_cast %30 : vector<128xf32> to vector<1x128xf32>
    %32 = arith.addf %29, %31 : vector<1x128xf32>
    %cst_28 = arith.constant 5.120000e+02 : f32
    %33 = vector.broadcast %cst_28 : f32 to vector<1x128xf32>
    %34 = arith.divf %32, %33 : vector<1x128xf32>
    %35 = vector.broadcast %34 : vector<1x128xf32> to vector<128x128xf32>
    %36 = arith.subf %4, %35 : vector<128x128xf32>
    %37 = arith.mulf %36, %36 : vector<128x128xf32>
    %cst_29 = arith.constant dense<0.000000e+00> : vector<128xf32>
    %38 = vector.multi_reduction <add>, %37, %cst_29 [0] : vector<128x128xf32> to vector<128xf32>
    %39 = vector.shape_cast %38 : vector<128xf32> to vector<1x128xf32>
    %cst_30 = arith.constant 0.000000e+00 : f32
    %40 = vector.broadcast %cst_30 : f32 to vector<1x128xf32>
    %41 = arith.addf %40, %39 : vector<1x128xf32>
    %42 = vector.broadcast %34 : vector<1x128xf32> to vector<128x128xf32>
    %43 = arith.subf %9, %42 : vector<128x128xf32>
    %44 = arith.mulf %43, %43 : vector<128x128xf32>
    %cst_31 = arith.constant dense<0.000000e+00> : vector<128xf32>
    %45 = vector.multi_reduction <add>, %44, %cst_31 [0] : vector<128x128xf32> to vector<128xf32>
    %46 = vector.shape_cast %45 : vector<128xf32> to vector<1x128xf32>
    %47 = arith.addf %41, %46 : vector<1x128xf32>
    %48 = vector.broadcast %34 : vector<1x128xf32> to vector<128x128xf32>
    %49 = arith.subf %14, %48 : vector<128x128xf32>
    %50 = arith.mulf %49, %49 : vector<128x128xf32>
    %cst_32 = arith.constant dense<0.000000e+00> : vector<128xf32>
    %51 = vector.multi_reduction <add>, %50, %cst_32 [0] : vector<128x128xf32> to vector<128xf32>
    %52 = vector.shape_cast %51 : vector<128xf32> to vector<1x128xf32>
    %53 = arith.addf %47, %52 : vector<1x128xf32>
    %54 = vector.broadcast %34 : vector<1x128xf32> to vector<128x128xf32>
    %55 = arith.subf %19, %54 : vector<128x128xf32>
    %56 = arith.mulf %55, %55 : vector<128x128xf32>
    %cst_33 = arith.constant dense<0.000000e+00> : vector<128xf32>
    %57 = vector.multi_reduction <add>, %56, %cst_33 [0] : vector<128x128xf32> to vector<128xf32>
    %58 = vector.shape_cast %57 : vector<128xf32> to vector<1x128xf32>
    %59 = arith.addf %53, %58 : vector<1x128xf32>
    %cst_34 = arith.constant 5.120000e+02 : f32
    %60 = vector.broadcast %cst_34 : f32 to vector<1x128xf32>
    %61 = arith.divf %59, %60 : vector<1x128xf32>
    %cst_35 = arith.constant 9.99999974E-6 : f32
    %62 = vector.broadcast %cst_35 : f32 to vector<1x128xf32>
    %63 = arith.addf %61, %62 : vector<1x128xf32>
    %64 = math.rsqrt %63 : vector<1x128xf32>
    %c0_36 = arith.constant 0 : index
    %c0_37 = arith.constant 0 : index
    %65 = vector.load %arg2[%c0_36, %c0_37] : memref<1x128xf32, #tpu.memory_space<vmem>>, vector<1x128xf32>
    %66 = arith.mulf %64, %65 : vector<1x128xf32>
    %c0_38 = arith.constant 0 : index
    %c0_39 = arith.constant 0 : index
    %67 = vector.load %arg3[%c0_38, %c0_39] : memref<1x128xf32, #tpu.memory_space<vmem>>, vector<1x128xf32>
    %68 = arith.mulf %34, %66 : vector<1x128xf32>
    %69 = arith.subf %67, %68 : vector<1x128xf32>
    %70 = vector.broadcast %66 : vector<1x128xf32> to vector<128x128xf32>
    %71 = arith.mulf %4, %70 : vector<128x128xf32>
    %72 = vector.broadcast %69 : vector<1x128xf32> to vector<128x128xf32>
    %73 = arith.addf %71, %72 : vector<128x128xf32>
    %cst_40 = arith.constant 0.000000e+00 : f32
    %74 = vector.broadcast %cst_40 : f32 to vector<128x128xf32>
    %75 = arith.maximumf %73, %74 : vector<128x128xf32>
    %76 = arith.truncf %75 : vector<128x128xf32> to vector<128x128xbf16>
    %c0_41 = arith.constant 0 : index
    %c0_42 = arith.constant 0 : index
    %c0_43 = arith.constant 0 : index
    %77 = vector.load %arg4[%c0_41, %c0_42, %c0_43] : memref<4x128x128xbf16, #tpu.memory_space<vmem>>, vector<1x128x128xbf16>
    %78 = vector.shape_cast %77 : vector<1x128x128xbf16> to vector<128x128xbf16>
    %79 = vector.shape_cast %76 : vector<128x128xbf16> to vector<1x128x128xbf16>
    tpu.vector_store %arg4[%c0_41, %c0_42, %c0_43], %79 {strides = array<i32>} : memref<4x128x128xbf16, #tpu.memory_space<vmem>>, vector<1x128x128xbf16>,
    %80 = vector.broadcast %66 : vector<1x128xf32> to vector<128x128xf32>
    %81 = arith.mulf %9, %80 : vector<128x128xf32>
    %82 = vector.broadcast %69 : vector<1x128xf32> to vector<128x128xf32>
    %83 = arith.addf %81, %82 : vector<128x128xf32>
    %cst_44 = arith.constant 0.000000e+00 : f32
    %84 = vector.broadcast %cst_44 : f32 to vector<128x128xf32>
    %85 = arith.maximumf %83, %84 : vector<128x128xf32>
    %86 = arith.truncf %85 : vector<128x128xf32> to vector<128x128xbf16>
    %c1_45 = arith.constant 1 : index
    %c0_46 = arith.constant 0 : index
    %c0_47 = arith.constant 0 : index
    %87 = vector.load %arg4[%c1_45, %c0_46, %c0_47] : memref<4x128x128xbf16, #tpu.memory_space<vmem>>, vector<1x128x128xbf16>
    %88 = vector.shape_cast %87 : vector<1x128x128xbf16> to vector<128x128xbf16>
    %89 = vector.shape_cast %86 : vector<128x128xbf16> to vector<1x128x128xbf16>
    tpu.vector_store %arg4[%c1_45, %c0_46, %c0_47], %89 {strides = array<i32>} : memref<4x128x128xbf16, #tpu.memory_space<vmem>>, vector<1x128x128xbf16>,
    %90 = vector.broadcast %66 : vector<1x128xf32> to vector<128x128xf32>
    %91 = arith.mulf %14, %90 : vector<128x128xf32>
    %92 = vector.broadcast %69 : vector<1x128xf32> to vector<128x128xf32>
    %93 = arith.addf %91, %92 : vector<128x128xf32>
    %cst_48 = arith.constant 0.000000e+00 : f32
    %94 = vector.broadcast %cst_48 : f32 to vector<128x128xf32>
    %95 = arith.maximumf %93, %94 : vector<128x128xf32>
    %96 = arith.truncf %95 : vector<128x128xf32> to vector<128x128xbf16>
    %c2_49 = arith.constant 2 : index
    %c0_50 = arith.constant 0 : index
    %c0_51 = arith.constant 0 : index
    %97 = vector.load %arg4[%c2_49, %c0_50, %c0_51] : memref<4x128x128xbf16, #tpu.memory_space<vmem>>, vector<1x128x128xbf16>
    %98 = vector.shape_cast %97 : vector<1x128x128xbf16> to vector<128x128xbf16>
    %99 = vector.shape_cast %96 : vector<128x128xbf16> to vector<1x128x128xbf16>
    tpu.vector_store %arg4[%c2_49, %c0_50, %c0_51], %99 {strides = array<i32>} : memref<4x128x128xbf16, #tpu.memory_space<vmem>>, vector<1x128x128xbf16>,
    %100 = vector.broadcast %66 : vector<1x128xf32> to vector<128x128xf32>
    %101 = arith.mulf %19, %100 : vector<128x128xf32>
    %102 = vector.broadcast %69 : vector<1x128xf32> to vector<128x128xf32>
    %103 = arith.addf %101, %102 : vector<128x128xf32>
    %cst_52 = arith.constant 0.000000e+00 : f32
    %104 = vector.broadcast %cst_52 : f32 to vector<128x128xf32>
    %105 = arith.maximumf %103, %104 : vector<128x128xf32>
    %106 = arith.truncf %105 : vector<128x128xf32> to vector<128x128xbf16>
    %c3_53 = arith.constant 3 : index
    %c0_54 = arith.constant 0 : index
    %c0_55 = arith.constant 0 : index
    %107 = vector.load %arg4[%c3_53, %c0_54, %c0_55] : memref<4x128x128xbf16, #tpu.memory_space<vmem>>, vector<1x128x128xbf16>
    %108 = vector.shape_cast %107 : vector<1x128x128xbf16> to vector<128x128xbf16>
    %109 = vector.shape_cast %106 : vector<128x128xbf16> to vector<1x128x128xbf16>
    tpu.vector_store %arg4[%c3_53, %c0_54, %c0_55], %109 {strides = array<i32>} : memref<4x128x128xbf16, #tpu.memory_space<vmem>>, vector<1x128x128xbf16>,
    return
  }
}

module attributes {stable_mosaic.version = 11 : i64} {
  func.func @_upsample_kernel(%arg0: memref<4x512x64xbf16, #tpu.memory_space<vmem>>, %arg1: memref<4x64x128xbf16, #tpu.memory_space<vmem>>, %arg2: memref<1x128xf32, #tpu.memory_space<vmem>>, %arg3: memref<1x128xf32, #tpu.memory_space<vmem>>, %arg4: memref<4x512x128xbf16, #tpu.memory_space<vmem>>) attributes {dimension_semantics = [], scalar_prefetch = 0 : i64, scratch_operands = 0 : i64, tpu.core_type = #tpu.core_type<tc>} {
    %c0 = arith.constant 0 : index
    %c0_0 = arith.constant 0 : index
    %c0_1 = arith.constant 0 : index
    %0 = vector.load %arg0[%c0, %c0_0, %c0_1] : memref<4x512x64xbf16, #tpu.memory_space<vmem>>, vector<1x512x64xbf16>
    %1 = vector.shape_cast %0 : vector<1x512x64xbf16> to vector<512x64xbf16>
    %c0_2 = arith.constant 0 : index
    %c0_3 = arith.constant 0 : index
    %c0_4 = arith.constant 0 : index
    %2 = vector.load %arg1[%c0_2, %c0_3, %c0_4] : memref<4x64x128xbf16, #tpu.memory_space<vmem>>, vector<1x64x128xbf16>
    %3 = vector.shape_cast %2 : vector<1x64x128xbf16> to vector<64x128xbf16>
    %cst = arith.constant dense<0.000000e+00> : vector<512x128xf32>
    %4 = tpu.matmul %1, %3, %cst {dimension_numbers = #tpu.dot_dimension_numbers<[1], [0], [0], [1], [0, 0, 1, 1], [], []>} : vector<512x64xbf16>, vector<64x128xbf16>, vector<512x128xf32> -> vector<512x128xf32>
    %c1 = arith.constant 1 : index
    %c0_5 = arith.constant 0 : index
    %c0_6 = arith.constant 0 : index
    %5 = vector.load %arg0[%c1, %c0_5, %c0_6] : memref<4x512x64xbf16, #tpu.memory_space<vmem>>, vector<1x512x64xbf16>
    %6 = vector.shape_cast %5 : vector<1x512x64xbf16> to vector<512x64xbf16>
    %c1_7 = arith.constant 1 : index
    %c0_8 = arith.constant 0 : index
    %c0_9 = arith.constant 0 : index
    %7 = vector.load %arg1[%c1_7, %c0_8, %c0_9] : memref<4x64x128xbf16, #tpu.memory_space<vmem>>, vector<1x64x128xbf16>
    %8 = vector.shape_cast %7 : vector<1x64x128xbf16> to vector<64x128xbf16>
    %cst_10 = arith.constant dense<0.000000e+00> : vector<512x128xf32>
    %9 = tpu.matmul %6, %8, %cst_10 {dimension_numbers = #tpu.dot_dimension_numbers<[1], [0], [0], [1], [0, 0, 1, 1], [], []>} : vector<512x64xbf16>, vector<64x128xbf16>, vector<512x128xf32> -> vector<512x128xf32>
    %c2 = arith.constant 2 : index
    %c0_11 = arith.constant 0 : index
    %c0_12 = arith.constant 0 : index
    %10 = vector.load %arg0[%c2, %c0_11, %c0_12] : memref<4x512x64xbf16, #tpu.memory_space<vmem>>, vector<1x512x64xbf16>
    %11 = vector.shape_cast %10 : vector<1x512x64xbf16> to vector<512x64xbf16>
    %c2_13 = arith.constant 2 : index
    %c0_14 = arith.constant 0 : index
    %c0_15 = arith.constant 0 : index
    %12 = vector.load %arg1[%c2_13, %c0_14, %c0_15] : memref<4x64x128xbf16, #tpu.memory_space<vmem>>, vector<1x64x128xbf16>
    %13 = vector.shape_cast %12 : vector<1x64x128xbf16> to vector<64x128xbf16>
    %cst_16 = arith.constant dense<0.000000e+00> : vector<512x128xf32>
    %14 = tpu.matmul %11, %13, %cst_16 {dimension_numbers = #tpu.dot_dimension_numbers<[1], [0], [0], [1], [0, 0, 1, 1], [], []>} : vector<512x64xbf16>, vector<64x128xbf16>, vector<512x128xf32> -> vector<512x128xf32>
    %c3 = arith.constant 3 : index
    %c0_17 = arith.constant 0 : index
    %c0_18 = arith.constant 0 : index
    %15 = vector.load %arg0[%c3, %c0_17, %c0_18] : memref<4x512x64xbf16, #tpu.memory_space<vmem>>, vector<1x512x64xbf16>
    %16 = vector.shape_cast %15 : vector<1x512x64xbf16> to vector<512x64xbf16>
    %c3_19 = arith.constant 3 : index
    %c0_20 = arith.constant 0 : index
    %c0_21 = arith.constant 0 : index
    %17 = vector.load %arg1[%c3_19, %c0_20, %c0_21] : memref<4x64x128xbf16, #tpu.memory_space<vmem>>, vector<1x64x128xbf16>
    %18 = vector.shape_cast %17 : vector<1x64x128xbf16> to vector<64x128xbf16>
    %cst_22 = arith.constant dense<0.000000e+00> : vector<512x128xf32>
    %19 = tpu.matmul %16, %18, %cst_22 {dimension_numbers = #tpu.dot_dimension_numbers<[1], [0], [0], [1], [0, 0, 1, 1], [], []>} : vector<512x64xbf16>, vector<64x128xbf16>, vector<512x128xf32> -> vector<512x128xf32>
    %cst_23 = arith.constant dense<0.000000e+00> : vector<128xf32>
    %20 = vector.multi_reduction <add>, %4, %cst_23 [0] : vector<512x128xf32> to vector<128xf32>
    %21 = vector.shape_cast %20 : vector<128xf32> to vector<1x128xf32>
    %cst_24 = arith.constant 0.000000e+00 : f32
    %22 = vector.broadcast %cst_24 : f32 to vector<1x128xf32>
    %23 = arith.addf %22, %21 : vector<1x128xf32>
    %cst_25 = arith.constant dense<0.000000e+00> : vector<128xf32>
    %24 = vector.multi_reduction <add>, %9, %cst_25 [0] : vector<512x128xf32> to vector<128xf32>
    %25 = vector.shape_cast %24 : vector<128xf32> to vector<1x128xf32>
    %26 = arith.addf %23, %25 : vector<1x128xf32>
    %cst_26 = arith.constant dense<0.000000e+00> : vector<128xf32>
    %27 = vector.multi_reduction <add>, %14, %cst_26 [0] : vector<512x128xf32> to vector<128xf32>
    %28 = vector.shape_cast %27 : vector<128xf32> to vector<1x128xf32>
    %29 = arith.addf %26, %28 : vector<1x128xf32>
    %cst_27 = arith.constant dense<0.000000e+00> : vector<128xf32>
    %30 = vector.multi_reduction <add>, %19, %cst_27 [0] : vector<512x128xf32> to vector<128xf32>
    %31 = vector.shape_cast %30 : vector<128xf32> to vector<1x128xf32>
    %32 = arith.addf %29, %31 : vector<1x128xf32>
    %cst_28 = arith.constant 2.048000e+03 : f32
    %33 = vector.broadcast %cst_28 : f32 to vector<1x128xf32>
    %34 = arith.divf %32, %33 : vector<1x128xf32>
    %35 = vector.broadcast %34 : vector<1x128xf32> to vector<512x128xf32>
    %36 = arith.subf %4, %35 : vector<512x128xf32>
    %37 = arith.mulf %36, %36 : vector<512x128xf32>
    %cst_29 = arith.constant dense<0.000000e+00> : vector<128xf32>
    %38 = vector.multi_reduction <add>, %37, %cst_29 [0] : vector<512x128xf32> to vector<128xf32>
    %39 = vector.shape_cast %38 : vector<128xf32> to vector<1x128xf32>
    %cst_30 = arith.constant 0.000000e+00 : f32
    %40 = vector.broadcast %cst_30 : f32 to vector<1x128xf32>
    %41 = arith.addf %40, %39 : vector<1x128xf32>
    %42 = vector.broadcast %34 : vector<1x128xf32> to vector<512x128xf32>
    %43 = arith.subf %9, %42 : vector<512x128xf32>
    %44 = arith.mulf %43, %43 : vector<512x128xf32>
    %cst_31 = arith.constant dense<0.000000e+00> : vector<128xf32>
    %45 = vector.multi_reduction <add>, %44, %cst_31 [0] : vector<512x128xf32> to vector<128xf32>
    %46 = vector.shape_cast %45 : vector<128xf32> to vector<1x128xf32>
    %47 = arith.addf %41, %46 : vector<1x128xf32>
    %48 = vector.broadcast %34 : vector<1x128xf32> to vector<512x128xf32>
    %49 = arith.subf %14, %48 : vector<512x128xf32>
    %50 = arith.mulf %49, %49 : vector<512x128xf32>
    %cst_32 = arith.constant dense<0.000000e+00> : vector<128xf32>
    %51 = vector.multi_reduction <add>, %50, %cst_32 [0] : vector<512x128xf32> to vector<128xf32>
    %52 = vector.shape_cast %51 : vector<128xf32> to vector<1x128xf32>
    %53 = arith.addf %47, %52 : vector<1x128xf32>
    %54 = vector.broadcast %34 : vector<1x128xf32> to vector<512x128xf32>
    %55 = arith.subf %19, %54 : vector<512x128xf32>
    %56 = arith.mulf %55, %55 : vector<512x128xf32>
    %cst_33 = arith.constant dense<0.000000e+00> : vector<128xf32>
    %57 = vector.multi_reduction <add>, %56, %cst_33 [0] : vector<512x128xf32> to vector<128xf32>
    %58 = vector.shape_cast %57 : vector<128xf32> to vector<1x128xf32>
    %59 = arith.addf %53, %58 : vector<1x128xf32>
    %cst_34 = arith.constant 2.048000e+03 : f32
    %60 = vector.broadcast %cst_34 : f32 to vector<1x128xf32>
    %61 = arith.divf %59, %60 : vector<1x128xf32>
    %cst_35 = arith.constant 9.99999974E-6 : f32
    %62 = vector.broadcast %cst_35 : f32 to vector<1x128xf32>
    %63 = arith.addf %61, %62 : vector<1x128xf32>
    %64 = math.rsqrt %63 : vector<1x128xf32>
    %c0_36 = arith.constant 0 : index
    %c0_37 = arith.constant 0 : index
    %65 = vector.load %arg2[%c0_36, %c0_37] : memref<1x128xf32, #tpu.memory_space<vmem>>, vector<1x128xf32>
    %66 = arith.mulf %64, %65 : vector<1x128xf32>
    %c0_38 = arith.constant 0 : index
    %c0_39 = arith.constant 0 : index
    %67 = vector.load %arg3[%c0_38, %c0_39] : memref<1x128xf32, #tpu.memory_space<vmem>>, vector<1x128xf32>
    %68 = arith.mulf %34, %66 : vector<1x128xf32>
    %69 = arith.subf %67, %68 : vector<1x128xf32>
    %70 = vector.broadcast %66 : vector<1x128xf32> to vector<512x128xf32>
    %71 = arith.mulf %4, %70 : vector<512x128xf32>
    %72 = vector.broadcast %69 : vector<1x128xf32> to vector<512x128xf32>
    %73 = arith.addf %71, %72 : vector<512x128xf32>
    %cst_40 = arith.constant 0.000000e+00 : f32
    %74 = vector.broadcast %cst_40 : f32 to vector<512x128xf32>
    %75 = arith.maximumf %73, %74 : vector<512x128xf32>
    %76 = arith.truncf %75 : vector<512x128xf32> to vector<512x128xbf16>
    %c0_41 = arith.constant 0 : index
    %c0_42 = arith.constant 0 : index
    %c0_43 = arith.constant 0 : index
    %77 = vector.load %arg4[%c0_41, %c0_42, %c0_43] : memref<4x512x128xbf16, #tpu.memory_space<vmem>>, vector<1x512x128xbf16>
    %78 = vector.shape_cast %77 : vector<1x512x128xbf16> to vector<512x128xbf16>
    %79 = vector.shape_cast %76 : vector<512x128xbf16> to vector<1x512x128xbf16>
    tpu.vector_store %arg4[%c0_41, %c0_42, %c0_43], %79 {strides = array<i32>} : memref<4x512x128xbf16, #tpu.memory_space<vmem>>, vector<1x512x128xbf16>,
    %80 = vector.broadcast %66 : vector<1x128xf32> to vector<512x128xf32>
    %81 = arith.mulf %9, %80 : vector<512x128xf32>
    %82 = vector.broadcast %69 : vector<1x128xf32> to vector<512x128xf32>
    %83 = arith.addf %81, %82 : vector<512x128xf32>
    %cst_44 = arith.constant 0.000000e+00 : f32
    %84 = vector.broadcast %cst_44 : f32 to vector<512x128xf32>
    %85 = arith.maximumf %83, %84 : vector<512x128xf32>
    %86 = arith.truncf %85 : vector<512x128xf32> to vector<512x128xbf16>
    %c1_45 = arith.constant 1 : index
    %c0_46 = arith.constant 0 : index
    %c0_47 = arith.constant 0 : index
    %87 = vector.load %arg4[%c1_45, %c0_46, %c0_47] : memref<4x512x128xbf16, #tpu.memory_space<vmem>>, vector<1x512x128xbf16>
    %88 = vector.shape_cast %87 : vector<1x512x128xbf16> to vector<512x128xbf16>
    %89 = vector.shape_cast %86 : vector<512x128xbf16> to vector<1x512x128xbf16>
    tpu.vector_store %arg4[%c1_45, %c0_46, %c0_47], %89 {strides = array<i32>} : memref<4x512x128xbf16, #tpu.memory_space<vmem>>, vector<1x512x128xbf16>,
    %90 = vector.broadcast %66 : vector<1x128xf32> to vector<512x128xf32>
    %91 = arith.mulf %14, %90 : vector<512x128xf32>
    %92 = vector.broadcast %69 : vector<1x128xf32> to vector<512x128xf32>
    %93 = arith.addf %91, %92 : vector<512x128xf32>
    %cst_48 = arith.constant 0.000000e+00 : f32
    %94 = vector.broadcast %cst_48 : f32 to vector<512x128xf32>
    %95 = arith.maximumf %93, %94 : vector<512x128xf32>
    %96 = arith.truncf %95 : vector<512x128xf32> to vector<512x128xbf16>
    %c2_49 = arith.constant 2 : index
    %c0_50 = arith.constant 0 : index
    %c0_51 = arith.constant 0 : index
    %97 = vector.load %arg4[%c2_49, %c0_50, %c0_51] : memref<4x512x128xbf16, #tpu.memory_space<vmem>>, vector<1x512x128xbf16>
    %98 = vector.shape_cast %97 : vector<1x512x128xbf16> to vector<512x128xbf16>
    %99 = vector.shape_cast %96 : vector<512x128xbf16> to vector<1x512x128xbf16>
    tpu.vector_store %arg4[%c2_49, %c0_50, %c0_51], %99 {strides = array<i32>} : memref<4x512x128xbf16, #tpu.memory_space<vmem>>, vector<1x512x128xbf16>,
    %100 = vector.broadcast %66 : vector<1x128xf32> to vector<512x128xf32>
    %101 = arith.mulf %19, %100 : vector<512x128xf32>
    %102 = vector.broadcast %69 : vector<1x128xf32> to vector<512x128xf32>
    %103 = arith.addf %101, %102 : vector<512x128xf32>
    %cst_52 = arith.constant 0.000000e+00 : f32
    %104 = vector.broadcast %cst_52 : f32 to vector<512x128xf32>
    %105 = arith.maximumf %103, %104 : vector<512x128xf32>
    %106 = arith.truncf %105 : vector<512x128xf32> to vector<512x128xbf16>
    %c3_53 = arith.constant 3 : index
    %c0_54 = arith.constant 0 : index
    %c0_55 = arith.constant 0 : index
    %107 = vector.load %arg4[%c3_53, %c0_54, %c0_55] : memref<4x512x128xbf16, #tpu.memory_space<vmem>>, vector<1x512x128xbf16>
    %108 = vector.shape_cast %107 : vector<1x512x128xbf16> to vector<512x128xbf16>
    %109 = vector.shape_cast %106 : vector<512x128xbf16> to vector<1x512x128xbf16>
    tpu.vector_store %arg4[%c3_53, %c0_54, %c0_55], %109 {strides = array<i32>} : memref<4x512x128xbf16, #tpu.memory_space<vmem>>, vector<1x512x128xbf16>,
    return
  }
}

module attributes {stable_mosaic.version = 11 : i64} {
  func.func @_final_kernel(%arg0: memref<3x72xbf16, #tpu.memory_space<vmem>>, %arg1: memref<72x2048xbf16, #tpu.memory_space<vmem>>, %arg2: memref<3x2048xf32, #tpu.memory_space<vmem>>) attributes {dimension_semantics = [], scalar_prefetch = 0 : i64, scratch_operands = 0 : i64, tpu.core_type = #tpu.core_type<tc>} {
    %c0 = arith.constant 0 : index
    %c0_0 = arith.constant 0 : index
    %0 = vector.load %arg0[%c0, %c0_0] : memref<3x72xbf16, #tpu.memory_space<vmem>>, vector<3x72xbf16>
    %c0_1 = arith.constant 0 : index
    %c0_2 = arith.constant 0 : index
    %1 = vector.load %arg1[%c0_1, %c0_2] : memref<72x2048xbf16, #tpu.memory_space<vmem>>, vector<72x2048xbf16>
    %cst = arith.constant dense<0.000000e+00> : vector<3x2048xf32>
    %2 = tpu.matmul %0, %1, %cst {dimension_numbers = #tpu.dot_dimension_numbers<[1], [0], [0], [1], [0, 0, 1, 1], [], []>} : vector<3x72xbf16>, vector<72x2048xbf16>, vector<3x2048xf32> -> vector<3x2048xf32>
    %3 = math.tanh %2 : vector<3x2048xf32>
    %c0_3 = arith.constant 0 : index
    %c0_4 = arith.constant 0 : index
    %4 = vector.load %arg2[%c0_3, %c0_4] : memref<3x2048xf32, #tpu.memory_space<vmem>>, vector<3x2048xf32>
    tpu.vector_store %arg2[%c0_3, %c0_4], %3 {strides = array<i32>} : memref<3x2048xf32, #tpu.memory_space<vmem>>, vector<3x2048xf32>,
    return
  }
}

</mosaic_0001>

<bundles_post_ra>
// kernel: _forward_jit.6
= control target key start
LH: loop header
LB: loop body
LE: loop exit
PB: predicated region body
PF: predicated region fallthrough
CT: control target
= control target key end

     0   :  { %v261_v1 = vmov 0   ;;  %vm43_vm0 = vcmask 130048   ;;  %vm129_vm1 = vcmask 1041408   ;;  %s348_s1 = inlined_call_operand.vmem [shape: bf16[16,512], index: 1, kind: input, shape index: {}]   ;;  %s349_s0 = inlined_call_operand.vmem [shape: bf16[2,16], index: 0, kind: input, shape index: {}]   ;;  %s350_s2 = inlined_call_operand.vmem [shape: f32[1,128], index: 2, kind: input, shape index: {}]   ;;  %s351_s3 = inlined_call_operand.vmem [shape: f32[1,128], index: 3, kind: input, shape index: {}]   ;;  %s352_s4 = inlined_call_operand.vmem [shape: bf16[2,512], index: 4, kind: output, shape index: {}]  }
   0x1   :  { %v253_v0 = vld [vmem:[%s348_s1 + $0x4] ss:$16 sps:$4 sm:$0xff]   ;;  %79 = vmatprep.mubr.bf16.mxu0 %v261_v1  ;;  %120 = vmatprep.mubr.bf16.mxu1 %v261_v1  ;;  %v255_v2 = vld [vmem:[%s348_s1 + $0xc] ss:$16 sps:$4 sm:$0xff]   ;;  %v257_v3 = vld [vmem:[%s348_s1] ss:$16 sps:$4 sm:$0xff]  }
   0x2   :  { %47 = vmatprep.subr.bf16.mxu0 %v253_v0  ;;  %v258_v4 = vld [vmem:[%s348_s1 + $0x8] ss:$16 sps:$4 sm:$0xff]   ;;  %88 = vmatprep.subr.bf16.mxu1 %v255_v2  ;;  %v18_v5 = vld [vmem:[%s349_s0] sm:$0x1] }
   0x3   :  { %48 = vmatpush1.bf16.msra.mxu0 %v257_v3  ;;  %89 = vmatpush1.bf16.msra.mxu1 %v258_v4 }
   0x6   :  { %250 = vmatmul.mubr.msk.bf16.vlgmr.msra.gmra.mrb[0].mxu0 %vm43_vm0, %v18_v5  ;;  %251 = vmatmul.mubr.msk.bf16.vlgmr.msra.gmra.mrb[0].mxu1 %vm43_vm0, %v18_v5 }
  0xd9   :  { %v302_v6 = vpop.f32.mrb[0].mxu0  ;;  %v304_v7 = vpop.f32.mrb[0].mxu1 }
  0xda   :  { %v130_v8 = vsel %vm129_vm1, %v302_v6, 0.0  ;;  %v146_v9 = vsel %vm129_vm1, %v304_v7, 0.0  ;;  %v310_v10 = vpop.f32.mrb[1].mxu0  ;;  %v312_v11 = vpop.f32.mrb[1].mxu1 }
  0xdb   :  { %v131_v12 = vrot.slane %v130_v8, 4  ;;  %v147_v13 = vrot.slane %v146_v9, 4  ;;  %v138_v14 = vsel %vm129_vm1, %v310_v10, 0.0  ;;  %v154_v15 = vsel %vm129_vm1, %v312_v11, 0.0  ;;  %v85_v16 = vpop.f32.mrb[2].mxu0  ;;  %v126_v17 = vpop.f32.mrb[2].mxu1 }
  0xdc   :  { %v139_v18 = vrot.slane %v138_v14, 4  ;;  %v155_v19 = vrot.slane %v154_v15, 4  ;;  %v86_v20 = vpop.f32.mrb[3].mxu0  ;;  %v127_v21 = vpop.f32.mrb[3].mxu1 }
  0xdd   :  { %v132_v22 = vadd.f32 %v131_v12, %v130_v8  ;;  %v148_v23 = vadd.f32 %v147_v13, %v146_v9 }
  0xde   :  { %v140_v24 = vadd.f32 %v139_v18, %v138_v14  ;;  %v156_v25 = vadd.f32 %v155_v19, %v154_v15 }
  0xdf   :  { %v133_v26 = vrot.slane %v132_v22, 2  ;;  %v149_v27 = vrot.slane %v148_v23, 2 }
  0xe0   :  { %v141_v28 = vrot.slane %v140_v24, 2  ;;  %v157_v29 = vrot.slane %v156_v25, 2 }
  0xe1   :  { %v134_v30 = vadd.f32 %v133_v26, %v132_v22  ;;  %v150_v31 = vadd.f32 %v149_v27, %v148_v23  ;;  %v212_v27 = vlaneseq }
  0xe2   :  { %v142_v32 = vadd.f32 %v141_v28, %v140_v24  ;;  %v158_v33 = vadd.f32 %v157_v29, %v156_v25  ;;  %v207_v29 = vld [vmem:[%s350_s2] sm:$0x1] }
  0xe3   :  { %v135_v34 = vrot.slane %v134_v30, 1  ;;  %v151_v35 = vrot.slane %v150_v31, 1  ;;  %v213_v28 = vshrl.u32 %v212_v27, 7 }
  0xe4   :  { %v143_v36 = vrot.slane %v142_v32, 1  ;;  %v159_v39 = vrot.slane %v158_v33, 1 }
  0xe5   :  { %v136_v37 = vadd.f32 %v135_v34, %v134_v30  ;;  %v152_v40 = vadd.f32 %v151_v35, %v150_v31  ;;  %v214_v30 = vsub.s32 0, %v213_v28 }
  0xe6   :  { %v144_v38 = vadd.f32 %v143_v36, %v142_v32  ;;  %v160_v43 = vadd.f32 %v159_v39, %v158_v33  ;;  %v209_v33 = vld [vmem:[%s351_s3] sm:$0x1] }
  0xe8   :  { %v145_v41 = vadd.f32 %v144_v38, %v136_v37 }
  0xea   :  { %v153_v42 = vadd.f32 %v152_v40, %v145_v41 }
  0xec   :  { %v161_v44 = vadd.f32 %v160_v43, %v153_v42 }
  0xee   :  { %v163_v45 = vmul.f32 0.125, %v161_v44 }
  0xf0   :  { %v164_v46 = vsub.f32 %v302_v6, %v163_v45  ;;  %v174_v47 = vsub.f32 %v310_v10, %v163_v45  ;;  %v184_v48 = vsub.f32 %v304_v7, %v163_v45  ;;  %v194_v49 = vsub.f32 %v312_v11, %v163_v45 }
  0xf2   :  { %v165_v50 = vmul.f32 %v164_v46, %v164_v46  ;;  %v175_v51 = vmul.f32 %v174_v47, %v174_v47  ;;  %v185_v52 = vmul.f32 %v184_v48, %v184_v48  ;;  %v195_v53 = vmul.f32 %v194_v49, %v194_v49 }
  0xf4   :  { %v166_v54 = vsel %vm129_vm1, %v165_v50, 0.0  ;;  %v176_v55 = vsel %vm129_vm1, %v175_v51, 0.0  ;;  %v186_v56 = vsel %vm129_vm1, %v185_v52, 0.0  ;;  %v196_v57 = vsel %vm129_vm1, %v195_v53, 0.0 }
  0xf5   :  { %v167_v58 = vrot.slane %v166_v54, 4  ;;  %v177_v59 = vrot.slane %v176_v55, 4  ;;  %v187_v60 = vrot.slane %v186_v56, 4  ;;  %v197_v61 = vrot.slane %v196_v57, 4 }
  0xf7   :  { %v168_v62 = vadd.f32 %v167_v58, %v166_v54  ;;  %v178_v63 = vadd.f32 %v177_v59, %v176_v55  ;;  %v188_v0 = vadd.f32 %v187_v60, %v186_v56  ;;  %v198_v1 = vadd.f32 %v197_v61, %v196_v57 }
  0xf9   :  { %v169_v2 = vrot.slane %v168_v62, 2  ;;  %v179_v3 = vrot.slane %v178_v63, 2  ;;  %v189_v4 = vrot.slane %v188_v0, 2  ;;  %v199_v5 = vrot.slane %v198_v1, 2 }
  0xfb   :  { %v170_v8 = vadd.f32 %v169_v2, %v168_v62  ;;  %v180_v9 = vadd.f32 %v179_v3, %v178_v63  ;;  %v190_v12 = vadd.f32 %v189_v4, %v188_v0  ;;  %v200_v13 = vadd.f32 %v199_v5, %v198_v1 }
  0xfd   :  { %v171_v14 = vrot.slane %v170_v8, 1  ;;  %v181_v15 = vrot.slane %v180_v9, 1  ;;  %v191_v16 = vrot.slane %v190_v12, 1  ;;  %v201_v19 = vrot.slane %v200_v13, 1 }
  0xff   :  { %v172_v17 = vadd.f32 %v171_v14, %v170_v8  ;;  %v182_v18 = vadd.f32 %v181_v15, %v180_v9  ;;  %v192_v21 = vadd.f32 %v191_v16, %v190_v12  ;;  %v202_v23 = vadd.f32 %v201_v19, %v200_v13 }
 0x101   :  { %v183_v20 = vadd.f32 %v182_v18, %v172_v17 }
 0x103   :  { %v193_v22 = vadd.f32 %v192_v21, %v183_v20 }
 0x105   :  { %v203_v24 = vadd.f32 %v202_v23, %v193_v22 }
 0x107   :  { %v204_v25 = vmul.f32 0.125, %v203_v24 }
 0x109   :  { %v205_v26 = vadd.f32 1e-05, %v204_v25 }
 0x10b   :  { %259 = vrsqrt.f32 %v205_v26 }
 0x115   :  { %v260_v31 = vpop.eup %259 }
 0x116   :  { %v208_v32 = vmul.f32 %v260_v31, %v207_v29 }
 0x118   :  { %v210_v34 = vmul.f32 %v208_v32, %v163_v45  ;;  %v215_v35 = vrot.slane %v208_v32, %v214_v30 }
 0x11a   :  { %v211_v36 = vsub.f32 %v209_v33, %v210_v34  ;;  %v216_v37 = vmul.f32 %v215_v35, %v302_v6  ;;  %v227_v38 = vmul.f32 %v215_v35, %v310_v10  ;;  %v232_v39 = vmul.f32 %v215_v35, %v304_v7 }
 0x11b   :  { %v237_v40 = vmul.f32 %v215_v35, %v312_v11 }
 0x11c   :  { %v221_v41 = vrot.slane %v211_v36, %v214_v30 }
 0x11e   :  { %v223_v42 = vadd.f32 %v221_v41, %v216_v37  ;;  %v228_v43 = vadd.f32 %v227_v38, %v221_v41  ;;  %v233_v44 = vadd.f32 %v232_v39, %v221_v41  ;;  %v238_v46 = vadd.f32 %v237_v40, %v221_v41 }
 0x120   :  { %v224_v47 = vmax.f32 %v223_v42, 0.0  ;;  %v229_v48 = vmax.f32 %v228_v43, 0.0  ;;  %v234_v49 = vmax.f32 %v233_v44, 0.0  ;;  %v239_v50 = vmax.f32 %v238_v46, 0.0 }
 0x122   :  { %v225_v45 = vpack.c.bf16 %v224_v47, %v224_v47  ;;  %v230_v51 = vpack.c.bf16 %v229_v48, %v229_v48  ;;  %v235_v52 = vpack.c.bf16 %v234_v49, %v234_v49  ;;  %v240_v53 = vpack.c.bf16 %v239_v50, %v239_v50 }
 0x124   :  { %226 = vst [vmem:[%s352_s4] sm:$0x1] %v225_v45  ;;  %231 = vst [vmem:[%s352_s4 + $0x1] sm:$0x1] %v230_v51 }
 0x125   :  { %236 = vst [vmem:[%s352_s4 + $0x2] sm:$0x1] %v235_v52  ;;  %241 = vst [vmem:[%s352_s4 + $0x3] sm:$0x1] %v240_v53 }

// kernel: _forward_jit.7
= control target key start
LH: loop header
LB: loop body
LE: loop exit
PB: predicated region body
PF: predicated region fallthrough
CT: control target
= control target key end

     0   :  { %9 = vsyncpa [#allocation3], 0  ;;  %s2060_s15 = smov [#allocation2]   ;;  %s2160_s0 = inlined_call_operand.vmem [shape: bf16[4,8,512], index: 0, kind: input, shape index: {}]   ;;  %s2161_s1 = inlined_call_operand.hbm [shape: bf16[4,512,128], index: 1, kind: input, shape index: {}]   ;;  %s2162_s2 = inlined_call_operand.vmem [shape: f32[1,128], index: 2, kind: input, shape index: {}]   ;;  %s2163_s3 = inlined_call_operand.vmem [shape: f32[1,128], index: 3, kind: input, shape index: {}]   ;;  %s2164_s4 = inlined_call_operand.vmem [shape: bf16[4,8,128], index: 4, kind: output, shape index: {}]  }
   0x1   :  { %s17_s16 = sshll.u32 %s2060_s15, 4  ;;  %s2036_s19 = scalar_lea.hbm %s2161_s1, 16384  ;;  %s18_s16 = int_to_ptr.vmem [resolvable:$true] %s17_s16 }
   0x2   :  { %p2037_p0 = scmp.ne.s32.totalorder %s2161_s1, %s2036_s19  ;;  %p2040_p1 = scmp.lt.u32.totalorder %s2036_s19, %s2161_s1 }
   0x4   :  { %p2042_p2 = pnand %p2040_p1, %p2037_p0 }
   0x6   :  { %2045 = shalt.err (!%p2042_p2)
}
   0x7   :  { %s2046_s24 = scalar_lea.vmem %s18_s16, 16384  ;;  %p2051_p4 = scmp.lt.s32.totalorder %s18_s16, %s18_s16 }
   0x8   :  { %p2047_p3 = scmp.ne.s32.totalorder %s18_s16, %s2046_s24  ;;  %p2052_p5 = scmp.lt.s32.totalorder %s2046_s24, %s2046_s24 }
   0xa   :  { %p2053_p6 = por %p2052_p5, %p2051_p4 }
   0xc   :  { %p2054_p7 = pnand %p2053_p6, %p2047_p3 }
   0xe   :  { %2057 = shalt.err (!%p2054_p7)
}
   0xf   :  { %s2061_s25 = smov 64   ;;  %s2062_s26 = smov 4  }
  0x10   :  { %23 = dma.hbm_to_vmem [thread:$0]  %s2161_s1, 16384, %s18_s16, [#allocation3], %s2061_s25, %s2061_s25, %s2062_s26  }
  0x11   :  { %2058 = dma.done.wait [#allocation3], 16384  }
  0x12   :  { %2059 = vsyncadd [#allocation3], 4294950912  ;;  %v1890_v0 = vld [vmem:[#allocation2 + $0x40] sm:$0xff]   ;;  %v1894_v4 = vld [vmem:[#allocation2 + $0x48] sm:$0xff]  }
  0x13   :  { %v1891_v1 = vld [vmem:[#allocation2 + $0xc0] sm:$0xff]   ;;  %1711 = vmatprep.subr.bf16.mxu0 %v1890_v0  ;;  %v1895_v5 = vld [vmem:[#allocation2 + $0xc8] sm:$0xff]   ;;  %v1898_v8 = vld [vmem:[#allocation2 + $0x50] sm:$0xff]  }
  0x14   :  { %v1892_v2 = vld [vmem:[#allocation2] sm:$0xff]   ;;  %1733 = vmatprep.subr.bf16.mxu1 %v1891_v1  ;;  %v1896_v6 = vld [vmem:[#allocation2 + $0x8] sm:$0xff]   ;;  %v1899_v9 = vld [vmem:[#allocation2 + $0xd0] sm:$0xff]  }
  0x15   :  { %v1893_v3 = vld [vmem:[#allocation2 + $0x80] sm:$0xff]   ;;  %1712 = vmatpush3.bf16.msra.mxu0 %v1892_v2  ;;  %v1897_v7 = vld [vmem:[#allocation2 + $0x88] sm:$0xff]   ;;  %v1900_v10 = vld [vmem:[#allocation2 + $0x10] sm:$0xff]  }
  0x16   :  { %1734 = vmatpush3.bf16.msra.mxu1 %v1893_v3  ;;  %1713 = vmatprep.subr.bf16.mxu0 %v1894_v4  ;;  %v1901_v11 = vld [vmem:[#allocation2 + $0x90] sm:$0xff]   ;;  %v1902_v12 = vld [vmem:[#allocation2 + $0x58] sm:$0xff]   ;;  %v1906_v16 = vld [vmem:[#allocation2 + $0x60] sm:$0xff]  }
  0x17   :  { %1735 = vmatprep.subr.bf16.mxu1 %v1895_v5  ;;  %v1903_v13 = vld [vmem:[#allocation2 + $0xd8] sm:$0xff]   ;;  %v1907_v17 = vld [vmem:[#allocation2 + $0xe0] sm:$0xff]   ;;  %v1910_v20 = vld [vmem:[#allocation2 + $0x68] sm:$0xff]  }
  0x18   :  { %v1904_v14 = vld [vmem:[#allocation2 + $0x18] sm:$0xff]   ;;  %v1908_v18 = vld [vmem:[#allocation2 + $0x20] sm:$0xff]   ;;  %v1911_v21 = vld [vmem:[#allocation2 + $0xe8] sm:$0xff]  }
  0x19   :  { %1714 = vmatpush3.bf16.msra.mxu0 %v1896_v6  ;;  %v1905_v15 = vld [vmem:[#allocation2 + $0x98] sm:$0xff]   ;;  %v1909_v19 = vld [vmem:[#allocation2 + $0xa0] sm:$0xff]   ;;  %v1912_v22 = vld [vmem:[#allocation2 + $0x28] sm:$0xff]  }
  0x1a   :  { %1736 = vmatpush3.bf16.msra.mxu1 %v1897_v7  ;;  %1715 = vmatprep.subr.bf16.mxu0 %v1898_v8  ;;  %v1913_v23 = vld [vmem:[#allocation2 + $0xa8] sm:$0xff]   ;;  %v1914_v24 = vld [vmem:[#allocation2 + $0x70] sm:$0xff]   ;;  %v1918_v28 = vld [vmem:[#allocation2 + $0x78] sm:$0xff]  }
  0x1b   :  { %1737 = vmatprep.subr.bf16.mxu1 %v1899_v9  ;;  %v1915_v25 = vld [vmem:[#allocation2 + $0xf0] sm:$0xff]   ;;  %v1919_v29 = vld [vmem:[#allocation2 + $0xf8] sm:$0xff]   ;;  %v32_v32 = vld [vmem:[%s2160_s0] sm:$0xff] }
  0x1c   :  { %v1916_v26 = vld [vmem:[#allocation2 + $0x30] sm:$0xff]   ;;  %v1920_v30 = vld [vmem:[#allocation2 + $0x38] sm:$0xff]   ;;  %v33_v33 = vld [vmem:[%s2160_s0 + $0x8] sm:$0xff]  ;;  %v1558_v34 = vcombine.low %v32_v32, %v32_v32  ;;  %v1559_v35 = vcombine.high %v32_v32, %v32_v32 }
  0x1d   :  { %1716 = vmatpush3.bf16.msra.mxu0 %v1900_v10  ;;  %v1917_v27 = vld [vmem:[#allocation2 + $0xb0] sm:$0xff]   ;;  %v1921_v31 = vld [vmem:[#allocation2 + $0xb8] sm:$0xff]   ;;  %v1560_v36 = vcombine.low %v33_v33, %v33_v33  ;;  %v1561_v37 = vcombine.high %v33_v33, %v33_v33  ;;  %v1926_v38 = vld [vmem:[#allocation2 + $0x140] sm:$0xff]  }
  0x1e   :  { %1738 = vmatpush3.bf16.msra.mxu1 %v1901_v11  ;;  %1717 = vmatprep.subr.bf16.mxu0 %v1902_v12  ;;  %v1927_v39 = vld [vmem:[#allocation2 + $0x1c0] sm:$0xff]   ;;  %v1930_v42 = vld [vmem:[#allocation2 + $0x148] sm:$0xff]   ;;  %v1934_v46 = vld [vmem:[#allocation2 + $0x150] sm:$0xff]  }
  0x1f   :  { %1739 = vmatprep.subr.bf16.mxu1 %v1903_v13  ;;  %336 = vmatprep.mubr.bf16.mxu0 %v1559_v35  ;;  %v1928_v40 = vld [vmem:[#allocation2 + $0x100] sm:$0xff]   ;;  %v1931_v43 = vld [vmem:[#allocation2 + $0x1c8] sm:$0xff]   ;;  %v1935_v47 = vld [vmem:[#allocation2 + $0x1d0] sm:$0xff]  }
  0x20   :  { %376 = vmatprep.mubr.bf16.mxu1 %v1561_v37  ;;  %v1929_v41 = vld [vmem:[#allocation2 + $0x180] sm:$0xff]   ;;  %v1932_v44 = vld [vmem:[#allocation2 + $0x108] sm:$0xff]   ;;  %v1936_v48 = vld [vmem:[#allocation2 + $0x110] sm:$0xff]  }
  0x21   :  { %1718 = vmatpush3.bf16.msra.mxu0 %v1904_v14  ;;  %v1933_v45 = vld [vmem:[#allocation2 + $0x188] sm:$0xff]   ;;  %v1937_v49 = vld [vmem:[#allocation2 + $0x190] sm:$0xff]   ;;  %v1938_v50 = vld [vmem:[#allocation2 + $0x158] sm:$0xff]  }
  0x22   :  { %1740 = vmatpush3.bf16.msra.mxu1 %v1905_v15  ;;  %1719 = vmatprep.subr.bf16.mxu0 %v1906_v16  ;;  %v1939_v51 = vld [vmem:[#allocation2 + $0x1d8] sm:$0xff]   ;;  %v1942_v54 = vld [vmem:[#allocation2 + $0x160] sm:$0xff]   ;;  %v1946_v58 = vld [vmem:[#allocation2 + $0x168] sm:$0xff]  }
  0x23   :  { %1741 = vmatprep.subr.bf16.mxu1 %v1907_v17  ;;  %v1940_v52 = vld [vmem:[#allocation2 + $0x118] sm:$0xff]   ;;  %v1943_v55 = vld [vmem:[#allocation2 + $0x1e0] sm:$0xff]   ;;  %v1947_v59 = vld [vmem:[#allocation2 + $0x1e8] sm:$0xff]  }
  0x24   :  { %v1941_v53 = vld [vmem:[#allocation2 + $0x198] sm:$0xff]   ;;  %v1944_v56 = vld [vmem:[#allocation2 + $0x120] sm:$0xff]   ;;  %v1948_v60 = vld [vmem:[#allocation2 + $0x128] sm:$0xff]  }
  0x25   :  { %1720 = vmatpush3.bf16.msra.mxu0 %v1908_v18  ;;  %v1945_v57 = vld [vmem:[#allocation2 + $0x1a0] sm:$0xff]   ;;  %v1949_v61 = vld [vmem:[#allocation2 + $0x1a8] sm:$0xff]   ;;  %v1950_v62 = vld [vmem:[#allocation2 + $0x170] sm:$0xff]  }
  0x26   :  { %1742 = vmatpush3.bf16.msra.mxu1 %v1909_v19  ;;  %1721 = vmatprep.subr.bf16.mxu0 %v1910_v20  ;;  %v1951_v63 = vld [vmem:[#allocation2 + $0x1f0] sm:$0xff]   ;;  %v1954_v2 = vld [vmem:[#allocation2 + $0x178] sm:$0xff]   ;;  %v1962_v12 = vld [vmem:[#allocation2 + $0x240] sm:$0xff]  }
  0x27   :  { %1743 = vmatprep.subr.bf16.mxu1 %v1911_v21  ;;  %v1952_v0 = vld [vmem:[#allocation2 + $0x130] sm:$0xff]   ;;  %v1955_v3 = vld [vmem:[#allocation2 + $0x1f8] sm:$0xff]   ;;  %v1963_v13 = vld [vmem:[#allocation2 + $0x2c0] sm:$0xff]  }
  0x28   :  { %v1953_v1 = vld [vmem:[#allocation2 + $0x1b0] sm:$0xff]   ;;  %v1956_v4 = vld [vmem:[#allocation2 + $0x138] sm:$0xff]   ;;  %v1964_v14 = vld [vmem:[#allocation2 + $0x200] sm:$0xff]  }
  0x29   :  { %1722 = vmatpush3.bf16.msra.mxu0 %v1912_v22  ;;  %v1957_v5 = vld [vmem:[#allocation2 + $0x1b8] sm:$0xff]   ;;  %v1594_v6 = vld [vmem:[%s2160_s0 + $0x10] sm:$0xff]  ;;  %v1965_v15 = vld [vmem:[#allocation2 + $0x280] sm:$0xff]  }
  0x2a   :  { %1744 = vmatpush3.bf16.msra.mxu1 %v1913_v23  ;;  %1723 = vmatprep.subr.bf16.mxu0 %v1914_v24  ;;  %v1596_v7 = vcombine.low %v1594_v6, %v1594_v6  ;;  %v1597_v8 = vcombine.high %v1594_v6, %v1594_v6  ;;  %v1595_v9 = vld [vmem:[%s2160_s0 + $0x18] sm:$0xff]  ;;  %v1966_v16 = vld [vmem:[#allocation2 + $0x248] sm:$0xff]   ;;  %v1970_v20 = vld [vmem:[#allocation2 + $0x250] sm:$0xff]  }
  0x2b   :  { %1745 = vmatprep.subr.bf16.mxu1 %v1915_v25  ;;  %v1598_v10 = vcombine.low %v1595_v9, %v1595_v9  ;;  %v1599_v11 = vcombine.high %v1595_v9, %v1595_v9  ;;  %v1967_v17 = vld [vmem:[#allocation2 + $0x2c8] sm:$0xff]   ;;  %v1971_v21 = vld [vmem:[#allocation2 + $0x2d0] sm:$0xff]   ;;  %v1974_v24 = vld [vmem:[#allocation2 + $0x258] sm:$0xff]  }
  0x2c   :  { %v1968_v18 = vld [vmem:[#allocation2 + $0x208] sm:$0xff]   ;;  %v1972_v22 = vld [vmem:[#allocation2 + $0x210] sm:$0xff]   ;;  %v1975_v25 = vld [vmem:[#allocation2 + $0x2d8] sm:$0xff]  }
  0x2d   :  { %1724 = vmatpush3.bf16.msra.mxu0 %v1916_v26  ;;  %v1969_v19 = vld [vmem:[#allocation2 + $0x288] sm:$0xff]   ;;  %v1973_v23 = vld [vmem:[#allocation2 + $0x290] sm:$0xff]   ;;  %v1976_v26 = vld [vmem:[#allocation2 + $0x218] sm:$0xff]  }
  0x2e   :  { %1746 = vmatpush3.bf16.msra.mxu1 %v1917_v27  ;;  %1725 = vmatprep.subr.bf16.mxu0 %v1918_v28  ;;  %v1977_v27 = vld [vmem:[#allocation2 + $0x298] sm:$0xff]   ;;  %v1978_v28 = vld [vmem:[#allocation2 + $0x260] sm:$0xff]   ;;  %v1982_v32 = vld [vmem:[#allocation2 + $0x268] sm:$0xff]  }
  0x2f   :  { %1747 = vmatprep.subr.bf16.mxu1 %v1919_v29  ;;  %v1979_v29 = vld [vmem:[#allocation2 + $0x2e0] sm:$0xff]   ;;  %v1983_v33 = vld [vmem:[#allocation2 + $0x2e8] sm:$0xff]   ;;  %v1987_v37 = vld [vmem:[#allocation2 + $0x2f0] sm:$0xff]  }
  0x30   :  { %v1985_v35 = vld [vmem:[#allocation2 + $0x2a8] sm:$0xff]  }
  0x31   :  { %1726 = vmatpush3.bf16.msra.mxu0 %v1920_v30  ;;  %v1980_v30 = vld [vmem:[#allocation2 + $0x220] sm:$0xff]   ;;  %v2018_v6 = vld [vmem:[#allocation2 + $0x368] sm:$0xff]  }
  0x32   :  { %1748 = vmatpush3.bf16.msra.mxu1 %v1921_v31  ;;  %1755 = vmatprep.subr.bf16.mxu0 %v1926_v38  ;;  %v1981_v31 = vld [vmem:[#allocation2 + $0x2a0] sm:$0xff]   ;;  %v1988_v38 = vld [vmem:[#allocation2 + $0x230] sm:$0xff]   ;;  %v2021_v9 = vld [vmem:[#allocation2 + $0x3a8] sm:$0xff]  }
  0x33   :  { %1777 = vmatprep.subr.bf16.mxu1 %v1927_v39  ;;  %v1989_v39 = vld [vmem:[#allocation2 + $0x2b0] sm:$0xff]  }
  0x34   :  { %337 = vmatmul.mubr.bf16.vlgmr.msra.gmra.mrb[0].mxu0 %v1558_v34  ;;  %v1984_v34 = vld [vmem:[#allocation2 + $0x228] sm:$0xff]  }
  0x35   :  { %377 = vmatmul.mubr.bf16.vlgmr.msra.gmra.mrb[0].mxu1 %v1560_v36  ;;  %1756 = vmatpush3.bf16.msra.mxu0 %v1928_v40  ;;  %v1986_v36 = vld [vmem:[#allocation2 + $0x270] sm:$0xff]   ;;  %v1990_v40 = vld [vmem:[#allocation2 + $0x278] sm:$0xff]  }
  0x36   :  { %1778 = vmatpush3.bf16.msra.mxu1 %v1929_v41  ;;  %1757 = vmatprep.subr.bf16.mxu0 %v1930_v42  ;;  %v1991_v41 = vld [vmem:[#allocation2 + $0x2f8] sm:$0xff]  }
  0x37   :  { %1779 = vmatprep.subr.bf16.mxu1 %v1931_v43  ;;  %690 = vmatprep.mubr.bf16.mxu0 %v1597_v8  ;;  %v1992_v42 = vld [vmem:[#allocation2 + $0x238] sm:$0xff]   ;;  %v2020_v8 = vld [vmem:[#allocation2 + $0x328] sm:$0xff]  }
  0x38   :  { %730 = vmatprep.mubr.bf16.mxu1 %v1599_v11  ;;  %v1993_v43 = vld [vmem:[#allocation2 + $0x2b8] sm:$0xff]   ;;  %v2023_v11 = vld [vmem:[#allocation2 + $0x3f0] sm:$0xff]  }
  0x39   :  { %1758 = vmatpush3.bf16.msra.mxu0 %v1932_v44  ;;  %v1632_v44 = vld [vmem:[%s2160_s0 + $0x20] sm:$0xff] }
  0x3a   :  { %1780 = vmatpush3.bf16.msra.mxu1 %v1933_v45  ;;  %1759 = vmatprep.subr.bf16.mxu0 %v1934_v46  ;;  %v1633_v45 = vld [vmem:[%s2160_s0 + $0x28] sm:$0xff]  ;;  %v1634_v46 = vcombine.low %v1632_v44, %v1632_v44 }
  0x3b   :  { %1781 = vmatprep.subr.bf16.mxu1 %v1935_v47  ;;  %v1635_v47 = vcombine.high %v1632_v44, %v1632_v44 }
  0x3d   :  { %1760 = vmatpush3.bf16.msra.mxu0 %v1936_v48  ;;  %v1636_v48 = vcombine.low %v1633_v45, %v1633_v45 }
  0x3e   :  { %1782 = vmatpush3.bf16.msra.mxu1 %v1937_v49  ;;  %1761 = vmatprep.subr.bf16.mxu0 %v1938_v50  ;;  %v1637_v49 = vcombine.high %v1633_v45, %v1633_v45  ;;  %v1998_v50 = vld [vmem:[#allocation2 + $0x340] sm:$0xff]  }
  0x3f   :  { %1783 = vmatprep.subr.bf16.mxu1 %v1939_v51  ;;  %v1999_v51 = vld [vmem:[#allocation2 + $0x3c0] sm:$0xff]  }
  0x41   :  { %1762 = vmatpush3.bf16.msra.mxu0 %v1940_v52  ;;  %v2000_v52 = vld [vmem:[#allocation2 + $0x300] sm:$0xff]  }
  0x42   :  { %1784 = vmatpush3.bf16.msra.mxu1 %v1941_v53  ;;  %1763 = vmatprep.subr.bf16.mxu0 %v1942_v54  ;;  %v2001_v53 = vld [vmem:[#allocation2 + $0x380] sm:$0xff]   ;;  %v2002_v54 = vld [vmem:[#allocation2 + $0x348] sm:$0xff]  }
  0x43   :  { %1785 = vmatprep.subr.bf16.mxu1 %v1943_v55  ;;  %v2003_v55 = vld [vmem:[#allocation2 + $0x3c8] sm:$0xff]  }
  0x45   :  { %1764 = vmatpush3.bf16.msra.mxu0 %v1944_v56  ;;  %v2004_v56 = vld [vmem:[#allocation2 + $0x308] sm:$0xff]  }
  0x46   :  { %1786 = vmatpush3.bf16.msra.mxu1 %v1945_v57  ;;  %1765 = vmatprep.subr.bf16.mxu0 %v1946_v58  ;;  %v2005_v57 = vld [vmem:[#allocation2 + $0x388] sm:$0xff]   ;;  %v2006_v58 = vld [vmem:[#allocation2 + $0x350] sm:$0xff]  }
  0x47   :  { %1787 = vmatprep.subr.bf16.mxu1 %v1947_v59  ;;  %v2007_v59 = vld [vmem:[#allocation2 + $0x3d0] sm:$0xff]  }
  0x49   :  { %1766 = vmatpush3.bf16.msra.mxu0 %v1948_v60  ;;  %v2008_v60 = vld [vmem:[#allocation2 + $0x310] sm:$0xff]  }
  0x4a   :  { %1788 = vmatpush3.bf16.msra.mxu1 %v1949_v61  ;;  %1767 = vmatprep.subr.bf16.mxu0 %v1950_v62  ;;  %v2009_v61 = vld [vmem:[#allocation2 + $0x390] sm:$0xff]   ;;  %v2010_v62 = vld [vmem:[#allocation2 + $0x358] sm:$0xff]  }
  0x4b   :  { %1789 = vmatprep.subr.bf16.mxu1 %v1951_v63  ;;  %v2011_v63 = vld [vmem:[#allocation2 + $0x3d8] sm:$0xff]  }
  0x4d   :  { %1768 = vmatpush3.bf16.msra.mxu0 %v1952_v0  ;;  %v2012_v0 = vld [vmem:[#allocation2 + $0x318] sm:$0xff]  }
  0x4e   :  { %1790 = vmatpush3.bf16.msra.mxu1 %v1953_v1  ;;  %1769 = vmatprep.subr.bf16.mxu0 %v1954_v2  ;;  %v2013_v1 = vld [vmem:[#allocation2 + $0x398] sm:$0xff]   ;;  %v2014_v2 = vld [vmem:[#allocation2 + $0x360] sm:$0xff]  }
  0x4f   :  { %1791 = vmatprep.subr.bf16.mxu1 %v1955_v3  ;;  %v2015_v3 = vld [vmem:[#allocation2 + $0x3e0] sm:$0xff]  }
  0x51   :  { %1770 = vmatpush3.bf16.msra.mxu0 %v1956_v4  ;;  %v2016_v4 = vld [vmem:[#allocation2 + $0x320] sm:$0xff]  }
  0x52   :  { %1792 = vmatpush3.bf16.msra.mxu1 %v1957_v5  ;;  %1799 = vmatprep.subr.bf16.mxu0 %v1962_v12  ;;  %v2017_v5 = vld [vmem:[#allocation2 + $0x3a0] sm:$0xff]   ;;  %v2024_v12 = vld [vmem:[#allocation2 + $0x330] sm:$0xff]  }
  0x53   :  { %1821 = vmatprep.subr.bf16.mxu1 %v1963_v13  ;;  %v2025_v13 = vld [vmem:[#allocation2 + $0x3b0] sm:$0xff]  }
  0x54   :  { %691 = vmatmul.mubr.bf16.vlgmr.msra.gmra.mrb[4].mxu0 %v1596_v7  ;;  %v2019_v7 = vld [vmem:[#allocation2 + $0x3e8] sm:$0xff]  }
  0x55   :  { %731 = vmatmul.mubr.bf16.vlgmr.msra.gmra.mrb[4].mxu1 %v1598_v10  ;;  %1800 = vmatpush3.bf16.msra.mxu0 %v1964_v14  ;;  %v2022_v10 = vld [vmem:[#allocation2 + $0x370] sm:$0xff]   ;;  %v2026_v14 = vld [vmem:[#allocation2 + $0x378] sm:$0xff]  }
  0x56   :  { %1822 = vmatpush3.bf16.msra.mxu1 %v1965_v15  ;;  %1801 = vmatprep.subr.bf16.mxu0 %v1966_v16  ;;  %v2027_v15 = vld [vmem:[#allocation2 + $0x3f8] sm:$0xff]  }
  0x57   :  { %1823 = vmatprep.subr.bf16.mxu1 %v1967_v17  ;;  %1044 = vmatprep.mubr.bf16.mxu0 %v1635_v47  ;;  %v2028_v16 = vld [vmem:[#allocation2 + $0x338] sm:$0xff]  }
  0x58   :  { %1084 = vmatprep.mubr.bf16.mxu1 %v1637_v49  ;;  %v2029_v17 = vld [vmem:[#allocation2 + $0x3b8] sm:$0xff]  }
  0x59   :  { %1802 = vmatpush3.bf16.msra.mxu0 %v1968_v18  ;;  %v1670_v18 = vld [vmem:[%s2160_s0 + $0x30] sm:$0xff] }
  0x5a   :  { %1824 = vmatpush3.bf16.msra.mxu1 %v1969_v19  ;;  %1803 = vmatprep.subr.bf16.mxu0 %v1970_v20  ;;  %v1671_v19 = vld [vmem:[%s2160_s0 + $0x38] sm:$0xff]  ;;  %v1672_v20 = vcombine.low %v1670_v18, %v1670_v18 }
  0x5b   :  { %1825 = vmatprep.subr.bf16.mxu1 %v1971_v21  ;;  %v1673_v21 = vcombine.high %v1670_v18, %v1670_v18 }
  0x5d   :  { %1804 = vmatpush3.bf16.msra.mxu0 %v1972_v22  ;;  %v1674_v22 = vcombine.low %v1671_v19, %v1671_v19 }
  0x5e   :  { %1826 = vmatpush3.bf16.msra.mxu1 %v1973_v23  ;;  %1805 = vmatprep.subr.bf16.mxu0 %v1974_v24  ;;  %v1675_v23 = vcombine.high %v1671_v19, %v1671_v19 }
  0x5f   :  { %1827 = vmatprep.subr.bf16.mxu1 %v1975_v25 }
  0x61   :  { %1806 = vmatpush3.bf16.msra.mxu0 %v1976_v26 }
  0x62   :  { %1828 = vmatpush3.bf16.msra.mxu1 %v1977_v27  ;;  %1807 = vmatprep.subr.bf16.mxu0 %v1978_v28 }
  0x63   :  { %1829 = vmatprep.subr.bf16.mxu1 %v1979_v29 }
  0x65   :  { %1808 = vmatpush3.bf16.msra.mxu0 %v1980_v30 }
  0x66   :  { %1830 = vmatpush3.bf16.msra.mxu1 %v1981_v31  ;;  %1809 = vmatprep.subr.bf16.mxu0 %v1982_v32 }
  0x67   :  { %1831 = vmatprep.subr.bf16.mxu1 %v1983_v33 }
  0x69   :  { %1810 = vmatpush3.bf16.msra.mxu0 %v1984_v34 }
  0x6a   :  { %1832 = vmatpush3.bf16.msra.mxu1 %v1985_v35  ;;  %1811 = vmatprep.subr.bf16.mxu0 %v1986_v36 }
  0x6b   :  { %1833 = vmatprep.subr.bf16.mxu1 %v1987_v37 }
  0x6d   :  { %1812 = vmatpush3.bf16.msra.mxu0 %v1988_v38 }
  0x6e   :  { %1834 = vmatpush3.bf16.msra.mxu1 %v1989_v39  ;;  %1813 = vmatprep.subr.bf16.mxu0 %v1990_v40 }
  0x6f   :  { %1835 = vmatprep.subr.bf16.mxu1 %v1991_v41 }
  0x71   :  { %1814 = vmatpush3.bf16.msra.mxu0 %v1992_v42 }
  0x72   :  { %1836 = vmatpush3.bf16.msra.mxu1 %v1993_v43  ;;  %1843 = vmatprep.subr.bf16.mxu0 %v1998_v50 }
  0x73   :  { %1865 = vmatprep.subr.bf16.mxu1 %v1999_v51 }
  0x74   :  { %1045 = vmatmul.mubr.bf16.vlgmr.msra.gmra.mrb[8].mxu0 %v1634_v46 }
  0x75   :  { %1085 = vmatmul.mubr.bf16.vlgmr.msra.gmra.mrb[8].mxu1 %v1636_v48  ;;  %1844 = vmatpush3.bf16.msra.mxu0 %v2000_v52 }
  0x76   :  { %1866 = vmatpush3.bf16.msra.mxu1 %v2001_v53  ;;  %1845 = vmatprep.subr.bf16.mxu0 %v2002_v54 }
  0x77   :  { %1867 = vmatprep.subr.bf16.mxu1 %v2003_v55  ;;  %1398 = vmatprep.mubr.bf16.mxu0 %v1673_v21 }
  0x78   :  { %1438 = vmatprep.mubr.bf16.mxu1 %v1675_v23 }
  0x79   :  { %1846 = vmatpush3.bf16.msra.mxu0 %v2004_v56 }
  0x7a   :  { %1868 = vmatpush3.bf16.msra.mxu1 %v2005_v57  ;;  %1847 = vmatprep.subr.bf16.mxu0 %v2006_v58 }
  0x7b   :  { %1869 = vmatprep.subr.bf16.mxu1 %v2007_v59 }
  0x7d   :  { %1848 = vmatpush3.bf16.msra.mxu0 %v2008_v60 }
  0x7e   :  { %1870 = vmatpush3.bf16.msra.mxu1 %v2009_v61  ;;  %1849 = vmatprep.subr.bf16.mxu0 %v2010_v62 }
  0x7f   :  { %1871 = vmatprep.subr.bf16.mxu1 %v2011_v63 }
  0x81   :  { %1850 = vmatpush3.bf16.msra.mxu0 %v2012_v0 }
  0x82   :  { %1872 = vmatpush3.bf16.msra.mxu1 %v2013_v1  ;;  %1851 = vmatprep.subr.bf16.mxu0 %v2014_v2 }
  0x83   :  { %1873 = vmatprep.subr.bf16.mxu1 %v2015_v3 }
  0x85   :  { %1852 = vmatpush3.bf16.msra.mxu0 %v2016_v4 }
  0x86   :  { %1874 = vmatpush3.bf16.msra.mxu1 %v2017_v5  ;;  %1853 = vmatprep.subr.bf16.mxu0 %v2018_v6 }
  0x87   :  { %1875 = vmatprep.subr.bf16.mxu1 %v2019_v7 }
  0x89   :  { %1854 = vmatpush3.bf16.msra.mxu0 %v2020_v8 }
  0x8a   :  { %1876 = vmatpush3.bf16.msra.mxu1 %v2021_v9  ;;  %1855 = vmatprep.subr.bf16.mxu0 %v2022_v10 }
  0x8b   :  { %1877 = vmatprep.subr.bf16.mxu1 %v2023_v11 }
  0x8d   :  { %1856 = vmatpush3.bf16.msra.mxu0 %v2024_v12 }
  0x8e   :  { %1878 = vmatpush3.bf16.msra.mxu1 %v2025_v13  ;;  %1857 = vmatprep.subr.bf16.mxu0 %v2026_v14 }
  0x8f   :  { %1879 = vmatprep.subr.bf16.mxu1 %v2027_v15 }
  0x91   :  { %1858 = vmatpush3.bf16.msra.mxu0 %v2028_v16 }
  0x92   :  { %1880 = vmatpush3.bf16.msra.mxu1 %v2029_v17 }
  0x94   :  { %1399 = vmatmul.mubr.bf16.vlgmr.msra.gmra.mrb[12].mxu0 %v1672_v20 }
  0x95   :  { %1439 = vmatmul.mubr.bf16.vlgmr.msra.gmra.mrb[12].mxu1 %v1674_v22 }
 0x107   :  { %v1727_v24 = vpop.f32.mrb[0].mxu0 }
 0x108   :  { %v1749_v25 = vpop.f32.mrb[0].mxu1  ;;  %v1728_v26 = vpop.f32.mrb[1].mxu0 }
 0x109   :  { %v1750_v27 = vpop.f32.mrb[1].mxu1  ;;  %v1729_v28 = vadd.f32 %v1728_v26, %v1727_v24  ;;  %v1730_v30 = vpop.f32.mrb[2].mxu0 }
 0x10a   :  { %v1751_v29 = vadd.f32 %v1750_v27, %v1749_v25  ;;  %v1752_v31 = vpop.f32.mrb[2].mxu1  ;;  %v1731_v32 = vpop.f32.mrb[3].mxu0 }
 0x10b   :  { %v1753_v33 = vpop.f32.mrb[3].mxu1 }
 0x10c   :  { %v2124_v34 = vadd.f32 %v1751_v29, %v1729_v28 }
 0x10e   :  { %v1446_v35 = vrot.slane %v2124_v34, 4 }
 0x110   :  { %v1447_v36 = vadd.f32 %v1446_v35, %v2124_v34 }
 0x112   :  { %v1448_v47 = vrot.slane %v1447_v36, 2 }
 0x114   :  { %v1449_v50 = vadd.f32 %v1448_v47, %v1447_v36 }
 0x116   :  { %v1450_v53 = vrot.slane %v1449_v50, 1 }
 0x118   :  { %v1451_v56 = vadd.f32 %v1450_v53, %v1449_v50 }
 0x127   :  { %v1771_v37 = vpop.f32.mrb[4].mxu0 }
 0x128   :  { %v1793_v38 = vpop.f32.mrb[4].mxu1  ;;  %v1772_v39 = vpop.f32.mrb[5].mxu0 }
 0x129   :  { %v1794_v40 = vpop.f32.mrb[5].mxu1  ;;  %v1773_v41 = vadd.f32 %v1772_v39, %v1771_v37  ;;  %v1774_v43 = vpop.f32.mrb[6].mxu0 }
 0x12a   :  { %v1795_v42 = vadd.f32 %v1794_v40, %v1793_v38  ;;  %v1796_v44 = vpop.f32.mrb[6].mxu1  ;;  %v1775_v45 = vpop.f32.mrb[7].mxu0 }
 0x12b   :  { %v1797_v46 = vpop.f32.mrb[7].mxu1 }
 0x12c   :  { %v2128_v48 = vadd.f32 %v1795_v42, %v1773_v41 }
 0x12e   :  { %v1453_v49 = vrot.slane %v2128_v48, 4 }
 0x130   :  { %v1454_v51 = vadd.f32 %v1453_v49, %v2128_v48 }
 0x132   :  { %v1455_v52 = vrot.slane %v1454_v51, 2 }
 0x134   :  { %v1456_v54 = vadd.f32 %v1455_v52, %v1454_v51 }
 0x136   :  { %v1457_v55 = vrot.slane %v1456_v54, 1 }
 0x138   :  { %v1458_v57 = vadd.f32 %v1457_v55, %v1456_v54 }
 0x13a   :  { %v1459_v58 = vadd.f32 %v1458_v57, %v1451_v56 }
 0x147   :  { %v1815_v59 = vpop.f32.mrb[8].mxu0 }
 0x148   :  { %v1837_v60 = vpop.f32.mrb[8].mxu1  ;;  %v1816_v61 = vpop.f32.mrb[9].mxu0 }
 0x149   :  { %v1817_v62 = vadd.f32 %v1816_v61, %v1815_v59  ;;  %v1838_v63 = vpop.f32.mrb[9].mxu1  ;;  %v1818_v0 = vpop.f32.mrb[10].mxu0 }
 0x14a   :  { %v1839_v1 = vadd.f32 %v1838_v63, %v1837_v60  ;;  %v1840_v2 = vpop.f32.mrb[10].mxu1  ;;  %v1819_v3 = vpop.f32.mrb[11].mxu0 }
 0x14b   :  { %v1841_v4 = vpop.f32.mrb[11].mxu1 }
 0x14c   :  { %v2132_v5 = vadd.f32 %v1839_v1, %v1817_v62 }
 0x14e   :  { %v1460_v6 = vrot.slane %v2132_v5, 4 }
 0x150   :  { %v1461_v7 = vadd.f32 %v1460_v6, %v2132_v5 }
 0x152   :  { %v1462_v8 = vrot.slane %v1461_v7, 2 }
 0x154   :  { %v1463_v9 = vadd.f32 %v1462_v8, %v1461_v7  ;;  %v1520_v8 = vlaneseq }
 0x156   :  { %v1464_v10 = vrot.slane %v1463_v9, 1 }
 0x158   :  { %v1465_v11 = vadd.f32 %v1464_v10, %v1463_v9  ;;  %v1521_v9 = vshrl.u32 %v1520_v8, 7  ;;  %v1515_v10 = vld [vmem:[%s2162_s2] sm:$0x1] }
 0x15a   :  { %v1466_v12 = vadd.f32 %v1465_v11, %v1459_v58  ;;  %v1522_v11 = vsub.s32 0, %v1521_v9 }
 0x167   :  { %v1859_v13 = vpop.f32.mrb[12].mxu0 }
 0x168   :  { %v1881_v14 = vpop.f32.mrb[12].mxu1  ;;  %v1860_v15 = vpop.f32.mrb[13].mxu0 }
 0x169   :  { %v1861_v16 = vadd.f32 %v1860_v15, %v1859_v13  ;;  %v1882_v17 = vpop.f32.mrb[13].mxu1  ;;  %v1862_v18 = vpop.f32.mrb[14].mxu0 }
 0x16a   :  { %v1883_v19 = vadd.f32 %v1882_v17, %v1881_v14  ;;  %v1884_v20 = vpop.f32.mrb[14].mxu1  ;;  %v1863_v21 = vpop.f32.mrb[15].mxu0  ;;  %v1517_v14 = vld [vmem:[%s2163_s3] sm:$0x1] }
 0x16b   :  { %v1885_v22 = vpop.f32.mrb[15].mxu1 }
 0x16c   :  { %v1441_v23 = vadd.f32 %v1883_v19, %v1861_v16 }
 0x16e   :  { %v1467_v24 = vrot.slane %v1441_v23, 4 }
 0x170   :  { %v1468_v25 = vadd.f32 %v1467_v24, %v1441_v23 }
 0x172   :  { %v1469_v26 = vrot.slane %v1468_v25, 2 }
 0x174   :  { %v1470_v27 = vadd.f32 %v1469_v26, %v1468_v25 }
 0x176   :  { %v1471_v28 = vrot.slane %v1470_v27, 1 }
 0x178   :  { %v1472_v29 = vadd.f32 %v1471_v28, %v1470_v27 }
 0x17a   :  { %v1473_v30 = vadd.f32 %v1472_v29, %v1466_v12 }
 0x17c   :  { %v1475_v31 = vmul.f32 0.03125, %v1473_v30 }
 0x17e   :  { %v1476_v32 = vsub.f32 %v2124_v34, %v1475_v31  ;;  %v1485_v33 = vsub.f32 %v2128_v48, %v1475_v31  ;;  %v1494_v35 = vsub.f32 %v2132_v5, %v1475_v31  ;;  %v1503_v36 = vsub.f32 %v1441_v23, %v1475_v31 }
 0x180   :  { %v1477_v37 = vmul.f32 %v1476_v32, %v1476_v32  ;;  %v1486_v38 = vmul.f32 %v1485_v33, %v1485_v33  ;;  %v1495_v39 = vmul.f32 %v1494_v35, %v1494_v35  ;;  %v1504_v40 = vmul.f32 %v1503_v36, %v1503_v36 }
 0x182   :  { %v1478_v41 = vrot.slane %v1477_v37, 4  ;;  %v1487_v42 = vrot.slane %v1486_v38, 4  ;;  %v1496_v43 = vrot.slane %v1495_v39, 4  ;;  %v1505_v44 = vrot.slane %v1504_v40, 4 }
 0x184   :  { %v1479_v45 = vadd.f32 %v1478_v41, %v1477_v37  ;;  %v1488_v46 = vadd.f32 %v1487_v42, %v1486_v38  ;;  %v1497_v47 = vadd.f32 %v1496_v43, %v1495_v39  ;;  %v1506_v49 = vadd.f32 %v1505_v44, %v1504_v40 }
 0x186   :  { %v1480_v50 = vrot.slane %v1479_v45, 2  ;;  %v1489_v51 = vrot.slane %v1488_v46, 2  ;;  %v1498_v52 = vrot.slane %v1497_v47, 2  ;;  %v1507_v53 = vrot.slane %v1506_v49, 2 }
 0x188   :  { %v1481_v54 = vadd.f32 %v1480_v50, %v1479_v45  ;;  %v1490_v55 = vadd.f32 %v1489_v51, %v1488_v46  ;;  %v1499_v56 = vadd.f32 %v1498_v52, %v1497_v47  ;;  %v1508_v57 = vadd.f32 %v1507_v53, %v1506_v49 }
 0x18a   :  { %v1482_v58 = vrot.slane %v1481_v54, 1  ;;  %v1491_v59 = vrot.slane %v1490_v55, 1  ;;  %v1500_v60 = vrot.slane %v1499_v56, 1  ;;  %v1509_v63 = vrot.slane %v1508_v57, 1 }
 0x18c   :  { %v1483_v61 = vadd.f32 %v1482_v58, %v1481_v54  ;;  %v1492_v62 = vadd.f32 %v1491_v59, %v1490_v55  ;;  %v1501_v1 = vadd.f32 %v1500_v60, %v1499_v56  ;;  %v1510_v3 = vadd.f32 %v1509_v63, %v1508_v57 }
 0x18e   :  { %v1493_v0 = vadd.f32 %v1492_v62, %v1483_v61 }
 0x190   :  { %v1502_v2 = vadd.f32 %v1501_v1, %v1493_v0 }
 0x192   :  { %v1511_v4 = vadd.f32 %v1510_v3, %v1502_v2 }
 0x194   :  { %v1512_v6 = vmul.f32 0.03125, %v1511_v4 }
 0x196   :  { %v1513_v7 = vadd.f32 1e-05, %v1512_v6 }
 0x198   :  { %2034 = vrsqrt.f32 %v1513_v7 }
 0x1a2   :  { %v2035_v12 = vpop.eup %2034 }
 0x1a3   :  { %v1516_v13 = vmul.f32 %v2035_v12, %v1515_v10 }
 0x1a5   :  { %v1518_v15 = vmul.f32 %v1516_v13, %v1475_v31  ;;  %v1523_v16 = vrot.slane %v1516_v13, %v1522_v11 }
 0x1a7   :  { %v1519_v17 = vsub.f32 %v1517_v14, %v1518_v15  ;;  %v1524_v18 = vmul.f32 %v1523_v16, %v2124_v34  ;;  %v1535_v19 = vmul.f32 %v1523_v16, %v2128_v48  ;;  %v1541_v20 = vmul.f32 %v1523_v16, %v2132_v5 }
 0x1a8   :  { %v1547_v21 = vmul.f32 %v1523_v16, %v1441_v23 }
 0x1a9   :  { %v1529_v22 = vrot.slane %v1519_v17, %v1522_v11 }
 0x1ab   :  { %v1531_v24 = vadd.f32 %v1529_v22, %v1524_v18  ;;  %v1536_v25 = vadd.f32 %v1535_v19, %v1529_v22  ;;  %v1542_v26 = vadd.f32 %v1541_v20, %v1529_v22  ;;  %v1548_v27 = vadd.f32 %v1547_v21, %v1529_v22 }
 0x1ad   :  { %v1532_v28 = vmax.f32 %v1531_v24, 0.0  ;;  %v1537_v29 = vmax.f32 %v1536_v25, 0.0  ;;  %v1543_v30 = vmax.f32 %v1542_v26, 0.0  ;;  %v1549_v32 = vmax.f32 %v1548_v27, 0.0 }
 0x1af   :  { %v1533_v33 = vpack.c.bf16 %v1532_v28, %v1532_v28  ;;  %v1538_v31 = vpack.c.bf16 %v1537_v29, %v1537_v29  ;;  %v1544_v35 = vpack.c.bf16 %v1543_v30, %v1543_v30  ;;  %v1550_v36 = vpack.c.bf16 %v1549_v32, %v1549_v32 }
 0x1b1   :  { %1534 = vst [vmem:[%s2164_s4] sm:$0xf] %v1533_v33  ;;  %1708 = vst [vmem:[%s2164_s4 + $0x4] sm:$0xf] %v1538_v31 }
 0x1b2   :  { %1709 = vst [vmem:[%s2164_s4 + $0x8] sm:$0xf] %v1544_v35  ;;  %1710 = vst [vmem:[%s2164_s4 + $0xc] sm:$0xf] %v1550_v36 }
 0x1b3   :  { %1557 = vsyncpa [#allocation3], 1 }

// kernel: _forward_jit.8
= control target key start
LH: loop header
LB: loop body
LE: loop exit
PB: predicated region body
PF: predicated region fallthrough
CT: control target
= control target key end

     0   :  { %s1970_s1 = inlined_call_operand.vmem [shape: bf16[4,256,128], index: 1, kind: input, shape index: {}]   ;;  %s1971_s0 = inlined_call_operand.vmem [shape: bf16[4,32,256], index: 0, kind: input, shape index: {}]   ;;  %s1972_s2 = inlined_call_operand.vmem [shape: f32[1,128], index: 2, kind: input, shape index: {}]   ;;  %s1973_s3 = inlined_call_operand.vmem [shape: f32[1,128], index: 3, kind: input, shape index: {}]   ;;  %s1974_s4 = inlined_call_operand.vmem [shape: bf16[4,32,128], index: 4, kind: output, shape index: {}]  }
   0x1   :  { %v1486_v0 = vld [vmem:[%s1970_s1 + $0x40] sm:$0xff]   ;;  %v1490_v4 = vld [vmem:[%s1970_s1 + $0x48] sm:$0xff]   ;;  %v1494_v8 = vld [vmem:[%s1970_s1 + $0x50] sm:$0xff]  }
   0x2   :  { %v1487_v1 = vld [vmem:[%s1970_s1 + $0xc0] sm:$0xff]   ;;  %1374 = vmatprep.subr.bf16.mxu0 %v1486_v0  ;;  %v1491_v5 = vld [vmem:[%s1970_s1 + $0xc8] sm:$0xff]   ;;  %v1495_v9 = vld [vmem:[%s1970_s1 + $0xd0] sm:$0xff]  }
   0x3   :  { %v1488_v2 = vld [vmem:[%s1970_s1] sm:$0xff]   ;;  %1402 = vmatprep.subr.bf16.mxu1 %v1487_v1  ;;  %v1492_v6 = vld [vmem:[%s1970_s1 + $0x8] sm:$0xff]   ;;  %v1496_v10 = vld [vmem:[%s1970_s1 + $0x10] sm:$0xff]  }
   0x4   :  { %v1489_v3 = vld [vmem:[%s1970_s1 + $0x80] sm:$0xff]   ;;  %1375 = vmatpush3.bf16.msra.mxu0 %v1488_v2  ;;  %v1493_v7 = vld [vmem:[%s1970_s1 + $0x88] sm:$0xff]   ;;  %v1497_v11 = vld [vmem:[%s1970_s1 + $0x90] sm:$0xff]  }
   0x5   :  { %1403 = vmatpush3.bf16.msra.mxu1 %v1489_v3  ;;  %1376 = vmatprep.subr.bf16.mxu0 %v1490_v4  ;;  %v1498_v12 = vld [vmem:[%s1970_s1 + $0x58] sm:$0xff]   ;;  %v1502_v16 = vld [vmem:[%s1970_s1 + $0x60] sm:$0xff]   ;;  %v1506_v20 = vld [vmem:[%s1970_s1 + $0x68] sm:$0xff]  }
   0x6   :  { %1404 = vmatprep.subr.bf16.mxu1 %v1491_v5  ;;  %v1499_v13 = vld [vmem:[%s1970_s1 + $0xd8] sm:$0xff]   ;;  %v1503_v17 = vld [vmem:[%s1970_s1 + $0xe0] sm:$0xff]   ;;  %v1507_v21 = vld [vmem:[%s1970_s1 + $0xe8] sm:$0xff]  }
   0x7   :  { %v1500_v14 = vld [vmem:[%s1970_s1 + $0x18] sm:$0xff]   ;;  %v1504_v18 = vld [vmem:[%s1970_s1 + $0x20] sm:$0xff]   ;;  %v1508_v22 = vld [vmem:[%s1970_s1 + $0x28] sm:$0xff]  }
   0x8   :  { %1377 = vmatpush3.bf16.msra.mxu0 %v1492_v6  ;;  %v1501_v15 = vld [vmem:[%s1970_s1 + $0x98] sm:$0xff]   ;;  %v1505_v19 = vld [vmem:[%s1970_s1 + $0xa0] sm:$0xff]   ;;  %v1509_v23 = vld [vmem:[%s1970_s1 + $0xa8] sm:$0xff]  }
   0x9   :  { %1405 = vmatpush3.bf16.msra.mxu1 %v1493_v7  ;;  %1378 = vmatprep.subr.bf16.mxu0 %v1494_v8  ;;  %v1510_v24 = vld [vmem:[%s1970_s1 + $0x70] sm:$0xff]   ;;  %v1514_v28 = vld [vmem:[%s1970_s1 + $0x78] sm:$0xff]   ;;  %v1518_v32 = vld [vmem:[%s1971_s0] ss:$8 sps:$4 sm:$0xff]  }
   0xa   :  { %1406 = vmatprep.subr.bf16.mxu1 %v1495_v9  ;;  %v1511_v25 = vld [vmem:[%s1970_s1 + $0xf0] sm:$0xff]   ;;  %v1515_v29 = vld [vmem:[%s1970_s1 + $0xf8] sm:$0xff]   ;;  %v1520_v33 = vld [vmem:[%s1971_s0 + $0x4] ss:$8 sps:$4 sm:$0xff]  }
   0xb   :  { %v1512_v26 = vld [vmem:[%s1970_s1 + $0x30] sm:$0xff]   ;;  %v1516_v30 = vld [vmem:[%s1970_s1 + $0x38] sm:$0xff]   ;;  %v1521_v34 = vld [vmem:[%s1971_s0 + $0x20] ss:$8 sps:$4 sm:$0xff]   ;;  %202 = vmatprep.mubr.bf16.mxu0 %v1520_v33 }
   0xc   :  { %1379 = vmatpush3.bf16.msra.mxu0 %v1496_v10  ;;  %v1513_v27 = vld [vmem:[%s1970_s1 + $0xb0] sm:$0xff]   ;;  %v1517_v31 = vld [vmem:[%s1970_s1 + $0xb8] sm:$0xff]   ;;  %v1523_v35 = vld [vmem:[%s1971_s0 + $0x24] ss:$8 sps:$4 sm:$0xff]  }
   0xd   :  { %1407 = vmatpush3.bf16.msra.mxu1 %v1497_v11  ;;  %1380 = vmatprep.subr.bf16.mxu0 %v1498_v12  ;;  %v1524_v36 = vld [vmem:[%s1970_s1 + $0x140] sm:$0xff]   ;;  %v1528_v40 = vld [vmem:[%s1970_s1 + $0x148] sm:$0xff]   ;;  %v1532_v44 = vld [vmem:[%s1971_s0 + $0x14] ss:$8 sps:$4 sm:$0xff]  }
   0xe   :  { %1408 = vmatprep.subr.bf16.mxu1 %v1499_v13  ;;  %405 = vmatprep.mubr.bf16.mxu1 %v1523_v35  ;;  %v1525_v37 = vld [vmem:[%s1970_s1 + $0x1c0] sm:$0xff]   ;;  %v1529_v41 = vld [vmem:[%s1970_s1 + $0x1c8] sm:$0xff]   ;;  %v1534_v45 = vld [vmem:[%s1971_s0 + $0x34] ss:$8 sps:$4 sm:$0xff]  }
   0xf   :  { %v1526_v38 = vld [vmem:[%s1970_s1 + $0x100] sm:$0xff]   ;;  %v1530_v42 = vld [vmem:[%s1970_s1 + $0x108] sm:$0xff]   ;;  %v1536_v46 = vld [vmem:[%s1971_s0 + $0x10] ss:$8 sps:$4 sm:$0xff]  }
  0x10   :  { %1381 = vmatpush3.bf16.msra.mxu0 %v1500_v14  ;;  %v1527_v39 = vld [vmem:[%s1970_s1 + $0x180] sm:$0xff]   ;;  %v1531_v43 = vld [vmem:[%s1970_s1 + $0x188] sm:$0xff]   ;;  %v1537_v47 = vld [vmem:[%s1971_s0 + $0x30] ss:$8 sps:$4 sm:$0xff]  }
  0x11   :  { %1409 = vmatpush3.bf16.msra.mxu1 %v1501_v15  ;;  %1382 = vmatprep.subr.bf16.mxu0 %v1502_v16  ;;  %v1538_v48 = vld [vmem:[%s1970_s1 + $0x150] sm:$0xff]   ;;  %v1542_v52 = vld [vmem:[%s1970_s1 + $0x158] sm:$0xff]   ;;  %v1546_v56 = vld [vmem:[%s1970_s1 + $0x160] sm:$0xff]  }
  0x12   :  { %1410 = vmatprep.subr.bf16.mxu1 %v1503_v17  ;;  %v1539_v49 = vld [vmem:[%s1970_s1 + $0x1d0] sm:$0xff]   ;;  %v1543_v53 = vld [vmem:[%s1970_s1 + $0x1d8] sm:$0xff]   ;;  %v1547_v57 = vld [vmem:[%s1970_s1 + $0x1e0] sm:$0xff]  }
  0x13   :  { %v1540_v50 = vld [vmem:[%s1970_s1 + $0x110] sm:$0xff]   ;;  %v1544_v54 = vld [vmem:[%s1970_s1 + $0x118] sm:$0xff]   ;;  %v1548_v58 = vld [vmem:[%s1970_s1 + $0x120] sm:$0xff]  }
  0x14   :  { %1383 = vmatpush3.bf16.msra.mxu0 %v1504_v18  ;;  %v1541_v51 = vld [vmem:[%s1970_s1 + $0x190] sm:$0xff]   ;;  %v1545_v55 = vld [vmem:[%s1970_s1 + $0x198] sm:$0xff]   ;;  %v1549_v59 = vld [vmem:[%s1970_s1 + $0x1a0] sm:$0xff]  }
  0x15   :  { %1411 = vmatpush3.bf16.msra.mxu1 %v1505_v19  ;;  %1384 = vmatprep.subr.bf16.mxu0 %v1506_v20  ;;  %v1550_v60 = vld [vmem:[%s1970_s1 + $0x168] sm:$0xff]   ;;  %v1554_v0 = vld [vmem:[%s1970_s1 + $0x170] sm:$0xff]   ;;  %v1558_v4 = vld [vmem:[%s1970_s1 + $0x178] sm:$0xff]  }
  0x16   :  { %1412 = vmatprep.subr.bf16.mxu1 %v1507_v21  ;;  %v1551_v61 = vld [vmem:[%s1970_s1 + $0x1e8] sm:$0xff]   ;;  %v1555_v1 = vld [vmem:[%s1970_s1 + $0x1f0] sm:$0xff]   ;;  %v1559_v5 = vld [vmem:[%s1970_s1 + $0x1f8] sm:$0xff]  }
  0x17   :  { %v1552_v62 = vld [vmem:[%s1970_s1 + $0x128] sm:$0xff]   ;;  %v1556_v2 = vld [vmem:[%s1970_s1 + $0x130] sm:$0xff]   ;;  %v1560_v6 = vld [vmem:[%s1970_s1 + $0x138] sm:$0xff]  }
  0x18   :  { %1385 = vmatpush3.bf16.msra.mxu0 %v1508_v22  ;;  %v1553_v63 = vld [vmem:[%s1970_s1 + $0x1a8] sm:$0xff]   ;;  %v1557_v3 = vld [vmem:[%s1970_s1 + $0x1b0] sm:$0xff]   ;;  %v1561_v7 = vld [vmem:[%s1970_s1 + $0x1b8] sm:$0xff]  }
  0x19   :  { %1413 = vmatpush3.bf16.msra.mxu1 %v1509_v23  ;;  %1386 = vmatprep.subr.bf16.mxu0 %v1510_v24  ;;  %v1562_v8 = vld [vmem:[%s1971_s0 + $0x40] ss:$8 sps:$4 sm:$0xff]   ;;  %v1564_v9 = vld [vmem:[%s1971_s0 + $0x44] ss:$8 sps:$4 sm:$0xff]   ;;  %v1568_v12 = vld [vmem:[%s1971_s0 + $0x54] ss:$8 sps:$4 sm:$0xff]  }
  0x1a   :  { %1414 = vmatprep.subr.bf16.mxu1 %v1511_v25  ;;  %v1565_v10 = vld [vmem:[%s1971_s0 + $0x60] ss:$8 sps:$4 sm:$0xff]   ;;  %v1567_v11 = vld [vmem:[%s1971_s0 + $0x64] ss:$8 sps:$4 sm:$0xff]   ;;  %v1570_v13 = vld [vmem:[%s1971_s0 + $0x74] ss:$8 sps:$4 sm:$0xff]  }
  0x1b   :  { %v1572_v14 = vld [vmem:[%s1971_s0 + $0x50] ss:$8 sps:$4 sm:$0xff]  }
  0x1c   :  { %1387 = vmatpush3.bf16.msra.mxu0 %v1512_v26  ;;  %v1573_v15 = vld [vmem:[%s1971_s0 + $0x70] ss:$8 sps:$4 sm:$0xff]  }
  0x1d   :  { %1415 = vmatpush3.bf16.msra.mxu1 %v1513_v27  ;;  %1388 = vmatprep.subr.bf16.mxu0 %v1514_v28 }
  0x1e   :  { %1416 = vmatprep.subr.bf16.mxu1 %v1515_v29 }
  0x20   :  { %1389 = vmatpush3.bf16.msra.mxu0 %v1516_v30 }
  0x21   :  { %1417 = vmatpush3.bf16.msra.mxu1 %v1517_v31  ;;  %1430 = vmatprep.subr.bf16.mxu0 %v1524_v36 }
  0x22   :  { %1458 = vmatprep.subr.bf16.mxu1 %v1525_v37 }
  0x23   :  { %203 = vmatmul.mubr.bf16.vlgmr.msra.gmra.mrb[0].mxu0 %v1518_v32 }
  0x24   :  { %406 = vmatmul.mubr.bf16.vlgmr.msra.gmra.mrb[0].mxu1 %v1521_v34  ;;  %1431 = vmatpush3.bf16.msra.mxu0 %v1526_v38 }
  0x25   :  { %1459 = vmatpush3.bf16.msra.mxu1 %v1527_v39  ;;  %1432 = vmatprep.subr.bf16.mxu0 %v1528_v40 }
  0x26   :  { %1460 = vmatprep.subr.bf16.mxu1 %v1529_v41  ;;  %210 = vmatprep.mubr.bf16.mxu0 %v1532_v44 }
  0x27   :  { %413 = vmatprep.mubr.bf16.mxu1 %v1534_v45 }
  0x28   :  { %1433 = vmatpush3.bf16.msra.mxu0 %v1530_v42 }
  0x29   :  { %1461 = vmatpush3.bf16.msra.mxu1 %v1531_v43  ;;  %1434 = vmatprep.subr.bf16.mxu0 %v1538_v48 }
  0x2a   :  { %1462 = vmatprep.subr.bf16.mxu1 %v1539_v49 }
  0x2b   :  { %211 = vmatmul.mubr.bf16.gmra.mrb[4].mxu0 %v1536_v46 }
  0x2c   :  { %414 = vmatmul.mubr.bf16.gmra.mrb[4].mxu1 %v1537_v47  ;;  %1435 = vmatpush3.bf16.msra.mxu0 %v1540_v50 }
  0x2d   :  { %1463 = vmatpush3.bf16.msra.mxu1 %v1541_v51  ;;  %1436 = vmatprep.subr.bf16.mxu0 %v1542_v52 }
  0x2e   :  { %1464 = vmatprep.subr.bf16.mxu1 %v1543_v53  ;;  %608 = vmatprep.mubr.bf16.mxu0 %v1564_v9 }
  0x2f   :  { %811 = vmatprep.mubr.bf16.mxu1 %v1567_v11 }
  0x30   :  { %1437 = vmatpush3.bf16.msra.mxu0 %v1544_v54 }
  0x31   :  { %1465 = vmatpush3.bf16.msra.mxu1 %v1545_v55  ;;  %1438 = vmatprep.subr.bf16.mxu0 %v1546_v56 }
  0x32   :  { %1466 = vmatprep.subr.bf16.mxu1 %v1547_v57 }
  0x34   :  { %1439 = vmatpush3.bf16.msra.mxu0 %v1548_v58 }
  0x35   :  { %1467 = vmatpush3.bf16.msra.mxu1 %v1549_v59  ;;  %1440 = vmatprep.subr.bf16.mxu0 %v1550_v60 }
  0x36   :  { %1468 = vmatprep.subr.bf16.mxu1 %v1551_v61 }
  0x38   :  { %1441 = vmatpush3.bf16.msra.mxu0 %v1552_v62 }
  0x39   :  { %1469 = vmatpush3.bf16.msra.mxu1 %v1553_v63  ;;  %1442 = vmatprep.subr.bf16.mxu0 %v1554_v0 }
  0x3a   :  { %1470 = vmatprep.subr.bf16.mxu1 %v1555_v1 }
  0x3c   :  { %1443 = vmatpush3.bf16.msra.mxu0 %v1556_v2 }
  0x3d   :  { %1471 = vmatpush3.bf16.msra.mxu1 %v1557_v3  ;;  %1444 = vmatprep.subr.bf16.mxu0 %v1558_v4 }
  0x3e   :  { %1472 = vmatprep.subr.bf16.mxu1 %v1559_v5 }
  0x40   :  { %1445 = vmatpush3.bf16.msra.mxu0 %v1560_v6 }
  0x41   :  { %1473 = vmatpush3.bf16.msra.mxu1 %v1561_v7 }
  0x43   :  { %609 = vmatmul.mubr.bf16.vlgmr.msra.gmra.mrb[8].mxu0 %v1562_v8 }
  0x44   :  { %812 = vmatmul.mubr.bf16.vlgmr.msra.gmra.mrb[8].mxu1 %v1565_v10  ;;  %616 = vmatprep.mubr.bf16.mxu0 %v1568_v12 }
  0x45   :  { %819 = vmatprep.mubr.bf16.mxu1 %v1570_v13 }
  0x4b   :  { %617 = vmatmul.mubr.bf16.gmra.mrb[12].mxu0 %v1572_v14 }
  0x4c   :  { %820 = vmatmul.mubr.bf16.gmra.mrb[12].mxu1 %v1573_v15 }
  0xf6   :  { %v1390_v16 = vpop.f32.mrb[0].mxu0 }
  0xf7   :  { %v1418_v17 = vpop.f32.mrb[0].mxu1  ;;  %v1391_v18 = vpop.f32.mrb[1].mxu0 }
  0xf8   :  { %v1841_v19 = vadd.f32 %v1391_v18, %v1390_v16  ;;  %v1419_v20 = vpop.f32.mrb[1].mxu1  ;;  %v1393_v21 = vpop.f32.mrb[2].mxu0 }
  0xf9   :  { %v1843_v22 = vadd.f32 %v1419_v20, %v1418_v17  ;;  %v1421_v23 = vpop.f32.mrb[2].mxu1  ;;  %v1394_v24 = vpop.f32.mrb[3].mxu0 }
  0xfa   :  { %v1845_v25 = vadd.f32 %v1394_v24, %v1393_v21  ;;  %v1422_v26 = vpop.f32.mrb[3].mxu1 }
  0xfb   :  { %v1847_v27 = vadd.f32 %v1422_v26, %v1421_v23 }
  0xfc   :  { %v828_v40 = vadd.f32 %v1845_v25, %v1841_v19 }
  0xfd   :  { %v838_v41 = vadd.f32 %v1847_v27, %v1843_v22 }
  0xfe   :  { %v1396_v28 = vpop.f32.mrb[4].mxu0 }
  0xff   :  { %v1424_v29 = vpop.f32.mrb[4].mxu1  ;;  %v1397_v30 = vpop.f32.mrb[5].mxu0 }
 0x100   :  { %v1849_v31 = vadd.f32 %v1397_v30, %v1396_v28  ;;  %v1425_v32 = vpop.f32.mrb[5].mxu1  ;;  %v1399_v33 = vpop.f32.mrb[6].mxu0 }
 0x101   :  { %v1851_v34 = vadd.f32 %v1425_v32, %v1424_v29  ;;  %v1427_v35 = vpop.f32.mrb[6].mxu1  ;;  %v1400_v36 = vpop.f32.mrb[7].mxu0 }
 0x102   :  { %v1853_v37 = vadd.f32 %v1400_v36, %v1399_v33  ;;  %v1428_v38 = vpop.f32.mrb[7].mxu1  ;;  %v829_v42 = vadd.f32 %v1849_v31, %v828_v40 }
 0x103   :  { %v1855_v39 = vadd.f32 %v1428_v38, %v1427_v35  ;;  %v839_v43 = vadd.f32 %v1851_v34, %v838_v41 }
 0x104   :  { %v830_v44 = vadd.f32 %v1853_v37, %v829_v42 }
 0x105   :  { %v840_v45 = vadd.f32 %v1855_v39, %v839_v43 }
 0x106   :  { %v831_v49 = vrot.slane %v830_v44, 4 }
 0x107   :  { %v841_v50 = vrot.slane %v840_v45, 4 }
 0x108   :  { %v832_v60 = vadd.f32 %v831_v49, %v830_v44 }
 0x109   :  { %v842_v61 = vadd.f32 %v841_v50, %v840_v45 }
 0x10a   :  { %v833_v1 = vrot.slane %v832_v60, 2 }
 0x10b   :  { %v843_v2 = vrot.slane %v842_v61, 2 }
 0x10c   :  { %v834_v16 = vadd.f32 %v833_v1, %v832_v60 }
 0x10d   :  { %v844_v17 = vadd.f32 %v843_v2, %v842_v61 }
 0x10e   :  { %v835_v24 = vrot.slane %v834_v16, 1 }
 0x10f   :  { %v845_v26 = vrot.slane %v844_v17, 1 }
 0x110   :  { %v836_v33 = vadd.f32 %v835_v24, %v834_v16 }
 0x111   :  { %v846_v35 = vadd.f32 %v845_v26, %v844_v17 }
 0x113   :  { %v847_v42 = vadd.f32 %v846_v35, %v836_v33 }
 0x116   :  { %v1446_v46 = vpop.f32.mrb[8].mxu0 }
 0x117   :  { %v1474_v47 = vpop.f32.mrb[8].mxu1  ;;  %v1447_v48 = vpop.f32.mrb[9].mxu0 }
 0x118   :  { %v1865_v51 = vadd.f32 %v1447_v48, %v1446_v46  ;;  %v1475_v52 = vpop.f32.mrb[9].mxu1  ;;  %v1449_v53 = vpop.f32.mrb[10].mxu0 }
 0x119   :  { %v1867_v54 = vadd.f32 %v1475_v52, %v1474_v47  ;;  %v1477_v55 = vpop.f32.mrb[10].mxu1  ;;  %v1450_v56 = vpop.f32.mrb[11].mxu0 }
 0x11a   :  { %v1869_v57 = vadd.f32 %v1450_v56, %v1449_v53  ;;  %v1478_v58 = vpop.f32.mrb[11].mxu1 }
 0x11b   :  { %v1871_v59 = vadd.f32 %v1478_v58, %v1477_v55 }
 0x11c   :  { %v848_v3 = vadd.f32 %v1869_v57, %v1865_v51 }
 0x11d   :  { %v858_v7 = vadd.f32 %v1871_v59, %v1867_v54 }
 0x11e   :  { %v1452_v62 = vpop.f32.mrb[12].mxu0 }
 0x11f   :  { %v1480_v63 = vpop.f32.mrb[12].mxu1  ;;  %v1453_v0 = vpop.f32.mrb[13].mxu0 }
 0x120   :  { %v1875_v4 = vadd.f32 %v1453_v0, %v1452_v62  ;;  %v1481_v5 = vpop.f32.mrb[13].mxu1  ;;  %v1455_v6 = vpop.f32.mrb[14].mxu0 }
 0x121   :  { %v1879_v8 = vadd.f32 %v1481_v5, %v1480_v63  ;;  %v1483_v9 = vpop.f32.mrb[14].mxu1  ;;  %v1456_v10 = vpop.f32.mrb[15].mxu0 }
 0x122   :  { %v849_v11 = vadd.f32 %v1875_v4, %v848_v3  ;;  %v1882_v12 = vadd.f32 %v1456_v10, %v1455_v6  ;;  %v1484_v13 = vpop.f32.mrb[15].mxu1 }
 0x123   :  { %v859_v14 = vadd.f32 %v1879_v8, %v858_v7  ;;  %v1885_v15 = vadd.f32 %v1484_v13, %v1483_v9 }
 0x124   :  { %v850_v18 = vadd.f32 %v1882_v12, %v849_v11 }
 0x125   :  { %v860_v20 = vadd.f32 %v1885_v15, %v859_v14 }
 0x126   :  { %v851_v21 = vrot.slane %v850_v18, 4 }
 0x127   :  { %v861_v23 = vrot.slane %v860_v20, 4 }
 0x128   :  { %v852_v28 = vadd.f32 %v851_v21, %v850_v18 }
 0x129   :  { %v862_v29 = vadd.f32 %v861_v23, %v860_v20 }
 0x12a   :  { %v853_v30 = vrot.slane %v852_v28, 2 }
 0x12b   :  { %v863_v32 = vrot.slane %v862_v29, 2 }
 0x12c   :  { %v854_v36 = vadd.f32 %v853_v30, %v852_v28 }
 0x12d   :  { %v864_v38 = vadd.f32 %v863_v32, %v862_v29 }
 0x12e   :  { %v855_v40 = vrot.slane %v854_v36, 1 }
 0x12f   :  { %v865_v41 = vrot.slane %v864_v38, 1 }
 0x130   :  { %v856_v43 = vadd.f32 %v855_v40, %v854_v36 }
 0x131   :  { %v866_v45 = vadd.f32 %v865_v41, %v864_v38 }
 0x132   :  { %v857_v44 = vadd.f32 %v856_v43, %v847_v42 }
 0x134   :  { %v867_v46 = vadd.f32 %v866_v45, %v857_v44 }
 0x136   :  { %v1889_v47 = vmul.f32 0.0078125, %v867_v46 }
 0x138   :  { %v870_v48 = vsub.f32 %v1841_v19, %v1889_v47  ;;  %v871_v49 = vsub.f32 %v1845_v25, %v1889_v47  ;;  %v872_v50 = vsub.f32 %v1849_v31, %v1889_v47  ;;  %v873_v52 = vsub.f32 %v1853_v37, %v1889_v47 }
 0x139   :  { %v888_v53 = vsub.f32 %v1843_v22, %v1889_v47  ;;  %v889_v55 = vsub.f32 %v1847_v27, %v1889_v47  ;;  %v890_v56 = vsub.f32 %v1851_v34, %v1889_v47  ;;  %v891_v62 = vsub.f32 %v1855_v39, %v1889_v47 }
 0x13a   :  { %v874_v58 = vmul.f32 %v870_v48, %v870_v48  ;;  %v875_v60 = vmul.f32 %v871_v49, %v871_v49  ;;  %v876_v61 = vmul.f32 %v872_v50, %v872_v50  ;;  %v877_v63 = vmul.f32 %v873_v52, %v873_v52 }
 0x13b   :  { %v892_v0 = vmul.f32 %v888_v53, %v888_v53  ;;  %v893_v1 = vmul.f32 %v889_v55, %v889_v55  ;;  %v894_v2 = vmul.f32 %v890_v56, %v890_v56  ;;  %v906_v5 = vsub.f32 %v1865_v51, %v1889_v47 }
 0x13c   :  { %v878_v3 = vadd.f32 %v875_v60, %v874_v58  ;;  %v907_v6 = vsub.f32 %v1869_v57, %v1889_v47  ;;  %v908_v7 = vsub.f32 %v1875_v4, %v1889_v47  ;;  %v909_v10 = vsub.f32 %v1882_v12, %v1889_v47 }
 0x13d   :  { %v896_v9 = vadd.f32 %v893_v1, %v892_v0  ;;  %v924_v11 = vsub.f32 %v1867_v54, %v1889_v47  ;;  %v925_v13 = vsub.f32 %v1871_v59, %v1889_v47  ;;  %v895_v16 = vmul.f32 %v891_v62, %v891_v62 }
 0x13e   :  { %v879_v14 = vadd.f32 %v878_v3, %v876_v61  ;;  %v910_v17 = vmul.f32 %v906_v5, %v906_v5  ;;  %v911_v18 = vmul.f32 %v907_v6, %v907_v6  ;;  %v912_v21 = vmul.f32 %v908_v7, %v908_v7 }
 0x13f   :  { %v897_v20 = vadd.f32 %v896_v9, %v894_v2  ;;  %v926_v23 = vsub.f32 %v1879_v8, %v1889_v47  ;;  %v927_v24 = vsub.f32 %v1885_v15, %v1889_v47  ;;  %v928_v29 = vmul.f32 %v924_v11, %v924_v11 }
 0x140   :  { %v880_v26 = vadd.f32 %v879_v14, %v877_v63  ;;  %v914_v28 = vadd.f32 %v911_v18, %v910_v17  ;;  %v929_v30 = vmul.f32 %v925_v13, %v925_v13  ;;  %v913_v33 = vmul.f32 %v909_v10, %v909_v10 }
 0x141   :  { %v898_v32 = vadd.f32 %v897_v20, %v895_v16  ;;  %v930_v38 = vmul.f32 %v926_v23, %v926_v23  ;;  %v931_v44 = vmul.f32 %v927_v24, %v927_v24  ;;  %v950_v18 = vlaneseq }
 0x142   :  { %v881_v35 = vrot.slane %v880_v26, 4  ;;  %v915_v36 = vadd.f32 %v914_v28, %v912_v21  ;;  %v932_v40 = vadd.f32 %v929_v30, %v928_v29  ;;  %v945_v21 = vld [vmem:[%s1972_s2] sm:$0x1] }
 0x143   :  { %v899_v41 = vrot.slane %v898_v32, 4  ;;  %v951_v20 = vshrl.u32 %v950_v18, 7  ;;  %v947_v28 = vld [vmem:[%s1973_s3] sm:$0x1] }
 0x144   :  { %v882_v42 = vadd.f32 %v881_v35, %v880_v26  ;;  %v916_v43 = vadd.f32 %v915_v36, %v913_v33  ;;  %v933_v45 = vadd.f32 %v932_v40, %v930_v38 }
 0x145   :  { %v900_v46 = vadd.f32 %v899_v41, %v898_v32  ;;  %v952_v23 = vsub.s32 0, %v951_v20 }
 0x146   :  { %v883_v48 = vrot.slane %v882_v42, 2  ;;  %v917_v49 = vrot.slane %v916_v43, 4  ;;  %v934_v50 = vadd.f32 %v933_v45, %v931_v44 }
 0x147   :  { %v901_v52 = vrot.slane %v900_v46, 2 }
 0x148   :  { %v884_v53 = vadd.f32 %v883_v48, %v882_v42  ;;  %v918_v55 = vadd.f32 %v917_v49, %v916_v43  ;;  %v935_v56 = vrot.slane %v934_v50, 4 }
 0x149   :  { %v902_v58 = vadd.f32 %v901_v52, %v900_v46 }
 0x14a   :  { %v885_v60 = vrot.slane %v884_v53, 1  ;;  %v919_v61 = vrot.slane %v918_v55, 2  ;;  %v936_v62 = vadd.f32 %v935_v56, %v934_v50 }
 0x14b   :  { %v903_v63 = vrot.slane %v902_v58, 1 }
 0x14c   :  { %v886_v0 = vadd.f32 %v885_v60, %v884_v53  ;;  %v920_v1 = vadd.f32 %v919_v61, %v918_v55  ;;  %v937_v2 = vrot.slane %v936_v62, 2 }
 0x14d   :  { %v904_v3 = vadd.f32 %v903_v63, %v902_v58 }
 0x14e   :  { %v921_v5 = vrot.slane %v920_v1, 1  ;;  %v938_v6 = vadd.f32 %v937_v2, %v936_v62 }
 0x14f   :  { %v905_v7 = vadd.f32 %v904_v3, %v886_v0 }
 0x150   :  { %v922_v9 = vadd.f32 %v921_v5, %v920_v1  ;;  %v939_v10 = vrot.slane %v938_v6, 1 }
 0x152   :  { %v923_v11 = vadd.f32 %v922_v9, %v905_v7  ;;  %v940_v13 = vadd.f32 %v939_v10, %v938_v6 }
 0x154   :  { %v941_v14 = vadd.f32 %v940_v13, %v923_v11 }
 0x156   :  { %v942_v16 = vmul.f32 0.0078125, %v941_v14 }
 0x158   :  { %v943_v17 = vadd.f32 1e-05, %v942_v16 }
 0x15a   :  { %1574 = vrsqrt.f32 %v943_v17 }
 0x164   :  { %v1575_v24 = vpop.eup %1574 }
 0x165   :  { %v946_v26 = vmul.f32 %v1575_v24, %v945_v21 }
 0x167   :  { %v948_v29 = vmul.f32 %v946_v26, %v1889_v47  ;;  %v953_v30 = vrot.slane %v946_v26, %v952_v23 }
 0x169   :  { %v949_v32 = vsub.f32 %v947_v28, %v948_v29  ;;  %v954_v33 = vmul.f32 %v1841_v19, %v953_v30  ;;  %v955_v35 = vmul.f32 %v1845_v25, %v953_v30  ;;  %v956_v36 = vmul.f32 %v1849_v31, %v953_v30 }
 0x16a   :  { %v957_v38 = vmul.f32 %v1853_v37, %v953_v30  ;;  %v992_v40 = vmul.f32 %v1843_v22, %v953_v30  ;;  %v993_v41 = vmul.f32 %v1847_v27, %v953_v30  ;;  %v994_v42 = vmul.f32 %v1851_v34, %v953_v30 }
 0x16b   :  { %v962_v43 = vrot.slane %v949_v32, %v952_v23  ;;  %v995_v44 = vmul.f32 %v1855_v39, %v953_v30  ;;  %v1025_v47 = vmul.f32 %v1865_v51, %v953_v30  ;;  %v1026_v45 = vmul.f32 %v1869_v57, %v953_v30 }
 0x16c   :  { %v1027_v19 = vmul.f32 %v1875_v4, %v953_v30  ;;  %v1028_v25 = vmul.f32 %v1882_v12, %v953_v30  ;;  %v1058_v31 = vmul.f32 %v1867_v54, %v953_v30  ;;  %v1059_v37 = vmul.f32 %v1871_v59, %v953_v30 }
 0x16d   :  { %v964_v22 = vadd.f32 %v962_v43, %v954_v33  ;;  %v965_v46 = vadd.f32 %v962_v43, %v955_v35  ;;  %v966_v27 = vadd.f32 %v962_v43, %v956_v36  ;;  %v967_v48 = vadd.f32 %v962_v43, %v957_v38 }
 0x16e   :  { %v996_v34 = vadd.f32 %v992_v40, %v962_v43  ;;  %v997_v49 = vadd.f32 %v993_v41, %v962_v43  ;;  %v998_v50 = vadd.f32 %v994_v42, %v962_v43  ;;  %v999_v39 = vadd.f32 %v995_v44, %v962_v43 }
 0x16f   :  { %v968_v52 = vmax.f32 %v964_v22, 0.0  ;;  %v969_v51 = vmax.f32 %v965_v46, 0.0  ;;  %v970_v53 = vmax.f32 %v966_v27, 0.0  ;;  %v971_v57 = vmax.f32 %v967_v48, 0.0 }
 0x170   :  { %v1000_v55 = vmax.f32 %v996_v34, 0.0  ;;  %v1001_v4 = vmax.f32 %v997_v49, 0.0  ;;  %v1002_v56 = vmax.f32 %v998_v50, 0.0  ;;  %v1003_v12 = vmax.f32 %v999_v39, 0.0 }
 0x171   :  { %v1330_v58 = vpack.c.bf16 %v969_v51, %v968_v52  ;;  %v1335_v54 = vpack.c.bf16 %v971_v57, %v970_v53  ;;  %v1029_v60 = vadd.f32 %v1025_v47, %v962_v43  ;;  %v1030_v59 = vadd.f32 %v1026_v45, %v962_v43 }
 0x172   :  { %v1340_v61 = vpack.c.bf16 %v1001_v4, %v1000_v55  ;;  %v1345_v62 = vpack.c.bf16 %v1003_v12, %v1002_v56  ;;  %v1031_v63 = vadd.f32 %v1027_v19, %v962_v43  ;;  %v1032_v0 = vadd.f32 %v1028_v25, %v962_v43 }
 0x173   :  { %1331 = vst [vmem:[%s1974_s4] sm:$0xff] %v1330_v58   ;;  %1367 = vst [vmem:[%s1974_s4 + $0x8] sm:$0xff] %v1335_v54   ;;  %v1033_v1 = vmax.f32 %v1029_v60, 0.0  ;;  %v1034_v2 = vmax.f32 %v1030_v59, 0.0  ;;  %v1060_v3 = vmul.f32 %v1879_v8, %v953_v30  ;;  %v1061_v5 = vmul.f32 %v1885_v15, %v953_v30 }
 0x174   :  { %1368 = vst [vmem:[%s1974_s4 + $0x10] sm:$0xff] %v1340_v61   ;;  %1369 = vst [vmem:[%s1974_s4 + $0x18] sm:$0xff] %v1345_v62   ;;  %v1035_v6 = vmax.f32 %v1031_v63, 0.0  ;;  %v1036_v7 = vmax.f32 %v1032_v0, 0.0  ;;  %v1062_v9 = vadd.f32 %v1058_v31, %v962_v43  ;;  %v1063_v10 = vadd.f32 %v1059_v37, %v962_v43 }
 0x175   :  { %v1350_v11 = vpack.c.bf16 %v1034_v2, %v1033_v1  ;;  %v1064_v13 = vadd.f32 %v1060_v3, %v962_v43  ;;  %v1065_v14 = vadd.f32 %v1061_v5, %v962_v43 }
 0x176   :  { %v1355_v16 = vpack.c.bf16 %v1036_v7, %v1035_v6  ;;  %v1066_v17 = vmax.f32 %v1062_v9, 0.0  ;;  %v1067_v8 = vmax.f32 %v1063_v10, 0.0 }
 0x177   :  { %1370 = vst [vmem:[%s1974_s4 + $0x20] sm:$0xff] %v1350_v11   ;;  %v1068_v15 = vmax.f32 %v1064_v13, 0.0  ;;  %v1069_v18 = vmax.f32 %v1065_v14, 0.0 }
 0x178   :  { %1371 = vst [vmem:[%s1974_s4 + $0x28] sm:$0xff] %v1355_v16   ;;  %v1360_v20 = vpack.c.bf16 %v1067_v8, %v1066_v17 }
 0x179   :  { %v1365_v21 = vpack.c.bf16 %v1069_v18, %v1068_v15 }
 0x17a   :  { %1372 = vst [vmem:[%s1974_s4 + $0x30] sm:$0xff] %v1360_v20  }
 0x17b   :  { %1373 = vst [vmem:[%s1974_s4 + $0x38] sm:$0xff] %v1365_v21  }

// kernel: _forward_jit.9
= control target key start
LH: loop header
LB: loop body
LE: loop exit
PB: predicated region body
PF: predicated region fallthrough
CT: control target
= control target key end

     0   :  { %s3408_s1 = inlined_call_operand.vmem [shape: bf16[4,128,128], index: 1, kind: input, shape index: {}]   ;;  %s3409_s0 = inlined_call_operand.vmem [shape: bf16[4,128,128], index: 0, kind: input, shape index: {}]   ;;  %s3410_s2 = inlined_call_operand.vmem [shape: f32[1,128], index: 2, kind: input, shape index: {}]   ;;  %s3411_s3 = inlined_call_operand.vmem [shape: f32[1,128], index: 3, kind: input, shape index: {}]   ;;  %s3412_s4 = inlined_call_operand.vmem [shape: bf16[4,128,128], index: 4, kind: output, shape index: {}]  }
   0x1   :  { %v2486_v0 = vld [vmem:[%s3408_s1] sm:$0xff]   ;;  %v2488_v2 = vld [vmem:[%s3408_s1 + $0x8] sm:$0xff]   ;;  %v2490_v4 = vld [vmem:[%s3408_s1 + $0x10] sm:$0xff]  }
   0x2   :  { %v2487_v1 = vld [vmem:[%s3408_s1 + $0x40] sm:$0xff]   ;;  %2358 = vmatprep.subr.bf16.mxu0 %v2486_v0  ;;  %v2489_v3 = vld [vmem:[%s3408_s1 + $0x48] sm:$0xff]   ;;  %v2491_v5 = vld [vmem:[%s3408_s1 + $0x50] sm:$0xff]  }
   0x3   :  { %2390 = vmatprep.subr.bf16.mxu1 %v2487_v1  ;;  %2359 = vmatpush3.bf16.msra.mxu0 %v2486_v0  ;;  %v2492_v6 = vld [vmem:[%s3408_s1 + $0x18] sm:$0xff]   ;;  %v2494_v8 = vld [vmem:[%s3408_s1 + $0x20] sm:$0xff]   ;;  %v2496_v10 = vld [vmem:[%s3408_s1 + $0x28] sm:$0xff]  }
   0x4   :  { %2391 = vmatpush3.bf16.msra.mxu1 %v2487_v1  ;;  %2360 = vmatprep.subr.bf16.mxu0 %v2488_v2  ;;  %v2493_v7 = vld [vmem:[%s3408_s1 + $0x58] sm:$0xff]   ;;  %v2495_v9 = vld [vmem:[%s3408_s1 + $0x60] sm:$0xff]   ;;  %v2497_v11 = vld [vmem:[%s3408_s1 + $0x68] sm:$0xff]  }
   0x5   :  { %2392 = vmatprep.subr.bf16.mxu1 %v2489_v3  ;;  %v2502_v12 = vld [vmem:[%s3409_s0] sm:$0xff]   ;;  %v2498_v14 = vld [vmem:[%s3408_s1 + $0x30] sm:$0xff]   ;;  %v2500_v16 = vld [vmem:[%s3408_s1 + $0x38] sm:$0xff]  }
   0x6   :  { %v2503_v13 = vld [vmem:[%s3409_s0 + $0x40] sm:$0xff]   ;;  %2374 = vmatprep.mubr.bf16.mxu0 %v2502_v12  ;;  %v2499_v15 = vld [vmem:[%s3408_s1 + $0x70] sm:$0xff]   ;;  %v2501_v17 = vld [vmem:[%s3408_s1 + $0x78] sm:$0xff]  }
   0x7   :  { %2361 = vmatpush3.bf16.msra.mxu0 %v2488_v2  ;;  %2406 = vmatprep.mubr.bf16.mxu1 %v2503_v13  ;;  %v2504_v18 = vld [vmem:[%s3409_s0 + $0x8] sm:$0xff]   ;;  %v2506_v19 = vld [vmem:[%s3408_s1 + $0x80] sm:$0xff]   ;;  %v2510_v24 = vld [vmem:[%s3409_s0 + $0x10] sm:$0xff]  }
   0x8   :  { %2393 = vmatpush3.bf16.msra.mxu1 %v2489_v3  ;;  %2362 = vmatprep.subr.bf16.mxu0 %v2490_v4  ;;  %v2507_v20 = vld [vmem:[%s3408_s1 + $0xc0] sm:$0xff]   ;;  %v2505_v21 = vld [vmem:[%s3409_s0 + $0x48] sm:$0xff]   ;;  %v2511_v25 = vld [vmem:[%s3409_s0 + $0x50] sm:$0xff]  }
   0x9   :  { %2394 = vmatprep.subr.bf16.mxu1 %v2491_v5  ;;  %v2508_v22 = vld [vmem:[%s3408_s1 + $0x88] sm:$0xff]   ;;  %v2512_v26 = vld [vmem:[%s3409_s0 + $0x18] sm:$0xff]   ;;  %v2514_v27 = vld [vmem:[%s3408_s1 + $0x90] sm:$0xff]  }
   0xa   :  { %v2509_v23 = vld [vmem:[%s3408_s1 + $0xc8] sm:$0xff]   ;;  %v2515_v28 = vld [vmem:[%s3408_s1 + $0xd0] sm:$0xff]   ;;  %v2513_v29 = vld [vmem:[%s3409_s0 + $0x58] sm:$0xff]  }
   0xb   :  { %2363 = vmatpush3.bf16.msra.mxu0 %v2490_v4  ;;  %v2516_v30 = vld [vmem:[%s3408_s1 + $0x98] sm:$0xff]   ;;  %v2518_v32 = vld [vmem:[%s3409_s0 + $0x20] sm:$0xff]   ;;  %v2520_v34 = vld [vmem:[%s3409_s0 + $0x28] sm:$0xff]  }
   0xc   :  { %2395 = vmatpush3.bf16.msra.mxu1 %v2491_v5  ;;  %2364 = vmatprep.subr.bf16.mxu0 %v2492_v6  ;;  %v2517_v31 = vld [vmem:[%s3408_s1 + $0xd8] sm:$0xff]   ;;  %v2519_v33 = vld [vmem:[%s3409_s0 + $0x60] sm:$0xff]   ;;  %v2521_v37 = vld [vmem:[%s3409_s0 + $0x68] sm:$0xff]  }
   0xd   :  { %2396 = vmatprep.subr.bf16.mxu1 %v2493_v7  ;;  %v2522_v35 = vld [vmem:[%s3408_s1 + $0xa0] sm:$0xff]   ;;  %v2524_v38 = vld [vmem:[%s3408_s1 + $0xa8] sm:$0xff]   ;;  %v2526_v40 = vld [vmem:[%s3409_s0 + $0x30] sm:$0xff]  }
   0xe   :  { %v2523_v36 = vld [vmem:[%s3408_s1 + $0xe0] sm:$0xff]   ;;  %v2525_v39 = vld [vmem:[%s3408_s1 + $0xe8] sm:$0xff]   ;;  %v2527_v41 = vld [vmem:[%s3409_s0 + $0x70] sm:$0xff]  }
   0xf   :  { %2365 = vmatpush3.bf16.msra.mxu0 %v2492_v6  ;;  %v2528_v42 = vld [vmem:[%s3409_s0 + $0x38] sm:$0xff]   ;;  %v2530_v43 = vld [vmem:[%s3408_s1 + $0xb0] sm:$0xff]   ;;  %v2534_v48 = vld [vmem:[%s3409_s0 + $0x80] sm:$0xff]  }
  0x10   :  { %2397 = vmatpush3.bf16.msra.mxu1 %v2493_v7  ;;  %2366 = vmatprep.subr.bf16.mxu0 %v2494_v8  ;;  %v2531_v44 = vld [vmem:[%s3408_s1 + $0xf0] sm:$0xff]   ;;  %v2529_v45 = vld [vmem:[%s3409_s0 + $0x78] sm:$0xff]   ;;  %v2535_v49 = vld [vmem:[%s3409_s0 + $0xc0] sm:$0xff]  }
  0x11   :  { %2398 = vmatprep.subr.bf16.mxu1 %v2495_v9  ;;  %v2532_v46 = vld [vmem:[%s3408_s1 + $0xb8] sm:$0xff]   ;;  %v2536_v50 = vld [vmem:[%s3409_s0 + $0x88] sm:$0xff]   ;;  %v2538_v52 = vld [vmem:[%s3409_s0 + $0x90] sm:$0xff]  }
  0x12   :  { %v2533_v47 = vld [vmem:[%s3408_s1 + $0xf8] sm:$0xff]   ;;  %v2537_v51 = vld [vmem:[%s3409_s0 + $0xc8] sm:$0xff]   ;;  %v2539_v53 = vld [vmem:[%s3409_s0 + $0xd0] sm:$0xff]  }
  0x13   :  { %2367 = vmatpush3.bf16.msra.mxu0 %v2494_v8  ;;  %v2540_v54 = vld [vmem:[%s3409_s0 + $0x98] sm:$0xff]   ;;  %v2542_v56 = vld [vmem:[%s3409_s0 + $0xa0] sm:$0xff]   ;;  %v2544_v58 = vld [vmem:[%s3409_s0 + $0xa8] sm:$0xff]  }
  0x14   :  { %2399 = vmatpush3.bf16.msra.mxu1 %v2495_v9  ;;  %2368 = vmatprep.subr.bf16.mxu0 %v2496_v10  ;;  %v2541_v55 = vld [vmem:[%s3409_s0 + $0xd8] sm:$0xff]   ;;  %v2543_v57 = vld [vmem:[%s3409_s0 + $0xe0] sm:$0xff]   ;;  %v2545_v59 = vld [vmem:[%s3409_s0 + $0xe8] sm:$0xff]  }
  0x15   :  { %2400 = vmatprep.subr.bf16.mxu1 %v2497_v11  ;;  %v2546_v60 = vld [vmem:[%s3409_s0 + $0xb0] sm:$0xff]   ;;  %v2548_v62 = vld [vmem:[%s3409_s0 + $0xb8] sm:$0xff]  }
  0x16   :  { %v2547_v61 = vld [vmem:[%s3409_s0 + $0xf0] sm:$0xff]   ;;  %v2549_v63 = vld [vmem:[%s3409_s0 + $0xf8] sm:$0xff]  }
  0x17   :  { %2369 = vmatpush3.bf16.msra.mxu0 %v2496_v10 }
  0x18   :  { %2401 = vmatpush3.bf16.msra.mxu1 %v2497_v11  ;;  %2370 = vmatprep.subr.bf16.mxu0 %v2498_v14 }
  0x19   :  { %2402 = vmatprep.subr.bf16.mxu1 %v2499_v15 }
  0x1b   :  { %2371 = vmatpush3.bf16.msra.mxu0 %v2498_v14 }
  0x1c   :  { %2403 = vmatpush3.bf16.msra.mxu1 %v2499_v15  ;;  %2372 = vmatprep.subr.bf16.mxu0 %v2500_v16 }
  0x1d   :  { %2404 = vmatprep.subr.bf16.mxu1 %v2501_v17 }
  0x1f   :  { %2373 = vmatpush3.bf16.msra.mxu0 %v2500_v16 }
  0x20   :  { %2405 = vmatpush3.bf16.msra.mxu1 %v2501_v17  ;;  %2422 = vmatprep.subr.bf16.mxu0 %v2506_v19 }
  0x21   :  { %2454 = vmatprep.subr.bf16.mxu1 %v2507_v20 }
  0x22   :  { %2375 = vmatmul.mubr.bf16.vlgmr.msra.gmra.mrb[0].mxu0 %v2504_v18 }
  0x23   :  { %2407 = vmatmul.mubr.bf16.vlgmr.msra.gmra.mrb[0].mxu1 %v2505_v21  ;;  %2423 = vmatpush3.bf16.msra.mxu0 %v2506_v19 }
  0x24   :  { %2455 = vmatpush3.bf16.msra.mxu1 %v2507_v20  ;;  %2424 = vmatprep.subr.bf16.mxu0 %v2508_v22 }
  0x25   :  { %2456 = vmatprep.subr.bf16.mxu1 %v2509_v23  ;;  %2378 = vmatprep.mubr.bf16.mxu0 %v2510_v24 }
  0x26   :  { %2410 = vmatprep.mubr.bf16.mxu1 %v2511_v25 }
  0x27   :  { %2425 = vmatpush3.bf16.msra.mxu0 %v2508_v22 }
  0x28   :  { %2457 = vmatpush3.bf16.msra.mxu1 %v2509_v23  ;;  %2426 = vmatprep.subr.bf16.mxu0 %v2514_v27 }
  0x29   :  { %2458 = vmatprep.subr.bf16.mxu1 %v2515_v28 }
  0x2a   :  { %2379 = vmatmul.mubr.bf16.gmra.mrb[4].mxu0 %v2512_v26 }
  0x2b   :  { %2411 = vmatmul.mubr.bf16.gmra.mrb[4].mxu1 %v2513_v29  ;;  %2427 = vmatpush3.bf16.msra.mxu0 %v2514_v27 }
  0x2c   :  { %2459 = vmatpush3.bf16.msra.mxu1 %v2515_v28  ;;  %2428 = vmatprep.subr.bf16.mxu0 %v2516_v30 }
  0x2d   :  { %2460 = vmatprep.subr.bf16.mxu1 %v2517_v31  ;;  %2382 = vmatprep.mubr.bf16.mxu0 %v2518_v32 }
  0x2e   :  { %2414 = vmatprep.mubr.bf16.mxu1 %v2519_v33 }
  0x2f   :  { %2429 = vmatpush3.bf16.msra.mxu0 %v2516_v30 }
  0x30   :  { %2461 = vmatpush3.bf16.msra.mxu1 %v2517_v31  ;;  %2430 = vmatprep.subr.bf16.mxu0 %v2522_v35 }
  0x31   :  { %2462 = vmatprep.subr.bf16.mxu1 %v2523_v36 }
  0x32   :  { %2383 = vmatmul.mubr.bf16.gmra.mrb[8].mxu0 %v2520_v34 }
  0x33   :  { %2415 = vmatmul.mubr.bf16.gmra.mrb[8].mxu1 %v2521_v37  ;;  %2431 = vmatpush3.bf16.msra.mxu0 %v2522_v35 }
  0x34   :  { %2463 = vmatpush3.bf16.msra.mxu1 %v2523_v36  ;;  %2432 = vmatprep.subr.bf16.mxu0 %v2524_v38 }
  0x35   :  { %2464 = vmatprep.subr.bf16.mxu1 %v2525_v39  ;;  %2386 = vmatprep.mubr.bf16.mxu0 %v2526_v40 }
  0x36   :  { %2418 = vmatprep.mubr.bf16.mxu1 %v2527_v41 }
  0x37   :  { %2433 = vmatpush3.bf16.msra.mxu0 %v2524_v38 }
  0x38   :  { %2465 = vmatpush3.bf16.msra.mxu1 %v2525_v39  ;;  %2434 = vmatprep.subr.bf16.mxu0 %v2530_v43 }
  0x39   :  { %2466 = vmatprep.subr.bf16.mxu1 %v2531_v44 }
  0x3a   :  { %2387 = vmatmul.mubr.bf16.gmra.mrb[12].mxu0 %v2528_v42 }
  0x3b   :  { %2419 = vmatmul.mubr.bf16.gmra.mrb[12].mxu1 %v2529_v45  ;;  %2435 = vmatpush3.bf16.msra.mxu0 %v2530_v43 }
  0x3c   :  { %2467 = vmatpush3.bf16.msra.mxu1 %v2531_v44  ;;  %2436 = vmatprep.subr.bf16.mxu0 %v2532_v46 }
  0x3d   :  { %2468 = vmatprep.subr.bf16.mxu1 %v2533_v47  ;;  %2438 = vmatprep.mubr.bf16.mxu0 %v2534_v48 }
  0x3e   :  { %2470 = vmatprep.mubr.bf16.mxu1 %v2535_v49 }
  0x3f   :  { %2437 = vmatpush3.bf16.msra.mxu0 %v2532_v46 }
  0x40   :  { %2469 = vmatpush3.bf16.msra.mxu1 %v2533_v47 }
  0x42   :  { %2439 = vmatmul.mubr.bf16.vlgmr.msra.gmra.mrb[16].mxu0 %v2536_v50 }
  0x43   :  { %2471 = vmatmul.mubr.bf16.vlgmr.msra.gmra.mrb[16].mxu1 %v2537_v51  ;;  %2442 = vmatprep.mubr.bf16.mxu0 %v2538_v52 }
  0x44   :  { %2474 = vmatprep.mubr.bf16.mxu1 %v2539_v53 }
  0x4a   :  { %2443 = vmatmul.mubr.bf16.gmra.mrb[20].mxu0 %v2540_v54 }
  0x4b   :  { %2475 = vmatmul.mubr.bf16.gmra.mrb[20].mxu1 %v2541_v55  ;;  %2446 = vmatprep.mubr.bf16.mxu0 %v2542_v56 }
  0x4c   :  { %2478 = vmatprep.mubr.bf16.mxu1 %v2543_v57 }
  0x52   :  { %2447 = vmatmul.mubr.bf16.gmra.mrb[24].mxu0 %v2544_v58 }
  0x53   :  { %2479 = vmatmul.mubr.bf16.gmra.mrb[24].mxu1 %v2545_v59  ;;  %2450 = vmatprep.mubr.bf16.mxu0 %v2546_v60 }
  0x54   :  { %2482 = vmatprep.mubr.bf16.mxu1 %v2547_v61 }
  0x5a   :  { %2451 = vmatmul.mubr.bf16.gmra.mrb[28].mxu0 %v2548_v62 }
  0x5b   :  { %2483 = vmatmul.mubr.bf16.gmra.mrb[28].mxu1 %v2549_v63 }
  0xf5   :  { %v2769_v0 = vpop.f32.mrb[0].mxu0 }
  0xf6   :  { %v2771_v1 = vpop.f32.mrb[0].mxu1  ;;  %v2773_v2 = vpop.f32.mrb[1].mxu0 }
  0xf7   :  { %3472 = vst [vmem:[#allocation2_spill] sm:$0xff] %v2771_v1  ;;  %v2775_v3 = vpop.f32.mrb[1].mxu1  ;;  %v2777_v4 = vpop.f32.mrb[2].mxu0 }
  0xf8   :  { %3473 = vst [vmem:[#allocation3_spill] sm:$0xff] %v2775_v3  ;;  %v2779_v5 = vpop.f32.mrb[2].mxu1  ;;  %v2781_v6 = vpop.f32.mrb[3].mxu0 }
  0xf9   :  { %3474 = vst [vmem:[#allocation4_spill] sm:$0xff] %v2779_v5  ;;  %v924_v7 = vadd.f32 %v2781_v6, %v2773_v2  ;;  %v2785_v8 = vpop.f32.mrb[3].mxu1 }
  0xfa   :  { %3475 = vst [vmem:[#allocation5_spill] sm:$0xff] %v2785_v8  ;;  %v946_v9 = vadd.f32 %v2785_v8, %v2775_v3 }
  0xfb   :  { %v925_v10 = vadd.f32 %v2769_v0, %v924_v7 }
  0xfc   :  { %v947_v11 = vadd.f32 %v2771_v1, %v946_v9 }
  0xfd   :  { %v2791_v12 = vpop.f32.mrb[4].mxu0  ;;  %v926_v13 = vadd.f32 %v2777_v4, %v925_v10 }
  0xfe   :  { %v2794_v14 = vpop.f32.mrb[4].mxu1  ;;  %v2796_v15 = vpop.f32.mrb[5].mxu0  ;;  %v948_v16 = vadd.f32 %v2779_v5, %v947_v11 }
  0xff   :  { %v927_v17 = vadd.f32 %v926_v13, %v2796_v15  ;;  %v2800_v18 = vpop.f32.mrb[5].mxu1  ;;  %v2802_v19 = vpop.f32.mrb[6].mxu0 }
 0x100   :  { %3476 = vst [vmem:[#allocation6_spill] sm:$0xff] %v2800_v18  ;;  %v949_v20 = vadd.f32 %v948_v16, %v2800_v18  ;;  %v2805_v21 = vpop.f32.mrb[6].mxu1  ;;  %v2807_v22 = vpop.f32.mrb[7].mxu0 }
 0x101   :  { %v928_v23 = vadd.f32 %v927_v17, %v2807_v22  ;;  %v2810_v24 = vpop.f32.mrb[7].mxu1 }
 0x102   :  { %3477 = vst [vmem:[#allocation7_spill] sm:$0xff] %v2810_v24  ;;  %v950_v25 = vadd.f32 %v949_v20, %v2810_v24 }
 0x103   :  { %v929_v26 = vadd.f32 %v2791_v12, %v928_v23 }
 0x104   :  { %v951_v27 = vadd.f32 %v2794_v14, %v950_v25 }
 0x105   :  { %v2815_v28 = vpop.f32.mrb[8].mxu0  ;;  %v930_v29 = vadd.f32 %v2802_v19, %v929_v26 }
 0x106   :  { %v2818_v30 = vpop.f32.mrb[8].mxu1  ;;  %v2820_v31 = vpop.f32.mrb[9].mxu0  ;;  %v952_v32 = vadd.f32 %v2805_v21, %v951_v27 }
 0x107   :  { %v931_v33 = vadd.f32 %v930_v29, %v2820_v31  ;;  %v2824_v34 = vpop.f32.mrb[9].mxu1  ;;  %v2826_v35 = vpop.f32.mrb[10].mxu0 }
 0x108   :  { %v953_v36 = vadd.f32 %v952_v32, %v2824_v34  ;;  %v2829_v37 = vpop.f32.mrb[10].mxu1  ;;  %v2831_v38 = vpop.f32.mrb[11].mxu0 }
 0x109   :  { %v932_v39 = vadd.f32 %v931_v33, %v2831_v38  ;;  %v2834_v40 = vpop.f32.mrb[11].mxu1 }
 0x10a   :  { %v954_v41 = vadd.f32 %v953_v36, %v2834_v40 }
 0x10b   :  { %v933_v42 = vadd.f32 %v2815_v28, %v932_v39 }
 0x10c   :  { %v955_v43 = vadd.f32 %v2818_v30, %v954_v41 }
 0x10d   :  { %v2839_v44 = vpop.f32.mrb[12].mxu0  ;;  %v934_v45 = vadd.f32 %v2826_v35, %v933_v42 }
 0x10e   :  { %3478 = vst [vmem:[#allocation8_spill] sm:$0xff] %v2839_v44  ;;  %v2842_v46 = vpop.f32.mrb[12].mxu1  ;;  %v2844_v47 = vpop.f32.mrb[13].mxu0  ;;  %v956_v48 = vadd.f32 %v2829_v37, %v955_v43 }
 0x10f   :  { %v935_v49 = vadd.f32 %v934_v45, %v2844_v47  ;;  %v2848_v50 = vpop.f32.mrb[13].mxu1  ;;  %v2850_v51 = vpop.f32.mrb[14].mxu0 }
 0x110   :  { %3479 = vst [vmem:[#allocation9_spill] sm:$0xff] %v2850_v51  ;;  %v957_v52 = vadd.f32 %v956_v48, %v2848_v50  ;;  %v2853_v53 = vpop.f32.mrb[14].mxu1  ;;  %v2855_v54 = vpop.f32.mrb[15].mxu0 }
 0x111   :  { %3480 = vst [vmem:[#allocation10_spill] sm:$0xff] %v2855_v54  ;;  %v936_v55 = vadd.f32 %v935_v49, %v2855_v54  ;;  %v2858_v56 = vpop.f32.mrb[15].mxu1 }
 0x112   :  { %v958_v57 = vadd.f32 %v957_v52, %v2858_v56 }
 0x113   :  { %v937_v58 = vadd.f32 %v2839_v44, %v936_v55 }
 0x114   :  { %v959_v59 = vadd.f32 %v2842_v46, %v958_v57 }
 0x115   :  { %v938_v60 = vadd.f32 %v2850_v51, %v937_v58  ;;  %v2864_v61 = vpop.f32.mrb[16].mxu0 }
 0x116   :  { %v960_v62 = vadd.f32 %v2853_v53, %v959_v59  ;;  %v2867_v63 = vpop.f32.mrb[16].mxu1  ;;  %v2869_v7 = vpop.f32.mrb[17].mxu0 }
 0x117   :  { %3481 = vst [vmem:[#allocation11_spill] sm:$0xff] %v2867_v63  ;;  %3482 = vst [vmem:[#allocation12_spill] sm:$0xff] %v2869_v7  ;;  %v939_v9 = vrot.slane %v938_v60, 4  ;;  %v2871_v10 = vpop.f32.mrb[17].mxu1  ;;  %v2873_v11 = vpop.f32.mrb[18].mxu0 }
 0x118   :  { %3483 = vst [vmem:[#allocation13_spill] sm:$0xff] %v2871_v10  ;;  %v961_v13 = vrot.slane %v960_v62, 4  ;;  %v2875_v16 = vpop.f32.mrb[18].mxu1  ;;  %v2877_v17 = vpop.f32.mrb[19].mxu0 }
 0x119   :  { %3484 = vst [vmem:[#allocation14_spill] sm:$0xff] %v2875_v16  ;;  %3485 = vst [vmem:[#allocation15_spill] sm:$0xff] %v2877_v17  ;;  %v940_v20 = vadd.f32 %v939_v9, %v938_v60  ;;  %v968_v23 = vadd.f32 %v2877_v17, %v2869_v7  ;;  %v2881_v25 = vpop.f32.mrb[19].mxu1 }
 0x11a   :  { %3486 = vst [vmem:[#allocation16_spill] sm:$0xff] %v2881_v25  ;;  %v962_v26 = vadd.f32 %v961_v13, %v960_v62  ;;  %v990_v27 = vadd.f32 %v2881_v25, %v2871_v10 }
 0x11b   :  { %v941_v29 = vrot.slane %v940_v20, 2  ;;  %v969_v32 = vadd.f32 %v2864_v61, %v968_v23 }
 0x11c   :  { %v963_v33 = vrot.slane %v962_v26, 2  ;;  %v991_v36 = vadd.f32 %v2867_v63, %v990_v27 }
 0x11d   :  { %v942_v39 = vadd.f32 %v941_v29, %v940_v20  ;;  %v2887_v41 = vpop.f32.mrb[20].mxu0  ;;  %v970_v42 = vadd.f32 %v2873_v11, %v969_v32 }
 0x11e   :  { %3487 = vst [vmem:[#allocation17_spill] sm:$0xff] %v2887_v41  ;;  %v964_v43 = vadd.f32 %v963_v33, %v962_v26  ;;  %v2890_v45 = vpop.f32.mrb[20].mxu1  ;;  %v2892_v48 = vpop.f32.mrb[21].mxu0  ;;  %v992_v49 = vadd.f32 %v2875_v16, %v991_v36 }
 0x11f   :  { %3488 = vst [vmem:[#allocation18_spill] sm:$0xff] %v2890_v45  ;;  %v943_v52 = vrot.slane %v942_v39, 1  ;;  %v971_v55 = vadd.f32 %v970_v42, %v2892_v48  ;;  %v2896_v57 = vpop.f32.mrb[21].mxu1  ;;  %v2898_v58 = vpop.f32.mrb[22].mxu0 }
 0x120   :  { %3489 = vst [vmem:[#allocation19_spill] sm:$0xff] %v2896_v57  ;;  %3490 = vst [vmem:[#allocation20_spill] sm:$0xff] %v2898_v58  ;;  %v965_v59 = vrot.slane %v964_v43, 1  ;;  %v993_v60 = vadd.f32 %v992_v49, %v2896_v57  ;;  %v2901_v62 = vpop.f32.mrb[22].mxu1  ;;  %v2903_v9 = vpop.f32.mrb[23].mxu0 }
 0x121   :  { %3491 = vst [vmem:[#allocation21_spill] sm:$0xff] %v2901_v62  ;;  %3492 = vst [vmem:[#allocation22_spill] sm:$0xff] %v2903_v9  ;;  %v944_v13 = vadd.f32 %v943_v52, %v942_v39  ;;  %v972_v20 = vadd.f32 %v971_v55, %v2903_v9  ;;  %v2906_v23 = vpop.f32.mrb[23].mxu1 }
 0x122   :  { %3493 = vst [vmem:[#allocation23_spill] sm:$0xff] %v2906_v23  ;;  %v966_v26 = vadd.f32 %v965_v59, %v964_v43  ;;  %v994_v27 = vadd.f32 %v993_v60, %v2906_v23 }
 0x123   :  { %v973_v29 = vadd.f32 %v2887_v41, %v972_v20 }
 0x124   :  { %v967_v32 = vadd.f32 %v966_v26, %v944_v13  ;;  %v995_v33 = vadd.f32 %v2890_v45, %v994_v27 }
 0x125   :  { %v2911_v36 = vpop.f32.mrb[24].mxu0  ;;  %v974_v42 = vadd.f32 %v2898_v58, %v973_v29 }
 0x126   :  { %3494 = vst [vmem:[#allocation24_spill] sm:$0xff] %v2911_v36  ;;  %v2914_v49 = vpop.f32.mrb[24].mxu1  ;;  %v2916_v57 = vpop.f32.mrb[25].mxu0  ;;  %v996_v39 = vadd.f32 %v2901_v62, %v995_v33 }
 0x127   :  { %3495 = vst [vmem:[#allocation25_spill] sm:$0xff] %v2914_v49  ;;  %3496 = vst [vmem:[#allocation26_spill] sm:$0xff] %v2916_v57  ;;  %v975_v52 = vadd.f32 %v974_v42, %v2916_v57  ;;  %v2920_v43 = vpop.f32.mrb[25].mxu1  ;;  %v2922_v55 = vpop.f32.mrb[26].mxu0 }
 0x128   :  { %3497 = vst [vmem:[#allocation27_spill] sm:$0xff] %v2920_v43  ;;  %3498 = vst [vmem:[#allocation28_spill] sm:$0xff] %v2922_v55  ;;  %v997_v59 = vadd.f32 %v996_v39, %v2920_v43  ;;  %v2925_v60 = vpop.f32.mrb[26].mxu1  ;;  %v2927_v13 = vpop.f32.mrb[27].mxu0 }
 0x129   :  { %3499 = vst [vmem:[#allocation29_spill] sm:$0xff] %v2925_v60  ;;  %3500 = vst [vmem:[#allocation30_spill] sm:$0xff] %v2927_v13  ;;  %v976_v20 = vadd.f32 %v975_v52, %v2927_v13  ;;  %v2930_v26 = vpop.f32.mrb[27].mxu1 }
 0x12a   :  { %3501 = vst [vmem:[#allocation31_spill] sm:$0xff] %v2930_v26  ;;  %v998_v27 = vadd.f32 %v997_v59, %v2930_v26 }
 0x12b   :  { %v977_v29 = vadd.f32 %v2911_v36, %v976_v20 }
 0x12c   :  { %v999_v33 = vadd.f32 %v2914_v49, %v998_v27 }
 0x12d   :  { %v2935_v42 = vpop.f32.mrb[28].mxu0  ;;  %v978_v62 = vadd.f32 %v2922_v55, %v977_v29 }
 0x12e   :  { %3502 = vst [vmem:[#allocation32_spill] sm:$0xff] %v2935_v42  ;;  %v2938_v45 = vpop.f32.mrb[28].mxu1  ;;  %v2940_v39 = vpop.f32.mrb[29].mxu0  ;;  %v1000_v43 = vadd.f32 %v2925_v60, %v999_v33 }
 0x12f   :  { %3503 = vst [vmem:[#allocation33_spill] sm:$0xff] %v2938_v45  ;;  %3504 = vst [vmem:[#allocation34_spill] sm:$0xff] %v2940_v39  ;;  %v979_v52 = vadd.f32 %v978_v62, %v2940_v39  ;;  %v2944_v23 = vpop.f32.mrb[29].mxu1  ;;  %v2946_v16 = vpop.f32.mrb[30].mxu0 }
 0x130   :  { %3505 = vst [vmem:[#allocation35_spill] sm:$0xff] %v2944_v23  ;;  %3506 = vst [vmem:[#allocation36_spill] sm:$0xff] %v2946_v16  ;;  %v1001_v59 = vadd.f32 %v1000_v43, %v2944_v23  ;;  %v2949_v20 = vpop.f32.mrb[30].mxu1  ;;  %v2951_v27 = vpop.f32.mrb[31].mxu0 }
 0x131   :  { %3507 = vst [vmem:[#allocation37_spill] sm:$0xff] %v2949_v20  ;;  %3508 = vst [vmem:[#allocation38_spill] sm:$0xff] %v2951_v27  ;;  %v980_v29 = vadd.f32 %v979_v52, %v2951_v27  ;;  %v2954_v49 = vpop.f32.mrb[31].mxu1 }
 0x132   :  { %3509 = vst [vmem:[#allocation39_spill] sm:$0xff] %v2954_v49  ;;  %v1002_v26 = vadd.f32 %v1001_v59, %v2954_v49 }
 0x133   :  { %v981_v33 = vadd.f32 %v2935_v42, %v980_v29 }
 0x134   :  { %v1003_v62 = vadd.f32 %v2938_v45, %v1002_v26 }
 0x135   :  { %v982_v60 = vadd.f32 %v2946_v16, %v981_v33 }
 0x136   :  { %v1004_v39 = vadd.f32 %v2949_v20, %v1003_v62 }
 0x137   :  { %v983_v55 = vrot.slane %v982_v60, 4 }
 0x138   :  { %v1005_v43 = vrot.slane %v1004_v39, 4 }
 0x139   :  { %v984_v23 = vadd.f32 %v983_v55, %v982_v60 }
 0x13a   :  { %v1006_v36 = vadd.f32 %v1005_v43, %v1004_v39 }
 0x13b   :  { %v985_v13 = vrot.slane %v984_v23, 2 }
 0x13c   :  { %v1007_v63 = vrot.slane %v1006_v36, 2 }
 0x13d   :  { %v986_v57 = vadd.f32 %v985_v13, %v984_v23 }
 0x13e   :  { %v1008_v52 = vadd.f32 %v1007_v63, %v1006_v36 }
 0x13f   :  { %v987_v27 = vrot.slane %v986_v57, 1 }
 0x140   :  { %v1009_v58 = vrot.slane %v1008_v52, 1 }
 0x141   :  { %v988_v25 = vadd.f32 %v987_v27, %v986_v57 }
 0x142   :  { %v1010_v49 = vadd.f32 %v1009_v58, %v1008_v52 }
 0x143   :  { %v989_v59 = vadd.f32 %v988_v25, %v967_v32 }
 0x145   :  { %v1011_v29 = vadd.f32 %v1010_v49, %v989_v59 }
 0x147   :  { %v2961_v42 = vmul.f32 0.001953125, %v1011_v29 }
 0x149   :  { %v1014_v26 = vsub.f32 %v2773_v2, %v2961_v42  ;;  %v1015_v33 = vsub.f32 %v2781_v6, %v2961_v42  ;;  %v1016_v55 = vsub.f32 %v2769_v0, %v2961_v42  ;;  %v1017_v63 = vsub.f32 %v2777_v4, %v2961_v42 }
 0x14a   :  { %v1018_v25 = vsub.f32 %v2796_v15, %v2961_v42  ;;  %v1068_v32 = vsub.f32 %v2775_v3, %v2961_v42  ;;  %v1069_v36 = vsub.f32 %v2785_v8, %v2961_v42  ;;  %v1019_v49 = vsub.f32 %v2807_v22, %v2961_v42 }
 0x14b   :  { %v1030_v60 = vmul.f32 %v1014_v26, %v1014_v26  ;;  %v1031_v23 = vmul.f32 %v1015_v33, %v1015_v33  ;;  %v1032_v57 = vmul.f32 %v1016_v55, %v1016_v55  ;;  %v1033_v13 = vmul.f32 %v1017_v63, %v1017_v63 }
 0x14c   :  { %v1020_v27 = vsub.f32 %v2791_v12, %v2961_v42  ;;  %v1034_v62 = vmul.f32 %v1018_v25, %v1018_v25  ;;  %v1070_v52 = vsub.f32 %v2771_v1, %v2961_v42  ;;  %v1084_v59 = vmul.f32 %v1068_v32, %v1068_v32 }
 0x14d   :  { %v1046_v58 = vadd.f32 %v1031_v23, %v1030_v60  ;;  %v1085_v29 = vmul.f32 %v1069_v36, %v1069_v36  ;;  %v1021_v26 = vsub.f32 %v2802_v19, %v2961_v42  ;;  %v1035_v33 = vmul.f32 %v1019_v49, %v1019_v49 }
 0x14e   :  { %v1022_v60 = vsub.f32 %v2820_v31, %v2961_v42  ;;  %v1023_v23 = vsub.f32 %v2831_v38, %v2961_v42  ;;  %v1071_v63 = vsub.f32 %v2779_v5, %v2961_v42  ;;  %v1024_v25 = vsub.f32 %v2815_v28, %v2961_v42 }
 0x14f   :  { %v1047_v39 = vadd.f32 %v1046_v58, %v1032_v57  ;;  %v1025_v57 = vsub.f32 %v2826_v35, %v2961_v42  ;;  %v1036_v58 = vmul.f32 %v1020_v27, %v1020_v27  ;;  %v1026_v36 = vsub.f32 %v2844_v47, %v2961_v42 }
 0x150   :  { %v1072_v49 = vsub.f32 %v2800_v18, %v2961_v42  ;;  %v1037_v5 = vmul.f32 %v1021_v26, %v1021_v26  ;;  %v1029_v27 = vsub.f32 %v2850_v51, %v2961_v42  ;;  %v1038_v3 = vmul.f32 %v1022_v60, %v1022_v60 }
 0x151   :  { %v1048_v43 = vadd.f32 %v1047_v39, %v1033_v13  ;;  %v1086_v13 = vmul.f32 %v1070_v52, %v1070_v52  ;;  %v1100_v39 = vadd.f32 %v1085_v29, %v1084_v59  ;;  %v1122_v52 = vsub.f32 %v2869_v7, %v2961_v42 }
 0x152   :  { %v1123_v59 = vsub.f32 %v2877_v17, %v2961_v42  ;;  %v1039_v29 = vmul.f32 %v1023_v23, %v1023_v23  ;;  %v1074_v26 = vsub.f32 %v2794_v14, %v2961_v42  ;;  %v1040_v51 = vmul.f32 %v1024_v25, %v1024_v25 }
 0x153   :  { %v1049_v55 = vadd.f32 %v1048_v43, %v1034_v62  ;;  %v1027_v62 = vsub.f32 %v2855_v54, %v2961_v42  ;;  %v1028_v43 = vsub.f32 %v2839_v44, %v2961_v42  ;;  %v1101_v8 = vadd.f32 %v1100_v39, %v1086_v13 }
 0x154   :  { %v1041_v44 = vmul.f32 %v1025_v57, %v1025_v57  ;;  %v1042_v54 = vmul.f32 %v1026_v36, %v1026_v36  ;;  %v1124_v39 = vsub.f32 %v2864_v61, %v2961_v42  ;;  %v1138_v23 = vmul.f32 %v1122_v52, %v1122_v52 }
 0x155   :  { %v1050_v32 = vadd.f32 %v1049_v55, %v1035_v33  ;;  %v1073_v33 = vsub.f32 %v2810_v24, %v2961_v42  ;;  %v1087_v55 = vmul.f32 %v1071_v63, %v1071_v63  ;;  %v1043_v63 = vmul.f32 %v1027_v62, %v1027_v62 }
 0x156   :  { %v1139_v17 = vmul.f32 %v1123_v59, %v1123_v59  ;;  %v1044_v7 = vmul.f32 %v1028_v43, %v1028_v43  ;;  %v1090_v25 = vmul.f32 %v1074_v26, %v1074_v26  ;;  %v1045_v36 = vmul.f32 %v1029_v27, %v1029_v27 }
 0x157   :  { %v1051_v1 = vadd.f32 %v1050_v32, %v1036_v58  ;;  %v1088_v58 = vmul.f32 %v1072_v49, %v1072_v49  ;;  %v1102_v32 = vadd.f32 %v1101_v8, %v1087_v55  ;;  %v1076_v8 = vsub.f32 %v2824_v34, %v2961_v42 }
 0x158   :  { %v1125_v49 = vsub.f32 %v2873_v11, %v2961_v42  ;;  %v1079_v62 = vsub.f32 %v2829_v37, %v2961_v42  ;;  %v1126_v52 = vsub.f32 %v2892_v48, %v2961_v42  ;;  %v1140_v27 = vmul.f32 %v1124_v39, %v1124_v39 }
 0x159   :  { %v1052_v18 = vadd.f32 %v1051_v1, %v1037_v5  ;;  %v1075_v1 = vsub.f32 %v2805_v21, %v2961_v42  ;;  %v1089_v5 = vmul.f32 %v1073_v33, %v1073_v33  ;;  %v1103_v60 = vadd.f32 %v1102_v32, %v1088_v58 }
 0x15a   :  { %v1080_v59 = vsub.f32 %v2848_v50, %v2961_v42  ;;  %v1092_v26 = vmul.f32 %v1076_v8, %v1076_v8  ;;  %v1142_v8 = vmul.f32 %v1126_v52, %v1126_v52 }
 0x15b   :  { %v1053_v24 = vadd.f32 %v1052_v18, %v1038_v3  ;;  %v1104_v57 = vadd.f32 %v1103_v60, %v1089_v5  ;;  %v1077_v18 = vsub.f32 %v2834_v40, %v2961_v42  ;;  %v1091_v43 = vmul.f32 %v1075_v1, %v1075_v1 }
 0x15c   :  { %v1127_v5 = vsub.f32 %v2903_v9, %v2961_v42  ;;  %v1141_v1 = vmul.f32 %v1125_v49, %v1125_v49  ;;  %v1176_v49 = vsub.f32 %v2871_v10, %v2961_v42  ;;  %v3513_v10 = vld [vmem:[#allocation11_spill] sm:$0xff] }
 0x15d   :  { %v1054_v13 = vadd.f32 %v1053_v24, %v1039_v29  ;;  %v1078_v24 = vsub.f32 %v2818_v30, %v2961_v42  ;;  %v1105_v33 = vadd.f32 %v1104_v57, %v1090_v25  ;;  %v1081_v29 = vsub.f32 %v2858_v56, %v2961_v42 }
 0x15e   :  { %v1128_v25 = vsub.f32 %v2887_v41, %v2961_v42 }
 0x15f   :  { %v1055_v3 = vadd.f32 %v1054_v13, %v1040_v51  ;;  %v1154_v51 = vadd.f32 %v1139_v17, %v1138_v23  ;;  %v1106_v58 = vadd.f32 %v1105_v33, %v1091_v43  ;;  %v1083_v17 = vsub.f32 %v2853_v53, %v2961_v42  ;;  %v3510_v43 = vld [vmem:[#allocation16_spill] sm:$0xff] }
 0x160   :  { %v1093_v13 = vmul.f32 %v1077_v18, %v1077_v18  ;;  %v1177_v33 = vsub.f32 %v3510_v43, %v2961_v42  ;;  %v1143_v18 = vmul.f32 %v1127_v5, %v1127_v5  ;;  %v1178_v43 = vsub.f32 %v3513_v10, %v2961_v42  ;;  %v3514_v5 = vld [vmem:[#allocation30_spill] sm:$0xff] }
 0x161   :  { %v1056_v55 = vadd.f32 %v1055_v3, %v1041_v44  ;;  %v1155_v60 = vadd.f32 %v1154_v51, %v1140_v27  ;;  %v1082_v44 = vsub.f32 %v2842_v46, %v2961_v42  ;;  %v1107_v39 = vadd.f32 %v1106_v58, %v1092_v26  ;;  %v3511_v27 = vld [vmem:[#allocation20_spill] sm:$0xff] }
 0x162   :  { %v1129_v51 = vsub.f32 %v3511_v27, %v2961_v42  ;;  %v1096_v58 = vmul.f32 %v1080_v59, %v1080_v59  ;;  %v1194_v10 = vmul.f32 %v1178_v43, %v1178_v43  ;;  %v3521_v43 = vld [vmem:[#allocation18_spill] sm:$0xff] }
 0x163   :  { %v1057_v32 = vadd.f32 %v1056_v55, %v1042_v54  ;;  %v1156_v57 = vadd.f32 %v1155_v60, %v1141_v1  ;;  %v1094_v54 = vmul.f32 %v1078_v24, %v1078_v24  ;;  %v1108_v3 = vadd.f32 %v1107_v39, %v1093_v13  ;;  %v3512_v24 = vld [vmem:[#allocation26_spill] sm:$0xff] }
 0x164   :  { %v1130_v1 = vsub.f32 %v3512_v24, %v2961_v42  ;;  %v1144_v60 = vmul.f32 %v1128_v25, %v1128_v25 }
 0x165   :  { %v1058_v23 = vadd.f32 %v1057_v32, %v1043_v63  ;;  %v1157_v26 = vadd.f32 %v1156_v57, %v1142_v8  ;;  %v1095_v63 = vmul.f32 %v1079_v62, %v1079_v62  ;;  %v1097_v32 = vmul.f32 %v1081_v29, %v1081_v29 }
 0x166   :  { %v1109_v41 = vadd.f32 %v1108_v3, %v1094_v54  ;;  %v1131_v8 = vsub.f32 %v3514_v5, %v2961_v42  ;;  %v1145_v62 = vmul.f32 %v1129_v51, %v1129_v51  ;;  %v1098_v29 = vmul.f32 %v1082_v44, %v1082_v44  ;;  %v3515_v54 = vld [vmem:[#allocation14_spill] sm:$0xff]  ;;  %v3518_v51 = vld [vmem:[#allocation28_spill] sm:$0xff] }
 0x167   :  { %v1059_v55 = vadd.f32 %v1058_v23, %v1044_v7  ;;  %v1158_v13 = vadd.f32 %v1157_v26, %v1143_v18  ;;  %v1192_v7 = vmul.f32 %v1176_v49, %v1176_v49  ;;  %v1193_v23 = vmul.f32 %v1177_v33, %v1177_v33  ;;  %v3517_v33 = vld [vmem:[#allocation19_spill] sm:$0xff] }
 0x168   :  { %v1110_v39 = vadd.f32 %v1109_v41, %v1095_v63  ;;  %v1099_v57 = vmul.f32 %v1083_v17, %v1083_v17  ;;  %v1179_v3 = vsub.f32 %v3515_v54, %v2961_v42  ;;  %v3516_v41 = vld [vmem:[#allocation24_spill] sm:$0xff]  ;;  %v1146_v18 = vmul.f32 %v1130_v1, %v1130_v1  ;;  %v3520_v1 = vld [vmem:[#allocation34_spill] sm:$0xff] }
 0x169   :  { %v1060_v52 = vadd.f32 %v1059_v55, %v1045_v36  ;;  %v1159_v59 = vadd.f32 %v1158_v13, %v1144_v60  ;;  %v1132_v55 = vsub.f32 %v3516_v41, %v2961_v42  ;;  %v1180_v63 = vsub.f32 %v3517_v33, %v2961_v42  ;;  %v3519_v60 = vld [vmem:[#allocation23_spill] sm:$0xff] }
 0x16a   :  { %v1111_v36 = vadd.f32 %v1110_v39, %v1096_v58  ;;  %v1208_v5 = vadd.f32 %v1193_v23, %v1192_v7  ;;  %v1133_v44 = vsub.f32 %v3518_v51, %v2961_v42  ;;  %v1147_v17 = vmul.f32 %v1131_v8, %v1131_v8  ;;  %v3522_v8 = vld [vmem:[#allocation38_spill] sm:$0xff] }
 0x16b   :  { %v1061_v9 = vrot.slane %v1060_v52, 4  ;;  %v1160_v26 = vadd.f32 %v1159_v59, %v1145_v62  ;;  %v1181_v13 = vsub.f32 %v3519_v60, %v2961_v42  ;;  %v1195_v39 = vmul.f32 %v1179_v3, %v1179_v3 }
 0x16c   :  { %v1112_v49 = vadd.f32 %v1111_v36, %v1097_v32  ;;  %v1209_v54 = vadd.f32 %v1208_v5, %v1194_v10  ;;  %v1134_v32 = vsub.f32 %v3520_v1, %v2961_v42  ;;  %v1148_v62 = vmul.f32 %v1132_v55, %v1132_v55  ;;  %v3524_v55 = vld [vmem:[#allocation32_spill] sm:$0xff] }
 0x16d   :  { %v1062_v25 = vadd.f32 %v1061_v9, %v1060_v52  ;;  %v1161_v58 = vadd.f32 %v1160_v26, %v1146_v18  ;;  %v1182_v7 = vsub.f32 %v3521_v43, %v2961_v42  ;;  %v1196_v23 = vmul.f32 %v1180_v63, %v1180_v63 }
 0x16e   :  { %v1113_v52 = vadd.f32 %v1112_v49, %v1098_v29  ;;  %v1210_v33 = vadd.f32 %v1209_v54, %v1195_v39  ;;  %v1135_v18 = vsub.f32 %v3522_v8, %v2961_v42  ;;  %v1149_v26 = vmul.f32 %v1133_v44, %v1133_v44  ;;  %v3523_v29 = vld [vmem:[#allocation21_spill] sm:$0xff]  ;;  %v3525_v54 = vld [vmem:[#allocation27_spill] sm:$0xff] }
 0x16f   :  { %v1063_v9 = vrot.slane %v1062_v25, 2  ;;  %v1162_v59 = vadd.f32 %v1161_v58, %v1147_v17  ;;  %v1183_v3 = vsub.f32 %v3523_v29, %v2961_v42  ;;  %v1197_v49 = vmul.f32 %v1181_v13, %v1181_v13 }
 0x170   :  { %v1114_v36 = vadd.f32 %v1113_v52, %v1099_v57  ;;  %v1211_v1 = vadd.f32 %v1210_v33, %v1196_v23  ;;  %v1136_v57 = vsub.f32 %v3524_v55, %v2961_v42  ;;  %v1150_v17 = vmul.f32 %v1134_v32, %v1134_v32 }
 0x171   :  { %v1163_v60 = vadd.f32 %v1162_v59, %v1148_v62  ;;  %v1064_v10 = vadd.f32 %v1063_v9, %v1062_v25  ;;  %v1184_v63 = vsub.f32 %v3525_v54, %v2961_v42  ;;  %v1198_v39 = vmul.f32 %v1182_v7, %v1182_v7  ;;  %v3526_v25 = vld [vmem:[#allocation31_spill] sm:$0xff] }
 0x172   :  { %v1115_v5 = vrot.slane %v1114_v36, 4  ;;  %v1212_v43 = vadd.f32 %v1211_v1, %v1197_v49  ;;  %v1137_v44 = vsub.f32 %v2946_v16, %v2961_v42  ;;  %v1151_v62 = vmul.f32 %v1135_v18, %v1135_v18  ;;  %v3528_v18 = vld [vmem:[#allocation29_spill] sm:$0xff] }
 0x173   :  { %v1164_v58 = vadd.f32 %v1163_v60, %v1149_v26  ;;  %v1185_v13 = vsub.f32 %v3526_v25, %v2961_v42  ;;  %v1065_v33 = vrot.slane %v1064_v10, 1  ;;  %v1199_v23 = vmul.f32 %v1183_v3, %v1183_v3  ;;  %v3527_v26 = vld [vmem:[#allocation25_spill] sm:$0xff] }
 0x174   :  { %v1116_v52 = vadd.f32 %v1115_v5, %v1114_v36  ;;  %v1213_v29 = vadd.f32 %v1212_v43, %v1198_v39  ;;  %v1152_v32 = vmul.f32 %v1136_v57, %v1136_v57  ;;  %v1186_v5 = vsub.f32 %v3527_v26, %v2961_v42  ;;  %v3529_v43 = vld [vmem:[#allocation35_spill] sm:$0xff] }
 0x175   :  { %v1165_v59 = vadd.f32 %v1164_v58, %v1150_v17  ;;  %v1200_v7 = vmul.f32 %v1184_v63, %v1184_v63  ;;  %v1153_v49 = vmul.f32 %v1137_v44, %v1137_v44  ;;  %v1187_v17 = vsub.f32 %v3528_v18, %v2961_v42 }
 0x176   :  { %v1117_v9 = vrot.slane %v1116_v52, 2  ;;  %v1214_v1 = vadd.f32 %v1213_v29, %v1199_v23  ;;  %v1066_v58 = vadd.f32 %v1065_v33, %v1064_v10  ;;  %v1201_v25 = vmul.f32 %v1185_v13, %v1185_v13  ;;  %v3530_v29 = vld [vmem:[#allocation39_spill] sm:$0xff] }
 0x177   :  { %v1166_v60 = vadd.f32 %v1165_v59, %v1151_v62  ;;  %v1188_v57 = vsub.f32 %v3529_v43, %v2961_v42  ;;  %v1189_v63 = vsub.f32 %v3530_v29, %v2961_v42  ;;  %v1203_v44 = vmul.f32 %v1187_v17, %v1187_v17 }
 0x178   :  { %v1118_v36 = vadd.f32 %v1117_v9, %v1116_v52  ;;  %v1215_v55 = vadd.f32 %v1214_v1, %v1200_v7  ;;  %v1202_v52 = vmul.f32 %v1186_v5, %v1186_v5  ;;  %v1190_v10 = vsub.f32 %v2938_v45, %v2961_v42 }
 0x179   :  { %v1167_v54 = vadd.f32 %v1166_v60, %v1152_v32  ;;  %v1204_v13 = vmul.f32 %v1188_v57, %v1188_v57  ;;  %v1205_v32 = vmul.f32 %v1189_v63, %v1189_v63  ;;  %v1238_v63 = vlaneseq }
 0x17a   :  { %v1119_v16 = vrot.slane %v1118_v36, 1  ;;  %v1216_v39 = vadd.f32 %v1215_v55, %v1201_v25  ;;  %v1206_v25 = vmul.f32 %v1190_v10, %v1190_v10  ;;  %v1233_v10 = vld [vmem:[%s3410_s2] sm:$0x1] }
 0x17b   :  { %v1168_v8 = vadd.f32 %v1167_v54, %v1153_v49 }
 0x17c   :  { %v1120_v3 = vadd.f32 %v1119_v16, %v1118_v36  ;;  %v1217_v9 = vadd.f32 %v1216_v39, %v1202_v52  ;;  %v1191_v16 = vsub.f32 %v2949_v20, %v2961_v42 }
 0x17d   :  { %v1169_v62 = vrot.slane %v1168_v8, 4 }
 0x17e   :  { %v1121_v59 = vadd.f32 %v1120_v3, %v1066_v58  ;;  %v1218_v33 = vadd.f32 %v1217_v9, %v1203_v44  ;;  %v1207_v7 = vmul.f32 %v1191_v16, %v1191_v16 }
 0x17f   :  { %v1170_v23 = vadd.f32 %v1169_v62, %v1168_v8 }
 0x180   :  { %v1219_v60 = vadd.f32 %v1218_v33, %v1204_v13 }
 0x181   :  { %v1171_v54 = vrot.slane %v1170_v23, 2 }
 0x182   :  { %v1220_v36 = vadd.f32 %v1219_v60, %v1205_v32 }
 0x183   :  { %v1172_v55 = vadd.f32 %v1171_v54, %v1170_v23  ;;  %v1239_v23 = vshrl.u32 %v1238_v63, 7 }
 0x184   :  { %v1221_v1 = vadd.f32 %v1220_v36, %v1206_v25 }
 0x185   :  { %v1173_v5 = vrot.slane %v1172_v55, 1  ;;  %v1240_v13 = vsub.s32 0, %v1239_v23 }
 0x186   :  { %v1222_v17 = vadd.f32 %v1221_v1, %v1207_v7  ;;  %v3531_v1 = vld [vmem:[#allocation10_spill] sm:$0xff] }
 0x187   :  { %v1174_v49 = vadd.f32 %v1173_v5, %v1172_v55 }
 0x188   :  { %v1223_v58 = vrot.slane %v1222_v17, 4 }
 0x189   :  { %v1175_v8 = vadd.f32 %v1174_v49, %v1121_v59  ;;  %v1235_v59 = vld [vmem:[%s3411_s3] sm:$0x1] }
 0x18a   :  { %v1224_v3 = vadd.f32 %v1223_v58, %v1222_v17  ;;  %v3535_v58 = vld [vmem:[#allocation5_spill] sm:$0xff] }
 0x18c   :  { %v1225_v52 = vrot.slane %v1224_v3, 2 }
 0x18e   :  { %v1226_v57 = vadd.f32 %v1225_v52, %v1224_v3  ;;  %v3537_v52 = vld [vmem:[#allocation4_spill] sm:$0xff] }
 0x190   :  { %v1227_v39 = vrot.slane %v1226_v57, 1 }
 0x192   :  { %v1228_v62 = vadd.f32 %v1227_v39, %v1226_v57  ;;  %v3538_v39 = vld [vmem:[#allocation6_spill] sm:$0xff] }
 0x194   :  { %v1229_v44 = vadd.f32 %v1228_v62, %v1175_v8 }
 0x196   :  { %v1230_v9 = vmul.f32 0.001953125, %v1229_v44  ;;  %v3539_v44 = vld [vmem:[#allocation7_spill] sm:$0xff] }
 0x198   :  { %v1231_v20 = vadd.f32 1e-05, %v1230_v9 }
 0x19a   :  { %2550 = vrsqrt.f32 %v1231_v20 }
 0x1a4   :  { %v2551_v33 = vpop.eup %2550 }
 0x1a5   :  { %v1234_v54 = vmul.f32 %v2551_v33, %v1233_v10 }
 0x1a7   :  { %v1236_v16 = vmul.f32 %v1234_v54, %v2961_v42  ;;  %v3098_v32 = vrot.slane %v1234_v54, %v1240_v13 }
 0x1a9   :  { %v1237_v60 = vsub.f32 %v1235_v59, %v1236_v16  ;;  %v1242_v20 = vmul.f32 %v3098_v32, %v2773_v2  ;;  %v1243_v55 = vmul.f32 %v3098_v32, %v2781_v6  ;;  %v1244_v25 = vmul.f32 %v2769_v0, %v3098_v32 }
 0x1aa   :  { %v1245_v36 = vmul.f32 %v2777_v4, %v3098_v32  ;;  %v1246_v5 = vmul.f32 %v3098_v32, %v2796_v15  ;;  %v1247_v42 = vmul.f32 %v3098_v32, %v2807_v22  ;;  %v1248_v7 = vmul.f32 %v2791_v12, %v3098_v32 }
 0x1ab   :  { %v1249_v2 = vmul.f32 %v2802_v19, %v3098_v32  ;;  %v1250_v6 = vmul.f32 %v3098_v32, %v2820_v31  ;;  %v1251_v0 = vmul.f32 %v3098_v32, %v2831_v38  ;;  %v1252_v4 = vmul.f32 %v2815_v28, %v3098_v32  ;;  %v3532_v19 = vld [vmem:[#allocation8_spill] sm:$0xff]  ;;  %v3533_v31 = vld [vmem:[#allocation9_spill] sm:$0xff]  ;;  %v3534_v38 = vld [vmem:[#allocation3_spill] sm:$0xff] }
 0x1ac   :  { %v1253_v15 = vmul.f32 %v2826_v35, %v3098_v32  ;;  %v1254_v22 = vmul.f32 %v3098_v32, %v2844_v47  ;;  %v1255_v12 = vmul.f32 %v3098_v32, %v3531_v1  ;;  %v1256_v49 = vmul.f32 %v3532_v19, %v3098_v32  ;;  %v3536_v47 = vld [vmem:[#allocation2_spill] sm:$0xff] }
 0x1ad   :  { %v1257_v17 = vmul.f32 %v3533_v31, %v3098_v32  ;;  %v3132_v8 = vrot.slane %v1237_v60, %v1240_v13  ;;  %v3136_v28 = vmul.f32 %v3098_v32, %v3534_v38  ;;  %v3140_v35 = vmul.f32 %v3098_v32, %v3535_v58 }
 0x1ae   :  { %v3144_v3 = vmul.f32 %v3536_v47, %v3098_v32  ;;  %v3148_v57 = vmul.f32 %v3537_v52, %v3098_v32  ;;  %v3152_v62 = vmul.f32 %v3098_v32, %v3538_v39  ;;  %v3156_v9 = vmul.f32 %v3098_v32, %v3539_v44 }
 0x1af   :  { %v1264_v63 = vadd.f32 %v3132_v8, %v1242_v20  ;;  %v1265_v23 = vadd.f32 %v3132_v8, %v1243_v55  ;;  %v1266_v10 = vadd.f32 %v3132_v8, %v1244_v25  ;;  %v1267_v13 = vadd.f32 %v3132_v8, %v1245_v36 }
 0x1b0   :  { %v1268_v33 = vadd.f32 %v3132_v8, %v1246_v5  ;;  %v1269_v54 = vadd.f32 %v3132_v8, %v1247_v42  ;;  %v1270_v59 = vadd.f32 %v3132_v8, %v1248_v7  ;;  %v1271_v16 = vadd.f32 %v3132_v8, %v1249_v2 }
 0x1b1   :  { %v1272_v60 = vadd.f32 %v3132_v8, %v1250_v6  ;;  %v1273_v1 = vadd.f32 %v3132_v8, %v1251_v0  ;;  %v1274_v20 = vadd.f32 %v3132_v8, %v1252_v4  ;;  %v1275_v55 = vadd.f32 %v3132_v8, %v1253_v15 }
 0x1b2   :  { %v1276_v25 = vadd.f32 %v3132_v8, %v1254_v22  ;;  %v1277_v36 = vadd.f32 %v3132_v8, %v1255_v12  ;;  %v1278_v5 = vadd.f32 %v3132_v8, %v1256_v49  ;;  %v1279_v42 = vadd.f32 %v3132_v8, %v1257_v17 }
 0x1b3   :  { %v1280_v19 = vmax.f32 %v1264_v63, 0.0  ;;  %v1281_v7 = vmax.f32 %v1265_v23, 0.0  ;;  %v1282_v31 = vmax.f32 %v1266_v10, 0.0  ;;  %v1283_v2 = vmax.f32 %v1267_v13, 0.0 }
 0x1b4   :  { %v1284_v38 = vmax.f32 %v1268_v33, 0.0  ;;  %v1285_v6 = vmax.f32 %v1269_v54, 0.0  ;;  %v1286_v58 = vmax.f32 %v1270_v59, 0.0  ;;  %v1287_v0 = vmax.f32 %v1271_v16, 0.0 }
 0x1b5   :  { %v1288_v47 = vmax.f32 %v1272_v60, 0.0  ;;  %v1289_v4 = vmax.f32 %v1273_v1, 0.0  ;;  %v1290_v52 = vmax.f32 %v1274_v20, 0.0  ;;  %v1291_v15 = vmax.f32 %v1275_v55, 0.0 }
 0x1b6   :  { %v1292_v39 = vmax.f32 %v1276_v25, 0.0  ;;  %v1293_v22 = vmax.f32 %v1277_v36, 0.0  ;;  %v1294_v44 = vmax.f32 %v1278_v5, 0.0  ;;  %v1295_v12 = vmax.f32 %v1279_v42, 0.0 }
 0x1b7   :  { %v2106_v45 = vpack.c.bf16 %v1281_v7, %v1280_v19  ;;  %v2111_v49 = vpack.c.bf16 %v1283_v2, %v1282_v31  ;;  %v2116_v29 = vpack.c.bf16 %v1285_v6, %v1284_v38  ;;  %v2121_v17 = vpack.c.bf16 %v1287_v0, %v1286_v58 }
 0x1b8   :  { %v2126_v63 = vpack.c.bf16 %v1289_v4, %v1288_v47  ;;  %v2131_v23 = vpack.c.bf16 %v1291_v15, %v1290_v52  ;;  %v2136_v10 = vpack.c.bf16 %v1293_v22, %v1292_v39  ;;  %v2141_v13 = vpack.c.bf16 %v1295_v12, %v1294_v44 }
 0x1b9   :  { %2107 = vst [vmem:[%s3412_s4] sm:$0xff] %v2106_v45   ;;  %2263 = vst [vmem:[%s3412_s4 + $0x8] sm:$0xff] %v2111_v49   ;;  %v1382_v33 = vmul.f32 %v2794_v14, %v3098_v32  ;;  %v1383_v54 = vmul.f32 %v2805_v21, %v3098_v32  ;;  %v1384_v45 = vmul.f32 %v3098_v32, %v2824_v34 }
 0x1ba   :  { %2264 = vst [vmem:[%s3412_s4 + $0x10] sm:$0xff] %v2116_v29   ;;  %2265 = vst [vmem:[%s3412_s4 + $0x18] sm:$0xff] %v2121_v17   ;;  %v1385_v59 = vmul.f32 %v3098_v32, %v2834_v40  ;;  %v1386_v14 = vmul.f32 %v2818_v30, %v3098_v32  ;;  %v1387_v21 = vmul.f32 %v2829_v37, %v3098_v32 }
 0x1bb   :  { %2266 = vst [vmem:[%s3412_s4 + $0x20] sm:$0xff] %v2126_v63   ;;  %2267 = vst [vmem:[%s3412_s4 + $0x28] sm:$0xff] %v2131_v23   ;;  %v1388_v34 = vmul.f32 %v3098_v32, %v2848_v50  ;;  %v1389_v40 = vmul.f32 %v3098_v32, %v2858_v56  ;;  %v1390_v29 = vmul.f32 %v2842_v46, %v3098_v32 }
 0x1bc   :  { %2268 = vst [vmem:[%s3412_s4 + $0x30] sm:$0xff] %v2136_v10   ;;  %2269 = vst [vmem:[%s3412_s4 + $0x38] sm:$0xff] %v2141_v13   ;;  %v1391_v16 = vmul.f32 %v2853_v53, %v3098_v32  ;;  %v1392_v60 = vadd.f32 %v3136_v28, %v3132_v8  ;;  %v1393_v30 = vadd.f32 %v3140_v35, %v3132_v8  ;;  %v3540_v10 = vld [vmem:[#allocation12_spill] sm:$0xff] }
 0x1bd   :  { %v1394_v37 = vadd.f32 %v3144_v3, %v3132_v8  ;;  %v1395_v50 = vadd.f32 %v3148_v57, %v3132_v8  ;;  %v1396_v56 = vadd.f32 %v3152_v62, %v3132_v8  ;;  %v1397_v46 = vadd.f32 %v3156_v9, %v3132_v8 }
 0x1be   :  { %v1398_v53 = vadd.f32 %v1382_v33, %v3132_v8  ;;  %v1399_v1 = vadd.f32 %v1383_v54, %v3132_v8  ;;  %v1400_v28 = vadd.f32 %v1384_v45, %v3132_v8  ;;  %v1401_v35 = vadd.f32 %v1385_v59, %v3132_v8  ;;  %v3541_v33 = vld [vmem:[#allocation15_spill] sm:$0xff] }
 0x1bf   :  { %v1402_v20 = vadd.f32 %v1386_v14, %v3132_v8  ;;  %v1403_v3 = vadd.f32 %v1387_v21, %v3132_v8  ;;  %v1404_v57 = vadd.f32 %v1388_v34, %v3132_v8  ;;  %v1405_v55 = vadd.f32 %v1389_v40, %v3132_v8  ;;  %v3542_v21 = vld [vmem:[#allocation22_spill] sm:$0xff]  ;;  %v3543_v40 = vld [vmem:[#allocation17_spill] sm:$0xff] }
 0x1c0   :  { %v1406_v62 = vadd.f32 %v1390_v29, %v3132_v8  ;;  %v1407_v9 = vadd.f32 %v1391_v16, %v3132_v8  ;;  %v1408_v25 = vmax.f32 %v1392_v60, 0.0  ;;  %v1409_v36 = vmax.f32 %v1393_v30, 0.0  ;;  %v3544_v29 = vld [vmem:[#allocation30_spill] sm:$0xff] }
 0x1c1   :  { %v1410_v5 = vmax.f32 %v1394_v37, 0.0  ;;  %v1411_v42 = vmax.f32 %v1395_v50, 0.0  ;;  %v1412_v19 = vmax.f32 %v1396_v56, 0.0  ;;  %v1413_v7 = vmax.f32 %v1397_v46, 0.0  ;;  %v3545_v37 = vld [vmem:[#allocation34_spill] sm:$0xff] }
 0x1c2   :  { %v1414_v31 = vmax.f32 %v1398_v53, 0.0  ;;  %v1415_v2 = vmax.f32 %v1399_v1, 0.0  ;;  %v1416_v38 = vmax.f32 %v1400_v28, 0.0  ;;  %v1417_v6 = vmax.f32 %v1401_v35, 0.0  ;;  %v3546_v56 = vld [vmem:[#allocation38_spill] sm:$0xff] }
 0x1c3   :  { %v1418_v58 = vmax.f32 %v1402_v20, 0.0  ;;  %v1419_v0 = vmax.f32 %v1403_v3, 0.0  ;;  %v1420_v47 = vmax.f32 %v1404_v57, 0.0  ;;  %v1421_v4 = vmax.f32 %v1405_v55, 0.0 }
 0x1c4   :  { %v1422_v52 = vmax.f32 %v1406_v62, 0.0  ;;  %v1423_v15 = vmax.f32 %v1407_v9, 0.0  ;;  %v2146_v39 = vpack.c.bf16 %v1409_v36, %v1408_v25  ;;  %v2151_v22 = vpack.c.bf16 %v1411_v42, %v1410_v5 }
 0x1c5   :  { %v2156_v44 = vpack.c.bf16 %v1413_v7, %v1412_v19  ;;  %v2161_v12 = vpack.c.bf16 %v1415_v2, %v1414_v31  ;;  %v2166_v49 = vpack.c.bf16 %v1417_v6, %v1416_v38  ;;  %v2171_v17 = vpack.c.bf16 %v1419_v0, %v1418_v58 }
 0x1c6   :  { %2270 = vst [vmem:[%s3412_s4 + $0x40] sm:$0xff] %v2146_v39   ;;  %2271 = vst [vmem:[%s3412_s4 + $0x48] sm:$0xff] %v2151_v22   ;;  %v2176_v63 = vpack.c.bf16 %v1421_v4, %v1420_v47  ;;  %v2181_v23 = vpack.c.bf16 %v1423_v15, %v1422_v52  ;;  %v1505_v13 = vmul.f32 %v3098_v32, %v3540_v10 }
 0x1c7   :  { %v1506_v54 = vmul.f32 %v3098_v32, %v3541_v33  ;;  %2272 = vst [vmem:[%s3412_s4 + $0x50] sm:$0xff] %v2156_v44   ;;  %2273 = vst [vmem:[%s3412_s4 + $0x58] sm:$0xff] %v2161_v12   ;;  %v1507_v45 = vmul.f32 %v2864_v61, %v3098_v32  ;;  %v1508_v59 = vmul.f32 %v2873_v11, %v3098_v32 }
 0x1c8   :  { %2274 = vst [vmem:[%s3412_s4 + $0x60] sm:$0xff] %v2166_v49   ;;  %2275 = vst [vmem:[%s3412_s4 + $0x68] sm:$0xff] %v2171_v17   ;;  %v1509_v14 = vmul.f32 %v3098_v32, %v2892_v48  ;;  %v1510_v34 = vmul.f32 %v3098_v32, %v3542_v21  ;;  %v1511_v61 = vmul.f32 %v3543_v40, %v3098_v32 }
 0x1c9   :  { %2276 = vst [vmem:[%s3412_s4 + $0x70] sm:$0xff] %v2176_v63   ;;  %2277 = vst [vmem:[%s3412_s4 + $0x78] sm:$0xff] %v2181_v23   ;;  %v1512_v11 = vmul.f32 %v3511_v27, %v3098_v32  ;;  %v1513_v48 = vmul.f32 %v3098_v32, %v3512_v24  ;;  %v1514_v16 = vmul.f32 %v3098_v32, %v3544_v29  ;;  %v3547_v27 = vld [vmem:[#allocation32_spill] sm:$0xff] }
 0x1ca   :  { %v1515_v60 = vmul.f32 %v3516_v41, %v3098_v32  ;;  %v1516_v30 = vmul.f32 %v3518_v51, %v3098_v32  ;;  %v1517_v50 = vmul.f32 %v3098_v32, %v3545_v37  ;;  %v1518_v46 = vmul.f32 %v3098_v32, %v3546_v56  ;;  %v3548_v24 = vld [vmem:[#allocation36_spill] sm:$0xff] }
 0x1cb   :  { %v1519_v53 = vmul.f32 %v3547_v27, %v3098_v32  ;;  %v1520_v1 = vmul.f32 %v3548_v24, %v3098_v32  ;;  %v1521_v28 = vadd.f32 %v1505_v13, %v3132_v8  ;;  %v1522_v35 = vadd.f32 %v1506_v54, %v3132_v8 }
 0x1cc   :  { %v1523_v41 = vadd.f32 %v1507_v45, %v3132_v8  ;;  %v1524_v51 = vadd.f32 %v1508_v59, %v3132_v8  ;;  %v1525_v20 = vadd.f32 %v1509_v14, %v3132_v8  ;;  %v1526_v3 = vadd.f32 %v1510_v34, %v3132_v8  ;;  %v3549_v14 = vld [vmem:[#allocation13_spill] sm:$0xff]  ;;  %v3550_v34 = vld [vmem:[#allocation16_spill] sm:$0xff] }
 0x1cd   :  { %v1527_v57 = vadd.f32 %v1511_v61, %v3132_v8  ;;  %v1528_v55 = vadd.f32 %v1512_v11, %v3132_v8  ;;  %v1529_v62 = vadd.f32 %v1513_v48, %v3132_v8  ;;  %v1530_v9 = vadd.f32 %v1514_v16, %v3132_v8  ;;  %v3551_v61 = vld [vmem:[#allocation11_spill] sm:$0xff]  ;;  %v3552_v48 = vld [vmem:[#allocation14_spill] sm:$0xff] }
 0x1ce   :  { %v1531_v25 = vadd.f32 %v1515_v60, %v3132_v8  ;;  %v1532_v36 = vadd.f32 %v1516_v30, %v3132_v8  ;;  %v1533_v5 = vadd.f32 %v1517_v50, %v3132_v8  ;;  %v1534_v42 = vadd.f32 %v1518_v46, %v3132_v8  ;;  %v3553_v16 = vld [vmem:[#allocation19_spill] sm:$0xff]  ;;  %v3555_v50 = vld [vmem:[#allocation18_spill] sm:$0xff]  ;;  %v3556_v46 = vld [vmem:[#allocation21_spill] sm:$0xff] }
 0x1cf   :  { %v1535_v19 = vadd.f32 %v1519_v53, %v3132_v8  ;;  %v1536_v7 = vadd.f32 %v1520_v1, %v3132_v8  ;;  %v1537_v31 = vmax.f32 %v1521_v28, 0.0  ;;  %v1538_v2 = vmax.f32 %v1522_v35, 0.0  ;;  %v3554_v30 = vld [vmem:[#allocation23_spill] sm:$0xff] }
 0x1d0   :  { %v1539_v38 = vmax.f32 %v1523_v41, 0.0  ;;  %v1540_v6 = vmax.f32 %v1524_v51, 0.0  ;;  %v1541_v58 = vmax.f32 %v1525_v20, 0.0  ;;  %v1542_v0 = vmax.f32 %v1526_v3, 0.0  ;;  %v3557_v53 = vld [vmem:[#allocation27_spill] sm:$0xff] }
 0x1d1   :  { %v1543_v47 = vmax.f32 %v1527_v57, 0.0  ;;  %v1544_v4 = vmax.f32 %v1528_v55, 0.0  ;;  %v1545_v52 = vmax.f32 %v1529_v62, 0.0  ;;  %v1546_v15 = vmax.f32 %v1530_v9, 0.0  ;;  %v3558_v1 = vld [vmem:[#allocation31_spill] sm:$0xff]  ;;  %v3560_v57 = vld [vmem:[#allocation33_spill] sm:$0xff] }
 0x1d2   :  { %v1547_v39 = vmax.f32 %v1531_v25, 0.0  ;;  %v1548_v22 = vmax.f32 %v1532_v36, 0.0  ;;  %v1549_v44 = vmax.f32 %v1533_v5, 0.0  ;;  %v1550_v12 = vmax.f32 %v1534_v42, 0.0  ;;  %v3559_v20 = vld [vmem:[#allocation39_spill] sm:$0xff]  ;;  %v3561_v62 = vld [vmem:[#allocation37_spill] sm:$0xff] }
 0x1d3   :  { %v1551_v49 = vmax.f32 %v1535_v19, 0.0  ;;  %v1552_v17 = vmax.f32 %v1536_v7, 0.0  ;;  %v2186_v63 = vpack.c.bf16 %v1538_v2, %v1537_v31  ;;  %v2191_v23 = vpack.c.bf16 %v1540_v6, %v1539_v38 }
 0x1d4   :  { %v2196_v10 = vpack.c.bf16 %v1542_v0, %v1541_v58  ;;  %v2201_v13 = vpack.c.bf16 %v1544_v4, %v1543_v47  ;;  %v2206_v33 = vpack.c.bf16 %v1546_v15, %v1545_v52  ;;  %v2211_v54 = vpack.c.bf16 %v1548_v22, %v1547_v39 }
 0x1d5   :  { %2278 = vst [vmem:[%s3412_s4 + $0x80] sm:$0xff] %v2186_v63   ;;  %2279 = vst [vmem:[%s3412_s4 + $0x88] sm:$0xff] %v2191_v23   ;;  %v2216_v45 = vpack.c.bf16 %v1550_v12, %v1549_v44  ;;  %v2221_v59 = vpack.c.bf16 %v1552_v17, %v1551_v49  ;;  %v1634_v21 = vmul.f32 %v3098_v32, %v3549_v14 }
 0x1d6   :  { %v1635_v40 = vmul.f32 %v3098_v32, %v3550_v34  ;;  %2280 = vst [vmem:[%s3412_s4 + $0x90] sm:$0xff] %v2196_v10   ;;  %2281 = vst [vmem:[%s3412_s4 + $0x98] sm:$0xff] %v2201_v13   ;;  %v1636_v11 = vmul.f32 %v3551_v61, %v3098_v32  ;;  %v1637_v29 = vmul.f32 %v3552_v48, %v3098_v32 }
 0x1d7   :  { %2282 = vst [vmem:[%s3412_s4 + $0xa0] sm:$0xff] %v2206_v33   ;;  %2283 = vst [vmem:[%s3412_s4 + $0xa8] sm:$0xff] %v2211_v54   ;;  %v1638_v60 = vmul.f32 %v3098_v32, %v3553_v16  ;;  %v1639_v37 = vmul.f32 %v3098_v32, %v3554_v30  ;;  %v1640_v56 = vmul.f32 %v3555_v50, %v3098_v32 }
 0x1d8   :  { %2284 = vst [vmem:[%s3412_s4 + $0xb0] sm:$0xff] %v2216_v45   ;;  %2285 = vst [vmem:[%s3412_s4 + $0xb8] sm:$0xff] %v2221_v59   ;;  %v1641_v27 = vmul.f32 %v3556_v46, %v3098_v32  ;;  %v1642_v24 = vmul.f32 %v3098_v32, %v3557_v53  ;;  %v1643_v28 = vmul.f32 %v3098_v32, %v3558_v1 }
 0x1d9   :  { %v1644_v35 = vmul.f32 %v3527_v26, %v3098_v32  ;;  %v1645_v41 = vmul.f32 %v3528_v18, %v3098_v32  ;;  %v1646_v51 = vmul.f32 %v3098_v32, %v3529_v43  ;;  %v1647_v3 = vmul.f32 %v3098_v32, %v3559_v20 }
 0x1da   :  { %v1648_v55 = vmul.f32 %v3560_v57, %v3098_v32  ;;  %v1649_v9 = vmul.f32 %v3561_v62, %v3098_v32  ;;  %v1650_v25 = vadd.f32 %v1634_v21, %v3132_v8  ;;  %v1651_v36 = vadd.f32 %v1635_v40, %v3132_v8 }
 0x1db   :  { %v1652_v26 = vadd.f32 %v1636_v11, %v3132_v8  ;;  %v1653_v18 = vadd.f32 %v1637_v29, %v3132_v8  ;;  %v1654_v5 = vadd.f32 %v1638_v60, %v3132_v8  ;;  %v1655_v43 = vadd.f32 %v1639_v37, %v3132_v8 }
 0x1dc   :  { %v1656_v42 = vadd.f32 %v1640_v56, %v3132_v8  ;;  %v1657_v19 = vadd.f32 %v1641_v27, %v3132_v8  ;;  %v1658_v7 = vadd.f32 %v1642_v24, %v3132_v8  ;;  %v1659_v32 = vadd.f32 %v1643_v28, %v3132_v8 }
 0x1dd   :  { %v1660_v31 = vadd.f32 %v1644_v35, %v3132_v8  ;;  %v1661_v2 = vadd.f32 %v1645_v41, %v3132_v8  ;;  %v1662_v38 = vadd.f32 %v1646_v51, %v3132_v8  ;;  %v1663_v6 = vadd.f32 %v1647_v3, %v3132_v8 }
 0x1de   :  { %v1664_v58 = vadd.f32 %v1648_v55, %v3132_v8  ;;  %v1665_v0 = vadd.f32 %v1649_v9, %v3132_v8  ;;  %v1666_v47 = vmax.f32 %v1650_v25, 0.0  ;;  %v1667_v4 = vmax.f32 %v1651_v36, 0.0 }
 0x1df   :  { %v1668_v52 = vmax.f32 %v1652_v26, 0.0  ;;  %v1669_v15 = vmax.f32 %v1653_v18, 0.0  ;;  %v1670_v39 = vmax.f32 %v1654_v5, 0.0  ;;  %v1671_v22 = vmax.f32 %v1655_v43, 0.0 }
 0x1e0   :  { %v1672_v44 = vmax.f32 %v1656_v42, 0.0  ;;  %v1673_v12 = vmax.f32 %v1657_v19, 0.0  ;;  %v1674_v49 = vmax.f32 %v1658_v7, 0.0  ;;  %v1675_v17 = vmax.f32 %v1659_v32, 0.0 }
 0x1e1   :  { %v1676_v63 = vmax.f32 %v1660_v31, 0.0  ;;  %v1677_v23 = vmax.f32 %v1661_v2, 0.0  ;;  %v1678_v10 = vmax.f32 %v1662_v38, 0.0  ;;  %v1679_v13 = vmax.f32 %v1663_v6, 0.0 }
 0x1e2   :  { %v1680_v33 = vmax.f32 %v1664_v58, 0.0  ;;  %v1681_v54 = vmax.f32 %v1665_v0, 0.0  ;;  %v2226_v45 = vpack.c.bf16 %v1667_v4, %v1666_v47  ;;  %v2231_v59 = vpack.c.bf16 %v1669_v15, %v1668_v52 }
 0x1e3   :  { %v2236_v14 = vpack.c.bf16 %v1671_v22, %v1670_v39  ;;  %v2241_v8 = vpack.c.bf16 %v1673_v12, %v1672_v44  ;;  %v2246_v21 = vpack.c.bf16 %v1675_v17, %v1674_v49  ;;  %v2251_v34 = vpack.c.bf16 %v1677_v23, %v1676_v63 }
 0x1e4   :  { %2286 = vst [vmem:[%s3412_s4 + $0xc0] sm:$0xff] %v2226_v45   ;;  %2287 = vst [vmem:[%s3412_s4 + $0xc8] sm:$0xff] %v2231_v59   ;;  %v2256_v40 = vpack.c.bf16 %v1679_v13, %v1678_v10  ;;  %v2261_v61 = vpack.c.bf16 %v1681_v54, %v1680_v33 }
 0x1e5   :  { %2288 = vst [vmem:[%s3412_s4 + $0xd0] sm:$0xff] %v2236_v14   ;;  %2289 = vst [vmem:[%s3412_s4 + $0xd8] sm:$0xff] %v2241_v8  }
 0x1e6   :  { %2290 = vst [vmem:[%s3412_s4 + $0xe0] sm:$0xff] %v2246_v21   ;;  %2291 = vst [vmem:[%s3412_s4 + $0xe8] sm:$0xff] %v2251_v34  }
 0x1e7   :  { %2292 = vst [vmem:[%s3412_s4 + $0xf0] sm:$0xff] %v2256_v40   ;;  %2293 = vst [vmem:[%s3412_s4 + $0xf8] sm:$0xff] %v2261_v61  }

// kernel: _forward_jit.10
= control target key start
LH: loop header
LB: loop body
LE: loop exit
PB: predicated region body
PF: predicated region fallthrough
CT: control target
= control target key end

     0   :  { %vm274_vm0 = vcmask 523264   ;;  %s13175_s1 = inlined_call_operand.vmem [shape: bf16[4,64,128], index: 1, kind: input, shape index: {}]   ;;  %s13176_s0 = inlined_call_operand.vmem [shape: bf16[4,512,64], index: 0, kind: input, shape index: {}]   ;;  %s13177_s2 = inlined_call_operand.vmem [shape: f32[1,128], index: 2, kind: input, shape index: {}]   ;;  %s13178_s3 = inlined_call_operand.vmem [shape: f32[1,128], index: 3, kind: input, shape index: {}]   ;;  %s13179_s4 = inlined_call_operand.vmem [shape: bf16[4,512,128], index: 4, kind: output, shape index: {}]  }
   0x1   :  { %v8127_v0 = vld [vmem:[%s13175_s1] sm:$0xff]   ;;  %v8129_v2 = vld [vmem:[%s13175_s1 + $0x8] sm:$0xff]   ;;  %v8131_v4 = vld [vmem:[%s13175_s1 + $0x10] sm:$0xff]  }
   0x2   :  { %v8128_v1 = vld [vmem:[%s13175_s1 + $0x20] sm:$0xff]   ;;  %7839 = vmatprep.subr.bf16.mxu0 %v8127_v0  ;;  %v8130_v3 = vld [vmem:[%s13175_s1 + $0x28] sm:$0xff]   ;;  %v8132_v5 = vld [vmem:[%s13175_s1 + $0x30] sm:$0xff]  }
   0x3   :  { %7911 = vmatprep.subr.bf16.mxu1 %v8128_v1  ;;  %7840 = vmatpush3.bf16.msra.mxu0 %v8127_v0  ;;  %v8133_v6 = vld [vmem:[%s13175_s1 + $0x18] sm:$0xff]   ;;  %v8135_v8 = vld [vmem:[%s13176_s0] sm:$0xff]   ;;  %v8137_v12 = vld [vmem:[%s13176_s0 + $0x8] sm:$0xff]  }
   0x4   :  { %7912 = vmatpush3.bf16.msra.mxu1 %v8128_v1  ;;  %7841 = vmatprep.subr.bf16.mxu0 %v8129_v2  ;;  %v8134_v7 = vld [vmem:[%s13175_s1 + $0x38] sm:$0xff]   ;;  %v8136_v9 = vld [vmem:[%s13176_s0 + $0x100] sm:$0xff]   ;;  %v8138_v13 = vld [vmem:[%s13176_s0 + $0x108] sm:$0xff]  }
   0x5   :  { %7913 = vmatprep.subr.bf16.mxu1 %v8130_v3  ;;  %7847 = vmatprep.mubr.msk.bf16.mxu0 %vm274_vm0, %v8135_v8  ;;  %v8139_v10 = vld [vmem:[%s13175_s1 + $0x40] sm:$0xff]   ;;  %v8141_v14 = vld [vmem:[%s13176_s0 + $0x10] sm:$0xff]   ;;  %v8143_v16 = vld [vmem:[%s13176_s0 + $0x18] sm:$0xff]  }
   0x6   :  { %7919 = vmatprep.mubr.msk.bf16.mxu1 %vm274_vm0, %v8136_v9  ;;  %v8140_v11 = vld [vmem:[%s13175_s1 + $0x60] sm:$0xff]   ;;  %v8142_v15 = vld [vmem:[%s13176_s0 + $0x110] sm:$0xff]   ;;  %v8144_v17 = vld [vmem:[%s13176_s0 + $0x118] sm:$0xff]  }
   0x7   :  { %7842 = vmatpush3.bf16.msra.mxu0 %v8129_v2  ;;  %v8145_v18 = vld [vmem:[%s13176_s0 + $0x20] sm:$0xff]   ;;  %v8147_v20 = vld [vmem:[%s13176_s0 + $0x28] sm:$0xff]   ;;  %v8149_v22 = vld [vmem:[%s13176_s0 + $0x30] sm:$0xff]  }
   0x8   :  { %7914 = vmatpush3.bf16.msra.mxu1 %v8130_v3  ;;  %7843 = vmatprep.subr.bf16.mxu0 %v8131_v4  ;;  %v8146_v19 = vld [vmem:[%s13176_s0 + $0x120] sm:$0xff]   ;;  %v8148_v21 = vld [vmem:[%s13176_s0 + $0x128] sm:$0xff]   ;;  %v8150_v25 = vld [vmem:[%s13176_s0 + $0x130] sm:$0xff]  }
   0x9   :  { %7915 = vmatprep.subr.bf16.mxu1 %v8132_v5  ;;  %v8157_v23 = vld [vmem:[%s13175_s1 + $0x48] sm:$0xff]   ;;  %v8151_v26 = vld [vmem:[%s13176_s0 + $0x38] sm:$0xff]   ;;  %v8153_v28 = vld [vmem:[%s13176_s0 + $0x40] sm:$0xff]  }
   0xa   :  { %v8158_v24 = vld [vmem:[%s13175_s1 + $0x68] sm:$0xff]   ;;  %v8152_v27 = vld [vmem:[%s13176_s0 + $0x138] sm:$0xff]   ;;  %v8154_v29 = vld [vmem:[%s13176_s0 + $0x140] sm:$0xff]  }
   0xb   :  { %7844 = vmatpush3.bf16.msra.mxu0 %v8131_v4  ;;  %v8155_v30 = vld [vmem:[%s13176_s0 + $0x48] sm:$0xff]   ;;  %v8159_v32 = vld [vmem:[%s13176_s0 + $0x50] sm:$0xff]   ;;  %v8161_v36 = vld [vmem:[%s13176_s0 + $0x58] sm:$0xff]  }
   0xc   :  { %7916 = vmatpush3.bf16.msra.mxu1 %v8132_v5  ;;  %7845 = vmatprep.subr.bf16.mxu0 %v8133_v6  ;;  %v8156_v31 = vld [vmem:[%s13176_s0 + $0x148] sm:$0xff]   ;;  %v8160_v33 = vld [vmem:[%s13176_s0 + $0x150] sm:$0xff]   ;;  %v8162_v37 = vld [vmem:[%s13176_s0 + $0x158] sm:$0xff]  }
   0xd   :  { %7917 = vmatprep.subr.bf16.mxu1 %v8134_v7  ;;  %v8175_v34 = vld [vmem:[%s13175_s1 + $0x50] sm:$0xff]   ;;  %v8163_v38 = vld [vmem:[%s13176_s0 + $0x60] sm:$0xff]   ;;  %v8165_v40 = vld [vmem:[%s13176_s0 + $0x68] sm:$0xff]  }
   0xe   :  { %v8176_v35 = vld [vmem:[%s13175_s1 + $0x70] sm:$0xff]   ;;  %v8164_v39 = vld [vmem:[%s13176_s0 + $0x160] sm:$0xff]   ;;  %v8166_v41 = vld [vmem:[%s13176_s0 + $0x168] sm:$0xff]  }
   0xf   :  { %7846 = vmatpush3.bf16.msra.mxu0 %v8133_v6  ;;  %v8167_v42 = vld [vmem:[%s13176_s0 + $0x70] sm:$0xff]   ;;  %v8193_v44 = vld [vmem:[%s13175_s1 + $0x58] sm:$0xff]   ;;  %v8171_v48 = vld [vmem:[%s13176_s0 + $0x80] sm:$0xff]  }
  0x10   :  { %7918 = vmatpush3.bf16.msra.mxu1 %v8134_v7  ;;  %7983 = vmatprep.subr.bf16.mxu0 %v8139_v10  ;;  %v8168_v43 = vld [vmem:[%s13176_s0 + $0x170] sm:$0xff]   ;;  %v8194_v45 = vld [vmem:[%s13175_s1 + $0x78] sm:$0xff]   ;;  %v8172_v49 = vld [vmem:[%s13176_s0 + $0x180] sm:$0xff]  }
  0x11   :  { %8055 = vmatprep.subr.bf16.mxu1 %v8140_v11  ;;  %v8169_v46 = vld [vmem:[%s13176_s0 + $0x78] sm:$0xff]   ;;  %v8173_v50 = vld [vmem:[%s13176_s0 + $0x88] sm:$0xff]   ;;  %v8177_v52 = vld [vmem:[%s13176_s0 + $0x90] sm:$0xff]  }
  0x12   :  { %7848 = vmatmul.mubr.msk.bf16.vlgmr.msra.gmra.mrb[0].mxu0 %vm274_vm0, %v8137_v12  ;;  %v8170_v47 = vld [vmem:[%s13176_s0 + $0x178] sm:$0xff]   ;;  %v8174_v51 = vld [vmem:[%s13176_s0 + $0x188] sm:$0xff]   ;;  %v8178_v53 = vld [vmem:[%s13176_s0 + $0x190] sm:$0xff]  }
  0x13   :  { %7920 = vmatmul.mubr.msk.bf16.vlgmr.msra.gmra.mrb[0].mxu1 %vm274_vm0, %v8138_v13  ;;  %7984 = vmatpush3.bf16.msra.mxu0 %v8139_v10  ;;  %v8179_v54 = vld [vmem:[%s13176_s0 + $0x98] sm:$0xff]   ;;  %v8181_v56 = vld [vmem:[%s13176_s0 + $0xa0] sm:$0xff]   ;;  %v8183_v58 = vld [vmem:[%s13176_s0 + $0xa8] sm:$0xff]  }
  0x14   :  { %8056 = vmatpush3.bf16.msra.mxu1 %v8140_v11  ;;  %7851 = vmatprep.mubr.msk.bf16.mxu0 %vm274_vm0, %v8141_v14  ;;  %v8180_v55 = vld [vmem:[%s13176_s0 + $0x198] sm:$0xff]   ;;  %v8182_v57 = vld [vmem:[%s13176_s0 + $0x1a0] sm:$0xff]   ;;  %v8184_v59 = vld [vmem:[%s13176_s0 + $0x1a8] sm:$0xff]  }
  0x15   :  { %7923 = vmatprep.mubr.msk.bf16.mxu1 %vm274_vm0, %v8142_v15  ;;  %7985 = vmatprep.subr.bf16.mxu0 %v8157_v23  ;;  %v8185_v60 = vld [vmem:[%s13176_s0 + $0xb0] sm:$0xff]   ;;  %v8187_v62 = vld [vmem:[%s13176_s0 + $0xb8] sm:$0xff]   ;;  %v8189_v0 = vld [vmem:[%s13176_s0 + $0xc0] sm:$0xff]  }
  0x16   :  { %8057 = vmatprep.subr.bf16.mxu1 %v8158_v24  ;;  %v8186_v61 = vld [vmem:[%s13176_s0 + $0x1b0] sm:$0xff]   ;;  %v8188_v63 = vld [vmem:[%s13176_s0 + $0x1b8] sm:$0xff]   ;;  %v8190_v1 = vld [vmem:[%s13176_s0 + $0x1c0] sm:$0xff]  }
  0x17   :  { %7986 = vmatpush3.bf16.msra.mxu0 %v8157_v23  ;;  %v8191_v2 = vld [vmem:[%s13176_s0 + $0xc8] sm:$0xff]   ;;  %v8195_v4 = vld [vmem:[%s13176_s0 + $0xd0] sm:$0xff]   ;;  %v8197_v6 = vld [vmem:[%s13176_s0 + $0xd8] sm:$0xff]  }
  0x18   :  { %8058 = vmatpush3.bf16.msra.mxu1 %v8158_v24  ;;  %7987 = vmatprep.subr.bf16.mxu0 %v8175_v34  ;;  %v8192_v3 = vld [vmem:[%s13176_s0 + $0x1c8] sm:$0xff]   ;;  %v8196_v5 = vld [vmem:[%s13176_s0 + $0x1d0] sm:$0xff]   ;;  %v8198_v7 = vld [vmem:[%s13176_s0 + $0x1d8] sm:$0xff]  }
  0x19   :  { %8059 = vmatprep.subr.bf16.mxu1 %v8176_v35  ;;  %v8199_v8 = vld [vmem:[%s13176_s0 + $0xe0] sm:$0xff]   ;;  %v8201_v10 = vld [vmem:[%s13176_s0 + $0xe8] sm:$0xff]   ;;  %v8203_v12 = vld [vmem:[%s13176_s0 + $0xf0] sm:$0xff]  }
  0x1a   :  { %7852 = vmatmul.mubr.msk.bf16.gmra.mrb[4].mxu0 %vm274_vm0, %v8143_v16  ;;  %v8200_v9 = vld [vmem:[%s13176_s0 + $0x1e0] sm:$0xff]   ;;  %v8202_v11 = vld [vmem:[%s13176_s0 + $0x1e8] sm:$0xff]   ;;  %v8204_v13 = vld [vmem:[%s13176_s0 + $0x1f0] sm:$0xff]  }
  0x1b   :  { %7924 = vmatmul.mubr.msk.bf16.gmra.mrb[4].mxu1 %vm274_vm0, %v8144_v17  ;;  %7855 = vmatprep.mubr.msk.bf16.mxu0 %vm274_vm0, %v8145_v18  ;;  %v8205_v14 = vld [vmem:[%s13176_s0 + $0xf8] sm:$0xff]   ;;  %v8207_v16 = vld [vmem:[%s13176_s0 + $0x200] sm:$0xff]   ;;  %v8209_v18 = vld [vmem:[%s13176_s0 + $0x208] sm:$0xff]  }
  0x1c   :  { %7927 = vmatprep.mubr.msk.bf16.mxu1 %vm274_vm0, %v8146_v19  ;;  %7988 = vmatpush3.bf16.msra.mxu0 %v8175_v34  ;;  %v8206_v15 = vld [vmem:[%s13176_s0 + $0x1f8] sm:$0xff]   ;;  %v8208_v17 = vld [vmem:[%s13176_s0 + $0x300] sm:$0xff]   ;;  %v8210_v19 = vld [vmem:[%s13176_s0 + $0x308] sm:$0xff]  }
  0x1d   :  { %8060 = vmatpush3.bf16.msra.mxu1 %v8176_v35  ;;  %7989 = vmatprep.subr.bf16.mxu0 %v8193_v44  ;;  %v8214_v23 = vld [vmem:[%s13176_s0 + $0x318] sm:$0xff]   ;;  %v8215_v24 = vld [vmem:[%s13176_s0 + $0x220] sm:$0xff]   ;;  %v8225_v34 = vld [vmem:[%s13176_s0 + $0x248] sm:$0xff]  }
  0x1e   :  { %8061 = vmatprep.subr.bf16.mxu1 %v8194_v45  ;;  %v8226_v35 = vld [vmem:[%s13176_s0 + $0x348] sm:$0xff]  }
  0x20   :  { %7990 = vmatpush3.bf16.msra.mxu0 %v8193_v44  ;;  %v8235_v44 = vld [vmem:[%s13176_s0 + $0x270] sm:$0xff]  }
  0x21   :  { %8062 = vmatpush3.bf16.msra.mxu1 %v8194_v45  ;;  %v8236_v45 = vld [vmem:[%s13176_s0 + $0x370] sm:$0xff]  }
  0x22   :  { %7856 = vmatmul.mubr.msk.bf16.gmra.mrb[8].mxu0 %vm274_vm0, %v8147_v20  ;;  %v8211_v20 = vld [vmem:[%s13176_s0 + $0x210] sm:$0xff]  }
  0x23   :  { %7928 = vmatmul.mubr.msk.bf16.gmra.mrb[8].mxu1 %vm274_vm0, %v8148_v21  ;;  %7859 = vmatprep.mubr.msk.bf16.mxu0 %vm274_vm0, %v8149_v22  ;;  %v8212_v21 = vld [vmem:[%s13176_s0 + $0x310] sm:$0xff]   ;;  %v8213_v22 = vld [vmem:[%s13176_s0 + $0x218] sm:$0xff]  }
  0x24   :  { %7931 = vmatprep.mubr.msk.bf16.mxu1 %vm274_vm0, %v8150_v25  ;;  %v8216_v25 = vld [vmem:[%s13176_s0 + $0x320] sm:$0xff]  }
  0x2a   :  { %7860 = vmatmul.mubr.msk.bf16.gmra.mrb[12].mxu0 %vm274_vm0, %v8151_v26  ;;  %v8217_v26 = vld [vmem:[%s13176_s0 + $0x228] sm:$0xff]  }
  0x2b   :  { %7932 = vmatmul.mubr.msk.bf16.gmra.mrb[12].mxu1 %vm274_vm0, %v8152_v27  ;;  %7863 = vmatprep.mubr.msk.bf16.mxu0 %vm274_vm0, %v8153_v28  ;;  %v8218_v27 = vld [vmem:[%s13176_s0 + $0x328] sm:$0xff]   ;;  %v8219_v28 = vld [vmem:[%s13176_s0 + $0x230] sm:$0xff]  }
  0x2c   :  { %7935 = vmatprep.mubr.msk.bf16.mxu1 %vm274_vm0, %v8154_v29  ;;  %v8220_v29 = vld [vmem:[%s13176_s0 + $0x330] sm:$0xff]  }
  0x32   :  { %7864 = vmatmul.mubr.msk.bf16.gmra.mrb[16].mxu0 %vm274_vm0, %v8155_v30  ;;  %v8221_v30 = vld [vmem:[%s13176_s0 + $0x238] sm:$0xff]  }
  0x33   :  { %7936 = vmatmul.mubr.msk.bf16.gmra.mrb[16].mxu1 %vm274_vm0, %v8156_v31  ;;  %7867 = vmatprep.mubr.msk.bf16.mxu0 %vm274_vm0, %v8159_v32  ;;  %v8222_v31 = vld [vmem:[%s13176_s0 + $0x338] sm:$0xff]   ;;  %v8223_v32 = vld [vmem:[%s13176_s0 + $0x240] sm:$0xff]  }
  0x34   :  { %7939 = vmatprep.mubr.msk.bf16.mxu1 %vm274_vm0, %v8160_v33  ;;  %v8224_v33 = vld [vmem:[%s13176_s0 + $0x340] sm:$0xff]  }
  0x3a   :  { %7868 = vmatmul.mubr.msk.bf16.gmra.mrb[20].mxu0 %vm274_vm0, %v8161_v36  ;;  %v8227_v36 = vld [vmem:[%s13176_s0 + $0x250] sm:$0xff]  }
  0x3b   :  { %7940 = vmatmul.mubr.msk.bf16.gmra.mrb[20].mxu1 %vm274_vm0, %v8162_v37  ;;  %7871 = vmatprep.mubr.msk.bf16.mxu0 %vm274_vm0, %v8163_v38  ;;  %v8228_v37 = vld [vmem:[%s13176_s0 + $0x350] sm:$0xff]   ;;  %v8229_v38 = vld [vmem:[%s13176_s0 + $0x258] sm:$0xff]  }
  0x3c   :  { %7943 = vmatprep.mubr.msk.bf16.mxu1 %vm274_vm0, %v8164_v39  ;;  %v8230_v39 = vld [vmem:[%s13176_s0 + $0x358] sm:$0xff]  }
  0x42   :  { %7872 = vmatmul.mubr.msk.bf16.gmra.mrb[24].mxu0 %vm274_vm0, %v8165_v40  ;;  %v8231_v40 = vld [vmem:[%s13176_s0 + $0x260] sm:$0xff]  }
  0x43   :  { %7944 = vmatmul.mubr.msk.bf16.gmra.mrb[24].mxu1 %vm274_vm0, %v8166_v41  ;;  %7875 = vmatprep.mubr.msk.bf16.mxu0 %vm274_vm0, %v8167_v42  ;;  %v8232_v41 = vld [vmem:[%s13176_s0 + $0x360] sm:$0xff]   ;;  %v8233_v42 = vld [vmem:[%s13176_s0 + $0x268] sm:$0xff]  }
  0x44   :  { %7947 = vmatprep.mubr.msk.bf16.mxu1 %vm274_vm0, %v8168_v43  ;;  %v8234_v43 = vld [vmem:[%s13176_s0 + $0x368] sm:$0xff]  }
  0x4a   :  { %7876 = vmatmul.mubr.msk.bf16.gmra.mrb[28].mxu0 %vm274_vm0, %v8169_v46  ;;  %v8237_v46 = vld [vmem:[%s13176_s0 + $0x278] sm:$0xff]  }
  0x4b   :  { %7948 = vmatmul.mubr.msk.bf16.gmra.mrb[28].mxu1 %vm274_vm0, %v8170_v47  ;;  %7879 = vmatprep.mubr.msk.bf16.mxu0 %vm274_vm0, %v8171_v48  ;;  %v8238_v47 = vld [vmem:[%s13176_s0 + $0x378] sm:$0xff]   ;;  %v8239_v48 = vld [vmem:[%s13176_s0 + $0x280] sm:$0xff]  }
  0x4c   :  { %7951 = vmatprep.mubr.msk.bf16.mxu1 %vm274_vm0, %v8172_v49  ;;  %v8240_v49 = vld [vmem:[%s13176_s0 + $0x380] sm:$0xff]  }
  0x52   :  { %7880 = vmatmul.mubr.msk.bf16.gmra.mrb[32].mxu0 %vm274_vm0, %v8173_v50  ;;  %v8241_v50 = vld [vmem:[%s13176_s0 + $0x288] sm:$0xff]  }
  0x53   :  { %7952 = vmatmul.mubr.msk.bf16.gmra.mrb[32].mxu1 %vm274_vm0, %v8174_v51  ;;  %7883 = vmatprep.mubr.msk.bf16.mxu0 %vm274_vm0, %v8177_v52  ;;  %v8242_v51 = vld [vmem:[%s13176_s0 + $0x388] sm:$0xff]   ;;  %v8243_v52 = vld [vmem:[%s13176_s0 + $0x290] sm:$0xff]  }
  0x54   :  { %7955 = vmatprep.mubr.msk.bf16.mxu1 %vm274_vm0, %v8178_v53  ;;  %v8244_v53 = vld [vmem:[%s13176_s0 + $0x390] sm:$0xff]  }
  0x5a   :  { %7884 = vmatmul.mubr.msk.bf16.gmra.mrb[36].mxu0 %vm274_vm0, %v8179_v54  ;;  %v8245_v54 = vld [vmem:[%s13176_s0 + $0x298] sm:$0xff]  }
  0x5b   :  { %7956 = vmatmul.mubr.msk.bf16.gmra.mrb[36].mxu1 %vm274_vm0, %v8180_v55  ;;  %7887 = vmatprep.mubr.msk.bf16.mxu0 %vm274_vm0, %v8181_v56  ;;  %v8246_v55 = vld [vmem:[%s13176_s0 + $0x398] sm:$0xff]   ;;  %v8247_v56 = vld [vmem:[%s13176_s0 + $0x2a0] sm:$0xff]  }
  0x5c   :  { %7959 = vmatprep.mubr.msk.bf16.mxu1 %vm274_vm0, %v8182_v57  ;;  %v8248_v57 = vld [vmem:[%s13176_s0 + $0x3a0] sm:$0xff]  }
  0x62   :  { %7888 = vmatmul.mubr.msk.bf16.gmra.mrb[40].mxu0 %vm274_vm0, %v8183_v58  ;;  %v8249_v58 = vld [vmem:[%s13176_s0 + $0x2a8] sm:$0xff]  }
  0x63   :  { %7960 = vmatmul.mubr.msk.bf16.gmra.mrb[40].mxu1 %vm274_vm0, %v8184_v59  ;;  %7891 = vmatprep.mubr.msk.bf16.mxu0 %vm274_vm0, %v8185_v60  ;;  %v8250_v59 = vld [vmem:[%s13176_s0 + $0x3a8] sm:$0xff]   ;;  %v8251_v60 = vld [vmem:[%s13176_s0 + $0x2b0] sm:$0xff]  }
  0x64   :  { %7963 = vmatprep.mubr.msk.bf16.mxu1 %vm274_vm0, %v8186_v61  ;;  %v8252_v61 = vld [vmem:[%s13176_s0 + $0x3b0] sm:$0xff]  }
  0x6a   :  { %7892 = vmatmul.mubr.msk.bf16.gmra.mrb[44].mxu0 %vm274_vm0, %v8187_v62 }
  0x6b   :  { %7964 = vmatmul.mubr.msk.bf16.gmra.mrb[44].mxu1 %vm274_vm0, %v8188_v63  ;;  %7895 = vmatprep.mubr.msk.bf16.mxu0 %vm274_vm0, %v8189_v0 }
  0x6c   :  { %7967 = vmatprep.mubr.msk.bf16.mxu1 %vm274_vm0, %v8190_v1  ;;  %v8253_v1 = vld [vmem:[%s13176_s0 + $0x2b8] sm:$0xff]  }
  0x72   :  { %7896 = vmatmul.mubr.msk.bf16.gmra.mrb[48].mxu0 %vm274_vm0, %v8191_v2 }
  0x73   :  { %7968 = vmatmul.mubr.msk.bf16.gmra.mrb[48].mxu1 %vm274_vm0, %v8192_v3  ;;  %7899 = vmatprep.mubr.msk.bf16.mxu0 %vm274_vm0, %v8195_v4  ;;  %v8254_v4 = vld [vmem:[%s13176_s0 + $0x3b8] sm:$0xff]  }
  0x74   :  { %7971 = vmatprep.mubr.msk.bf16.mxu1 %vm274_vm0, %v8196_v5  ;;  %v8255_v5 = vld [vmem:[%s13176_s0 + $0x2c0] sm:$0xff]  }
  0x7a   :  { %7900 = vmatmul.mubr.msk.bf16.gmra.mrb[52].mxu0 %vm274_vm0, %v8197_v6 }
  0x7b   :  { %7972 = vmatmul.mubr.msk.bf16.gmra.mrb[52].mxu1 %vm274_vm0, %v8198_v7  ;;  %7903 = vmatprep.mubr.msk.bf16.mxu0 %vm274_vm0, %v8199_v8  ;;  %v8256_v8 = vld [vmem:[%s13176_s0 + $0x3c0] sm:$0xff]  }
  0x7c   :  { %7975 = vmatprep.mubr.msk.bf16.mxu1 %vm274_vm0, %v8200_v9 }
  0x82   :  { %7904 = vmatmul.mubr.msk.bf16.gmra.mrb[56].mxu0 %vm274_vm0, %v8201_v10 }
  0x83   :  { %7976 = vmatmul.mubr.msk.bf16.gmra.mrb[56].mxu1 %vm274_vm0, %v8202_v11  ;;  %7907 = vmatprep.mubr.msk.bf16.mxu0 %vm274_vm0, %v8203_v12 }
  0x84   :  { %7979 = vmatprep.mubr.msk.bf16.mxu1 %vm274_vm0, %v8204_v13 }
  0x8a   :  { %7908 = vmatmul.mubr.msk.bf16.gmra.mrb[60].mxu0 %vm274_vm0, %v8205_v14 }
  0x8b   :  { %7980 = vmatmul.mubr.msk.bf16.gmra.mrb[60].mxu1 %vm274_vm0, %v8206_v15  ;;  %7991 = vmatprep.mubr.msk.bf16.mxu0 %vm274_vm0, %v8207_v16 }
  0x8c   :  { %8063 = vmatprep.mubr.msk.bf16.mxu1 %vm274_vm0, %v8208_v17 }
  0x92   :  { %7992 = vmatmul.mubr.msk.bf16.vlgmr.msra.gmra.mrb[64].mxu0 %vm274_vm0, %v8209_v18 }
  0x93   :  { %8064 = vmatmul.mubr.msk.bf16.vlgmr.msra.gmra.mrb[64].mxu1 %vm274_vm0, %v8210_v19  ;;  %7995 = vmatprep.mubr.msk.bf16.mxu0 %vm274_vm0, %v8211_v20  ;;  %v8257_v19 = vld [vmem:[%s13176_s0 + $0x2c8] sm:$0xff]  }
  0x94   :  { %8067 = vmatprep.mubr.msk.bf16.mxu1 %vm274_vm0, %v8212_v21 }
  0x9a   :  { %7996 = vmatmul.mubr.msk.bf16.gmra.mrb[68].mxu0 %vm274_vm0, %v8213_v22 }
  0x9b   :  { %8068 = vmatmul.mubr.msk.bf16.gmra.mrb[68].mxu1 %vm274_vm0, %v8214_v23  ;;  %7999 = vmatprep.mubr.msk.bf16.mxu0 %vm274_vm0, %v8215_v24  ;;  %v8258_v23 = vld [vmem:[%s13176_s0 + $0x3c8] sm:$0xff]   ;;  %v8259_v24 = vld [vmem:[%s13176_s0 + $0x2d0] sm:$0xff]  }
  0x9c   :  { %8071 = vmatprep.mubr.msk.bf16.mxu1 %vm274_vm0, %v8216_v25 }
  0xa2   :  { %8000 = vmatmul.mubr.msk.bf16.gmra.mrb[72].mxu0 %vm274_vm0, %v8217_v26 }
  0xa3   :  { %8072 = vmatmul.mubr.msk.bf16.gmra.mrb[72].mxu1 %vm274_vm0, %v8218_v27  ;;  %8003 = vmatprep.mubr.msk.bf16.mxu0 %vm274_vm0, %v8219_v28  ;;  %v8260_v28 = vld [vmem:[%s13176_s0 + $0x3d0] sm:$0xff]  }
  0xa4   :  { %8075 = vmatprep.mubr.msk.bf16.mxu1 %vm274_vm0, %v8220_v29 }
  0xaa   :  { %8004 = vmatmul.mubr.msk.bf16.gmra.mrb[76].mxu0 %vm274_vm0, %v8221_v30 }
  0xab   :  { %8076 = vmatmul.mubr.msk.bf16.gmra.mrb[76].mxu1 %vm274_vm0, %v8222_v31  ;;  %8007 = vmatprep.mubr.msk.bf16.mxu0 %vm274_vm0, %v8223_v32 }
  0xac   :  { %8079 = vmatprep.mubr.msk.bf16.mxu1 %vm274_vm0, %v8224_v33 }
  0xb2   :  { %8008 = vmatmul.mubr.msk.bf16.gmra.mrb[80].mxu0 %vm274_vm0, %v8225_v34 }
  0xb3   :  { %8080 = vmatmul.mubr.msk.bf16.gmra.mrb[80].mxu1 %vm274_vm0, %v8226_v35  ;;  %8011 = vmatprep.mubr.msk.bf16.mxu0 %vm274_vm0, %v8227_v36 }
  0xb4   :  { %8083 = vmatprep.mubr.msk.bf16.mxu1 %vm274_vm0, %v8228_v37 }
  0xba   :  { %8012 = vmatmul.mubr.msk.bf16.gmra.mrb[84].mxu0 %vm274_vm0, %v8229_v38 }
  0xbb   :  { %8084 = vmatmul.mubr.msk.bf16.gmra.mrb[84].mxu1 %vm274_vm0, %v8230_v39  ;;  %8015 = vmatprep.mubr.msk.bf16.mxu0 %vm274_vm0, %v8231_v40  ;;  %v8261_v39 = vld [vmem:[%s13176_s0 + $0x2d8] sm:$0xff]  }
  0xbc   :  { %8087 = vmatprep.mubr.msk.bf16.mxu1 %vm274_vm0, %v8232_v41 }
  0xc2   :  { %8016 = vmatmul.mubr.msk.bf16.gmra.mrb[88].mxu0 %vm274_vm0, %v8233_v42 }
  0xc3   :  { %8088 = vmatmul.mubr.msk.bf16.gmra.mrb[88].mxu1 %vm274_vm0, %v8234_v43  ;;  %8019 = vmatprep.mubr.msk.bf16.mxu0 %vm274_vm0, %v8235_v44  ;;  %v8262_v43 = vld [vmem:[%s13176_s0 + $0x3d8] sm:$0xff]   ;;  %v8263_v44 = vld [vmem:[%s13176_s0 + $0x2e0] sm:$0xff]  }
  0xc4   :  { %8091 = vmatprep.mubr.msk.bf16.mxu1 %vm274_vm0, %v8236_v45 }
  0xca   :  { %8020 = vmatmul.mubr.msk.bf16.gmra.mrb[92].mxu0 %vm274_vm0, %v8237_v46 }
  0xcb   :  { %8092 = vmatmul.mubr.msk.bf16.gmra.mrb[92].mxu1 %vm274_vm0, %v8238_v47  ;;  %8023 = vmatprep.mubr.msk.bf16.mxu0 %vm274_vm0, %v8239_v48  ;;  %v8264_v48 = vld [vmem:[%s13176_s0 + $0x3e0] sm:$0xff]  }
  0xcc   :  { %8095 = vmatprep.mubr.msk.bf16.mxu1 %vm274_vm0, %v8240_v49 }
  0xd2   :  { %8024 = vmatmul.mubr.msk.bf16.gmra.mrb[96].mxu0 %vm274_vm0, %v8241_v50 }
  0xd3   :  { %8096 = vmatmul.mubr.msk.bf16.gmra.mrb[96].mxu1 %vm274_vm0, %v8242_v51  ;;  %8027 = vmatprep.mubr.msk.bf16.mxu0 %vm274_vm0, %v8243_v52 }
  0xd4   :  { %8099 = vmatprep.mubr.msk.bf16.mxu1 %vm274_vm0, %v8244_v53 }
  0xda   :  { %8028 = vmatmul.mubr.msk.bf16.gmra.mrb[100].mxu0 %vm274_vm0, %v8245_v54 }
  0xdb   :  { %8100 = vmatmul.mubr.msk.bf16.gmra.mrb[100].mxu1 %vm274_vm0, %v8246_v55  ;;  %8031 = vmatprep.mubr.msk.bf16.mxu0 %vm274_vm0, %v8247_v56 }
  0xdc   :  { %8103 = vmatprep.mubr.msk.bf16.mxu1 %vm274_vm0, %v8248_v57 }
  0xe2   :  { %8032 = vmatmul.mubr.msk.bf16.gmra.mrb[104].mxu0 %vm274_vm0, %v8249_v58 }
  0xe3   :  { %8104 = vmatmul.mubr.msk.bf16.gmra.mrb[104].mxu1 %vm274_vm0, %v8250_v59  ;;  %8035 = vmatprep.mubr.msk.bf16.mxu0 %vm274_vm0, %v8251_v60  ;;  %v8265_v59 = vld [vmem:[%s13176_s0 + $0x2e8] sm:$0xff]  }
  0xe4   :  { %8107 = vmatprep.mubr.msk.bf16.mxu1 %vm274_vm0, %v8252_v61 }
  0xe5   :  { %v8786_v62 = vpop.f32.mrb[0].mxu0 }
  0xe6   :  { %v8788_v63 = vpop.f32.mrb[0].mxu1  ;;  %v8790_v0 = vpop.f32.mrb[1].mxu0 }
  0xe7   :  { %13659 = vst [vmem:[#allocation2_spill] sm:$0xff] %v8788_v63  ;;  %v8795_v2 = vpop.f32.mrb[1].mxu1  ;;  %v8797_v3 = vpop.f32.mrb[2].mxu0 }
  0xe8   :  { %13660 = vst [vmem:[#allocation3_spill] sm:$0xff] %v8795_v2  ;;  %v8805_v6 = vpop.f32.mrb[2].mxu1  ;;  %v8807_v7 = vpop.f32.mrb[3].mxu0 }
  0xe9   :  { %13661 = vst [vmem:[#allocation4_spill] sm:$0xff] %v8805_v6  ;;  %v2589_v9 = vadd.f32 %v8807_v7, %v8790_v0  ;;  %v8814_v10 = vpop.f32.mrb[3].mxu1 }
  0xea   :  { %13662 = vst [vmem:[#allocation5_spill] sm:$0xff] %v8814_v10  ;;  %v2659_v11 = vadd.f32 %v8814_v10, %v8795_v2  ;;  %8036 = vmatmul.mubr.msk.bf16.gmra.mrb[108].mxu0 %vm274_vm0, %v8253_v1 }
  0xeb   :  { %v2590_v12 = vadd.f32 %v8786_v62, %v2589_v9  ;;  %8108 = vmatmul.mubr.msk.bf16.gmra.mrb[108].mxu1 %vm274_vm0, %v8254_v4  ;;  %8039 = vmatprep.mubr.msk.bf16.mxu0 %vm274_vm0, %v8255_v5  ;;  %v8266_v4 = vld [vmem:[%s13176_s0 + $0x3e8] sm:$0xff]   ;;  %v8267_v5 = vld [vmem:[%s13176_s0 + $0x2f0] sm:$0xff]  }
  0xec   :  { %v2660_v13 = vadd.f32 %v8788_v63, %v2659_v11  ;;  %8111 = vmatprep.mubr.msk.bf16.mxu1 %vm274_vm0, %v8256_v8 }
  0xed   :  { %v8824_v14 = vpop.f32.mrb[4].mxu0  ;;  %v2591_v15 = vadd.f32 %v8797_v3, %v2590_v12  ;;  %v8268_v12 = vld [vmem:[%s13176_s0 + $0x3f0] sm:$0xff]  }
  0xee   :  { %v8827_v16 = vpop.f32.mrb[4].mxu1  ;;  %v8829_v17 = vpop.f32.mrb[5].mxu0  ;;  %v2661_v18 = vadd.f32 %v8805_v6, %v2660_v13 }
  0xef   :  { %13663 = vst [vmem:[#allocation6_spill] sm:$0xff] %v8827_v16  ;;  %v2592_v20 = vadd.f32 %v2591_v15, %v8829_v17  ;;  %v8836_v21 = vpop.f32.mrb[5].mxu1  ;;  %v8838_v22 = vpop.f32.mrb[6].mxu0 }
  0xf0   :  { %13664 = vst [vmem:[#allocation7_spill] sm:$0xff] %v8836_v21  ;;  %v2662_v25 = vadd.f32 %v2661_v18, %v8836_v21  ;;  %v8847_v26 = vpop.f32.mrb[6].mxu1  ;;  %v8849_v27 = vpop.f32.mrb[7].mxu0 }
  0xf1   :  { %13665 = vst [vmem:[#allocation8_spill] sm:$0xff] %v8847_v26  ;;  %v2593_v29 = vadd.f32 %v2592_v20, %v8849_v27  ;;  %v8855_v30 = vpop.f32.mrb[7].mxu1 }
  0xf2   :  { %13666 = vst [vmem:[#allocation9_spill] sm:$0xff] %v8855_v30  ;;  %v2663_v31 = vadd.f32 %v2662_v25, %v8855_v30  ;;  %8040 = vmatmul.mubr.msk.bf16.gmra.mrb[112].mxu0 %vm274_vm0, %v8257_v19 }
  0xf3   :  { %v2594_v32 = vadd.f32 %v8824_v14, %v2593_v29  ;;  %8112 = vmatmul.mubr.msk.bf16.gmra.mrb[112].mxu1 %vm274_vm0, %v8258_v23  ;;  %8043 = vmatprep.mubr.msk.bf16.mxu0 %vm274_vm0, %v8259_v24 }
  0xf4   :  { %v2664_v33 = vadd.f32 %v8827_v16, %v2663_v31  ;;  %8115 = vmatprep.mubr.msk.bf16.mxu1 %vm274_vm0, %v8260_v28  ;;  %v8269_v31 = vld [vmem:[%s13176_s0 + $0x2f8] sm:$0xff]  }
  0xf5   :  { %v8864_v34 = vpop.f32.mrb[8].mxu0  ;;  %v2595_v35 = vadd.f32 %v8838_v22, %v2594_v32 }
  0xf6   :  { %v8867_v36 = vpop.f32.mrb[8].mxu1  ;;  %v8869_v37 = vpop.f32.mrb[9].mxu0  ;;  %v2665_v38 = vadd.f32 %v8847_v26, %v2664_v33 }
  0xf7   :  { %13667 = vst [vmem:[#allocation10_spill] sm:$0xff] %v8867_v36  ;;  %v2596_v40 = vadd.f32 %v2595_v35, %v8869_v37  ;;  %v8876_v41 = vpop.f32.mrb[9].mxu1  ;;  %v8878_v42 = vpop.f32.mrb[10].mxu0 }
  0xf8   :  { %13668 = vst [vmem:[#allocation11_spill] sm:$0xff] %v8876_v41  ;;  %v2666_v45 = vadd.f32 %v2665_v38, %v8876_v41  ;;  %v8887_v46 = vpop.f32.mrb[10].mxu1  ;;  %v8889_v47 = vpop.f32.mrb[11].mxu0  ;;  %v8270_v38 = vld [vmem:[%s13176_s0 + $0x3f8] sm:$0xff]  }
  0xf9   :  { %13669 = vst [vmem:[#allocation12_spill] sm:$0xff] %v8887_v46  ;;  %v2597_v49 = vadd.f32 %v2596_v40, %v8889_v47  ;;  %v8895_v50 = vpop.f32.mrb[11].mxu1 }
  0xfa   :  { %13670 = vst [vmem:[#allocation13_spill] sm:$0xff] %v8895_v50  ;;  %v2667_v51 = vadd.f32 %v2666_v45, %v8895_v50  ;;  %8044 = vmatmul.mubr.msk.bf16.gmra.mrb[116].mxu0 %vm274_vm0, %v8261_v39 }
  0xfb   :  { %v2598_v52 = vadd.f32 %v8864_v34, %v2597_v49  ;;  %8116 = vmatmul.mubr.msk.bf16.gmra.mrb[116].mxu1 %vm274_vm0, %v8262_v43  ;;  %8047 = vmatprep.mubr.msk.bf16.mxu0 %vm274_vm0, %v8263_v44 }
  0xfc   :  { %v2668_v53 = vadd.f32 %v8867_v36, %v2667_v51  ;;  %8119 = vmatprep.mubr.msk.bf16.mxu1 %vm274_vm0, %v8264_v48 }
  0xfd   :  { %v8904_v54 = vpop.f32.mrb[12].mxu0  ;;  %v2599_v55 = vadd.f32 %v8878_v42, %v2598_v52 }
  0xfe   :  { %13671 = vst [vmem:[#allocation14_spill] sm:$0xff] %v8904_v54  ;;  %v8907_v56 = vpop.f32.mrb[12].mxu1  ;;  %v8909_v57 = vpop.f32.mrb[13].mxu0  ;;  %v2669_v58 = vadd.f32 %v8887_v46, %v2668_v53 }
  0xff   :  { %13672 = vst [vmem:[#allocation15_spill] sm:$0xff] %v8907_v56  ;;  %13673 = vst [vmem:[#allocation16_spill] sm:$0xff] %v8909_v57  ;;  %v2600_v60 = vadd.f32 %v2599_v55, %v8909_v57  ;;  %v8916_v61 = vpop.f32.mrb[13].mxu1  ;;  %v8918_v1 = vpop.f32.mrb[14].mxu0 }
 0x100   :  { %13674 = vst [vmem:[#allocation17_spill] sm:$0xff] %v8916_v61  ;;  %13675 = vst [vmem:[#allocation18_spill] sm:$0xff] %v8918_v1  ;;  %v2670_v8 = vadd.f32 %v2669_v58, %v8916_v61  ;;  %v8927_v9 = vpop.f32.mrb[14].mxu1  ;;  %v8929_v11 = vpop.f32.mrb[15].mxu0 }
 0x101   :  { %13676 = vst [vmem:[#allocation19_spill] sm:$0xff] %v8927_v9  ;;  %13677 = vst [vmem:[#allocation20_spill] sm:$0xff] %v8929_v11  ;;  %v2601_v13 = vadd.f32 %v2600_v60, %v8929_v11  ;;  %v8935_v15 = vpop.f32.mrb[15].mxu1 }
 0x102   :  { %13678 = vst [vmem:[#allocation21_spill] sm:$0xff] %v8935_v15  ;;  %v2671_v18 = vadd.f32 %v2670_v8, %v8935_v15  ;;  %8048 = vmatmul.mubr.msk.bf16.gmra.mrb[120].mxu0 %vm274_vm0, %v8265_v59 }
 0x103   :  { %v2602_v19 = vadd.f32 %v8904_v54, %v2601_v13  ;;  %8120 = vmatmul.mubr.msk.bf16.gmra.mrb[120].mxu1 %vm274_vm0, %v8266_v4  ;;  %8051 = vmatprep.mubr.msk.bf16.mxu0 %vm274_vm0, %v8267_v5 }
 0x104   :  { %v2672_v20 = vadd.f32 %v8907_v56, %v2671_v18  ;;  %8123 = vmatprep.mubr.msk.bf16.mxu1 %vm274_vm0, %v8268_v12 }
 0x105   :  { %v8944_v23 = vpop.f32.mrb[16].mxu0  ;;  %v2603_v24 = vadd.f32 %v8918_v1, %v2602_v19 }
 0x106   :  { %13679 = vst [vmem:[#allocation22_spill] sm:$0xff] %v8944_v23  ;;  %v8947_v25 = vpop.f32.mrb[16].mxu1  ;;  %v8949_v28 = vpop.f32.mrb[17].mxu0  ;;  %v2673_v29 = vadd.f32 %v8927_v9, %v2672_v20 }
 0x107   :  { %13680 = vst [vmem:[#allocation23_spill] sm:$0xff] %v8947_v25  ;;  %13681 = vst [vmem:[#allocation24_spill] sm:$0xff] %v8949_v28  ;;  %v2604_v32 = vadd.f32 %v2603_v24, %v8949_v28  ;;  %v8956_v33 = vpop.f32.mrb[17].mxu1  ;;  %v8958_v35 = vpop.f32.mrb[18].mxu0 }
 0x108   :  { %13682 = vst [vmem:[#allocation25_spill] sm:$0xff] %v8956_v33  ;;  %13683 = vst [vmem:[#allocation26_spill] sm:$0xff] %v8958_v35  ;;  %v2674_v39 = vadd.f32 %v2673_v29, %v8956_v33  ;;  %v8964_v40 = vpop.f32.mrb[18].mxu1  ;;  %v8966_v43 = vpop.f32.mrb[19].mxu0 }
 0x109   :  { %13684 = vst [vmem:[#allocation27_spill] sm:$0xff] %v8964_v40  ;;  %13685 = vst [vmem:[#allocation28_spill] sm:$0xff] %v8966_v43  ;;  %v2605_v44 = vadd.f32 %v2604_v32, %v8966_v43  ;;  %v8969_v45 = vpop.f32.mrb[19].mxu1 }
 0x10a   :  { %13686 = vst [vmem:[#allocation29_spill] sm:$0xff] %v8969_v45  ;;  %v2675_v48 = vadd.f32 %v2674_v39, %v8969_v45  ;;  %8052 = vmatmul.mubr.msk.bf16.gmra.mrb[124].mxu0 %vm274_vm0, %v8269_v31 }
 0x10b   :  { %v2606_v49 = vadd.f32 %v8944_v23, %v2605_v44  ;;  %8124 = vmatmul.mubr.msk.bf16.gmra.mrb[124].mxu1 %vm274_vm0, %v8270_v38 }
 0x10c   :  { %v2676_v51 = vadd.f32 %v8947_v25, %v2675_v48 }
 0x10d   :  { %v8976_v52 = vpop.f32.mrb[20].mxu0  ;;  %v2607_v53 = vadd.f32 %v8958_v35, %v2606_v49 }
 0x10e   :  { %13687 = vst [vmem:[#allocation30_spill] sm:$0xff] %v8976_v52  ;;  %v8979_v55 = vpop.f32.mrb[20].mxu1  ;;  %v8981_v58 = vpop.f32.mrb[21].mxu0  ;;  %v2677_v59 = vadd.f32 %v8964_v40, %v2676_v51 }
 0x10f   :  { %13688 = vst [vmem:[#allocation31_spill] sm:$0xff] %v8979_v55  ;;  %13689 = vst [vmem:[#allocation32_spill] sm:$0xff] %v8981_v58  ;;  %v2608_v60 = vadd.f32 %v2607_v53, %v8981_v58  ;;  %v8985_v4 = vpop.f32.mrb[21].mxu1  ;;  %v8987_v5 = vpop.f32.mrb[22].mxu0 }
 0x110   :  { %13690 = vst [vmem:[#allocation33_spill] sm:$0xff] %v8985_v4  ;;  %13691 = vst [vmem:[#allocation34_spill] sm:$0xff] %v8987_v5  ;;  %v2678_v8 = vadd.f32 %v2677_v59, %v8985_v4  ;;  %v8990_v12 = vpop.f32.mrb[22].mxu1  ;;  %v8992_v13 = vpop.f32.mrb[23].mxu0 }
 0x111   :  { %13692 = vst [vmem:[#allocation35_spill] sm:$0xff] %v8990_v12  ;;  %13693 = vst [vmem:[#allocation36_spill] sm:$0xff] %v8992_v13  ;;  %v2609_v18 = vadd.f32 %v2608_v60, %v8992_v13  ;;  %v8995_v19 = vpop.f32.mrb[23].mxu1 }
 0x112   :  { %13694 = vst [vmem:[#allocation37_spill] sm:$0xff] %v8995_v19  ;;  %v2679_v20 = vadd.f32 %v2678_v8, %v8995_v19 }
 0x113   :  { %v2610_v24 = vadd.f32 %v8976_v52, %v2609_v18 }
 0x114   :  { %v2680_v29 = vadd.f32 %v8979_v55, %v2679_v20 }
 0x115   :  { %v9000_v31 = vpop.f32.mrb[24].mxu0  ;;  %v2611_v32 = vadd.f32 %v8987_v5, %v2610_v24 }
 0x116   :  { %13695 = vst [vmem:[#allocation38_spill] sm:$0xff] %v9000_v31  ;;  %v9003_v38 = vpop.f32.mrb[24].mxu1  ;;  %v9005_v39 = vpop.f32.mrb[25].mxu0  ;;  %v2681_v44 = vadd.f32 %v8990_v12, %v2680_v29 }
 0x117   :  { %13696 = vst [vmem:[#allocation39_spill] sm:$0xff] %v9003_v38  ;;  %13697 = vst [vmem:[#allocation40_spill] sm:$0xff] %v9005_v39  ;;  %v2612_v48 = vadd.f32 %v2611_v32, %v9005_v39  ;;  %v9009_v49 = vpop.f32.mrb[25].mxu1  ;;  %v9011_v51 = vpop.f32.mrb[26].mxu0 }
 0x118   :  { %13698 = vst [vmem:[#allocation41_spill] sm:$0xff] %v9009_v49  ;;  %13699 = vst [vmem:[#allocation42_spill] sm:$0xff] %v9011_v51  ;;  %v2682_v53 = vadd.f32 %v2681_v44, %v9009_v49  ;;  %v9014_v59 = vpop.f32.mrb[26].mxu1  ;;  %v9016_v60 = vpop.f32.mrb[27].mxu0 }
 0x119   :  { %13700 = vst [vmem:[#allocation43_spill] sm:$0xff] %v9014_v59  ;;  %13701 = vst [vmem:[#allocation44_spill] sm:$0xff] %v9016_v60  ;;  %v2613_v8 = vadd.f32 %v2612_v48, %v9016_v60  ;;  %v9019_v18 = vpop.f32.mrb[27].mxu1 }
 0x11a   :  { %13702 = vst [vmem:[#allocation45_spill] sm:$0xff] %v9019_v18  ;;  %v2683_v20 = vadd.f32 %v2682_v53, %v9019_v18 }
 0x11b   :  { %v2614_v24 = vadd.f32 %v9000_v31, %v2613_v8 }
 0x11c   :  { %v2684_v29 = vadd.f32 %v9003_v38, %v2683_v20 }
 0x11d   :  { %v9024_v32 = vpop.f32.mrb[28].mxu0  ;;  %v2615_v12 = vadd.f32 %v9011_v51, %v2614_v24 }
 0x11e   :  { %13703 = vst [vmem:[#allocation46_spill] sm:$0xff] %v9024_v32  ;;  %v9027_v55 = vpop.f32.mrb[28].mxu1  ;;  %v9029_v44 = vpop.f32.mrb[29].mxu0  ;;  %v2685_v49 = vadd.f32 %v9014_v59, %v2684_v29 }
 0x11f   :  { %13704 = vst [vmem:[#allocation47_spill] sm:$0xff] %v9027_v55  ;;  %13705 = vst [vmem:[#allocation48_spill] sm:$0xff] %v9029_v44  ;;  %v2616_v48 = vadd.f32 %v2615_v12, %v9029_v44  ;;  %v9033_v19 = vpop.f32.mrb[29].mxu1  ;;  %v9035_v4 = vpop.f32.mrb[30].mxu0 }
 0x120   :  { %13706 = vst [vmem:[#allocation49_spill] sm:$0xff] %v9033_v19  ;;  %13707 = vst [vmem:[#allocation50_spill] sm:$0xff] %v9035_v4  ;;  %v2686_v53 = vadd.f32 %v2685_v49, %v9033_v19  ;;  %v9038_v8 = vpop.f32.mrb[30].mxu1  ;;  %v9040_v20 = vpop.f32.mrb[31].mxu0 }
 0x121   :  { %13708 = vst [vmem:[#allocation51_spill] sm:$0xff] %v9038_v8  ;;  %13709 = vst [vmem:[#allocation52_spill] sm:$0xff] %v9040_v20  ;;  %v2617_v24 = vadd.f32 %v2616_v48, %v9040_v20  ;;  %v9043_v38 = vpop.f32.mrb[31].mxu1 }
 0x122   :  { %13710 = vst [vmem:[#allocation53_spill] sm:$0xff] %v9043_v38  ;;  %v2687_v18 = vadd.f32 %v2686_v53, %v9043_v38 }
 0x123   :  { %v2618_v29 = vadd.f32 %v9024_v32, %v2617_v24 }
 0x124   :  { %v2688_v12 = vadd.f32 %v9027_v55, %v2687_v18 }
 0x125   :  { %v9048_v59 = vpop.f32.mrb[32].mxu0  ;;  %v2619_v40 = vadd.f32 %v9035_v4, %v2618_v29 }
 0x126   :  { %13711 = vst [vmem:[#allocation54_spill] sm:$0xff] %v9048_v59  ;;  %v9051_v25 = vpop.f32.mrb[32].mxu1  ;;  %v9053_v49 = vpop.f32.mrb[33].mxu0  ;;  %v2689_v19 = vadd.f32 %v9038_v8, %v2688_v12 }
 0x127   :  { %13712 = vst [vmem:[#allocation55_spill] sm:$0xff] %v9051_v25  ;;  %13713 = vst [vmem:[#allocation56_spill] sm:$0xff] %v9053_v49  ;;  %v2620_v48 = vadd.f32 %v2619_v40, %v9053_v49  ;;  %v9057_v45 = vpop.f32.mrb[33].mxu1  ;;  %v9059_v33 = vpop.f32.mrb[34].mxu0 }
 0x128   :  { %13714 = vst [vmem:[#allocation57_spill] sm:$0xff] %v9057_v45  ;;  %13715 = vst [vmem:[#allocation58_spill] sm:$0xff] %v9059_v33  ;;  %v2690_v53 = vadd.f32 %v2689_v19, %v9057_v45  ;;  %v9062_v24 = vpop.f32.mrb[34].mxu1  ;;  %v9064_v18 = vpop.f32.mrb[35].mxu0 }
 0x129   :  { %13716 = vst [vmem:[#allocation59_spill] sm:$0xff] %v9062_v24  ;;  %13717 = vst [vmem:[#allocation60_spill] sm:$0xff] %v9064_v18  ;;  %v2621_v29 = vadd.f32 %v2620_v48, %v9064_v18  ;;  %v9067_v55 = vpop.f32.mrb[35].mxu1 }
 0x12a   :  { %13718 = vst [vmem:[#allocation61_spill] sm:$0xff] %v9067_v55  ;;  %v2691_v38 = vadd.f32 %v2690_v53, %v9067_v55 }
 0x12b   :  { %v2622_v12 = vadd.f32 %v9048_v59, %v2621_v29 }
 0x12c   :  { %v2692_v40 = vadd.f32 %v9051_v25, %v2691_v38 }
 0x12d   :  { %v9072_v8 = vpop.f32.mrb[36].mxu0  ;;  %v2623_v9 = vadd.f32 %v9059_v33, %v2622_v12 }
 0x12e   :  { %13719 = vst [vmem:[#allocation62_spill] sm:$0xff] %v9072_v8  ;;  %v9075_v56 = vpop.f32.mrb[36].mxu1  ;;  %v9077_v19 = vpop.f32.mrb[37].mxu0  ;;  %v2693_v45 = vadd.f32 %v9062_v24, %v2692_v40 }
 0x12f   :  { %13720 = vst [vmem:[#allocation63_spill] sm:$0xff] %v9075_v56  ;;  %13721 = vst [vmem:[#allocation64_spill] sm:$0xff] %v9077_v19  ;;  %v2624_v48 = vadd.f32 %v2623_v9, %v9077_v19  ;;  %v9081_v15 = vpop.f32.mrb[37].mxu1  ;;  %v9083_v61 = vpop.f32.mrb[38].mxu0 }
 0x130   :  { %13722 = vst [vmem:[#allocation65_spill] sm:$0xff] %v9081_v15  ;;  %13723 = vst [vmem:[#allocation66_spill] sm:$0xff] %v9083_v61  ;;  %v2694_v53 = vadd.f32 %v2693_v45, %v9081_v15  ;;  %v9086_v29 = vpop.f32.mrb[38].mxu1  ;;  %v9088_v38 = vpop.f32.mrb[39].mxu0 }
 0x131   :  { %13724 = vst [vmem:[#allocation67_spill] sm:$0xff] %v9086_v29  ;;  %13725 = vst [vmem:[#allocation68_spill] sm:$0xff] %v9088_v38  ;;  %v2625_v12 = vadd.f32 %v2624_v48, %v9088_v38  ;;  %v9091_v25 = vpop.f32.mrb[39].mxu1 }
 0x132   :  { %13726 = vst [vmem:[#allocation69_spill] sm:$0xff] %v9091_v25  ;;  %v2695_v55 = vadd.f32 %v2694_v53, %v9091_v25 }
 0x133   :  { %v2626_v40 = vadd.f32 %v9072_v8, %v2625_v12 }
 0x134   :  { %v2696_v9 = vadd.f32 %v9075_v56, %v2695_v55 }
 0x135   :  { %v9096_v24 = vpop.f32.mrb[40].mxu0  ;;  %v2627_v46 = vadd.f32 %v9083_v61, %v2626_v40 }
 0x136   :  { %13727 = vst [vmem:[#allocation70_spill] sm:$0xff] %v9096_v24  ;;  %v9099_v36 = vpop.f32.mrb[40].mxu1  ;;  %v9101_v45 = vpop.f32.mrb[41].mxu0  ;;  %v2697_v15 = vadd.f32 %v9086_v29, %v2696_v9 }
 0x137   :  { %13728 = vst [vmem:[#allocation71_spill] sm:$0xff] %v9099_v36  ;;  %13729 = vst [vmem:[#allocation72_spill] sm:$0xff] %v9101_v45  ;;  %v2628_v48 = vadd.f32 %v2627_v46, %v9101_v45  ;;  %v9105_v50 = vpop.f32.mrb[41].mxu1  ;;  %v9107_v38 = vpop.f32.mrb[42].mxu0 }
 0x138   :  { %13730 = vst [vmem:[#allocation73_spill] sm:$0xff] %v9105_v50  ;;  %13731 = vst [vmem:[#allocation74_spill] sm:$0xff] %v9107_v38  ;;  %v2698_v53 = vadd.f32 %v2697_v15, %v9105_v50  ;;  %v9110_v12 = vpop.f32.mrb[42].mxu1  ;;  %v9112_v55 = vpop.f32.mrb[43].mxu0 }
 0x139   :  { %13732 = vst [vmem:[#allocation75_spill] sm:$0xff] %v9110_v12  ;;  %13733 = vst [vmem:[#allocation76_spill] sm:$0xff] %v9112_v55  ;;  %v2629_v40 = vadd.f32 %v2628_v48, %v9112_v55  ;;  %v9115_v56 = vpop.f32.mrb[43].mxu1 }
 0x13a   :  { %13734 = vst [vmem:[#allocation77_spill] sm:$0xff] %v9115_v56  ;;  %v2699_v25 = vadd.f32 %v2698_v53, %v9115_v56 }
 0x13b   :  { %v2630_v9 = vadd.f32 %v9096_v24, %v2629_v40 }
 0x13c   :  { %v2700_v46 = vadd.f32 %v9099_v36, %v2699_v25 }
 0x13d   :  { %v9120_v29 = vpop.f32.mrb[44].mxu0  ;;  %v2631_v45 = vadd.f32 %v9107_v38, %v2630_v9 }
 0x13e   :  { %13735 = vst [vmem:[#allocation78_spill] sm:$0xff] %v9120_v29  ;;  %v9123_v61 = vpop.f32.mrb[44].mxu1  ;;  %v9125_v15 = vpop.f32.mrb[45].mxu0  ;;  %v2701_v50 = vadd.f32 %v9110_v12, %v2700_v46 }
 0x13f   :  { %13736 = vst [vmem:[#allocation79_spill] sm:$0xff] %v9123_v61  ;;  %13737 = vst [vmem:[#allocation80_spill] sm:$0xff] %v9125_v15  ;;  %v2632_v48 = vadd.f32 %v2631_v45, %v9125_v15  ;;  %v9129_v55 = vpop.f32.mrb[45].mxu1  ;;  %v9131_v8 = vpop.f32.mrb[46].mxu0 }
 0x140   :  { %13738 = vst [vmem:[#allocation81_spill] sm:$0xff] %v9129_v55  ;;  %13739 = vst [vmem:[#allocation82_spill] sm:$0xff] %v9131_v8  ;;  %v2702_v53 = vadd.f32 %v2701_v50, %v9129_v55  ;;  %v9134_v40 = vpop.f32.mrb[46].mxu1  ;;  %v9136_v25 = vpop.f32.mrb[47].mxu0 }
 0x141   :  { %13740 = vst [vmem:[#allocation83_spill] sm:$0xff] %v9134_v40  ;;  %13741 = vst [vmem:[#allocation84_spill] sm:$0xff] %v9136_v25  ;;  %v2633_v9 = vadd.f32 %v2632_v48, %v9136_v25  ;;  %v9139_v36 = vpop.f32.mrb[47].mxu1 }
 0x142   :  { %13742 = vst [vmem:[#allocation85_spill] sm:$0xff] %v9139_v36  ;;  %v2703_v56 = vadd.f32 %v2702_v53, %v9139_v36 }
 0x143   :  { %v2634_v46 = vadd.f32 %v9120_v29, %v2633_v9 }
 0x144   :  { %v2704_v45 = vadd.f32 %v9123_v61, %v2703_v56 }
 0x145   :  { %v9144_v12 = vpop.f32.mrb[48].mxu0  ;;  %v2635_v15 = vadd.f32 %v9131_v8, %v2634_v46 }
 0x146   :  { %13743 = vst [vmem:[#allocation86_spill] sm:$0xff] %v9144_v12  ;;  %v9147_v38 = vpop.f32.mrb[48].mxu1  ;;  %v9149_v50 = vpop.f32.mrb[49].mxu0  ;;  %v2705_v55 = vadd.f32 %v9134_v40, %v2704_v45 }
 0x147   :  { %13744 = vst [vmem:[#allocation87_spill] sm:$0xff] %v9147_v38  ;;  %13745 = vst [vmem:[#allocation88_spill] sm:$0xff] %v9149_v50  ;;  %v2636_v48 = vadd.f32 %v2635_v15, %v9149_v50  ;;  %v9153_v25 = vpop.f32.mrb[49].mxu1  ;;  %v9155_v24 = vpop.f32.mrb[50].mxu0 }
 0x148   :  { %13746 = vst [vmem:[#allocation89_spill] sm:$0xff] %v9153_v25  ;;  %13747 = vst [vmem:[#allocation90_spill] sm:$0xff] %v9155_v24  ;;  %v2706_v53 = vadd.f32 %v2705_v55, %v9153_v25  ;;  %v9158_v9 = vpop.f32.mrb[50].mxu1  ;;  %v9160_v56 = vpop.f32.mrb[51].mxu0 }
 0x149   :  { %13748 = vst [vmem:[#allocation91_spill] sm:$0xff] %v9158_v9  ;;  %13749 = vst [vmem:[#allocation92_spill] sm:$0xff] %v9160_v56  ;;  %v2637_v46 = vadd.f32 %v2636_v48, %v9160_v56  ;;  %v9163_v61 = vpop.f32.mrb[51].mxu1 }
 0x14a   :  { %13750 = vst [vmem:[#allocation93_spill] sm:$0xff] %v9163_v61  ;;  %v2707_v36 = vadd.f32 %v2706_v53, %v9163_v61 }
 0x14b   :  { %v2638_v45 = vadd.f32 %v9144_v12, %v2637_v46 }
 0x14c   :  { %v2708_v15 = vadd.f32 %v9147_v38, %v2707_v36 }
 0x14d   :  { %v9168_v40 = vpop.f32.mrb[52].mxu0  ;;  %v2639_v50 = vadd.f32 %v9155_v24, %v2638_v45 }
 0x14e   :  { %13751 = vst [vmem:[#allocation94_spill] sm:$0xff] %v9168_v40  ;;  %v9171_v8 = vpop.f32.mrb[52].mxu1  ;;  %v9173_v55 = vpop.f32.mrb[53].mxu0  ;;  %v2709_v25 = vadd.f32 %v9158_v9, %v2708_v15 }
 0x14f   :  { %13752 = vst [vmem:[#allocation95_spill] sm:$0xff] %v9171_v8  ;;  %13753 = vst [vmem:[#allocation96_spill] sm:$0xff] %v9173_v55  ;;  %v2640_v48 = vadd.f32 %v2639_v50, %v9173_v55  ;;  %v9177_v56 = vpop.f32.mrb[53].mxu1  ;;  %v9179_v29 = vpop.f32.mrb[54].mxu0 }
 0x150   :  { %13754 = vst [vmem:[#allocation97_spill] sm:$0xff] %v9177_v56  ;;  %13755 = vst [vmem:[#allocation98_spill] sm:$0xff] %v9179_v29  ;;  %v2710_v53 = vadd.f32 %v2709_v25, %v9177_v56  ;;  %v9182_v46 = vpop.f32.mrb[54].mxu1  ;;  %v9184_v36 = vpop.f32.mrb[55].mxu0 }
 0x151   :  { %13756 = vst [vmem:[#allocation99_spill] sm:$0xff] %v9182_v46  ;;  %13757 = vst [vmem:[#allocation100_spill] sm:$0xff] %v9184_v36  ;;  %v2641_v45 = vadd.f32 %v2640_v48, %v9184_v36  ;;  %v9187_v38 = vpop.f32.mrb[55].mxu1 }
 0x152   :  { %13758 = vst [vmem:[#allocation101_spill] sm:$0xff] %v9187_v38  ;;  %v2711_v61 = vadd.f32 %v2710_v53, %v9187_v38 }
 0x153   :  { %v2642_v15 = vadd.f32 %v9168_v40, %v2641_v45 }
 0x154   :  { %v2712_v50 = vadd.f32 %v9171_v8, %v2711_v61 }
 0x155   :  { %v9192_v9 = vpop.f32.mrb[56].mxu0  ;;  %v2643_v55 = vadd.f32 %v9179_v29, %v2642_v15 }
 0x156   :  { %13759 = vst [vmem:[#allocation102_spill] sm:$0xff] %v9192_v9  ;;  %v9195_v24 = vpop.f32.mrb[56].mxu1  ;;  %v9197_v25 = vpop.f32.mrb[57].mxu0  ;;  %v2713_v56 = vadd.f32 %v9182_v46, %v2712_v50 }
 0x157   :  { %13760 = vst [vmem:[#allocation103_spill] sm:$0xff] %v9195_v24  ;;  %13761 = vst [vmem:[#allocation104_spill] sm:$0xff] %v9197_v25  ;;  %v2644_v48 = vadd.f32 %v2643_v55, %v9197_v25  ;;  %v9201_v36 = vpop.f32.mrb[57].mxu1  ;;  %v9203_v12 = vpop.f32.mrb[58].mxu0 }
 0x158   :  { %13762 = vst [vmem:[#allocation105_spill] sm:$0xff] %v9201_v36  ;;  %13763 = vst [vmem:[#allocation106_spill] sm:$0xff] %v9203_v12  ;;  %v2714_v53 = vadd.f32 %v2713_v56, %v9201_v36  ;;  %v9206_v45 = vpop.f32.mrb[58].mxu1  ;;  %v9208_v61 = vpop.f32.mrb[59].mxu0 }
 0x159   :  { %13764 = vst [vmem:[#allocation107_spill] sm:$0xff] %v9206_v45  ;;  %13765 = vst [vmem:[#allocation108_spill] sm:$0xff] %v9208_v61  ;;  %v2645_v15 = vadd.f32 %v2644_v48, %v9208_v61  ;;  %v9211_v8 = vpop.f32.mrb[59].mxu1 }
 0x15a   :  { %13766 = vst [vmem:[#allocation109_spill] sm:$0xff] %v9211_v8  ;;  %v2715_v38 = vadd.f32 %v2714_v53, %v9211_v8 }
 0x15b   :  { %v2646_v50 = vadd.f32 %v9192_v9, %v2645_v15 }
 0x15c   :  { %v2716_v55 = vadd.f32 %v9195_v24, %v2715_v38 }
 0x15d   :  { %v9216_v46 = vpop.f32.mrb[60].mxu0  ;;  %v2647_v25 = vadd.f32 %v9203_v12, %v2646_v50 }
 0x15e   :  { %13767 = vst [vmem:[#allocation110_spill] sm:$0xff] %v9216_v46  ;;  %v9219_v29 = vpop.f32.mrb[60].mxu1  ;;  %v9221_v56 = vpop.f32.mrb[61].mxu0  ;;  %v2717_v36 = vadd.f32 %v9206_v45, %v2716_v55 }
 0x15f   :  { %13768 = vst [vmem:[#allocation111_spill] sm:$0xff] %v9219_v29  ;;  %13769 = vst [vmem:[#allocation112_spill] sm:$0xff] %v9221_v56  ;;  %v2648_v48 = vadd.f32 %v2647_v25, %v9221_v56  ;;  %v9225_v61 = vpop.f32.mrb[61].mxu1  ;;  %v9227_v40 = vpop.f32.mrb[62].mxu0 }
 0x160   :  { %13770 = vst [vmem:[#allocation113_spill] sm:$0xff] %v9225_v61  ;;  %13771 = vst [vmem:[#allocation114_spill] sm:$0xff] %v9227_v40  ;;  %v2718_v53 = vadd.f32 %v2717_v36, %v9225_v61  ;;  %v9230_v15 = vpop.f32.mrb[62].mxu1  ;;  %v9232_v38 = vpop.f32.mrb[63].mxu0 }
 0x161   :  { %13772 = vst [vmem:[#allocation115_spill] sm:$0xff] %v9230_v15  ;;  %13773 = vst [vmem:[#allocation116_spill] sm:$0xff] %v9232_v38  ;;  %v2649_v50 = vadd.f32 %v2648_v48, %v9232_v38  ;;  %v9235_v24 = vpop.f32.mrb[63].mxu1 }
 0x162   :  { %13774 = vst [vmem:[#allocation117_spill] sm:$0xff] %v9235_v24  ;;  %v2719_v8 = vadd.f32 %v2718_v53, %v9235_v24 }
 0x163   :  { %v2650_v55 = vadd.f32 %v9216_v46, %v2649_v50 }
 0x164   :  { %v2720_v25 = vadd.f32 %v9219_v29, %v2719_v8 }
 0x165   :  { %v2651_v45 = vadd.f32 %v9227_v40, %v2650_v55  ;;  %v9241_v56 = vpop.f32.mrb[64].mxu0 }
 0x166   :  { %13775 = vst [vmem:[#allocation118_spill] sm:$0xff] %v9241_v56  ;;  %v2721_v36 = vadd.f32 %v9230_v15, %v2720_v25  ;;  %v9244_v61 = vpop.f32.mrb[64].mxu1  ;;  %v9246_v12 = vpop.f32.mrb[65].mxu0 }
 0x167   :  { %13776 = vst [vmem:[#allocation119_spill] sm:$0xff] %v9244_v61  ;;  %13777 = vst [vmem:[#allocation120_spill] sm:$0xff] %v9246_v12  ;;  %v2652_v9 = vrot.slane %v2651_v45, 4  ;;  %v9248_v48 = vpop.f32.mrb[65].mxu1  ;;  %v9250_v38 = vpop.f32.mrb[66].mxu0 }
 0x168   :  { %13778 = vst [vmem:[#allocation121_spill] sm:$0xff] %v9248_v48  ;;  %13779 = vst [vmem:[#allocation122_spill] sm:$0xff] %v9250_v38  ;;  %v2722_v53 = vrot.slane %v2721_v36, 4  ;;  %v9252_v24 = vpop.f32.mrb[66].mxu1  ;;  %v9254_v50 = vpop.f32.mrb[67].mxu0 }
 0x169   :  { %13780 = vst [vmem:[#allocation123_spill] sm:$0xff] %v9252_v24  ;;  %13781 = vst [vmem:[#allocation124_spill] sm:$0xff] %v9254_v50  ;;  %v2653_v8 = vadd.f32 %v2652_v9, %v2651_v45  ;;  %v2729_v55 = vadd.f32 %v9254_v50, %v9246_v12  ;;  %v9258_v29 = vpop.f32.mrb[67].mxu1 }
 0x16a   :  { %13782 = vst [vmem:[#allocation125_spill] sm:$0xff] %v9258_v29  ;;  %v2723_v25 = vadd.f32 %v2722_v53, %v2721_v36  ;;  %v2799_v15 = vadd.f32 %v9258_v29, %v9248_v48 }
 0x16b   :  { %v2654_v40 = vrot.slane %v2653_v8, 2  ;;  %v2730_v46 = vadd.f32 %v9241_v56, %v2729_v55 }
 0x16c   :  { %v2724_v19 = vrot.slane %v2723_v25, 2  ;;  %v2800_v33 = vadd.f32 %v9244_v61, %v2799_v15 }
 0x16d   :  { %v2655_v41 = vadd.f32 %v2654_v40, %v2653_v8  ;;  %v9264_v59 = vpop.f32.mrb[68].mxu0  ;;  %v2731_v9 = vadd.f32 %v9250_v38, %v2730_v46 }
 0x16e   :  { %13783 = vst [vmem:[#allocation126_spill] sm:$0xff] %v9264_v59  ;;  %v2725_v45 = vadd.f32 %v2724_v19, %v2723_v25  ;;  %v9267_v18 = vpop.f32.mrb[68].mxu1  ;;  %v9269_v50 = vpop.f32.mrb[69].mxu0  ;;  %v2801_v36 = vadd.f32 %v9252_v24, %v2800_v33 }
 0x16f   :  { %13784 = vst [vmem:[#allocation127_spill] sm:$0xff] %v9267_v18  ;;  %13785 = vst [vmem:[#allocation128_spill] sm:$0xff] %v9269_v50  ;;  %v2656_v53 = vrot.slane %v2655_v41, 1  ;;  %v2732_v29 = vadd.f32 %v2731_v9, %v9269_v50  ;;  %v9273_v48 = vpop.f32.mrb[69].mxu1  ;;  %v9275_v55 = vpop.f32.mrb[70].mxu0 }
 0x170   :  { %13786 = vst [vmem:[#allocation129_spill] sm:$0xff] %v9273_v48  ;;  %13787 = vst [vmem:[#allocation130_spill] sm:$0xff] %v9275_v55  ;;  %v2726_v15 = vrot.slane %v2725_v45, 1  ;;  %v2802_v40 = vadd.f32 %v2801_v36, %v9273_v48  ;;  %v9278_v8 = vpop.f32.mrb[70].mxu1  ;;  %v9280_v46 = vpop.f32.mrb[71].mxu0 }
 0x171   :  { %13788 = vst [vmem:[#allocation131_spill] sm:$0xff] %v9278_v8  ;;  %13789 = vst [vmem:[#allocation132_spill] sm:$0xff] %v9280_v46  ;;  %v2657_v19 = vadd.f32 %v2656_v53, %v2655_v41  ;;  %v2733_v25 = vadd.f32 %v2732_v29, %v9280_v46  ;;  %v9283_v61 = vpop.f32.mrb[71].mxu1 }
 0x172   :  { %13790 = vst [vmem:[#allocation133_spill] sm:$0xff] %v9283_v61  ;;  %v2727_v33 = vadd.f32 %v2726_v15, %v2725_v45  ;;  %v2803_v24 = vadd.f32 %v2802_v40, %v9283_v61 }
 0x173   :  { %v2734_v9 = vadd.f32 %v9264_v59, %v2733_v25 }
 0x174   :  { %v9287_v50 = vadd.f32 %v2727_v33, %v2657_v19  ;;  %v2804_v38 = vadd.f32 %v9267_v18, %v2803_v24 }
 0x175   :  { %v9290_v56 = vpop.f32.mrb[72].mxu0  ;;  %v2735_v36 = vadd.f32 %v9275_v55, %v2734_v9 }
 0x176   :  { %13791 = vst [vmem:[#allocation134_spill] sm:$0xff] %v9290_v56  ;;  %v9293_v48 = vpop.f32.mrb[72].mxu1  ;;  %v9295_v41 = vpop.f32.mrb[73].mxu0  ;;  %v2805_v29 = vadd.f32 %v9278_v8, %v2804_v38 }
 0x177   :  { %13792 = vst [vmem:[#allocation135_spill] sm:$0xff] %v9293_v48  ;;  %13793 = vst [vmem:[#allocation136_spill] sm:$0xff] %v9295_v41  ;;  %v2736_v45 = vadd.f32 %v2735_v36, %v9295_v41  ;;  %v9299_v53 = vpop.f32.mrb[73].mxu1  ;;  %v9301_v15 = vpop.f32.mrb[74].mxu0 }
 0x178   :  { %13794 = vst [vmem:[#allocation137_spill] sm:$0xff] %v9299_v53  ;;  %13795 = vst [vmem:[#allocation138_spill] sm:$0xff] %v9301_v15  ;;  %v2806_v40 = vadd.f32 %v2805_v29, %v9299_v53  ;;  %v9304_v19 = vpop.f32.mrb[74].mxu1  ;;  %v9306_v24 = vpop.f32.mrb[75].mxu0 }
 0x179   :  { %13796 = vst [vmem:[#allocation139_spill] sm:$0xff] %v9304_v19  ;;  %13797 = vst [vmem:[#allocation140_spill] sm:$0xff] %v9306_v24  ;;  %v2737_v25 = vadd.f32 %v2736_v45, %v9306_v24  ;;  %v9309_v33 = vpop.f32.mrb[75].mxu1 }
 0x17a   :  { %13798 = vst [vmem:[#allocation141_spill] sm:$0xff] %v9309_v33  ;;  %v2807_v9 = vadd.f32 %v2806_v40, %v9309_v33 }
 0x17b   :  { %v2738_v38 = vadd.f32 %v9290_v56, %v2737_v25 }
 0x17c   :  { %v2808_v36 = vadd.f32 %v9293_v48, %v2807_v9 }
 0x17d   :  { %v9314_v8 = vpop.f32.mrb[76].mxu0  ;;  %v2739_v18 = vadd.f32 %v9301_v15, %v2738_v38 }
 0x17e   :  { %13799 = vst [vmem:[#allocation142_spill] sm:$0xff] %v9314_v8  ;;  %v9317_v61 = vpop.f32.mrb[76].mxu1  ;;  %v9319_v29 = vpop.f32.mrb[77].mxu0  ;;  %v2809_v53 = vadd.f32 %v9304_v19, %v2808_v36 }
 0x17f   :  { %13800 = vst [vmem:[#allocation143_spill] sm:$0xff] %v9317_v61  ;;  %13801 = vst [vmem:[#allocation144_spill] sm:$0xff] %v9319_v29  ;;  %v2740_v45 = vadd.f32 %v2739_v18, %v9319_v29  ;;  %v9323_v24 = vpop.f32.mrb[77].mxu1  ;;  %v9325_v41 = vpop.f32.mrb[78].mxu0 }
 0x180   :  { %13802 = vst [vmem:[#allocation145_spill] sm:$0xff] %v9323_v24  ;;  %13803 = vst [vmem:[#allocation146_spill] sm:$0xff] %v9325_v41  ;;  %v2810_v40 = vadd.f32 %v2809_v53, %v9323_v24  ;;  %v9328_v25 = vpop.f32.mrb[78].mxu1  ;;  %v9330_v9 = vpop.f32.mrb[79].mxu0 }
 0x181   :  { %13804 = vst [vmem:[#allocation147_spill] sm:$0xff] %v9328_v25  ;;  %13805 = vst [vmem:[#allocation148_spill] sm:$0xff] %v9330_v9  ;;  %v2741_v38 = vadd.f32 %v2740_v45, %v9330_v9  ;;  %v9333_v48 = vpop.f32.mrb[79].mxu1 }
 0x182   :  { %13806 = vst [vmem:[#allocation149_spill] sm:$0xff] %v9333_v48  ;;  %v2811_v33 = vadd.f32 %v2810_v40, %v9333_v48 }
 0x183   :  { %v2742_v36 = vadd.f32 %v9314_v8, %v2741_v38 }
 0x184   :  { %v2812_v18 = vadd.f32 %v9317_v61, %v2811_v33 }
 0x185   :  { %v9338_v19 = vpop.f32.mrb[80].mxu0  ;;  %v2743_v29 = vadd.f32 %v9325_v41, %v2742_v36 }
 0x186   :  { %13807 = vst [vmem:[#allocation150_spill] sm:$0xff] %v9338_v19  ;;  %v9341_v15 = vpop.f32.mrb[80].mxu1  ;;  %v9343_v53 = vpop.f32.mrb[81].mxu0  ;;  %v2813_v24 = vadd.f32 %v9328_v25, %v2812_v18 }
 0x187   :  { %13808 = vst [vmem:[#allocation151_spill] sm:$0xff] %v9341_v15  ;;  %13809 = vst [vmem:[#allocation152_spill] sm:$0xff] %v9343_v53  ;;  %v2744_v45 = vadd.f32 %v2743_v29, %v9343_v53  ;;  %v9347_v9 = vpop.f32.mrb[81].mxu1  ;;  %v9349_v56 = vpop.f32.mrb[82].mxu0 }
 0x188   :  { %13810 = vst [vmem:[#allocation153_spill] sm:$0xff] %v9347_v9  ;;  %13811 = vst [vmem:[#allocation154_spill] sm:$0xff] %v9349_v56  ;;  %v2814_v40 = vadd.f32 %v2813_v24, %v9347_v9  ;;  %v9352_v38 = vpop.f32.mrb[82].mxu1  ;;  %v9354_v33 = vpop.f32.mrb[83].mxu0 }
 0x189   :  { %13812 = vst [vmem:[#allocation155_spill] sm:$0xff] %v9352_v38  ;;  %13813 = vst [vmem:[#allocation156_spill] sm:$0xff] %v9354_v33  ;;  %v2745_v36 = vadd.f32 %v2744_v45, %v9354_v33  ;;  %v9357_v61 = vpop.f32.mrb[83].mxu1 }
 0x18a   :  { %13814 = vst [vmem:[#allocation157_spill] sm:$0xff] %v9357_v61  ;;  %v2815_v48 = vadd.f32 %v2814_v40, %v9357_v61 }
 0x18b   :  { %v2746_v18 = vadd.f32 %v9338_v19, %v2745_v36 }
 0x18c   :  { %v2816_v29 = vadd.f32 %v9341_v15, %v2815_v48 }
 0x18d   :  { %v9362_v25 = vpop.f32.mrb[84].mxu0  ;;  %v2747_v53 = vadd.f32 %v9349_v56, %v2746_v18 }
 0x18e   :  { %13815 = vst [vmem:[#allocation158_spill] sm:$0xff] %v9362_v25  ;;  %v9365_v41 = vpop.f32.mrb[84].mxu1  ;;  %v9367_v24 = vpop.f32.mrb[85].mxu0  ;;  %v2817_v9 = vadd.f32 %v9352_v38, %v2816_v29 }
 0x18f   :  { %13816 = vst [vmem:[#allocation159_spill] sm:$0xff] %v9365_v41  ;;  %13817 = vst [vmem:[#allocation160_spill] sm:$0xff] %v9367_v24  ;;  %v2748_v45 = vadd.f32 %v2747_v53, %v9367_v24  ;;  %v9371_v33 = vpop.f32.mrb[85].mxu1  ;;  %v9373_v8 = vpop.f32.mrb[86].mxu0 }
 0x190   :  { %13818 = vst [vmem:[#allocation161_spill] sm:$0xff] %v9371_v33  ;;  %13819 = vst [vmem:[#allocation162_spill] sm:$0xff] %v9373_v8  ;;  %v2818_v40 = vadd.f32 %v2817_v9, %v9371_v33  ;;  %v9376_v36 = vpop.f32.mrb[86].mxu1  ;;  %v9378_v48 = vpop.f32.mrb[87].mxu0 }
 0x191   :  { %13820 = vst [vmem:[#allocation163_spill] sm:$0xff] %v9376_v36  ;;  %13821 = vst [vmem:[#allocation164_spill] sm:$0xff] %v9378_v48  ;;  %v2749_v18 = vadd.f32 %v2748_v45, %v9378_v48  ;;  %v9381_v15 = vpop.f32.mrb[87].mxu1 }
 0x192   :  { %13822 = vst [vmem:[#allocation165_spill] sm:$0xff] %v9381_v15  ;;  %v2819_v61 = vadd.f32 %v2818_v40, %v9381_v15 }
 0x193   :  { %v2750_v29 = vadd.f32 %v9362_v25, %v2749_v18 }
 0x194   :  { %v2820_v53 = vadd.f32 %v9365_v41, %v2819_v61 }
 0x195   :  { %v9386_v38 = vpop.f32.mrb[88].mxu0  ;;  %v2751_v24 = vadd.f32 %v9373_v8, %v2750_v29 }
 0x196   :  { %13823 = vst [vmem:[#allocation166_spill] sm:$0xff] %v9386_v38  ;;  %v9389_v56 = vpop.f32.mrb[88].mxu1  ;;  %v9391_v9 = vpop.f32.mrb[89].mxu0  ;;  %v2821_v33 = vadd.f32 %v9376_v36, %v2820_v53 }
 0x197   :  { %13824 = vst [vmem:[#allocation167_spill] sm:$0xff] %v9389_v56  ;;  %13825 = vst [vmem:[#allocation168_spill] sm:$0xff] %v9391_v9  ;;  %v2752_v45 = vadd.f32 %v2751_v24, %v9391_v9  ;;  %v9395_v48 = vpop.f32.mrb[89].mxu1  ;;  %v9397_v19 = vpop.f32.mrb[90].mxu0 }
 0x198   :  { %13826 = vst [vmem:[#allocation169_spill] sm:$0xff] %v9395_v48  ;;  %13827 = vst [vmem:[#allocation170_spill] sm:$0xff] %v9397_v19  ;;  %v2822_v40 = vadd.f32 %v2821_v33, %v9395_v48  ;;  %v9400_v18 = vpop.f32.mrb[90].mxu1  ;;  %v9402_v61 = vpop.f32.mrb[91].mxu0 }
 0x199   :  { %13828 = vst [vmem:[#allocation171_spill] sm:$0xff] %v9400_v18  ;;  %13829 = vst [vmem:[#allocation172_spill] sm:$0xff] %v9402_v61  ;;  %v2753_v29 = vadd.f32 %v2752_v45, %v9402_v61  ;;  %v9405_v41 = vpop.f32.mrb[91].mxu1 }
 0x19a   :  { %13830 = vst [vmem:[#allocation173_spill] sm:$0xff] %v9405_v41  ;;  %v2823_v15 = vadd.f32 %v2822_v40, %v9405_v41 }
 0x19b   :  { %v2754_v53 = vadd.f32 %v9386_v38, %v2753_v29 }
 0x19c   :  { %v2824_v24 = vadd.f32 %v9389_v56, %v2823_v15 }
 0x19d   :  { %v9410_v36 = vpop.f32.mrb[92].mxu0  ;;  %v2755_v9 = vadd.f32 %v9397_v19, %v2754_v53 }
 0x19e   :  { %13831 = vst [vmem:[#allocation174_spill] sm:$0xff] %v9410_v36  ;;  %v9413_v8 = vpop.f32.mrb[92].mxu1  ;;  %v9415_v33 = vpop.f32.mrb[93].mxu0  ;;  %v2825_v48 = vadd.f32 %v9400_v18, %v2824_v24 }
 0x19f   :  { %13832 = vst [vmem:[#allocation175_spill] sm:$0xff] %v9413_v8  ;;  %13833 = vst [vmem:[#allocation176_spill] sm:$0xff] %v9415_v33  ;;  %v2756_v45 = vadd.f32 %v2755_v9, %v9415_v33  ;;  %v9419_v61 = vpop.f32.mrb[93].mxu1  ;;  %v9421_v25 = vpop.f32.mrb[94].mxu0 }
 0x1a0   :  { %13834 = vst [vmem:[#allocation177_spill] sm:$0xff] %v9419_v61  ;;  %13835 = vst [vmem:[#allocation178_spill] sm:$0xff] %v9421_v25  ;;  %v2826_v40 = vadd.f32 %v2825_v48, %v9419_v61  ;;  %v9424_v29 = vpop.f32.mrb[94].mxu1  ;;  %v9426_v15 = vpop.f32.mrb[95].mxu0 }
 0x1a1   :  { %13836 = vst [vmem:[#allocation179_spill] sm:$0xff] %v9424_v29  ;;  %13837 = vst [vmem:[#allocation180_spill] sm:$0xff] %v9426_v15  ;;  %v2757_v53 = vadd.f32 %v2756_v45, %v9426_v15  ;;  %v9429_v56 = vpop.f32.mrb[95].mxu1 }
 0x1a2   :  { %13838 = vst [vmem:[#allocation181_spill] sm:$0xff] %v9429_v56  ;;  %v2827_v41 = vadd.f32 %v2826_v40, %v9429_v56 }
 0x1a3   :  { %v2758_v24 = vadd.f32 %v9410_v36, %v2757_v53 }
 0x1a4   :  { %v2828_v9 = vadd.f32 %v9413_v8, %v2827_v41 }
 0x1a5   :  { %v9434_v18 = vpop.f32.mrb[96].mxu0  ;;  %v2759_v33 = vadd.f32 %v9421_v25, %v2758_v24 }
 0x1a6   :  { %13839 = vst [vmem:[#allocation182_spill] sm:$0xff] %v9434_v18  ;;  %v9437_v19 = vpop.f32.mrb[96].mxu1  ;;  %v9439_v48 = vpop.f32.mrb[97].mxu0  ;;  %v2829_v61 = vadd.f32 %v9424_v29, %v2828_v9 }
 0x1a7   :  { %13840 = vst [vmem:[#allocation183_spill] sm:$0xff] %v9437_v19  ;;  %13841 = vst [vmem:[#allocation184_spill] sm:$0xff] %v9439_v48  ;;  %v2760_v45 = vadd.f32 %v2759_v33, %v9439_v48  ;;  %v9443_v15 = vpop.f32.mrb[97].mxu1  ;;  %v9445_v38 = vpop.f32.mrb[98].mxu0 }
 0x1a8   :  { %13842 = vst [vmem:[#allocation185_spill] sm:$0xff] %v9443_v15  ;;  %13843 = vst [vmem:[#allocation186_spill] sm:$0xff] %v9445_v38  ;;  %v2830_v40 = vadd.f32 %v2829_v61, %v9443_v15  ;;  %v9448_v53 = vpop.f32.mrb[98].mxu1  ;;  %v9450_v41 = vpop.f32.mrb[99].mxu0 }
 0x1a9   :  { %13844 = vst [vmem:[#allocation187_spill] sm:$0xff] %v9448_v53  ;;  %13845 = vst [vmem:[#allocation188_spill] sm:$0xff] %v9450_v41  ;;  %v2761_v24 = vadd.f32 %v2760_v45, %v9450_v41  ;;  %v9453_v8 = vpop.f32.mrb[99].mxu1 }
 0x1aa   :  { %13846 = vst [vmem:[#allocation189_spill] sm:$0xff] %v9453_v8  ;;  %v2831_v56 = vadd.f32 %v2830_v40, %v9453_v8 }
 0x1ab   :  { %v2762_v9 = vadd.f32 %v9434_v18, %v2761_v24 }
 0x1ac   :  { %v2832_v33 = vadd.f32 %v9437_v19, %v2831_v56 }
 0x1ad   :  { %v9458_v29 = vpop.f32.mrb[100].mxu0  ;;  %v2763_v48 = vadd.f32 %v9445_v38, %v2762_v9 }
 0x1ae   :  { %13847 = vst [vmem:[#allocation190_spill] sm:$0xff] %v9458_v29  ;;  %v9461_v25 = vpop.f32.mrb[100].mxu1  ;;  %v9463_v61 = vpop.f32.mrb[101].mxu0  ;;  %v2833_v15 = vadd.f32 %v9448_v53, %v2832_v33 }
 0x1af   :  { %13848 = vst [vmem:[#allocation191_spill] sm:$0xff] %v9461_v25  ;;  %13849 = vst [vmem:[#allocation192_spill] sm:$0xff] %v9463_v61  ;;  %v2764_v45 = vadd.f32 %v2763_v48, %v9463_v61  ;;  %v9467_v41 = vpop.f32.mrb[101].mxu1  ;;  %v9469_v36 = vpop.f32.mrb[102].mxu0 }
 0x1b0   :  { %13850 = vst [vmem:[#allocation193_spill] sm:$0xff] %v9467_v41  ;;  %13851 = vst [vmem:[#allocation194_spill] sm:$0xff] %v9469_v36  ;;  %v2834_v40 = vadd.f32 %v2833_v15, %v9467_v41  ;;  %v9472_v24 = vpop.f32.mrb[102].mxu1  ;;  %v9474_v56 = vpop.f32.mrb[103].mxu0 }
 0x1b1   :  { %13852 = vst [vmem:[#allocation195_spill] sm:$0xff] %v9472_v24  ;;  %13853 = vst [vmem:[#allocation196_spill] sm:$0xff] %v9474_v56  ;;  %v2765_v9 = vadd.f32 %v2764_v45, %v9474_v56  ;;  %v9477_v19 = vpop.f32.mrb[103].mxu1 }
 0x1b2   :  { %13854 = vst [vmem:[#allocation197_spill] sm:$0xff] %v9477_v19  ;;  %v2835_v8 = vadd.f32 %v2834_v40, %v9477_v19 }
 0x1b3   :  { %v2766_v33 = vadd.f32 %v9458_v29, %v2765_v9 }
 0x1b4   :  { %v2836_v48 = vadd.f32 %v9461_v25, %v2835_v8 }
 0x1b5   :  { %v9482_v53 = vpop.f32.mrb[104].mxu0  ;;  %v2767_v61 = vadd.f32 %v9469_v36, %v2766_v33 }
 0x1b6   :  { %13855 = vst [vmem:[#allocation198_spill] sm:$0xff] %v9482_v53  ;;  %v9485_v38 = vpop.f32.mrb[104].mxu1  ;;  %v9487_v15 = vpop.f32.mrb[105].mxu0  ;;  %v2837_v41 = vadd.f32 %v9472_v24, %v2836_v48 }
 0x1b7   :  { %13856 = vst [vmem:[#allocation199_spill] sm:$0xff] %v9485_v38  ;;  %13857 = vst [vmem:[#allocation200_spill] sm:$0xff] %v9487_v15  ;;  %v2768_v45 = vadd.f32 %v2767_v61, %v9487_v15  ;;  %v9491_v56 = vpop.f32.mrb[105].mxu1  ;;  %v9493_v18 = vpop.f32.mrb[106].mxu0 }
 0x1b8   :  { %13858 = vst [vmem:[#allocation201_spill] sm:$0xff] %v9491_v56  ;;  %13859 = vst [vmem:[#allocation202_spill] sm:$0xff] %v9493_v18  ;;  %v2838_v40 = vadd.f32 %v2837_v41, %v9491_v56  ;;  %v9496_v9 = vpop.f32.mrb[106].mxu1  ;;  %v9498_v8 = vpop.f32.mrb[107].mxu0 }
 0x1b9   :  { %13860 = vst [vmem:[#allocation203_spill] sm:$0xff] %v9496_v9  ;;  %13861 = vst [vmem:[#allocation204_spill] sm:$0xff] %v9498_v8  ;;  %v2769_v33 = vadd.f32 %v2768_v45, %v9498_v8  ;;  %v9501_v25 = vpop.f32.mrb[107].mxu1 }
 0x1ba   :  { %13862 = vst [vmem:[#allocation205_spill] sm:$0xff] %v9501_v25  ;;  %v2839_v19 = vadd.f32 %v2838_v40, %v9501_v25 }
 0x1bb   :  { %v2770_v48 = vadd.f32 %v9482_v53, %v2769_v33 }
 0x1bc   :  { %v2840_v61 = vadd.f32 %v9485_v38, %v2839_v19 }
 0x1bd   :  { %v9506_v24 = vpop.f32.mrb[108].mxu0  ;;  %v2771_v15 = vadd.f32 %v9493_v18, %v2770_v48 }
 0x1be   :  { %13863 = vst [vmem:[#allocation206_spill] sm:$0xff] %v9506_v24  ;;  %v9509_v36 = vpop.f32.mrb[108].mxu1  ;;  %v9511_v41 = vpop.f32.mrb[109].mxu0  ;;  %v2841_v56 = vadd.f32 %v9496_v9, %v2840_v61 }
 0x1bf   :  { %13864 = vst [vmem:[#allocation207_spill] sm:$0xff] %v9509_v36  ;;  %13865 = vst [vmem:[#allocation208_spill] sm:$0xff] %v9511_v41  ;;  %v2772_v45 = vadd.f32 %v2771_v15, %v9511_v41  ;;  %v9515_v8 = vpop.f32.mrb[109].mxu1  ;;  %v9517_v29 = vpop.f32.mrb[110].mxu0 }
 0x1c0   :  { %13866 = vst [vmem:[#allocation209_spill] sm:$0xff] %v9515_v8  ;;  %13867 = vst [vmem:[#allocation210_spill] sm:$0xff] %v9517_v29  ;;  %v2842_v40 = vadd.f32 %v2841_v56, %v9515_v8  ;;  %v9520_v33 = vpop.f32.mrb[110].mxu1  ;;  %v9522_v19 = vpop.f32.mrb[111].mxu0 }
 0x1c1   :  { %13868 = vst [vmem:[#allocation211_spill] sm:$0xff] %v9520_v33  ;;  %13869 = vst [vmem:[#allocation212_spill] sm:$0xff] %v9522_v19  ;;  %v2773_v48 = vadd.f32 %v2772_v45, %v9522_v19  ;;  %v9525_v38 = vpop.f32.mrb[111].mxu1 }
 0x1c2   :  { %13870 = vst [vmem:[#allocation213_spill] sm:$0xff] %v9525_v38  ;;  %v2843_v25 = vadd.f32 %v2842_v40, %v9525_v38 }
 0x1c3   :  { %v2774_v61 = vadd.f32 %v9506_v24, %v2773_v48 }
 0x1c4   :  { %v2844_v15 = vadd.f32 %v9509_v36, %v2843_v25 }
 0x1c5   :  { %v9530_v9 = vpop.f32.mrb[112].mxu0  ;;  %v2775_v41 = vadd.f32 %v9517_v29, %v2774_v61 }
 0x1c6   :  { %13871 = vst [vmem:[#allocation214_spill] sm:$0xff] %v9530_v9  ;;  %v9533_v18 = vpop.f32.mrb[112].mxu1  ;;  %v9535_v56 = vpop.f32.mrb[113].mxu0  ;;  %v2845_v8 = vadd.f32 %v9520_v33, %v2844_v15 }
 0x1c7   :  { %13872 = vst [vmem:[#allocation215_spill] sm:$0xff] %v9533_v18  ;;  %13873 = vst [vmem:[#allocation216_spill] sm:$0xff] %v9535_v56  ;;  %v2776_v45 = vadd.f32 %v2775_v41, %v9535_v56  ;;  %v9539_v19 = vpop.f32.mrb[113].mxu1  ;;  %v9541_v53 = vpop.f32.mrb[114].mxu0 }
 0x1c8   :  { %13874 = vst [vmem:[#allocation217_spill] sm:$0xff] %v9539_v19  ;;  %13875 = vst [vmem:[#allocation218_spill] sm:$0xff] %v9541_v53  ;;  %v2846_v40 = vadd.f32 %v2845_v8, %v9539_v19  ;;  %v9544_v48 = vpop.f32.mrb[114].mxu1  ;;  %v9546_v25 = vpop.f32.mrb[115].mxu0 }
 0x1c9   :  { %13876 = vst [vmem:[#allocation219_spill] sm:$0xff] %v9544_v48  ;;  %13877 = vst [vmem:[#allocation220_spill] sm:$0xff] %v9546_v25  ;;  %v2777_v61 = vadd.f32 %v2776_v45, %v9546_v25  ;;  %v9549_v36 = vpop.f32.mrb[115].mxu1 }
 0x1ca   :  { %13878 = vst [vmem:[#allocation221_spill] sm:$0xff] %v9549_v36  ;;  %v2847_v38 = vadd.f32 %v2846_v40, %v9549_v36 }
 0x1cb   :  { %v2778_v15 = vadd.f32 %v9530_v9, %v2777_v61 }
 0x1cc   :  { %v2848_v41 = vadd.f32 %v9533_v18, %v2847_v38 }
 0x1cd   :  { %v9554_v33 = vpop.f32.mrb[116].mxu0  ;;  %v2779_v56 = vadd.f32 %v9541_v53, %v2778_v15 }
 0x1ce   :  { %13879 = vst [vmem:[#allocation222_spill] sm:$0xff] %v9554_v33  ;;  %v9557_v29 = vpop.f32.mrb[116].mxu1  ;;  %v9559_v8 = vpop.f32.mrb[117].mxu0  ;;  %v2849_v19 = vadd.f32 %v9544_v48, %v2848_v41 }
 0x1cf   :  { %13880 = vst [vmem:[#allocation223_spill] sm:$0xff] %v9557_v29  ;;  %13881 = vst [vmem:[#allocation224_spill] sm:$0xff] %v9559_v8  ;;  %v2780_v45 = vadd.f32 %v2779_v56, %v9559_v8  ;;  %v9563_v25 = vpop.f32.mrb[117].mxu1  ;;  %v9565_v24 = vpop.f32.mrb[118].mxu0 }
 0x1d0   :  { %13882 = vst [vmem:[#allocation225_spill] sm:$0xff] %v9563_v25  ;;  %13883 = vst [vmem:[#allocation226_spill] sm:$0xff] %v9565_v24  ;;  %v2850_v40 = vadd.f32 %v2849_v19, %v9563_v25  ;;  %v9568_v61 = vpop.f32.mrb[118].mxu1  ;;  %v9570_v38 = vpop.f32.mrb[119].mxu0 }
 0x1d1   :  { %13884 = vst [vmem:[#allocation227_spill] sm:$0xff] %v9568_v61  ;;  %13885 = vst [vmem:[#allocation228_spill] sm:$0xff] %v9570_v38  ;;  %v2781_v15 = vadd.f32 %v2780_v45, %v9570_v38  ;;  %v9573_v18 = vpop.f32.mrb[119].mxu1 }
 0x1d2   :  { %13886 = vst [vmem:[#allocation229_spill] sm:$0xff] %v9573_v18  ;;  %v2851_v36 = vadd.f32 %v2850_v40, %v9573_v18 }
 0x1d3   :  { %v2782_v41 = vadd.f32 %v9554_v33, %v2781_v15 }
 0x1d4   :  { %v2852_v56 = vadd.f32 %v9557_v29, %v2851_v36 }
 0x1d5   :  { %v9578_v48 = vpop.f32.mrb[120].mxu0  ;;  %v2783_v8 = vadd.f32 %v9565_v24, %v2782_v41 }
 0x1d6   :  { %13887 = vst [vmem:[#allocation230_spill] sm:$0xff] %v9578_v48  ;;  %v9581_v53 = vpop.f32.mrb[120].mxu1  ;;  %v9583_v19 = vpop.f32.mrb[121].mxu0  ;;  %v2853_v25 = vadd.f32 %v9568_v61, %v2852_v56 }
 0x1d7   :  { %13888 = vst [vmem:[#allocation231_spill] sm:$0xff] %v9581_v53  ;;  %13889 = vst [vmem:[#allocation232_spill] sm:$0xff] %v9583_v19  ;;  %v2784_v45 = vadd.f32 %v2783_v8, %v9583_v19  ;;  %v9587_v38 = vpop.f32.mrb[121].mxu1  ;;  %v9589_v9 = vpop.f32.mrb[122].mxu0 }
 0x1d8   :  { %13890 = vst [vmem:[#allocation233_spill] sm:$0xff] %v9587_v38  ;;  %13891 = vst [vmem:[#allocation234_spill] sm:$0xff] %v9589_v9  ;;  %v2854_v40 = vadd.f32 %v2853_v25, %v9587_v38  ;;  %v9592_v15 = vpop.f32.mrb[122].mxu1  ;;  %v9594_v36 = vpop.f32.mrb[123].mxu0 }
 0x1d9   :  { %13892 = vst [vmem:[#allocation235_spill] sm:$0xff] %v9592_v15  ;;  %13893 = vst [vmem:[#allocation236_spill] sm:$0xff] %v9594_v36  ;;  %v2785_v41 = vadd.f32 %v2784_v45, %v9594_v36  ;;  %v9597_v29 = vpop.f32.mrb[123].mxu1 }
 0x1da   :  { %13894 = vst [vmem:[#allocation237_spill] sm:$0xff] %v9597_v29  ;;  %v2855_v18 = vadd.f32 %v2854_v40, %v9597_v29 }
 0x1db   :  { %v2786_v56 = vadd.f32 %v9578_v48, %v2785_v41 }
 0x1dc   :  { %v2856_v8 = vadd.f32 %v9581_v53, %v2855_v18 }
 0x1dd   :  { %v9602_v61 = vpop.f32.mrb[124].mxu0  ;;  %v2787_v19 = vadd.f32 %v9589_v9, %v2786_v56 }
 0x1de   :  { %13895 = vst [vmem:[#allocation238_spill] sm:$0xff] %v9602_v61  ;;  %v9605_v24 = vpop.f32.mrb[124].mxu1  ;;  %v9607_v25 = vpop.f32.mrb[125].mxu0  ;;  %v2857_v38 = vadd.f32 %v9592_v15, %v2856_v8 }
 0x1df   :  { %13896 = vst [vmem:[#allocation239_spill] sm:$0xff] %v9605_v24  ;;  %13897 = vst [vmem:[#allocation240_spill] sm:$0xff] %v9607_v25  ;;  %v2788_v45 = vadd.f32 %v2787_v19, %v9607_v25  ;;  %v9611_v36 = vpop.f32.mrb[125].mxu1  ;;  %v9613_v33 = vpop.f32.mrb[126].mxu0 }
 0x1e0   :  { %13898 = vst [vmem:[#allocation241_spill] sm:$0xff] %v9611_v36  ;;  %13899 = vst [vmem:[#allocation242_spill] sm:$0xff] %v9613_v33  ;;  %v2858_v40 = vadd.f32 %v2857_v38, %v9611_v36  ;;  %v9616_v41 = vpop.f32.mrb[126].mxu1  ;;  %v9618_v18 = vpop.f32.mrb[127].mxu0 }
 0x1e1   :  { %13900 = vst [vmem:[#allocation243_spill] sm:$0xff] %v9616_v41  ;;  %13901 = vst [vmem:[#allocation244_spill] sm:$0xff] %v9618_v18  ;;  %v2789_v56 = vadd.f32 %v2788_v45, %v9618_v18  ;;  %v9621_v53 = vpop.f32.mrb[127].mxu1 }
 0x1e2   :  { %13902 = vst [vmem:[#allocation245_spill] sm:$0xff] %v9621_v53  ;;  %v2859_v29 = vadd.f32 %v2858_v40, %v9621_v53 }
 0x1e3   :  { %v2790_v8 = vadd.f32 %v9602_v61, %v2789_v56 }
 0x1e4   :  { %v2860_v19 = vadd.f32 %v9605_v24, %v2859_v29 }
 0x1e5   :  { %v2791_v15 = vadd.f32 %v9613_v33, %v2790_v8 }
 0x1e6   :  { %v2861_v25 = vadd.f32 %v9616_v41, %v2860_v19 }
 0x1e7   :  { %v2792_v9 = vrot.slane %v2791_v15, 4 }
 0x1e8   :  { %v2862_v38 = vrot.slane %v2861_v25, 4 }
 0x1e9   :  { %v2793_v36 = vadd.f32 %v2792_v9, %v2791_v15 }
 0x1ea   :  { %v2863_v48 = vadd.f32 %v2862_v38, %v2861_v25 }
 0x1eb   :  { %v2794_v55 = vrot.slane %v2793_v36, 2 }
 0x1ec   :  { %v2864_v59 = vrot.slane %v2863_v48, 2 }
 0x1ed   :  { %v2795_v46 = vadd.f32 %v2794_v55, %v2793_v36 }
 0x1ee   :  { %v2865_v45 = vadd.f32 %v2864_v59, %v2863_v48 }
 0x1ef   :  { %v2796_v18 = vrot.slane %v2795_v46, 1 }
 0x1f0   :  { %v2866_v12 = vrot.slane %v2865_v45, 1 }
 0x1f1   :  { %v2797_v49 = vadd.f32 %v2796_v18, %v2795_v46 }
 0x1f2   :  { %v2867_v56 = vadd.f32 %v2866_v12, %v2865_v45 }
 0x1f3   :  { %v2798_v40 = vadd.f32 %v2797_v49, %v9287_v50 }
 0x1f5   :  { %v2868_v53 = vadd.f32 %v2867_v56, %v2798_v40 }
 0x1f7   :  { %v9629_v29 = vmul.f32 0.00048828125, %v2868_v53 }
 0x1f9   :  { %v2871_v8 = vsub.f32 %v8790_v0, %v9629_v29  ;;  %v2872_v9 = vsub.f32 %v8807_v7, %v9629_v29  ;;  %v2873_v15 = vsub.f32 %v8786_v62, %v9629_v29  ;;  %v2874_v46 = vsub.f32 %v8797_v3, %v9629_v29 }
 0x1fa   :  { %v2875_v49 = vsub.f32 %v8829_v17, %v9629_v29  ;;  %v2876_v53 = vsub.f32 %v8849_v27, %v9629_v29  ;;  %v2877_v25 = vsub.f32 %v8824_v14, %v9629_v29  ;;  %v2878_v38 = vsub.f32 %v8838_v22, %v9629_v29 }
 0x1fb   :  { %v2935_v55 = vmul.f32 %v2871_v8, %v2871_v8  ;;  %v2936_v59 = vmul.f32 %v2872_v9, %v2872_v9  ;;  %v2937_v12 = vmul.f32 %v2873_v15, %v2873_v15  ;;  %v2938_v48 = vmul.f32 %v2874_v46, %v2874_v46 }
 0x1fc   :  { %v2939_v18 = vmul.f32 %v2875_v49, %v2875_v49  ;;  %v2940_v45 = vmul.f32 %v2876_v53, %v2876_v53  ;;  %v2879_v56 = vsub.f32 %v8869_v37, %v9629_v29  ;;  %v2941_v8 = vmul.f32 %v2877_v25, %v2877_v25 }
 0x1fd   :  { %v2999_v50 = vadd.f32 %v2936_v59, %v2935_v55  ;;  %v2880_v15 = vsub.f32 %v8889_v47, %v9629_v29  ;;  %v2942_v55 = vmul.f32 %v2878_v38, %v2878_v38  ;;  %v2881_v46 = vsub.f32 %v8864_v34, %v9629_v29 }
 0x1fe   :  { %v2943_v49 = vmul.f32 %v2879_v56, %v2879_v56 }
 0x1ff   :  { %v3000_v36 = vadd.f32 %v2999_v50, %v2937_v12  ;;  %v2882_v50 = vsub.f32 %v8878_v42, %v9629_v29  ;;  %v2944_v53 = vmul.f32 %v2880_v15, %v2880_v15  ;;  %v2945_v25 = vmul.f32 %v2881_v46, %v2881_v46 }
 0x201   :  { %v3001_v19 = vadd.f32 %v3000_v36, %v2938_v48  ;;  %v2883_v36 = vsub.f32 %v8909_v57, %v9629_v29  ;;  %v2946_v38 = vmul.f32 %v2882_v50, %v2882_v50 }
 0x203   :  { %v3002_v40 = vadd.f32 %v3001_v19, %v2939_v18  ;;  %v2884_v19 = vsub.f32 %v8929_v11, %v9629_v29  ;;  %v2947_v56 = vmul.f32 %v2883_v36, %v2883_v36 }
 0x205   :  { %v3003_v9 = vadd.f32 %v3002_v40, %v2940_v45  ;;  %v2885_v40 = vsub.f32 %v8904_v54, %v9629_v29  ;;  %v2948_v15 = vmul.f32 %v2884_v19, %v2884_v19  ;;  %v3070_v19 = vsub.f32 %v8814_v10, %v9629_v29  ;;  %v13905_v10 = vld [vmem:[#allocation54_spill] sm:$0xff] }
 0x207   :  { %v3004_v59 = vadd.f32 %v3003_v9, %v2941_v8  ;;  %v2886_v9 = vsub.f32 %v8918_v1, %v9629_v29  ;;  %v2949_v46 = vmul.f32 %v2885_v40, %v2885_v40 }
 0x209   :  { %v3005_v12 = vadd.f32 %v3004_v59, %v2942_v55  ;;  %v2887_v59 = vsub.f32 %v8949_v28, %v9629_v29  ;;  %v2950_v50 = vmul.f32 %v2886_v9, %v2886_v9 }
 0x20b   :  { %v3006_v48 = vadd.f32 %v3005_v12, %v2943_v49  ;;  %v2888_v12 = vsub.f32 %v8966_v43, %v9629_v29  ;;  %v2951_v36 = vmul.f32 %v2887_v59, %v2887_v59  ;;  %v3134_v59 = vmul.f32 %v3070_v19, %v3070_v19 }
 0x20c   :  { %v2895_v19 = vsub.f32 %v9005_v39, %v9629_v29 }
 0x20d   :  { %v3007_v18 = vadd.f32 %v3006_v48, %v2944_v53  ;;  %v2889_v48 = vsub.f32 %v8944_v23, %v9629_v29 }
 0x20f   :  { %v3008_v45 = vadd.f32 %v3007_v18, %v2945_v25  ;;  %v3069_v18 = vsub.f32 %v8795_v2, %v9629_v29  ;;  %v9723_v2 = vsub.f32 %v13905_v10, %v9629_v29 }
 0x211   :  { %v3009_v8 = vadd.f32 %v3008_v45, %v2946_v38  ;;  %v2890_v38 = vsub.f32 %v8958_v35, %v9629_v29  ;;  %v2952_v45 = vmul.f32 %v2888_v12, %v2888_v12  ;;  %v2893_v12 = vsub.f32 %v8976_v52, %v9629_v29 }
 0x213   :  { %v3010_v55 = vadd.f32 %v3009_v8, %v2947_v56  ;;  %v2891_v56 = vsub.f32 %v8981_v58, %v9629_v29  ;;  %v2953_v8 = vmul.f32 %v2889_v48, %v2889_v48  ;;  %v3073_v48 = vsub.f32 %v8836_v21, %v9629_v29 }
 0x214   :  { %v2957_v21 = vmul.f32 %v2893_v12, %v2893_v12  ;;  %v3076_v12 = vsub.f32 %v8847_v26, %v9629_v29 }
 0x215   :  { %v3011_v49 = vadd.f32 %v3010_v55, %v2948_v15  ;;  %v3071_v15 = vsub.f32 %v8788_v63, %v9629_v29  ;;  %v3133_v55 = vmul.f32 %v3069_v18, %v3069_v18  ;;  %v2894_v18 = vsub.f32 %v8987_v5, %v9629_v29 }
 0x217   :  { %v3012_v53 = vadd.f32 %v3011_v49, %v2949_v46  ;;  %v2892_v46 = vsub.f32 %v8992_v13, %v9629_v29  ;;  %v2954_v49 = vmul.f32 %v2890_v38, %v2890_v38  ;;  %v2896_v38 = vsub.f32 %v9016_v60, %v9629_v29 }
 0x219   :  { %v3013_v25 = vadd.f32 %v3012_v53, %v2950_v50  ;;  %v3072_v53 = vsub.f32 %v8805_v6, %v9629_v29  ;;  %v2960_v10 = vmul.f32 %v2896_v38, %v2896_v38 }
 0x21b   :  { %v3014_v40 = vadd.f32 %v3013_v25, %v2951_v36  ;;  %v2955_v36 = vmul.f32 %v2891_v56, %v2891_v56  ;;  %v3074_v56 = vsub.f32 %v8855_v30, %v9629_v29  ;;  %v2958_v30 = vmul.f32 %v2894_v18, %v2894_v18 }
 0x21d   :  { %v3015_v9 = vadd.f32 %v3014_v40, %v2952_v45  ;;  %v3135_v45 = vmul.f32 %v3071_v15, %v3071_v15  ;;  %v3197_v40 = vadd.f32 %v3134_v59, %v3133_v55  ;;  %v2897_v15 = vsub.f32 %v9000_v31, %v9629_v29 }
 0x21e   :  { %v2898_v55 = vsub.f32 %v9011_v51, %v9629_v29  ;;  %v2899_v59 = vsub.f32 %v9029_v44, %v9629_v29 }
 0x21f   :  { %v3016_v50 = vadd.f32 %v3015_v9, %v2953_v8  ;;  %v2956_v8 = vmul.f32 %v2892_v46, %v2892_v46  ;;  %v3075_v46 = vsub.f32 %v8827_v16, %v9629_v29 }
 0x221   :  { %v3017_v25 = vadd.f32 %v3016_v50, %v2954_v49  ;;  %v3136_v49 = vmul.f32 %v3072_v53, %v3072_v53  ;;  %v3198_v50 = vadd.f32 %v3197_v40, %v3135_v45  ;;  %v2900_v53 = vsub.f32 %v9040_v20, %v9629_v29 }
 0x222   :  { %v2901_v45 = vsub.f32 %v9024_v32, %v9629_v29  ;;  %v9709_v40 = vsub.f32 %v9035_v4, %v9629_v29  ;;  %v2959_v4 = vmul.f32 %v2895_v19, %v2895_v19  ;;  %v3139_v26 = vmul.f32 %v3075_v46, %v3075_v46 }
 0x223   :  { %v3018_v9 = vadd.f32 %v3017_v25, %v2955_v36  ;;  %v3137_v36 = vmul.f32 %v3073_v48, %v3073_v48  ;;  %v3199_v25 = vadd.f32 %v3198_v50, %v3136_v49  ;;  %v13903_v48 = vld [vmem:[#allocation56_spill] sm:$0xff] }
 0x224   :  { %v9715_v49 = vsub.f32 %v13903_v48, %v9629_v29  ;;  %v13904_v50 = vld [vmem:[#allocation60_spill] sm:$0xff] }
 0x225   :  { %v3019_v6 = vadd.f32 %v3018_v9, %v2956_v8  ;;  %v3138_v8 = vmul.f32 %v3074_v56, %v3074_v56  ;;  %v3200_v9 = vadd.f32 %v3199_v25, %v3137_v36  ;;  %v9719_v16 = vsub.f32 %v13904_v50, %v9629_v29  ;;  %v13907_v36 = vld [vmem:[#allocation58_spill] sm:$0xff]  ;;  %v13908_v48 = vld [vmem:[#allocation64_spill] sm:$0xff] }
 0x226   :  { %v9729_v25 = vsub.f32 %v13907_v36, %v9629_v29  ;;  %v9733_v32 = vsub.f32 %v13908_v48, %v9629_v29  ;;  %v13909_v50 = vld [vmem:[#allocation68_spill] sm:$0xff]  ;;  %v13912_v36 = vld [vmem:[#allocation66_spill] sm:$0xff] }
 0x227   :  { %v3020_v63 = vadd.f32 %v3019_v6, %v2957_v21  ;;  %v13906_v6 = vld [vmem:[#allocation11_spill] sm:$0xff]  ;;  %v3201_v56 = vadd.f32 %v3200_v9, %v3138_v8  ;;  %v9737_v20 = vsub.f32 %v13909_v50, %v9629_v29  ;;  %v13911_v8 = vld [vmem:[#allocation62_spill] sm:$0xff]  ;;  %v9747_v44 = vsub.f32 %v13912_v36, %v9629_v29  ;;  %v13913_v48 = vld [vmem:[#allocation72_spill] sm:$0xff] }
 0x228   :  { %v3077_v21 = vsub.f32 %v13906_v6, %v9629_v29  ;;  %v3140_v6 = vmul.f32 %v3076_v12, %v3076_v12  ;;  %v9743_v9 = vsub.f32 %v13911_v8, %v9629_v29  ;;  %v9751_v51 = vsub.f32 %v13913_v48, %v9629_v29  ;;  %v13916_v8 = vld [vmem:[#allocation70_spill] sm:$0xff] }
 0x229   :  { %v3021_v18 = vadd.f32 %v3020_v63, %v2958_v30  ;;  %v13910_v63 = vld [vmem:[#allocation13_spill] sm:$0xff]  ;;  %v3202_v46 = vadd.f32 %v3201_v56, %v3139_v26  ;;  %v2961_v50 = vmul.f32 %v2897_v15, %v2897_v15  ;;  %v13915_v26 = vld [vmem:[#allocation76_spill] sm:$0xff]  ;;  %v9761_v31 = vsub.f32 %v13916_v8, %v9629_v29  ;;  %v13917_v36 = vld [vmem:[#allocation74_spill] sm:$0xff] }
 0x22a   :  { %v3078_v30 = vsub.f32 %v13910_v63, %v9629_v29  ;;  %v3141_v63 = vmul.f32 %v3077_v21, %v3077_v21  ;;  %v9757_v56 = vsub.f32 %v13915_v26, %v9629_v29  ;;  %v9765_v60 = vsub.f32 %v13917_v36, %v9629_v29  ;;  %v13920_v26 = vld [vmem:[#allocation84_spill] sm:$0xff]  ;;  %v13921_v8 = vld [vmem:[#allocation78_spill] sm:$0xff] }
 0x22b   :  { %v3022_v19 = vadd.f32 %v3021_v18, %v2959_v4  ;;  %v13914_v4 = vld [vmem:[#allocation10_spill] sm:$0xff]  ;;  %v3203_v12 = vadd.f32 %v3202_v46, %v3140_v6  ;;  %v2962_v48 = vmul.f32 %v2898_v55, %v2898_v55  ;;  %v13919_v6 = vld [vmem:[#allocation80_spill] sm:$0xff]  ;;  %v9775_v39 = vsub.f32 %v13920_v26, %v9629_v29 }
 0x22c   :  { %v3079_v18 = vsub.f32 %v13914_v4, %v9629_v29  ;;  %v3142_v4 = vmul.f32 %v3078_v30, %v3078_v30  ;;  %v9771_v46 = vsub.f32 %v13919_v6, %v9629_v29  ;;  %v9779_v5 = vsub.f32 %v13921_v8, %v9629_v29  ;;  %v13924_v6 = vld [vmem:[#allocation88_spill] sm:$0xff] }
 0x22d   :  { %v3023_v38 = vadd.f32 %v3022_v19, %v2960_v10  ;;  %v13918_v10 = vld [vmem:[#allocation12_spill] sm:$0xff]  ;;  %v3204_v21 = vadd.f32 %v3203_v12, %v3141_v63  ;;  %v2963_v36 = vmul.f32 %v2899_v59, %v2899_v59  ;;  %v13923_v63 = vld [vmem:[#allocation82_spill] sm:$0xff]  ;;  %v9789_v52 = vsub.f32 %v13924_v6, %v9629_v29 }
 0x22e   :  { %v3080_v19 = vsub.f32 %v13918_v10, %v9629_v29  ;;  %v3143_v10 = vmul.f32 %v3079_v18, %v3079_v18  ;;  %v9785_v12 = vsub.f32 %v13923_v63, %v9629_v29  ;;  %v13925_v26 = vld [vmem:[#allocation92_spill] sm:$0xff]  ;;  %v2964_v8 = vmul.f32 %v2900_v53, %v2900_v53  ;;  %v13928_v63 = vld [vmem:[#allocation90_spill] sm:$0xff] }
 0x22f   :  { %v3024_v15 = vadd.f32 %v3023_v38, %v2961_v50  ;;  %v13922_v50 = vld [vmem:[#allocation17_spill] sm:$0xff]  ;;  %v3205_v30 = vadd.f32 %v3204_v21, %v3142_v4  ;;  %v9793_v13 = vsub.f32 %v13925_v26, %v9629_v29  ;;  %v13927_v4 = vld [vmem:[#allocation86_spill] sm:$0xff]  ;;  %v9803_v58 = vsub.f32 %v13928_v63, %v9629_v29  ;;  %v13929_v6 = vld [vmem:[#allocation96_spill] sm:$0xff] }
 0x230   :  { %v3081_v38 = vsub.f32 %v13922_v50, %v9629_v29  ;;  %v3144_v50 = vmul.f32 %v3080_v19, %v3080_v19  ;;  %v9799_v21 = vsub.f32 %v13927_v4, %v9629_v29  ;;  %v9807_v35 = vsub.f32 %v13929_v6, %v9629_v29  ;;  %v13932_v4 = vld [vmem:[#allocation94_spill] sm:$0xff] }
 0x231   :  { %v3025_v55 = vadd.f32 %v3024_v15, %v2962_v48  ;;  %v13926_v48 = vld [vmem:[#allocation21_spill] sm:$0xff]  ;;  %v3206_v18 = vadd.f32 %v3205_v30, %v3143_v10  ;;  %v2965_v26 = vmul.f32 %v2901_v45, %v2901_v45  ;;  %v13931_v10 = vld [vmem:[#allocation100_spill] sm:$0xff]  ;;  %v9817_v23 = vsub.f32 %v13932_v4, %v9629_v29  ;;  %v13933_v63 = vld [vmem:[#allocation98_spill] sm:$0xff] }
 0x232   :  { %v3082_v15 = vsub.f32 %v13926_v48, %v9629_v29  ;;  %v3145_v48 = vmul.f32 %v3081_v38, %v3081_v38  ;;  %v9813_v30 = vsub.f32 %v13931_v10, %v9629_v29  ;;  %v9821_v43 = vsub.f32 %v13933_v63, %v9629_v29  ;;  %v13936_v4 = vld [vmem:[#allocation108_spill] sm:$0xff]  ;;  %v13937_v63 = vld [vmem:[#allocation102_spill] sm:$0xff] }
 0x233   :  { %v3026_v59 = vadd.f32 %v3025_v55, %v2963_v36  ;;  %v13930_v36 = vld [vmem:[#allocation15_spill] sm:$0xff]  ;;  %v3207_v19 = vadd.f32 %v3206_v18, %v3144_v50  ;;  %v2966_v45 = vmul.f32 %v9709_v40, %v9709_v40  ;;  %v9833_v6 = vsub.f32 %v13936_v4, %v9629_v29  ;;  %v13940_v4 = vld [vmem:[#allocation112_spill] sm:$0xff] }
 0x234   :  { %v3083_v55 = vsub.f32 %v13930_v36, %v9629_v29  ;;  %v3146_v50 = vmul.f32 %v3082_v15, %v3082_v15  ;;  %v13935_v36 = vld [vmem:[#allocation104_spill] sm:$0xff]  ;;  %v9837_v28 = vsub.f32 %v13937_v63, %v9629_v29  ;;  %v2967_v40 = vmul.f32 %v9715_v49, %v9715_v49 }
 0x235   :  { %v3027_v53 = vadd.f32 %v3026_v59, %v2964_v8  ;;  %v13934_v59 = vld [vmem:[#allocation19_spill] sm:$0xff]  ;;  %v3208_v18 = vadd.f32 %v3207_v19, %v3145_v48  ;;  %v9829_v10 = vsub.f32 %v13935_v36, %v9629_v29  ;;  %v9849_v1 = vsub.f32 %v13940_v4, %v9629_v29  ;;  %v13941_v63 = vld [vmem:[#allocation116_spill] sm:$0xff]  ;;  %v13944_v4 = vld [vmem:[#allocation114_spill] sm:$0xff] }
 0x236   :  { %v3084_v38 = vsub.f32 %v13934_v59, %v9629_v29  ;;  %v3147_v48 = vmul.f32 %v3083_v55, %v3083_v55  ;;  %v13939_v59 = vld [vmem:[#allocation106_spill] sm:$0xff]  ;;  %v9853_v54 = vsub.f32 %v13941_v63, %v9629_v29  ;;  %v2968_v49 = vmul.f32 %v9719_v16, %v9719_v16 }
 0x237   :  { %v3028_v8 = vadd.f32 %v3027_v53, %v2965_v26  ;;  %v13938_v53 = vld [vmem:[#allocation25_spill] sm:$0xff]  ;;  %v3209_v19 = vadd.f32 %v3208_v18, %v3146_v50  ;;  %v9845_v36 = vsub.f32 %v13939_v59, %v9629_v29  ;;  %v9865_v11 = vsub.f32 %v13944_v4, %v9629_v29 }
 0x238   :  { %v3085_v15 = vsub.f32 %v13938_v53, %v9629_v29  ;;  %v3148_v50 = vmul.f32 %v3084_v38, %v3084_v38  ;;  %v13943_v53 = vld [vmem:[#allocation110_spill] sm:$0xff]  ;;  %v2969_v63 = vmul.f32 %v9723_v2, %v9723_v2  ;;  %v2970_v16 = vmul.f32 %v9729_v25, %v9729_v25  ;;  %v13946_v25 = vld [vmem:[#allocation27_spill] sm:$0xff] }
 0x239   :  { %v3029_v26 = vadd.f32 %v3028_v8, %v2966_v45  ;;  %v13942_v8 = vld [vmem:[#allocation29_spill] sm:$0xff]  ;;  %v3210_v18 = vadd.f32 %v3209_v19, %v3147_v48  ;;  %v9861_v59 = vsub.f32 %v13943_v53, %v9629_v29  ;;  %v2971_v19 = vmul.f32 %v9733_v32, %v9733_v32 }
 0x23a   :  { %v3086_v55 = vsub.f32 %v13942_v8, %v9629_v29  ;;  %v3149_v38 = vmul.f32 %v3085_v15, %v3085_v15  ;;  %v2972_v53 = vmul.f32 %v9737_v20, %v9737_v20  ;;  %v2973_v4 = vmul.f32 %v9743_v9, %v9743_v9 }
 0x23b   :  { %v3030_v45 = vadd.f32 %v3029_v26, %v2967_v40  ;;  %v13945_v26 = vld [vmem:[#allocation23_spill] sm:$0xff]  ;;  %v3211_v48 = vadd.f32 %v3210_v18, %v3148_v50  ;;  %v2974_v2 = vmul.f32 %v9747_v44, %v9747_v44  ;;  %v2975_v15 = vmul.f32 %v9751_v51, %v9751_v51 }
 0x23c   :  { %v3087_v8 = vsub.f32 %v13945_v26, %v9629_v29  ;;  %v2976_v32 = vmul.f32 %v9757_v56, %v9757_v56  ;;  %v2977_v20 = vmul.f32 %v9761_v31, %v9761_v31  ;;  %v9891_v9 = vmul.f32 %v9765_v60, %v9765_v60  ;;  %v13948_v56 = vld [vmem:[#allocation37_spill] sm:$0xff] }
 0x23d   :  { %v3031_v40 = vadd.f32 %v3030_v45, %v2968_v49  ;;  %v3088_v49 = vsub.f32 %v13946_v25, %v9629_v29  ;;  %v3150_v45 = vmul.f32 %v3086_v55, %v3086_v55  ;;  %v3212_v26 = vadd.f32 %v3211_v48, %v3149_v38 }
 0x23e   :  { %v3151_v18 = vmul.f32 %v3087_v8, %v3087_v8  ;;  %v9901_v51 = vmul.f32 %v9775_v39, %v9775_v39  ;;  %v9905_v31 = vmul.f32 %v9779_v5, %v9779_v5  ;;  %v3090_v8 = vsub.f32 %v13948_v56, %v9629_v29  ;;  %v13949_v5 = vld [vmem:[#allocation120_spill] sm:$0xff] }
 0x23f   :  { %v3032_v57 = vadd.f32 %v3031_v40, %v2969_v63  ;;  %v13947_v63 = vld [vmem:[#allocation33_spill] sm:$0xff]  ;;  %v3213_v55 = vadd.f32 %v3212_v26, %v3150_v45  ;;  %v9897_v40 = vmul.f32 %v9771_v46, %v9771_v46  ;;  %v9915_v46 = vmul.f32 %v9789_v52, %v9789_v52  ;;  %v13951_v45 = vld [vmem:[#allocation31_spill] sm:$0xff] }
 0x240   :  { %v3089_v50 = vsub.f32 %v13947_v63, %v9629_v29  ;;  %v9919_v39 = vmul.f32 %v9793_v13, %v9793_v13  ;;  %v3267_v38 = vsub.f32 %v13949_v5, %v9629_v29  ;;  %v9929_v52 = vmul.f32 %v9799_v21, %v9799_v21  ;;  %v13954_v63 = vld [vmem:[#allocation41_spill] sm:$0xff] }
 0x241   :  { %v3033_v44 = vadd.f32 %v3032_v57, %v2970_v16  ;;  %v9909_v57 = vmul.f32 %v9785_v12, %v9785_v12  ;;  %v3152_v16 = vmul.f32 %v3088_v49, %v3088_v49  ;;  %v3214_v26 = vadd.f32 %v3213_v55, %v3151_v18  ;;  %v13950_v12 = vld [vmem:[#allocation124_spill] sm:$0xff] }
 0x242   :  { %v3268_v48 = vsub.f32 %v13950_v12, %v9629_v29  ;;  %v3153_v49 = vmul.f32 %v3089_v50, %v3089_v50  ;;  %v9933_v13 = vmul.f32 %v9803_v58, %v9803_v58  ;;  %v9937_v55 = vmul.f32 %v9807_v35, %v9807_v35  ;;  %v13952_v50 = vld [vmem:[#allocation35_spill] sm:$0xff]  ;;  %v13953_v58 = vld [vmem:[#allocation118_spill] sm:$0xff] }
 0x243   :  { %v3034_v60 = vadd.f32 %v3033_v44, %v2971_v19  ;;  %v3091_v44 = vsub.f32 %v13951_v45, %v9629_v29  ;;  %v3215_v18 = vadd.f32 %v3214_v26, %v3152_v16  ;;  %v3092_v16 = vsub.f32 %v13952_v50, %v9629_v29 }
 0x244   :  { %v3154_v26 = vmul.f32 %v3090_v8, %v3090_v8  ;;  %v9947_v21 = vmul.f32 %v9817_v23, %v9817_v23  ;;  %v3269_v5 = vsub.f32 %v13953_v58, %v9629_v29  ;;  %v3331_v45 = vmul.f32 %v3267_v38, %v3267_v38  ;;  %v13955_v38 = vld [vmem:[#allocation122_spill] sm:$0xff] }
 0x245   :  { %v3035_v19 = vadd.f32 %v3034_v60, %v2972_v53  ;;  %v9941_v53 = vmul.f32 %v9813_v30, %v9813_v30  ;;  %v3216_v12 = vadd.f32 %v3215_v18, %v3153_v49  ;;  %v3332_v35 = vmul.f32 %v3268_v48, %v3268_v48  ;;  %v13956_v49 = vld [vmem:[#allocation45_spill] sm:$0xff] }
 0x246   :  { %v3093_v30 = vsub.f32 %v13954_v63, %v9629_v29  ;;  %v3155_v25 = vmul.f32 %v3091_v44, %v3091_v44  ;;  %v9959_v8 = vmul.f32 %v9829_v10, %v9829_v10  ;;  %v9963_v23 = vmul.f32 %v9833_v6, %v9833_v6  ;;  %v13957_v10 = vld [vmem:[#allocation128_spill] sm:$0xff]  ;;  %v13958_v63 = vld [vmem:[#allocation39_spill] sm:$0xff] }
 0x247   :  { %v3036_v60 = vadd.f32 %v3035_v19, %v2973_v4  ;;  %v3217_v4 = vadd.f32 %v3216_v12, %v3154_v26  ;;  %v9955_v19 = vmul.f32 %v9821_v43, %v9821_v43  ;;  %v3094_v44 = vsub.f32 %v13956_v49, %v9629_v29 }
 0x248   :  { %v3156_v12 = vmul.f32 %v3092_v16, %v3092_v16  ;;  %v9971_v43 = vmul.f32 %v9837_v28, %v9837_v28  ;;  %v3333_v26 = vmul.f32 %v3269_v5, %v3269_v5  ;;  %v3395_v58 = vadd.f32 %v3332_v35, %v3331_v45 }
 0x249   :  { %v3037_v56 = vadd.f32 %v3036_v60, %v2974_v2  ;;  %v3270_v2 = vsub.f32 %v13955_v38, %v9629_v29  ;;  %v3218_v18 = vadd.f32 %v3217_v4, %v3155_v25  ;;  %v3271_v60 = vsub.f32 %v13957_v10, %v9629_v29  ;;  %v13959_v25 = vld [vmem:[#allocation132_spill] sm:$0xff]  ;;  %v13960_v10 = vld [vmem:[#allocation43_spill] sm:$0xff] }
 0x24a   :  { %v3095_v50 = vsub.f32 %v13958_v63, %v9629_v29  ;;  %v3157_v38 = vmul.f32 %v3093_v30, %v3093_v30  ;;  %v3272_v16 = vsub.f32 %v13959_v25, %v9629_v29  ;;  %v3396_v4 = vadd.f32 %v3395_v58, %v3333_v26  ;;  %v13961_v30 = vld [vmem:[#allocation126_spill] sm:$0xff] }
 0x24b   :  { %v3038_v48 = vadd.f32 %v3037_v56, %v2975_v15  ;;  %v3219_v15 = vadd.f32 %v3218_v18, %v3156_v12  ;;  %v9979_v56 = vmul.f32 %v9845_v36, %v9845_v36  ;;  %v3334_v28 = vmul.f32 %v3270_v2, %v3270_v2  ;;  %v13962_v2 = vld [vmem:[#allocation49_spill] sm:$0xff]  ;;  %v14163_v63 = vld [vmem:[#allocation94_spill] sm:$0xff] }
 0x24c   :  { %v3096_v5 = vsub.f32 %v13960_v10, %v9629_v29  ;;  %v3158_v45 = vmul.f32 %v3094_v44, %v3094_v44  ;;  %v9987_v35 = vmul.f32 %v9849_v1, %v9849_v1  ;;  %v3335_v36 = vmul.f32 %v3271_v60, %v3271_v60  ;;  %v13964_v60 = vld [vmem:[#allocation53_spill] sm:$0xff]  ;;  %v14161_v10 = vld [vmem:[#allocation100_spill] sm:$0xff] }
 0x24d   :  { %v3039_v6 = vadd.f32 %v3038_v48, %v2976_v32  ;;  %v3220_v32 = vadd.f32 %v3219_v15, %v3157_v38  ;;  %v3273_v48 = vsub.f32 %v13961_v30, %v9629_v29  ;;  %v3397_v12 = vadd.f32 %v3396_v4, %v3334_v28  ;;  %v13963_v38 = vld [vmem:[#allocation130_spill] sm:$0xff]  ;;  %v13965_v4 = vld [vmem:[#allocation136_spill] sm:$0xff] }
 0x24e   :  { %v3097_v58 = vsub.f32 %v13962_v2, %v9629_v29  ;;  %v9996_v44 = vmul.f32 %v9853_v54, %v9853_v54  ;;  %v3274_v1 = vsub.f32 %v13963_v38, %v9629_v29  ;;  %v3098_v28 = vsub.f32 %v13964_v60, %v9629_v29  ;;  %v14157_v60 = vld [vmem:[#allocation90_spill] sm:$0xff]  ;;  %v14159_v2 = vld [vmem:[#allocation96_spill] sm:$0xff] }
 0x24f   :  { %v3040_v49 = vadd.f32 %v3039_v6, %v2977_v20  ;;  %v3159_v20 = vmul.f32 %v3095_v50, %v3095_v50  ;;  %v3221_v26 = vadd.f32 %v3220_v32, %v3158_v45  ;;  %v3336_v6 = vmul.f32 %v3272_v16, %v3272_v16  ;;  %v13966_v16 = vld [vmem:[#allocation47_spill] sm:$0xff] }
 0x250   :  { %v3398_v15 = vadd.f32 %v3397_v12, %v3335_v36  ;;  %v10005_v50 = vmul.f32 %v9861_v59, %v9861_v59  ;;  %v3275_v54 = vsub.f32 %v13965_v4, %v9629_v29  ;;  %v3337_v45 = vmul.f32 %v3273_v48, %v3273_v48  ;;  %v13968_v48 = vld [vmem:[#allocation51_spill] sm:$0xff] }
 0x251   :  { %v3041_v18 = vadd.f32 %v3040_v49, %v9891_v9  ;;  %v3160_v9 = vmul.f32 %v3096_v5, %v3096_v5  ;;  %v3222_v49 = vadd.f32 %v3221_v26, %v3159_v20  ;;  %v3099_v36 = vsub.f32 %v13966_v16, %v9629_v29 }
 0x252   :  { %v3399_v32 = vadd.f32 %v3398_v15, %v3336_v6  ;;  %v10014_v5 = vmul.f32 %v9865_v11, %v9865_v11  ;;  %v3338_v20 = vmul.f32 %v3274_v1, %v3274_v1  ;;  %v3100_v6 = vsub.f32 %v13968_v48, %v9629_v29  ;;  %v13969_v15 = vld [vmem:[#allocation57_spill] sm:$0xff] }
 0x253   :  { %v3042_v30 = vadd.f32 %v3041_v18, %v9897_v40  ;;  %v3161_v40 = vmul.f32 %v3097_v58, %v3097_v58  ;;  %v3223_v12 = vadd.f32 %v3222_v49, %v3160_v9  ;;  %v13967_v18 = vld [vmem:[#allocation140_spill] sm:$0xff]  ;;  %v3101_v58 = vsub.f32 %v13969_v15, %v9629_v29  ;;  %v13970_v9 = vld [vmem:[#allocation134_spill] sm:$0xff]  ;;  %v13971_v1 = vld [vmem:[#allocation61_spill] sm:$0xff] }
 0x254   :  { %v3276_v59 = vsub.f32 %v13967_v18, %v9629_v29  ;;  %v3400_v26 = vadd.f32 %v3399_v32, %v3337_v45  ;;  %v3277_v49 = vsub.f32 %v13970_v9, %v9629_v29  ;;  %v3339_v11 = vmul.f32 %v3275_v54, %v3275_v54  ;;  %v13974_v54 = vld [vmem:[#allocation59_spill] sm:$0xff] }
 0x255   :  { %v3043_v38 = vadd.f32 %v3042_v30, %v9901_v51  ;;  %v3162_v51 = vmul.f32 %v3098_v28, %v3098_v28  ;;  %v3224_v30 = vadd.f32 %v3223_v12, %v3161_v40  ;;  %v3102_v45 = vsub.f32 %v13971_v1, %v9629_v29  ;;  %v13973_v28 = vld [vmem:[#allocation138_spill] sm:$0xff] }
 0x256   :  { %v3401_v25 = vadd.f32 %v3400_v26, %v3338_v20  ;;  %v3163_v32 = vmul.f32 %v3099_v36, %v3099_v36  ;;  %v3278_v40 = vsub.f32 %v13973_v28, %v9629_v29  ;;  %v3340_v12 = vmul.f32 %v3276_v59, %v3276_v59  ;;  %v13976_v36 = vld [vmem:[#allocation144_spill] sm:$0xff]  ;;  %v13977_v59 = vld [vmem:[#allocation69_spill] sm:$0xff] }
 0x257   :  { %v3044_v4 = vadd.f32 %v3043_v38, %v9905_v31  ;;  %v3225_v31 = vadd.f32 %v3224_v30, %v3162_v51  ;;  %v13972_v38 = vld [vmem:[#allocation55_spill] sm:$0xff]  ;;  %v3104_v20 = vsub.f32 %v13974_v54, %v9629_v29  ;;  %v3164_v26 = vmul.f32 %v3100_v6, %v3100_v6  ;;  %v13979_v6 = vld [vmem:[#allocation148_spill] sm:$0xff] }
 0x258   :  { %v3103_v18 = vsub.f32 %v13972_v38, %v9629_v29  ;;  %v3402_v15 = vadd.f32 %v3401_v25, %v3339_v11  ;;  %v3279_v51 = vsub.f32 %v13976_v36, %v9629_v29  ;;  %v3341_v30 = vmul.f32 %v3277_v49, %v3277_v49  ;;  %v13980_v49 = vld [vmem:[#allocation67_spill] sm:$0xff] }
 0x259   :  { %v3045_v16 = vadd.f32 %v3044_v4, %v9909_v57  ;;  %v3226_v57 = vadd.f32 %v3225_v31, %v3163_v32  ;;  %v13975_v4 = vld [vmem:[#allocation65_spill] sm:$0xff]  ;;  %v3106_v25 = vsub.f32 %v13977_v59, %v9629_v29  ;;  %v3165_v11 = vmul.f32 %v3101_v58, %v3101_v58  ;;  %v13982_v58 = vld [vmem:[#allocation142_spill] sm:$0xff] }
 0x25a   :  { %v3105_v9 = vsub.f32 %v13975_v4, %v9629_v29  ;;  %v3403_v38 = vadd.f32 %v3402_v15, %v3340_v12  ;;  %v3280_v32 = vsub.f32 %v13979_v6, %v9629_v29  ;;  %v3342_v31 = vmul.f32 %v3278_v40, %v3278_v40  ;;  %v13983_v40 = vld [vmem:[#allocation77_spill] sm:$0xff] }
 0x25b   :  { %v3046_v48 = vadd.f32 %v3045_v16, %v9915_v46  ;;  %v3227_v46 = vadd.f32 %v3226_v57, %v3164_v26  ;;  %v13978_v16 = vld [vmem:[#allocation63_spill] sm:$0xff]  ;;  %v3108_v15 = vsub.f32 %v13980_v49, %v9629_v29  ;;  %v3166_v12 = vmul.f32 %v3102_v45, %v3102_v45  ;;  %v13985_v45 = vld [vmem:[#allocation146_spill] sm:$0xff] }
 0x25c   :  { %v3107_v28 = vsub.f32 %v13978_v16, %v9629_v29  ;;  %v3404_v4 = vadd.f32 %v3403_v38, %v3341_v30  ;;  %v3281_v26 = vsub.f32 %v13982_v58, %v9629_v29  ;;  %v3343_v57 = vmul.f32 %v3279_v51, %v3279_v51  ;;  %v13986_v51 = vld [vmem:[#allocation75_spill] sm:$0xff] }
 0x25d   :  { %v3047_v1 = vadd.f32 %v3046_v48, %v9919_v39  ;;  %v3228_v39 = vadd.f32 %v3227_v46, %v3165_v11  ;;  %v13981_v48 = vld [vmem:[#allocation73_spill] sm:$0xff]  ;;  %v3110_v38 = vsub.f32 %v13983_v40, %v9629_v29  ;;  %v3167_v30 = vmul.f32 %v3103_v18, %v3103_v18  ;;  %v14155_v40 = vld [vmem:[#allocation86_spill] sm:$0xff] }
 0x25e   :  { %v3109_v36 = vsub.f32 %v13981_v48, %v9629_v29  ;;  %v3405_v16 = vadd.f32 %v3404_v4, %v3342_v31  ;;  %v3282_v11 = vsub.f32 %v13985_v45, %v9629_v29  ;;  %v3344_v46 = vmul.f32 %v3280_v32, %v3280_v32  ;;  %v13987_v31 = vld [vmem:[#allocation81_spill] sm:$0xff] }
 0x25f   :  { %v3048_v54 = vadd.f32 %v3047_v1, %v9929_v52  ;;  %v3229_v52 = vadd.f32 %v3228_v39, %v3166_v12  ;;  %v13984_v1 = vld [vmem:[#allocation71_spill] sm:$0xff]  ;;  %v10063_v4 = vsub.f32 %v13986_v51, %v9629_v29  ;;  %v10067_v18 = vsub.f32 %v13987_v31, %v9629_v29  ;;  %v13988_v12 = vld [vmem:[#allocation152_spill] sm:$0xff] }
 0x260   :  { %v3111_v6 = vsub.f32 %v13984_v1, %v9629_v29  ;;  %v3406_v48 = vadd.f32 %v3405_v16, %v3343_v57  ;;  %v3283_v39 = vsub.f32 %v13988_v12, %v9629_v29  ;;  %v3345_v58 = vmul.f32 %v3281_v26, %v3281_v26  ;;  %v13989_v16 = vld [vmem:[#allocation85_spill] sm:$0xff] }
 0x261   :  { %v3049_v59 = vadd.f32 %v3048_v54, %v9933_v13  ;;  %v3168_v13 = vmul.f32 %v3104_v20, %v3104_v20  ;;  %v3230_v54 = vadd.f32 %v3229_v52, %v3167_v30  ;;  %v13990_v20 = vld [vmem:[#allocation79_spill] sm:$0xff]  ;;  %v13991_v52 = vld [vmem:[#allocation156_spill] sm:$0xff]  ;;  %v3346_v31 = vmul.f32 %v3282_v11, %v3282_v11 }
 0x262   :  { %v3407_v1 = vadd.f32 %v3406_v48, %v3344_v46  ;;  %v10078_v30 = vsub.f32 %v13990_v20, %v9629_v29  ;;  %v3284_v45 = vsub.f32 %v13991_v52, %v9629_v29  ;;  %v13992_v48 = vld [vmem:[#allocation83_spill] sm:$0xff]  ;;  %v3347_v20 = vmul.f32 %v3283_v39, %v3283_v39 }
 0x263   :  { %v3050_v49 = vadd.f32 %v3049_v59, %v9937_v55  ;;  %v10074_v55 = vsub.f32 %v13989_v16, %v9629_v29  ;;  %v3169_v59 = vmul.f32 %v3105_v9, %v3105_v9  ;;  %v3231_v57 = vadd.f32 %v3230_v54, %v3168_v13  ;;  %v13993_v9 = vld [vmem:[#allocation89_spill] sm:$0xff]  ;;  %v13994_v54 = vld [vmem:[#allocation150_spill] sm:$0xff] }
 0x264   :  { %v3408_v51 = vadd.f32 %v3407_v1, %v3345_v58  ;;  %v10089_v13 = vsub.f32 %v13993_v9, %v9629_v29  ;;  %v3285_v12 = vsub.f32 %v13994_v54, %v9629_v29  ;;  %v13995_v58 = vld [vmem:[#allocation93_spill] sm:$0xff]  ;;  %v3171_v1 = vmul.f32 %v3107_v28, %v3107_v28 }
 0x265   :  { %v3051_v32 = vadd.f32 %v3050_v49, %v9941_v53  ;;  %v10085_v53 = vsub.f32 %v13992_v48, %v9629_v29  ;;  %v3170_v49 = vmul.f32 %v3106_v25, %v3106_v25  ;;  %v3232_v46 = vadd.f32 %v3231_v57, %v3169_v59  ;;  %v13996_v25 = vld [vmem:[#allocation87_spill] sm:$0xff]  ;;  %v13997_v57 = vld [vmem:[#allocation154_spill] sm:$0xff]  ;;  %v13999_v28 = vld [vmem:[#allocation97_spill] sm:$0xff] }
 0x266   :  { %v3409_v16 = vadd.f32 %v3408_v51, %v3346_v31  ;;  %v10100_v59 = vsub.f32 %v13996_v25, %v9629_v29  ;;  %v3286_v52 = vsub.f32 %v13997_v57, %v9629_v29  ;;  %v3348_v9 = vmul.f32 %v3284_v45, %v3284_v45  ;;  %v13998_v51 = vld [vmem:[#allocation91_spill] sm:$0xff] }
 0x267   :  { %v3052_v26 = vadd.f32 %v3051_v32, %v9947_v21  ;;  %v10096_v21 = vsub.f32 %v13995_v58, %v9629_v29  ;;  %v3233_v32 = vadd.f32 %v3232_v46, %v3170_v49  ;;  %v3172_v31 = vmul.f32 %v3108_v15, %v3108_v15  ;;  %v14000_v46 = vld [vmem:[#allocation160_spill] sm:$0xff]  ;;  %v14002_v15 = vld [vmem:[#allocation95_spill] sm:$0xff] }
 0x268   :  { %v3410_v48 = vadd.f32 %v3409_v16, %v3347_v20  ;;  %v10111_v49 = vsub.f32 %v13999_v28, %v9629_v29  ;;  %v3287_v54 = vsub.f32 %v14000_v46, %v9629_v29  ;;  %v3349_v25 = vmul.f32 %v3285_v12, %v3285_v12  ;;  %v14001_v16 = vld [vmem:[#allocation101_spill] sm:$0xff] }
 0x269   :  { %v3053_v11 = vadd.f32 %v3052_v26, %v9955_v19  ;;  %v10107_v19 = vsub.f32 %v13998_v51, %v9629_v29  ;;  %v3234_v26 = vadd.f32 %v3233_v32, %v3171_v1  ;;  %v3173_v20 = vmul.f32 %v3109_v36, %v3109_v36  ;;  %v14003_v32 = vld [vmem:[#allocation164_spill] sm:$0xff]  ;;  %v14005_v36 = vld [vmem:[#allocation105_spill] sm:$0xff] }
 0x26a   :  { %v3411_v58 = vadd.f32 %v3410_v48, %v3348_v9  ;;  %v10122_v1 = vsub.f32 %v14002_v15, %v9629_v29  ;;  %v3288_v57 = vsub.f32 %v14003_v32, %v9629_v29  ;;  %v3350_v28 = vmul.f32 %v3286_v52, %v3286_v52  ;;  %v14004_v48 = vld [vmem:[#allocation99_spill] sm:$0xff] }
 0x26b   :  { %v3054_v39 = vadd.f32 %v3053_v11, %v9959_v8  ;;  %v10118_v8 = vsub.f32 %v14001_v16, %v9629_v29  ;;  %v3235_v11 = vadd.f32 %v3234_v26, %v3172_v31  ;;  %v3174_v9 = vmul.f32 %v3110_v38, %v3110_v38  ;;  %v14006_v26 = vld [vmem:[#allocation158_spill] sm:$0xff]  ;;  %v14008_v38 = vld [vmem:[#allocation103_spill] sm:$0xff] }
 0x26c   :  { %v3412_v51 = vadd.f32 %v3411_v58, %v3349_v25  ;;  %v10133_v31 = vsub.f32 %v14005_v36, %v9629_v29  ;;  %v3289_v46 = vsub.f32 %v14006_v26, %v9629_v29  ;;  %v3351_v15 = vmul.f32 %v3287_v54, %v3287_v54  ;;  %v14007_v58 = vld [vmem:[#allocation109_spill] sm:$0xff] }
 0x26d   :  { %v3055_v45 = vadd.f32 %v3054_v39, %v9963_v23  ;;  %v10129_v23 = vsub.f32 %v14004_v48, %v9629_v29  ;;  %v3236_v39 = vadd.f32 %v3235_v11, %v3173_v20  ;;  %v3175_v25 = vmul.f32 %v3111_v6, %v3111_v6  ;;  %v14009_v11 = vld [vmem:[#allocation162_spill] sm:$0xff] }
 0x26e   :  { %v3413_v16 = vadd.f32 %v3412_v51, %v3350_v28  ;;  %v10144_v20 = vsub.f32 %v14008_v38, %v9629_v29  ;;  %v3290_v32 = vsub.f32 %v14009_v11, %v9629_v29  ;;  %v3352_v36 = vmul.f32 %v3288_v57, %v3288_v57  ;;  %v14010_v51 = vld [vmem:[#allocation107_spill] sm:$0xff]  ;;  %v14018_v38 = vld [vmem:[#allocation125_spill] sm:$0xff] }
 0x26f   :  { %v3056_v12 = vadd.f32 %v3055_v45, %v9971_v43  ;;  %v10140_v43 = vsub.f32 %v14007_v58, %v9629_v29  ;;  %v3237_v45 = vadd.f32 %v3236_v39, %v3174_v9  ;;  %v3176_v28 = vmul.f32 %v10063_v4, %v10063_v4  ;;  %v14012_v39 = vld [vmem:[#allocation168_spill] sm:$0xff] }
 0x270   :  { %v3414_v48 = vadd.f32 %v3413_v16, %v3351_v15  ;;  %v3291_v26 = vsub.f32 %v14012_v39, %v9629_v29  ;;  %v3353_v11 = vmul.f32 %v3289_v46, %v3289_v46  ;;  %v3354_v39 = vmul.f32 %v3290_v32, %v3290_v32 }
 0x271   :  { %v3057_v52 = vadd.f32 %v3056_v12, %v9979_v56  ;;  %v10151_v56 = vsub.f32 %v14010_v51, %v9629_v29  ;;  %v3238_v6 = vadd.f32 %v3237_v45, %v3175_v25  ;;  %v14011_v12 = vld [vmem:[#allocation113_spill] sm:$0xff]  ;;  %v14014_v25 = vld [vmem:[#allocation111_spill] sm:$0xff]  ;;  %v3466_v58 = vsub.f32 %v14018_v38, %v9629_v29 }
 0x272   :  { %v10157_v9 = vsub.f32 %v14011_v12, %v9629_v29  ;;  %v3415_v57 = vadd.f32 %v3414_v48, %v3352_v36  ;;  %v10170_v45 = vsub.f32 %v14014_v25, %v9629_v29  ;;  %v14015_v12 = vld [vmem:[#allocation172_spill] sm:$0xff] }
 0x273   :  { %v3058_v54 = vadd.f32 %v3057_v52, %v9987_v35  ;;  %v14013_v35 = vld [vmem:[#allocation117_spill] sm:$0xff]  ;;  %v3177_v52 = vmul.f32 %v10067_v18, %v10067_v18  ;;  %v3239_v4 = vadd.f32 %v3238_v6, %v3176_v28  ;;  %v3292_v51 = vsub.f32 %v14015_v12, %v9629_v29 }
 0x274   :  { %v10164_v15 = vsub.f32 %v14013_v35, %v9629_v29  ;;  %v3416_v46 = vadd.f32 %v3415_v57, %v3353_v11  ;;  %v3355_v18 = vmul.f32 %v3291_v26, %v3291_v26  ;;  %v14017_v6 = vld [vmem:[#allocation121_spill] sm:$0xff]  ;;  %v3180_v26 = vmul.f32 %v10085_v53, %v10085_v53 }
 0x275   :  { %v3059_v16 = vadd.f32 %v3058_v54, %v9996_v44  ;;  %v3178_v44 = vmul.f32 %v10074_v55, %v10074_v55  ;;  %v3240_v36 = vadd.f32 %v3239_v4, %v3177_v52  ;;  %v14016_v54 = vld [vmem:[#allocation166_spill] sm:$0xff]  ;;  %v3465_v25 = vsub.f32 %v14017_v6, %v9629_v29 }
 0x276   :  { %v3293_v35 = vsub.f32 %v14016_v54, %v9629_v29  ;;  %v3417_v28 = vadd.f32 %v3416_v46, %v3354_v39  ;;  %v3179_v55 = vmul.f32 %v10078_v30, %v10078_v30  ;;  %v14020_v39 = vld [vmem:[#allocation170_spill] sm:$0xff]  ;;  %v3356_v52 = vmul.f32 %v3292_v51, %v3292_v51  ;;  %v14022_v30 = vld [vmem:[#allocation119_spill] sm:$0xff] }
 0x277   :  { %v3060_v48 = vadd.f32 %v3059_v16, %v10005_v50  ;;  %v14019_v50 = vld [vmem:[#allocation115_spill] sm:$0xff]  ;;  %v3241_v57 = vadd.f32 %v3240_v36, %v3178_v44  ;;  %v3294_v16 = vsub.f32 %v14020_v39, %v9629_v29  ;;  %v3467_v44 = vsub.f32 %v14022_v30, %v9629_v29 }
 0x278   :  { %v10188_v11 = vsub.f32 %v14019_v50, %v9629_v29  ;;  %v3418_v4 = vadd.f32 %v3417_v28, %v3355_v18  ;;  %v3357_v6 = vmul.f32 %v3293_v35, %v3293_v35  ;;  %v3529_v36 = vmul.f32 %v3465_v25, %v3465_v25  ;;  %v14153_v50 = vld [vmem:[#allocation92_spill] sm:$0xff] }
 0x279   :  { %v10184_v32 = vadd.f32 %v3060_v48, %v10014_v5  ;;  %v3181_v5 = vmul.f32 %v10089_v13, %v10089_v13  ;;  %v3242_v46 = vadd.f32 %v3241_v57, %v3179_v55  ;;  %v14021_v48 = vld [vmem:[#allocation176_spill] sm:$0xff]  ;;  %v3530_v12 = vmul.f32 %v3466_v58, %v3466_v58 }
 0x27a   :  { %v3295_v38 = vsub.f32 %v14021_v48, %v9629_v29  ;;  %v3419_v54 = vadd.f32 %v3418_v4, %v3356_v52  ;;  %v3182_v53 = vmul.f32 %v10096_v21, %v10096_v21  ;;  %v3183_v51 = vmul.f32 %v10100_v59, %v10100_v59  ;;  %v14023_v13 = vld [vmem:[#allocation180_spill] sm:$0xff]  ;;  %v14024_v52 = vld [vmem:[#allocation123_spill] sm:$0xff]  ;;  %v14025_v21 = vld [vmem:[#allocation174_spill] sm:$0xff] }
 0x27b   :  { %v3243_v18 = vadd.f32 %v3242_v46, %v3180_v26  ;;  %v3296_v28 = vsub.f32 %v14023_v13, %v9629_v29  ;;  %v3184_v55 = vmul.f32 %v10107_v19, %v10107_v19  ;;  %v3358_v35 = vmul.f32 %v3294_v16, %v3294_v16  ;;  %v14026_v46 = vld [vmem:[#allocation129_spill] sm:$0xff] }
 0x27c   :  { %v3420_v57 = vadd.f32 %v3419_v54, %v3357_v6  ;;  %v3468_v4 = vsub.f32 %v14024_v52, %v9629_v29  ;;  %v3185_v58 = vmul.f32 %v10111_v49, %v10111_v49  ;;  %v3297_v30 = vsub.f32 %v14025_v21, %v9629_v29  ;;  %v14027_v6 = vld [vmem:[#allocation178_spill] sm:$0xff] }
 0x27d   :  { %v3244_v25 = vadd.f32 %v3243_v18, %v3181_v5  ;;  %v3359_v59 = vmul.f32 %v3295_v38, %v3295_v38  ;;  %v3469_v13 = vsub.f32 %v14026_v46, %v9629_v29  ;;  %v3531_v48 = vmul.f32 %v3467_v44, %v3467_v44  ;;  %v14028_v5 = vld [vmem:[#allocation133_spill] sm:$0xff] }
 0x27e   :  { %v3421_v26 = vadd.f32 %v3420_v57, %v3358_v35  ;;  %v3593_v39 = vadd.f32 %v3530_v12, %v3529_v36  ;;  %v3186_v19 = vmul.f32 %v10118_v8, %v10118_v8  ;;  %v3298_v16 = vsub.f32 %v14027_v6, %v9629_v29  ;;  %v14029_v12 = vld [vmem:[#allocation184_spill] sm:$0xff] }
 0x27f   :  { %v3245_v54 = vadd.f32 %v3244_v25, %v3182_v53  ;;  %v3360_v52 = vmul.f32 %v3296_v28, %v3296_v28  ;;  %v3470_v18 = vsub.f32 %v14028_v5, %v9629_v29  ;;  %v3532_v21 = vmul.f32 %v3468_v4, %v3468_v4  ;;  %v14030_v53 = vld [vmem:[#allocation127_spill] sm:$0xff]  ;;  %v14152_v6 = vld [vmem:[#allocation88_spill] sm:$0xff] }
 0x280   :  { %v3422_v49 = vadd.f32 %v3421_v26, %v3359_v59  ;;  %v3594_v38 = vadd.f32 %v3593_v39, %v3531_v48  ;;  %v3187_v35 = vmul.f32 %v10122_v1, %v10122_v1  ;;  %v3299_v44 = vsub.f32 %v14029_v12, %v9629_v29  ;;  %v14031_v39 = vld [vmem:[#allocation188_spill] sm:$0xff]  ;;  %v14151_v12 = vld [vmem:[#allocation82_spill] sm:$0xff] }
 0x281   :  { %v3246_v57 = vadd.f32 %v3245_v54, %v3183_v51  ;;  %v3361_v36 = vmul.f32 %v3297_v30, %v3297_v30  ;;  %v3471_v25 = vsub.f32 %v14030_v53, %v9629_v29  ;;  %v3533_v46 = vmul.f32 %v3469_v13, %v3469_v13  ;;  %v14032_v51 = vld [vmem:[#allocation131_spill] sm:$0xff]  ;;  %v14033_v13 = vld [vmem:[#allocation182_spill] sm:$0xff] }
 0x282   :  { %v3423_v8 = vadd.f32 %v3422_v49, %v3360_v52  ;;  %v3595_v28 = vadd.f32 %v3594_v38, %v3532_v21  ;;  %v3188_v59 = vmul.f32 %v10129_v23, %v10129_v23  ;;  %v3300_v48 = vsub.f32 %v14031_v39, %v9629_v29  ;;  %v14150_v39 = vld [vmem:[#allocation78_spill] sm:$0xff] }
 0x283   :  { %v3247_v26 = vadd.f32 %v3246_v57, %v3184_v55  ;;  %v3362_v4 = vmul.f32 %v3298_v16, %v3298_v16  ;;  %v3472_v54 = vsub.f32 %v14032_v51, %v9629_v29  ;;  %v3534_v5 = vmul.f32 %v3470_v18, %v3470_v18  ;;  %v14034_v55 = vld [vmem:[#allocation137_spill] sm:$0xff] }
 0x284   :  { %v3424_v1 = vadd.f32 %v3423_v8, %v3361_v36  ;;  %v3596_v30 = vadd.f32 %v3595_v28, %v3533_v46  ;;  %v3189_v52 = vmul.f32 %v10133_v31, %v10133_v31  ;;  %v3301_v21 = vsub.f32 %v14033_v13, %v9629_v29  ;;  %v14035_v46 = vld [vmem:[#allocation186_spill] sm:$0xff]  ;;  %v14149_v13 = vld [vmem:[#allocation84_spill] sm:$0xff] }
 0x285   :  { %v3248_v49 = vadd.f32 %v3247_v26, %v3185_v58  ;;  %v3363_v38 = vmul.f32 %v3299_v44, %v3299_v44  ;;  %v3473_v57 = vsub.f32 %v14034_v55, %v9629_v29  ;;  %v3535_v53 = vmul.f32 %v3471_v25, %v3471_v25  ;;  %v14036_v58 = vld [vmem:[#allocation141_spill] sm:$0xff] }
 0x286   :  { %v3425_v23 = vadd.f32 %v3424_v1, %v3362_v4  ;;  %v3597_v16 = vadd.f32 %v3596_v30, %v3534_v5  ;;  %v3190_v36 = vmul.f32 %v10140_v43, %v10140_v43  ;;  %v3302_v18 = vsub.f32 %v14035_v46, %v9629_v29  ;;  %v14037_v5 = vld [vmem:[#allocation192_spill] sm:$0xff] }
 0x287   :  { %v3249_v8 = vadd.f32 %v3248_v49, %v3186_v19  ;;  %v3364_v28 = vmul.f32 %v3300_v48, %v3300_v48  ;;  %v3474_v26 = vsub.f32 %v14036_v58, %v9629_v29  ;;  %v3536_v51 = vmul.f32 %v3472_v54, %v3472_v54  ;;  %v14038_v19 = vld [vmem:[#allocation135_spill] sm:$0xff]  ;;  %v14148_v46 = vld [vmem:[#allocation80_spill] sm:$0xff] }
 0x288   :  { %v3426_v31 = vadd.f32 %v3425_v23, %v3363_v38  ;;  %v3598_v44 = vadd.f32 %v3597_v16, %v3535_v53  ;;  %v3191_v4 = vmul.f32 %v10144_v20, %v10144_v20  ;;  %v3303_v25 = vsub.f32 %v14037_v5, %v9629_v29  ;;  %v14039_v53 = vld [vmem:[#allocation196_spill] sm:$0xff]  ;;  %v14147_v5 = vld [vmem:[#allocation74_spill] sm:$0xff] }
 0x289   :  { %v3250_v1 = vadd.f32 %v3249_v8, %v3187_v35  ;;  %v3365_v30 = vmul.f32 %v3301_v21, %v3301_v21  ;;  %v3475_v49 = vsub.f32 %v14038_v19, %v9629_v29  ;;  %v3537_v55 = vmul.f32 %v3473_v57, %v3473_v57  ;;  %v14040_v35 = vld [vmem:[#allocation139_spill] sm:$0xff] }
 0x28a   :  { %v3427_v43 = vadd.f32 %v3426_v31, %v3364_v28  ;;  %v3599_v48 = vadd.f32 %v3598_v44, %v3536_v51  ;;  %v3192_v38 = vmul.f32 %v10151_v56, %v10151_v56  ;;  %v3304_v54 = vsub.f32 %v14039_v53, %v9629_v29  ;;  %v14041_v51 = vld [vmem:[#allocation190_spill] sm:$0xff] }
 0x28b   :  { %v3251_v23 = vadd.f32 %v3250_v1, %v3188_v59  ;;  %v3366_v16 = vmul.f32 %v3302_v18, %v3302_v18  ;;  %v3476_v8 = vsub.f32 %v14040_v35, %v9629_v29  ;;  %v3538_v58 = vmul.f32 %v3474_v26, %v3474_v26  ;;  %v14042_v59 = vld [vmem:[#allocation145_spill] sm:$0xff]  ;;  %v14146_v53 = vld [vmem:[#allocation70_spill] sm:$0xff] }
 0x28c   :  { %v3428_v20 = vadd.f32 %v3427_v43, %v3365_v30  ;;  %v3600_v21 = vadd.f32 %v3599_v48, %v3537_v55  ;;  %v3193_v28 = vmul.f32 %v10157_v9, %v10157_v9  ;;  %v3305_v57 = vsub.f32 %v14041_v51, %v9629_v29  ;;  %v14043_v55 = vld [vmem:[#allocation194_spill] sm:$0xff]  ;;  %v14145_v51 = vld [vmem:[#allocation76_spill] sm:$0xff] }
 0x28d   :  { %v3252_v31 = vadd.f32 %v3251_v23, %v3189_v52  ;;  %v3367_v44 = vmul.f32 %v3303_v25, %v3303_v25  ;;  %v3477_v1 = vsub.f32 %v14042_v59, %v9629_v29  ;;  %v3539_v19 = vmul.f32 %v3475_v49, %v3475_v49  ;;  %v14044_v52 = vld [vmem:[#allocation149_spill] sm:$0xff]  ;;  %v14045_v49 = vld [vmem:[#allocation200_spill] sm:$0xff] }
 0x28e   :  { %v3429_v56 = vadd.f32 %v3428_v20, %v3366_v16  ;;  %v3601_v18 = vadd.f32 %v3600_v21, %v3538_v58  ;;  %v3194_v30 = vmul.f32 %v10164_v15, %v10164_v15  ;;  %v3306_v26 = vsub.f32 %v14043_v55, %v9629_v29  ;;  %v14046_v15 = vld [vmem:[#allocation143_spill] sm:$0xff] }
 0x28f   :  { %v3253_v43 = vadd.f32 %v3252_v31, %v3190_v36  ;;  %v3368_v48 = vmul.f32 %v3304_v54, %v3304_v54  ;;  %v3478_v23 = vsub.f32 %v14044_v52, %v9629_v29  ;;  %v3540_v35 = vmul.f32 %v3476_v8, %v3476_v8  ;;  %v14047_v8 = vld [vmem:[#allocation204_spill] sm:$0xff] }
 0x290   :  { %v3430_v9 = vadd.f32 %v3429_v56, %v3367_v44  ;;  %v3602_v25 = vadd.f32 %v3601_v18, %v3539_v19  ;;  %v3062_v16 = vrot.slane %v10184_v32, 4  ;;  %v3307_v58 = vsub.f32 %v14045_v49, %v9629_v29  ;;  %v14144_v49 = vld [vmem:[#allocation72_spill] sm:$0xff] }
 0x291   :  { %v3254_v20 = vadd.f32 %v3253_v43, %v3191_v4  ;;  %v3369_v21 = vmul.f32 %v3305_v57, %v3305_v57  ;;  %v3479_v36 = vsub.f32 %v14046_v15, %v9629_v29  ;;  %v3541_v31 = vmul.f32 %v3477_v1, %v3477_v1  ;;  %v14048_v4 = vld [vmem:[#allocation147_spill] sm:$0xff]  ;;  %v14049_v1 = vld [vmem:[#allocation198_spill] sm:$0xff] }
 0x292   :  { %v3431_v59 = vadd.f32 %v3430_v9, %v3368_v48  ;;  %v3603_v55 = vadd.f32 %v3602_v25, %v3540_v35  ;;  %v3195_v54 = vmul.f32 %v10170_v45, %v10170_v45  ;;  %v3308_v19 = vsub.f32 %v14047_v8, %v9629_v29  ;;  %v14050_v45 = vld [vmem:[#allocation153_spill] sm:$0xff] }
 0x293   :  { %v3255_v44 = vadd.f32 %v3254_v20, %v3192_v38  ;;  %v3370_v56 = vmul.f32 %v3306_v26, %v3306_v26  ;;  %v3480_v43 = vsub.f32 %v14048_v4, %v9629_v29  ;;  %v3542_v52 = vmul.f32 %v3478_v23, %v3478_v23  ;;  %v14051_v23 = vld [vmem:[#allocation202_spill] sm:$0xff] }
 0x294   :  { %v3432_v18 = vadd.f32 %v3431_v59, %v3369_v21  ;;  %v3604_v57 = vadd.f32 %v3603_v55, %v3541_v31  ;;  %v3063_v48 = vadd.f32 %v3062_v16, %v10184_v32  ;;  %v3309_v35 = vsub.f32 %v14049_v1, %v9629_v29  ;;  %v14143_v1 = vld [vmem:[#allocation66_spill] sm:$0xff] }
 0x295   :  { %v3256_v9 = vadd.f32 %v3255_v44, %v3193_v28  ;;  %v3371_v25 = vmul.f32 %v3307_v58, %v3307_v58  ;;  %v3481_v38 = vsub.f32 %v14050_v45, %v9629_v29  ;;  %v3543_v20 = vmul.f32 %v3479_v36, %v3479_v36  ;;  %v14052_v28 = vld [vmem:[#allocation157_spill] sm:$0xff] }
 0x296   :  { %v3433_v15 = vadd.f32 %v3432_v18, %v3370_v56  ;;  %v3605_v8 = vadd.f32 %v3604_v57, %v3542_v52  ;;  %v3196_v59 = vmul.f32 %v10188_v11, %v10188_v11  ;;  %v3310_v55 = vsub.f32 %v14051_v23, %v9629_v29  ;;  %v14053_v18 = vld [vmem:[#allocation208_spill] sm:$0xff]  ;;  %v14054_v11 = vld [vmem:[#allocation151_spill] sm:$0xff]  ;;  %v14142_v23 = vld [vmem:[#allocation62_spill] sm:$0xff] }
 0x297   :  { %v3257_v26 = vadd.f32 %v3256_v9, %v3194_v30  ;;  %v3372_v21 = vmul.f32 %v3308_v19, %v3308_v19  ;;  %v3482_v16 = vsub.f32 %v14052_v28, %v9629_v29  ;;  %v3544_v31 = vmul.f32 %v3480_v43, %v3480_v43 }
 0x298   :  { %v3434_v32 = vadd.f32 %v3433_v15, %v3371_v25  ;;  %v3606_v58 = vadd.f32 %v3605_v8, %v3543_v20  ;;  %v3064_v44 = vrot.slane %v3063_v48, 2  ;;  %v3311_v36 = vsub.f32 %v14053_v18, %v9629_v29  ;;  %v14055_v15 = vld [vmem:[#allocation212_spill] sm:$0xff]  ;;  %v14056_v8 = vld [vmem:[#allocation155_spill] sm:$0xff] }
 0x299   :  { %v3258_v56 = vadd.f32 %v3257_v26, %v3195_v54  ;;  %v3373_v52 = vmul.f32 %v3309_v35, %v3309_v35  ;;  %v3483_v30 = vsub.f32 %v14054_v11, %v9629_v29  ;;  %v3545_v9 = vmul.f32 %v3481_v38, %v3481_v38  ;;  %v14057_v35 = vld [vmem:[#allocation206_spill] sm:$0xff]  ;;  %v14058_v38 = vld [vmem:[#allocation161_spill] sm:$0xff] }
 0x29a   :  { %v3435_v57 = vadd.f32 %v3434_v32, %v3372_v21  ;;  %v3607_v45 = vadd.f32 %v3606_v58, %v3544_v31  ;;  %v3312_v19 = vsub.f32 %v14055_v15, %v9629_v29  ;;  %v3374_v25 = vmul.f32 %v3310_v55, %v3310_v55  ;;  %v14059_v55 = vld [vmem:[#allocation210_spill] sm:$0xff] }
 0x29b   :  { %v3259_v4 = vadd.f32 %v3258_v56, %v3196_v59  ;;  %v3484_v43 = vsub.f32 %v14056_v8, %v9629_v29  ;;  %v3546_v54 = vmul.f32 %v3482_v16, %v3482_v16  ;;  %v3065_v26 = vadd.f32 %v3064_v44, %v3063_v48 }
 0x29c   :  { %v3436_v28 = vadd.f32 %v3435_v57, %v3373_v52  ;;  %v3608_v20 = vadd.f32 %v3607_v45, %v3545_v9  ;;  %v3313_v21 = vsub.f32 %v14057_v35, %v9629_v29  ;;  %v3375_v32 = vmul.f32 %v3311_v36, %v3311_v36  ;;  %v14060_v45 = vld [vmem:[#allocation165_spill] sm:$0xff] }
 0x29d   :  { %v3260_v18 = vrot.slane %v3259_v4, 4  ;;  %v3485_v59 = vsub.f32 %v14058_v38, %v9629_v29  ;;  %v3547_v31 = vmul.f32 %v3483_v30, %v3483_v30  ;;  %v3314_v52 = vsub.f32 %v14059_v55, %v9629_v29  ;;  %v14062_v30 = vld [vmem:[#allocation159_spill] sm:$0xff] }
 0x29e   :  { %v3437_v11 = vadd.f32 %v3436_v28, %v3374_v25  ;;  %v3609_v58 = vadd.f32 %v3608_v20, %v3546_v54  ;;  %v3376_v57 = vmul.f32 %v3312_v19, %v3312_v19  ;;  %v3486_v48 = vsub.f32 %v14060_v45, %v9629_v29  ;;  %v14061_v28 = vld [vmem:[#allocation216_spill] sm:$0xff] }
 0x29f   :  { %v3261_v56 = vadd.f32 %v3260_v18, %v3259_v4  ;;  %v3548_v16 = vmul.f32 %v3484_v43, %v3484_v43  ;;  %v3066_v9 = vrot.slane %v3065_v26, 1  ;;  %v3315_v36 = vsub.f32 %v14061_v28, %v9629_v29  ;;  %v14064_v43 = vld [vmem:[#allocation163_spill] sm:$0xff] }
 0x2a0   :  { %v3438_v8 = vadd.f32 %v3437_v11, %v3375_v32  ;;  %v3610_v44 = vadd.f32 %v3609_v58, %v3547_v31  ;;  %v3377_v25 = vmul.f32 %v3313_v21, %v3313_v21  ;;  %v3487_v4 = vsub.f32 %v14062_v30, %v9629_v29  ;;  %v14063_v11 = vld [vmem:[#allocation220_spill] sm:$0xff] }
 0x2a1   :  { %v3262_v35 = vrot.slane %v3261_v56, 2  ;;  %v3549_v18 = vmul.f32 %v3485_v59, %v3485_v59  ;;  %v3316_v19 = vsub.f32 %v14063_v11, %v9629_v29  ;;  %v3378_v32 = vmul.f32 %v3314_v52, %v3314_v52  ;;  %v14066_v59 = vld [vmem:[#allocation169_spill] sm:$0xff]  ;;  %v14141_v11 = vld [vmem:[#allocation68_spill] sm:$0xff] }
 0x2a2   :  { %v3439_v38 = vadd.f32 %v3438_v8, %v3376_v57  ;;  %v3611_v54 = vadd.f32 %v3610_v44, %v3548_v16  ;;  %v3488_v31 = vsub.f32 %v14064_v43, %v9629_v29  ;;  %v3550_v58 = vmul.f32 %v3486_v48, %v3486_v48  ;;  %v14065_v8 = vld [vmem:[#allocation214_spill] sm:$0xff]  ;;  %v14068_v48 = vld [vmem:[#allocation173_spill] sm:$0xff] }
 0x2a3   :  { %v3263_v20 = vadd.f32 %v3262_v35, %v3261_v56  ;;  %v3067_v15 = vadd.f32 %v3066_v9, %v3065_v26  ;;  %v3317_v21 = vsub.f32 %v14065_v8, %v9629_v29  ;;  %v3379_v57 = vmul.f32 %v3315_v36, %v3315_v36  ;;  %v14140_v8 = vld [vmem:[#allocation64_spill] sm:$0xff] }
 0x2a4   :  { %v3440_v45 = vadd.f32 %v3439_v38, %v3377_v25  ;;  %v3612_v55 = vadd.f32 %v3611_v54, %v3549_v18  ;;  %v3489_v35 = vsub.f32 %v14066_v59, %v9629_v29  ;;  %v3551_v56 = vmul.f32 %v3487_v4, %v3487_v4  ;;  %v14067_v38 = vld [vmem:[#allocation218_spill] sm:$0xff] }
 0x2a5   :  { %v3264_v28 = vrot.slane %v3263_v20, 1  ;;  %v3318_v52 = vsub.f32 %v14067_v38, %v9629_v29  ;;  %v3380_v25 = vmul.f32 %v3316_v19, %v3316_v19  ;;  %v3490_v26 = vsub.f32 %v14068_v48, %v9629_v29  ;;  %v14071_v19 = vld [vmem:[#allocation228_spill] sm:$0xff]  ;;  %v14139_v38 = vld [vmem:[#allocation58_spill] sm:$0xff] }
 0x2a6   :  { %v3441_v30 = vadd.f32 %v3440_v45, %v3378_v32  ;;  %v3613_v16 = vadd.f32 %v3612_v55, %v3550_v58  ;;  %v3552_v9 = vmul.f32 %v3488_v31, %v3488_v31  ;;  %v14069_v45 = vld [vmem:[#allocation224_spill] sm:$0xff]  ;;  %v3381_v32 = vmul.f32 %v3317_v21, %v3317_v21  ;;  %v14070_v55 = vld [vmem:[#allocation167_spill] sm:$0xff] }
 0x2a7   :  { %v3265_v44 = vadd.f32 %v3264_v28, %v3263_v20  ;;  %v3319_v36 = vsub.f32 %v14069_v45, %v9629_v29  ;;  %v3491_v28 = vsub.f32 %v14070_v55, %v9629_v29  ;;  %v3553_v4 = vmul.f32 %v3489_v35, %v3489_v35  ;;  %v14072_v31 = vld [vmem:[#allocation171_spill] sm:$0xff]  ;;  %v14138_v45 = vld [vmem:[#allocation54_spill] sm:$0xff] }
 0x2a8   :  { %v3442_v43 = vadd.f32 %v3441_v30, %v3379_v57  ;;  %v3614_v18 = vadd.f32 %v3613_v16, %v3551_v56  ;;  %v3320_v30 = vsub.f32 %v14071_v19, %v9629_v29  ;;  %v3382_v58 = vmul.f32 %v3318_v52, %v3318_v52 }
 0x2a9   :  { %v10326_v54 = vadd.f32 %v3265_v44, %v3067_v15  ;;  %v3492_v56 = vsub.f32 %v14072_v31, %v9629_v29  ;;  %v3554_v15 = vmul.f32 %v3490_v26, %v3490_v26  ;;  %v14073_v44 = vld [vmem:[#allocation222_spill] sm:$0xff]  ;;  %v3383_v21 = vmul.f32 %v3319_v36, %v3319_v36 }
 0x2aa   :  { %v3443_v59 = vadd.f32 %v3442_v43, %v3380_v25  ;;  %v3615_v20 = vadd.f32 %v3614_v18, %v3552_v9  ;;  %v3321_v48 = vsub.f32 %v14073_v44, %v9629_v29  ;;  %v14074_v25 = vld [vmem:[#allocation177_spill] sm:$0xff]  ;;  %v3555_v35 = vmul.f32 %v3491_v28, %v3491_v28  ;;  %v14075_v18 = vld [vmem:[#allocation226_spill] sm:$0xff] }
 0x2ab   :  { %v3493_v55 = vsub.f32 %v14074_v25, %v9629_v29  ;;  %v3322_v19 = vsub.f32 %v14075_v18, %v9629_v29  ;;  %v3384_v52 = vmul.f32 %v3320_v30, %v3320_v30  ;;  %v3556_v26 = vmul.f32 %v3492_v56, %v3492_v56 }
 0x2ac   :  { %v3444_v57 = vadd.f32 %v3443_v59, %v3381_v32  ;;  %v3616_v16 = vadd.f32 %v3615_v20, %v3553_v4  ;;  %v14076_v32 = vld [vmem:[#allocation181_spill] sm:$0xff]  ;;  %v14077_v20 = vld [vmem:[#allocation232_spill] sm:$0xff]  ;;  %v3385_v36 = vmul.f32 %v3321_v48, %v3321_v48 }
 0x2ad   :  { %v3494_v31 = vsub.f32 %v14076_v32, %v9629_v29  ;;  %v3323_v44 = vsub.f32 %v14077_v20, %v9629_v29  ;;  %v3557_v28 = vmul.f32 %v3493_v55, %v3493_v55  ;;  %v3386_v30 = vmul.f32 %v3322_v19, %v3322_v19 }
 0x2ae   :  { %v3445_v43 = vadd.f32 %v3444_v57, %v3382_v58  ;;  %v3617_v9 = vadd.f32 %v3616_v16, %v3554_v15  ;;  %v14078_v57 = vld [vmem:[#allocation175_spill] sm:$0xff]  ;;  %v14079_v16 = vld [vmem:[#allocation236_spill] sm:$0xff] }
 0x2af   :  { %v3495_v25 = vsub.f32 %v14078_v57, %v9629_v29  ;;  %v3324_v18 = vsub.f32 %v14079_v16, %v9629_v29  ;;  %v3558_v56 = vmul.f32 %v3494_v31, %v3494_v31  ;;  %v3387_v48 = vmul.f32 %v3323_v44, %v3323_v44 }
 0x2b0   :  { %v3446_v59 = vadd.f32 %v3445_v43, %v3383_v21  ;;  %v3618_v4 = vadd.f32 %v3617_v9, %v3555_v35  ;;  %v14080_v43 = vld [vmem:[#allocation179_spill] sm:$0xff]  ;;  %v14081_v9 = vld [vmem:[#allocation230_spill] sm:$0xff] }
 0x2b1   :  { %v3496_v32 = vsub.f32 %v14080_v43, %v9629_v29  ;;  %v3325_v20 = vsub.f32 %v14081_v9, %v9629_v29  ;;  %v3559_v55 = vmul.f32 %v3495_v25, %v3495_v25  ;;  %v3388_v19 = vmul.f32 %v3324_v18, %v3324_v18 }
 0x2b2   :  { %v3447_v58 = vadd.f32 %v3446_v59, %v3384_v52  ;;  %v3619_v15 = vadd.f32 %v3618_v4, %v3556_v26  ;;  %v14082_v59 = vld [vmem:[#allocation185_spill] sm:$0xff]  ;;  %v14083_v4 = vld [vmem:[#allocation234_spill] sm:$0xff] }
 0x2b3   :  { %v3497_v57 = vsub.f32 %v14082_v59, %v9629_v29  ;;  %v3326_v16 = vsub.f32 %v14083_v4, %v9629_v29  ;;  %v3560_v31 = vmul.f32 %v3496_v32, %v3496_v32  ;;  %v3389_v44 = vmul.f32 %v3325_v20, %v3325_v20 }
 0x2b4   :  { %v3448_v21 = vadd.f32 %v3447_v58, %v3385_v36  ;;  %v3620_v35 = vadd.f32 %v3619_v15, %v3557_v28  ;;  %v14084_v58 = vld [vmem:[#allocation189_spill] sm:$0xff]  ;;  %v14085_v15 = vld [vmem:[#allocation240_spill] sm:$0xff] }
 0x2b5   :  { %v3498_v43 = vsub.f32 %v14084_v58, %v9629_v29  ;;  %v3327_v9 = vsub.f32 %v14085_v15, %v9629_v29  ;;  %v3561_v25 = vmul.f32 %v3497_v57, %v3497_v57  ;;  %v3390_v18 = vmul.f32 %v3326_v16, %v3326_v16  ;;  %v14137_v15 = vld [vmem:[#allocation60_spill] sm:$0xff] }
 0x2b6   :  { %v3449_v52 = vadd.f32 %v3448_v21, %v3386_v30  ;;  %v3621_v26 = vadd.f32 %v3620_v35, %v3558_v56  ;;  %v14086_v21 = vld [vmem:[#allocation183_spill] sm:$0xff]  ;;  %v14087_v35 = vld [vmem:[#allocation244_spill] sm:$0xff] }
 0x2b7   :  { %v3499_v59 = vsub.f32 %v14086_v21, %v9629_v29  ;;  %v3328_v4 = vsub.f32 %v14087_v35, %v9629_v29  ;;  %v3562_v32 = vmul.f32 %v3498_v43, %v3498_v43  ;;  %v3391_v20 = vmul.f32 %v3327_v9, %v3327_v9  ;;  %v14091_v9 = vld [vmem:[#allocation191_spill] sm:$0xff] }
 0x2b8   :  { %v3450_v36 = vadd.f32 %v3449_v52, %v3387_v48  ;;  %v3622_v28 = vadd.f32 %v3621_v26, %v3559_v55  ;;  %v14088_v52 = vld [vmem:[#allocation187_spill] sm:$0xff]  ;;  %v3329_v26 = vsub.f32 %v9602_v61, %v9629_v29 }
 0x2b9   :  { %v3500_v58 = vsub.f32 %v14088_v52, %v9629_v29  ;;  %v3563_v57 = vmul.f32 %v3499_v59, %v3499_v59  ;;  %v3392_v16 = vmul.f32 %v3328_v4, %v3328_v4 }
 0x2ba   :  { %v3451_v30 = vadd.f32 %v3450_v36, %v3388_v19  ;;  %v3623_v56 = vadd.f32 %v3622_v28, %v3560_v31  ;;  %v14089_v36 = vld [vmem:[#allocation193_spill] sm:$0xff]  ;;  %v3330_v28 = vsub.f32 %v9613_v33, %v9629_v29 }
 0x2bb   :  { %v3501_v21 = vsub.f32 %v14089_v36, %v9629_v29  ;;  %v3564_v43 = vmul.f32 %v3500_v58, %v3500_v58 }
 0x2bc   :  { %v3452_v48 = vadd.f32 %v3451_v30, %v3389_v44  ;;  %v3624_v55 = vadd.f32 %v3623_v56, %v3561_v25  ;;  %v14090_v30 = vld [vmem:[#allocation197_spill] sm:$0xff]  ;;  %v3393_v56 = vmul.f32 %v3329_v26, %v3329_v26  ;;  %v3394_v36 = vmul.f32 %v3330_v28, %v3330_v28 }
 0x2bd   :  { %v3502_v52 = vsub.f32 %v14090_v30, %v9629_v29 }
 0x2be   :  { %v3453_v19 = vadd.f32 %v3452_v48, %v3390_v18  ;;  %v3625_v31 = vadd.f32 %v3624_v55, %v3562_v32  ;;  %v3503_v18 = vsub.f32 %v14091_v9, %v9629_v29  ;;  %v3565_v48 = vmul.f32 %v3501_v21, %v3501_v21  ;;  %v14092_v32 = vld [vmem:[#allocation195_spill] sm:$0xff]  ;;  %v14136_v9 = vld [vmem:[#allocation56_spill] sm:$0xff] }
 0x2bf   :  { %v3504_v55 = vsub.f32 %v14092_v32, %v9629_v29  ;;  %v3566_v33 = vmul.f32 %v3502_v52, %v3502_v52  ;;  %v14135_v32 = vld [vmem:[#allocation50_spill] sm:$0xff] }
 0x2c0   :  { %v3454_v44 = vadd.f32 %v3453_v19, %v3391_v20  ;;  %v3626_v25 = vadd.f32 %v3625_v31, %v3563_v57  ;;  %v14093_v19 = vld [vmem:[#allocation201_spill] sm:$0xff]  ;;  %v3567_v58 = vmul.f32 %v3503_v18, %v3503_v18 }
 0x2c1   :  { %v3505_v30 = vsub.f32 %v14093_v19, %v9629_v29  ;;  %v14094_v31 = vld [vmem:[#allocation205_spill] sm:$0xff] }
 0x2c2   :  { %v3455_v35 = vadd.f32 %v3454_v44, %v3392_v16  ;;  %v3627_v61 = vadd.f32 %v3626_v25, %v3564_v43  ;;  %v3506_v16 = vsub.f32 %v14094_v31, %v9629_v29  ;;  %v3568_v44 = vmul.f32 %v3504_v55, %v3504_v55 }
 0x2c3   :  { %v3569_v25 = vmul.f32 %v3505_v30, %v3505_v30 }
 0x2c4   :  { %v3456_v59 = vadd.f32 %v3455_v35, %v3393_v56  ;;  %v3628_v4 = vadd.f32 %v3627_v61, %v3565_v48  ;;  %v14095_v35 = vld [vmem:[#allocation199_spill] sm:$0xff]  ;;  %v3570_v48 = vmul.f32 %v3506_v16, %v3506_v16 }
 0x2c5   :  { %v3507_v28 = vsub.f32 %v14095_v35, %v9629_v29  ;;  %v14096_v61 = vld [vmem:[#allocation203_spill] sm:$0xff] }
 0x2c6   :  { %v3457_v20 = vadd.f32 %v3456_v59, %v3394_v36  ;;  %v3629_v57 = vadd.f32 %v3628_v4, %v3566_v33  ;;  %v3508_v36 = vsub.f32 %v14096_v61, %v9629_v29  ;;  %v14097_v33 = vld [vmem:[#allocation209_spill] sm:$0xff] }
 0x2c7   :  { %v3509_v4 = vsub.f32 %v14097_v33, %v9629_v29  ;;  %v3571_v19 = vmul.f32 %v3507_v28, %v3507_v28  ;;  %v14134_v33 = vld [vmem:[#allocation46_spill] sm:$0xff] }
 0x2c8   :  { %v3458_v26 = vrot.slane %v3457_v20, 4  ;;  %v3630_v21 = vadd.f32 %v3629_v57, %v3567_v58  ;;  %v3572_v57 = vmul.f32 %v3508_v36, %v3508_v36 }
 0x2c9   :  { %v3573_v35 = vmul.f32 %v3509_v4, %v3509_v4  ;;  %v14103_v4 = vld [vmem:[#allocation215_spill] sm:$0xff] }
 0x2ca   :  { %v3459_v43 = vadd.f32 %v3458_v26, %v3457_v20  ;;  %v3631_v56 = vadd.f32 %v3630_v21, %v3568_v44  ;;  %v14098_v20 = vld [vmem:[#allocation213_spill] sm:$0xff]  ;;  %v14099_v44 = vld [vmem:[#allocation207_spill] sm:$0xff] }
 0x2cb   :  { %v3510_v58 = vsub.f32 %v14098_v20, %v9629_v29  ;;  %v3511_v21 = vsub.f32 %v14099_v44, %v9629_v29  ;;  %v14132_v44 = vld [vmem:[#allocation48_spill] sm:$0xff] }
 0x2cc   :  { %v3460_v52 = vrot.slane %v3459_v43, 2  ;;  %v3632_v59 = vadd.f32 %v3631_v56, %v3569_v25  ;;  %v14133_v20 = vld [vmem:[#allocation52_spill] sm:$0xff] }
 0x2cd   :  { %v3574_v28 = vmul.f32 %v3510_v58, %v3510_v58 }
 0x2ce   :  { %v3461_v18 = vadd.f32 %v3460_v52, %v3459_v43  ;;  %v3633_v31 = vadd.f32 %v3632_v59, %v3570_v48  ;;  %v14100_v43 = vld [vmem:[#allocation211_spill] sm:$0xff]  ;;  %v14101_v52 = vld [vmem:[#allocation217_spill] sm:$0xff]  ;;  %v3575_v59 = vmul.f32 %v3511_v21, %v3511_v21 }
 0x2cf   :  { %v3512_v25 = vsub.f32 %v14100_v43, %v9629_v29  ;;  %v3513_v48 = vsub.f32 %v14101_v52, %v9629_v29 }
 0x2d0   :  { %v3462_v55 = vrot.slane %v3461_v18, 1  ;;  %v3634_v26 = vadd.f32 %v3633_v31, %v3571_v19  ;;  %v14102_v19 = vld [vmem:[#allocation221_spill] sm:$0xff] }
 0x2d1   :  { %v3514_v31 = vsub.f32 %v14102_v19, %v9629_v29 }
 0x2d2   :  { %v3463_v30 = vadd.f32 %v3462_v55, %v3461_v18  ;;  %v3635_v61 = vadd.f32 %v3634_v26, %v3572_v57  ;;  %v3576_v18 = vmul.f32 %v3512_v25, %v3512_v25  ;;  %v3515_v57 = vsub.f32 %v14103_v4, %v9629_v29 }
 0x2d3   :  { %v3578_v58 = vmul.f32 %v3514_v31, %v3514_v31 }
 0x2d4   :  { %v10395_v16 = vadd.f32 %v3463_v30, %v10326_v54  ;;  %v3636_v56 = vadd.f32 %v3635_v61, %v3573_v35  ;;  %v3577_v54 = vmul.f32 %v3513_v48, %v3513_v48  ;;  %v14104_v30 = vld [vmem:[#allocation219_spill] sm:$0xff]  ;;  %v14105_v61 = vld [vmem:[#allocation225_spill] sm:$0xff]  ;;  %v3579_v21 = vmul.f32 %v3515_v57, %v3515_v57 }
 0x2d5   :  { %v3516_v43 = vsub.f32 %v14104_v30, %v9629_v29  ;;  %v3517_v52 = vsub.f32 %v14105_v61, %v9629_v29 }
 0x2d6   :  { %v3637_v36 = vadd.f32 %v3636_v56, %v3574_v28  ;;  %v14106_v56 = vld [vmem:[#allocation229_spill] sm:$0xff] }
 0x2d7   :  { %v3518_v19 = vsub.f32 %v14106_v56, %v9629_v29  ;;  %v3580_v25 = vmul.f32 %v3516_v43, %v3516_v43  ;;  %v3581_v48 = vmul.f32 %v3517_v52, %v3517_v52 }
 0x2d8   :  { %v3638_v55 = vadd.f32 %v3637_v36, %v3575_v59  ;;  %v14107_v36 = vld [vmem:[#allocation223_spill] sm:$0xff] }
 0x2d9   :  { %v3519_v4 = vsub.f32 %v14107_v36, %v9629_v29  ;;  %v3582_v31 = vmul.f32 %v3518_v19, %v3518_v19 }
 0x2da   :  { %v3639_v26 = vadd.f32 %v3638_v55, %v3576_v18  ;;  %v14108_v55 = vld [vmem:[#allocation227_spill] sm:$0xff] }
 0x2db   :  { %v3520_v30 = vsub.f32 %v14108_v55, %v9629_v29  ;;  %v3583_v57 = vmul.f32 %v3519_v4, %v3519_v4 }
 0x2dc   :  { %v3640_v35 = vadd.f32 %v3639_v26, %v3577_v54  ;;  %v14109_v26 = vld [vmem:[#allocation233_spill] sm:$0xff] }
 0x2dd   :  { %v3521_v61 = vsub.f32 %v14109_v26, %v9629_v29  ;;  %v3584_v43 = vmul.f32 %v3520_v30, %v3520_v30 }
 0x2de   :  { %v3641_v28 = vadd.f32 %v3640_v35, %v3578_v58  ;;  %v14110_v35 = vld [vmem:[#allocation237_spill] sm:$0xff] }
 0x2df   :  { %v3522_v56 = vsub.f32 %v14110_v35, %v9629_v29  ;;  %v3585_v52 = vmul.f32 %v3521_v61, %v3521_v61 }
 0x2e0   :  { %v3642_v59 = vadd.f32 %v3641_v28, %v3579_v21  ;;  %v14111_v28 = vld [vmem:[#allocation231_spill] sm:$0xff] }
 0x2e1   :  { %v3523_v36 = vsub.f32 %v14111_v28, %v9629_v29  ;;  %v3586_v19 = vmul.f32 %v3522_v56, %v3522_v56 }
 0x2e2   :  { %v3643_v18 = vadd.f32 %v3642_v59, %v3580_v25  ;;  %v14112_v59 = vld [vmem:[#allocation235_spill] sm:$0xff] }
 0x2e3   :  { %v3524_v55 = vsub.f32 %v14112_v59, %v9629_v29  ;;  %v3587_v4 = vmul.f32 %v3523_v36, %v3523_v36 }
 0x2e4   :  { %v3644_v54 = vadd.f32 %v3643_v18, %v3581_v48  ;;  %v14113_v18 = vld [vmem:[#allocation241_spill] sm:$0xff] }
 0x2e5   :  { %v3525_v26 = vsub.f32 %v14113_v18, %v9629_v29  ;;  %v3588_v30 = vmul.f32 %v3524_v55, %v3524_v55 }
 0x2e6   :  { %v3645_v58 = vadd.f32 %v3644_v54, %v3582_v31  ;;  %v14114_v54 = vld [vmem:[#allocation245_spill] sm:$0xff] }
 0x2e7   :  { %v3526_v35 = vsub.f32 %v14114_v54, %v9629_v29  ;;  %v3589_v61 = vmul.f32 %v3525_v26, %v3525_v26 }
 0x2e8   :  { %v3646_v21 = vadd.f32 %v3645_v58, %v3583_v57  ;;  %v3527_v58 = vsub.f32 %v9605_v24, %v9629_v29 }
 0x2e9   :  { %v3590_v56 = vmul.f32 %v3526_v35, %v3526_v35  ;;  %v3666_v35 = vld [vmem:[%s13177_s2] sm:$0x1] }
 0x2ea   :  { %v3647_v25 = vadd.f32 %v3646_v21, %v3584_v43  ;;  %v3528_v21 = vsub.f32 %v9616_v41, %v9629_v29 }
 0x2ec   :  { %v3648_v48 = vadd.f32 %v3647_v25, %v3585_v52  ;;  %v3591_v25 = vmul.f32 %v3527_v58, %v3527_v58  ;;  %v3592_v18 = vmul.f32 %v3528_v21, %v3528_v21 }
 0x2ee   :  { %v3649_v31 = vadd.f32 %v3648_v48, %v3586_v19 }
 0x2f0   :  { %v3650_v57 = vadd.f32 %v3649_v31, %v3587_v4 }
 0x2f2   :  { %v3651_v43 = vadd.f32 %v3650_v57, %v3588_v30  ;;  %v3671_v57 = vlaneseq }
 0x2f4   :  { %v3652_v52 = vadd.f32 %v3651_v43, %v3589_v61  ;;  %v10432_v41 = vshrl.u32 %v3671_v57, 7 }
 0x2f6   :  { %v3653_v59 = vadd.f32 %v3652_v52, %v3590_v56  ;;  %v14116_v52 = vld [vmem:[#allocation16_spill] sm:$0xff] }
 0x2f8   :  { %v3654_v36 = vadd.f32 %v3653_v59, %v3591_v25  ;;  %v13636_v59 = vsub.s32 0, %v10432_v41  ;;  %v14117_v25 = vld [vmem:[#allocation20_spill] sm:$0xff] }
 0x2fa   :  { %v3655_v19 = vadd.f32 %v3654_v36, %v3592_v18  ;;  %v14118_v36 = vld [vmem:[#allocation14_spill] sm:$0xff] }
 0x2fc   :  { %v3656_v48 = vrot.slane %v3655_v19, 4 }
 0x2fe   :  { %v3657_v28 = vadd.f32 %v3656_v48, %v3655_v19  ;;  %v14119_v19 = vld [vmem:[#allocation18_spill] sm:$0xff]  ;;  %v14120_v48 = vld [vmem:[#allocation24_spill] sm:$0xff] }
 0x300   :  { %v3658_v54 = vrot.slane %v3657_v28, 2 }
 0x302   :  { %v3659_v55 = vadd.f32 %v3658_v54, %v3657_v28  ;;  %v10441_v28 = vld [vmem:[%s13178_s3] sm:$0x1] }
 0x303   :  { %v14130_v54 = vld [vmem:[#allocation38_spill] sm:$0xff] }
 0x304   :  { %v3660_v4 = vrot.slane %v3659_v55, 1 }
 0x306   :  { %v3661_v31 = vadd.f32 %v3660_v4, %v3659_v55  ;;  %v14121_v55 = vld [vmem:[#allocation28_spill] sm:$0xff] }
 0x308   :  { %v3662_v24 = vadd.f32 %v3661_v31, %v10395_v16  ;;  %v14122_v31 = vld [vmem:[#allocation22_spill] sm:$0xff] }
 0x30a   :  { %v3663_v26 = vmul.f32 0.00048828125, %v3662_v24 }
 0x30c   :  { %v3664_v30 = vadd.f32 1e-05, %v3663_v26 }
 0x30e   :  { %8271 = vrsqrt.f32 %v3664_v30  ;;  %v14123_v30 = vld [vmem:[#allocation26_spill] sm:$0xff] }
 0x318   :  { %v8272_v18 = vpop.eup %8271 }
 0x319   :  { %v3667_v58 = vmul.f32 %v8272_v18, %v3666_v35  ;;  %v14124_v35 = vld [vmem:[#allocation32_spill] sm:$0xff] }
 0x31b   :  { %v10444_v24 = vmul.f32 %v3667_v58, %v9629_v29  ;;  %v10448_v16 = vrot.slane %v3667_v58, %v13636_v59  ;;  %v14125_v58 = vld [vmem:[#allocation36_spill] sm:$0xff]  ;;  %v14131_v59 = vld [vmem:[#allocation42_spill] sm:$0xff] }
 0x31d   :  { %14115 = vst [vmem:[#allocation246_spill] sm:$0xff] %v10448_v16  ;;  %v10454_v61 = vmul.f32 %v10448_v16, %v8790_v0  ;;  %v10458_v43 = vmul.f32 %v10448_v16, %v8807_v7  ;;  %v10462_v21 = vmul.f32 %v8786_v62, %v10448_v16  ;;  %v10466_v29 = vmul.f32 %v8797_v3, %v10448_v16 }
 0x31e   :  { %v10470_v56 = vmul.f32 %v10448_v16, %v8829_v17  ;;  %v10474_v0 = vmul.f32 %v10448_v16, %v8849_v27  ;;  %v10478_v7 = vmul.f32 %v8824_v14, %v10448_v16  ;;  %v10482_v62 = vmul.f32 %v8838_v22, %v10448_v16 }
 0x31f   :  { %v10486_v3 = vmul.f32 %v10448_v16, %v8869_v37  ;;  %v10490_v17 = vmul.f32 %v10448_v16, %v8889_v47  ;;  %v10494_v27 = vmul.f32 %v8864_v34, %v10448_v16  ;;  %v10498_v14 = vmul.f32 %v8878_v42, %v10448_v16 }
 0x320   :  { %v10502_v22 = vmul.f32 %v10448_v16, %v14116_v52  ;;  %v10506_v37 = vmul.f32 %v10448_v16, %v14117_v25  ;;  %v10510_v47 = vmul.f32 %v14118_v36, %v10448_v16  ;;  %v10514_v34 = vmul.f32 %v14119_v19, %v10448_v16  ;;  %v14126_v25 = vld [vmem:[#allocation30_spill] sm:$0xff] }
 0x321   :  { %v10518_v42 = vmul.f32 %v10448_v16, %v14120_v48  ;;  %v10522_v4 = vmul.f32 %v10448_v16, %v14121_v55  ;;  %v10526_v26 = vmul.f32 %v14122_v31, %v10448_v16  ;;  %v10530_v57 = vmul.f32 %v14123_v30, %v10448_v16  ;;  %v14127_v19 = vld [vmem:[#allocation34_spill] sm:$0xff]  ;;  %v14128_v55 = vld [vmem:[#allocation40_spill] sm:$0xff] }
 0x322   :  { %v10534_v18 = vmul.f32 %v10448_v16, %v14124_v35  ;;  %v10538_v52 = vmul.f32 %v10448_v16, %v14125_v58  ;;  %v10542_v36 = vmul.f32 %v14126_v25, %v10448_v16  ;;  %v10546_v48 = vmul.f32 %v14127_v19, %v10448_v16  ;;  %v14129_v30 = vld [vmem:[#allocation44_spill] sm:$0xff] }
 0x323   :  { %v10550_v31 = vmul.f32 %v10448_v16, %v14128_v55  ;;  %v10554_v35 = vmul.f32 %v10448_v16, %v14129_v30  ;;  %v10558_v58 = vmul.f32 %v14130_v54, %v10448_v16  ;;  %v10562_v25 = vmul.f32 %v14131_v59, %v10448_v16 }
 0x324   :  { %v10566_v19 = vmul.f32 %v10448_v16, %v14132_v44  ;;  %v10570_v55 = vmul.f32 %v10448_v16, %v14133_v20  ;;  %v10574_v30 = vmul.f32 %v14134_v33, %v10448_v16  ;;  %v10578_v54 = vmul.f32 %v14135_v32, %v10448_v16 }
 0x325   :  { %v10582_v59 = vmul.f32 %v10448_v16, %v14136_v9  ;;  %v10586_v44 = vmul.f32 %v10448_v16, %v14137_v15  ;;  %v10590_v20 = vmul.f32 %v14138_v45, %v10448_v16  ;;  %v10594_v33 = vmul.f32 %v14139_v38, %v10448_v16 }
 0x326   :  { %v10598_v32 = vmul.f32 %v10448_v16, %v14140_v8  ;;  %v10602_v9 = vmul.f32 %v10448_v16, %v14141_v11  ;;  %v10606_v15 = vmul.f32 %v14142_v23, %v10448_v16  ;;  %v10610_v45 = vmul.f32 %v14143_v1, %v10448_v16 }
 0x327   :  { %v10614_v38 = vmul.f32 %v10448_v16, %v14144_v49  ;;  %v10618_v8 = vmul.f32 %v10448_v16, %v14145_v51  ;;  %v10622_v11 = vmul.f32 %v14146_v53, %v10448_v16  ;;  %v10626_v23 = vmul.f32 %v14147_v5, %v10448_v16 }
 0x328   :  { %v10630_v1 = vmul.f32 %v10448_v16, %v14148_v46  ;;  %v10634_v49 = vmul.f32 %v10448_v16, %v14149_v13  ;;  %v10638_v51 = vmul.f32 %v14150_v39, %v10448_v16  ;;  %v10642_v53 = vmul.f32 %v14151_v12, %v10448_v16 }
 0x329   :  { %v10646_v5 = vmul.f32 %v10448_v16, %v14152_v6  ;;  %v10650_v46 = vmul.f32 %v10448_v16, %v14153_v50  ;;  %v10654_v13 = vmul.f32 %v14155_v40, %v10448_v16  ;;  %v10658_v39 = vmul.f32 %v14157_v60, %v10448_v16 }
 0x32a   :  { %v10662_v12 = vmul.f32 %v10448_v16, %v14159_v2  ;;  %v10666_v6 = vmul.f32 %v10448_v16, %v14161_v10  ;;  %v10670_v50 = vmul.f32 %v14163_v63, %v10448_v16 }
 0x32b   :  { %14154 = vst [vmem:[#allocation16_spill] sm:$0xff] %v10650_v46  ;;  %14156 = vst [vmem:[#allocation20_spill] sm:$0xff] %v10654_v13  ;;  %v14165_v46 = vld [vmem:[#allocation98_spill] sm:$0xff]  ;;  %v14167_v13 = vld [vmem:[#allocation104_spill] sm:$0xff] }
 0x32c   :  { %14158 = vst [vmem:[#allocation14_spill] sm:$0xff] %v10658_v39  ;;  %14160 = vst [vmem:[#allocation18_spill] sm:$0xff] %v10662_v12  ;;  %v10674_v40 = vmul.f32 %v14165_v46, %v10448_v16  ;;  %v10678_v60 = vmul.f32 %v10448_v16, %v14167_v13  ;;  %v14169_v39 = vld [vmem:[#allocation108_spill] sm:$0xff]  ;;  %v14171_v12 = vld [vmem:[#allocation102_spill] sm:$0xff] }
 0x32d   :  { %14162 = vst [vmem:[#allocation24_spill] sm:$0xff] %v10666_v6  ;;  %14164 = vst [vmem:[#allocation28_spill] sm:$0xff] %v10670_v50  ;;  %v10682_v2 = vmul.f32 %v10448_v16, %v14169_v39  ;;  %v10686_v10 = vmul.f32 %v14171_v12, %v10448_v16  ;;  %v14173_v6 = vld [vmem:[#allocation106_spill] sm:$0xff]  ;;  %v14175_v50 = vld [vmem:[#allocation112_spill] sm:$0xff] }
 0x32e   :  { %14166 = vst [vmem:[#allocation22_spill] sm:$0xff] %v10674_v40  ;;  %14168 = vst [vmem:[#allocation26_spill] sm:$0xff] %v10678_v60  ;;  %v10690_v63 = vmul.f32 %v14173_v6, %v10448_v16  ;;  %v10694_v46 = vmul.f32 %v10448_v16, %v14175_v50  ;;  %v14177_v40 = vld [vmem:[#allocation116_spill] sm:$0xff]  ;;  %v14179_v60 = vld [vmem:[#allocation110_spill] sm:$0xff]  ;;  %v14184_v6 = vsub.f32 %v10441_v28, %v10444_v24 }
 0x32f   :  { %14170 = vst [vmem:[#allocation32_spill] sm:$0xff] %v10682_v2  ;;  %14172 = vst [vmem:[#allocation36_spill] sm:$0xff] %v10686_v10  ;;  %v10698_v13 = vmul.f32 %v10448_v16, %v14177_v40  ;;  %v10702_v39 = vmul.f32 %v14179_v60, %v10448_v16  ;;  %v14181_v2 = vld [vmem:[#allocation114_spill] sm:$0xff]  ;;  %v14183_v10 = vsub.s32 0, %v10432_v41  ;;  %v14186_v50 = vld [vmem:[#allocation3_spill] sm:$0xff] }
 0x330   :  { %14174 = vst [vmem:[#allocation30_spill] sm:$0xff] %v10690_v63  ;;  %14176 = vst [vmem:[#allocation34_spill] sm:$0xff] %v10694_v46  ;;  %v10706_v12 = vmul.f32 %v14181_v2, %v10448_v16  ;;  %v10717_v46 = vmul.f32 %v10448_v16, %v14186_v50  ;;  %v14188_v40 = vld [vmem:[#allocation5_spill] sm:$0xff]  ;;  %v14190_v60 = vld [vmem:[#allocation2_spill] sm:$0xff] }
 0x331   :  { %14178 = vst [vmem:[#allocation40_spill] sm:$0xff] %v10698_v13  ;;  %14180 = vst [vmem:[#allocation44_spill] sm:$0xff] %v10702_v39  ;;  %v10713_v63 = vrot.slane %v14184_v6, %v14183_v10  ;;  %v10721_v13 = vmul.f32 %v10448_v16, %v14188_v40  ;;  %v10725_v39 = vmul.f32 %v14190_v60, %v10448_v16  ;;  %v14192_v2 = vld [vmem:[#allocation4_spill] sm:$0xff]  ;;  %v14196_v24 = vld [vmem:[#allocation9_spill] sm:$0xff] }
 0x332   :  { %14182 = vst [vmem:[#allocation38_spill] sm:$0xff] %v10706_v12  ;;  %14187 = vst [vmem:[#allocation48_spill] sm:$0xff] %v10717_v46  ;;  %v10729_v41 = vmul.f32 %v14192_v2, %v10448_v16  ;;  %v14194_v12 = vld [vmem:[#allocation7_spill] sm:$0xff]  ;;  %v10737_v10 = vmul.f32 %v10448_v16, %v14196_v24  ;;  %v14203_v2 = vld [vmem:[#allocation16_spill] sm:$0xff] }
 0x333   :  { %14185 = vst [vmem:[#allocation42_spill] sm:$0xff] %v10713_v63  ;;  %14189 = vst [vmem:[#allocation52_spill] sm:$0xff] %v10721_v13  ;;  %v10733_v28 = vmul.f32 %v10448_v16, %v14194_v12  ;;  %v10741_v6 = vadd.f32 %v10713_v63, %v10454_v61  ;;  %v10745_v50 = vadd.f32 %v10713_v63, %v10458_v43  ;;  %v14204_v24 = vld [vmem:[#allocation20_spill] sm:$0xff] }
 0x334   :  { %14191 = vst [vmem:[#allocation46_spill] sm:$0xff] %v10725_v39  ;;  %14193 = vst [vmem:[#allocation50_spill] sm:$0xff] %v10729_v41  ;;  %v10749_v40 = vadd.f32 %v10713_v63, %v10462_v21  ;;  %v10753_v12 = vadd.f32 %v10713_v63, %v10466_v29  ;;  %v10757_v60 = vadd.f32 %v10713_v63, %v10470_v56  ;;  %v14208_v41 = vld [vmem:[#allocation24_spill] sm:$0xff] }
 0x335   :  { %14195 = vst [vmem:[#allocation56_spill] sm:$0xff] %v10733_v28  ;;  %14197 = vst [vmem:[#allocation60_spill] sm:$0xff] %v10737_v10  ;;  %v10761_v61 = vadd.f32 %v10713_v63, %v10474_v0  ;;  %v10765_v43 = vadd.f32 %v10713_v63, %v10478_v7  ;;  %v10769_v21 = vadd.f32 %v10713_v63, %v10482_v62  ;;  %v14205_v10 = vld [vmem:[#allocation14_spill] sm:$0xff]  ;;  %v14210_v39 = vld [vmem:[#allocation28_spill] sm:$0xff] }
 0x336   :  { %14198 = vst [vmem:[#allocation54_spill] sm:$0xff] %v10741_v6  ;;  %14199 = vst [vmem:[#allocation58_spill] sm:$0xff] %v10745_v50  ;;  %v10773_v29 = vadd.f32 %v10713_v63, %v10486_v3  ;;  %v10777_v56 = vadd.f32 %v10713_v63, %v10490_v17  ;;  %v10781_v0 = vadd.f32 %v10713_v63, %v10494_v27  ;;  %v14206_v28 = vld [vmem:[#allocation18_spill] sm:$0xff]  ;;  %v14216_v16 = vld [vmem:[#allocation32_spill] sm:$0xff] }
 0x337   :  { %14200 = vst [vmem:[#allocation64_spill] sm:$0xff] %v10749_v40  ;;  %14201 = vst [vmem:[#allocation68_spill] sm:$0xff] %v10753_v12  ;;  %v10785_v7 = vadd.f32 %v10713_v63, %v10498_v14  ;;  %v10789_v62 = vadd.f32 %v10713_v63, %v10502_v22  ;;  %v10793_v3 = vadd.f32 %v10713_v63, %v10506_v37  ;;  %v14212_v13 = vld [vmem:[#allocation22_spill] sm:$0xff] }
 0x338   :  { %14202 = vst [vmem:[#allocation62_spill] sm:$0xff] %v10757_v60  ;;  %v10797_v17 = vadd.f32 %v10713_v63, %v10510_v47  ;;  %v10801_v27 = vadd.f32 %v10713_v63, %v10514_v34  ;;  %v10805_v14 = vadd.f32 %v10713_v63, %v10518_v42  ;;  %v10809_v22 = vadd.f32 %v10713_v63, %v10522_v4  ;;  %v14214_v46 = vld [vmem:[#allocation26_spill] sm:$0xff] }
 0x339   :  { %v10813_v37 = vadd.f32 %v10713_v63, %v10526_v26  ;;  %v10817_v47 = vadd.f32 %v10713_v63, %v10530_v57  ;;  %v10821_v34 = vadd.f32 %v10713_v63, %v10534_v18  ;;  %v10825_v42 = vadd.f32 %v10713_v63, %v10538_v52 }
 0x33a   :  { %v10829_v4 = vadd.f32 %v10713_v63, %v10542_v36  ;;  %v10833_v26 = vadd.f32 %v10713_v63, %v10546_v48  ;;  %v10837_v57 = vadd.f32 %v10713_v63, %v10550_v31  ;;  %v10841_v18 = vadd.f32 %v10713_v63, %v10554_v35 }
 0x33b   :  { %v10845_v52 = vadd.f32 %v10713_v63, %v10558_v58  ;;  %v10849_v36 = vadd.f32 %v10713_v63, %v10562_v25  ;;  %v10853_v48 = vadd.f32 %v10713_v63, %v10566_v19  ;;  %v10857_v31 = vadd.f32 %v10713_v63, %v10570_v55 }
 0x33c   :  { %v10861_v35 = vadd.f32 %v10713_v63, %v10574_v30  ;;  %v10865_v58 = vadd.f32 %v10713_v63, %v10578_v54  ;;  %v10869_v25 = vadd.f32 %v10713_v63, %v10582_v59  ;;  %v10873_v19 = vadd.f32 %v10713_v63, %v10586_v44 }
 0x33d   :  { %v10877_v55 = vadd.f32 %v10713_v63, %v10590_v20  ;;  %v10881_v30 = vadd.f32 %v10713_v63, %v10594_v33  ;;  %v10885_v54 = vadd.f32 %v10713_v63, %v10598_v32  ;;  %v10889_v59 = vadd.f32 %v10713_v63, %v10602_v9 }
 0x33e   :  { %v10893_v44 = vadd.f32 %v10713_v63, %v10606_v15  ;;  %v10897_v20 = vadd.f32 %v10713_v63, %v10610_v45  ;;  %v10901_v33 = vadd.f32 %v10713_v63, %v10614_v38  ;;  %v10905_v32 = vadd.f32 %v10713_v63, %v10618_v8 }
 0x33f   :  { %v10909_v9 = vadd.f32 %v10713_v63, %v10622_v11  ;;  %v10913_v15 = vadd.f32 %v10713_v63, %v10626_v23  ;;  %v10917_v45 = vadd.f32 %v10713_v63, %v10630_v1  ;;  %v10921_v38 = vadd.f32 %v10713_v63, %v10634_v49 }
 0x340   :  { %v10925_v8 = vadd.f32 %v10713_v63, %v10638_v51  ;;  %v10929_v11 = vadd.f32 %v10713_v63, %v10642_v53  ;;  %v10933_v23 = vadd.f32 %v10713_v63, %v10646_v5  ;;  %v10937_v1 = vadd.f32 %v10713_v63, %v14203_v2 }
 0x341   :  { %v10941_v49 = vadd.f32 %v10713_v63, %v14204_v24  ;;  %v10945_v51 = vadd.f32 %v10713_v63, %v14205_v10  ;;  %v10949_v53 = vadd.f32 %v10713_v63, %v14206_v28  ;;  %v10953_v5 = vadd.f32 %v10713_v63, %v14208_v41 }
 0x342   :  { %v10957_v2 = vadd.f32 %v10713_v63, %v14210_v39  ;;  %v10961_v24 = vadd.f32 %v10713_v63, %v14212_v13  ;;  %v10965_v10 = vadd.f32 %v10713_v63, %v14214_v46  ;;  %v10969_v28 = vadd.f32 %v10713_v63, %v14216_v16 }
 0x343   :  { %14207 = vst [vmem:[#allocation66_spill] sm:$0xff] %v10949_v53  ;;  %14209 = vst [vmem:[#allocation72_spill] sm:$0xff] %v10953_v5  ;;  %v14218_v53 = vld [vmem:[#allocation36_spill] sm:$0xff]  ;;  %v14220_v5 = vld [vmem:[#allocation30_spill] sm:$0xff] }
 0x344   :  { %14211 = vst [vmem:[#allocation76_spill] sm:$0xff] %v10957_v2  ;;  %14213 = vst [vmem:[#allocation70_spill] sm:$0xff] %v10961_v24  ;;  %v10973_v41 = vadd.f32 %v10713_v63, %v14218_v53  ;;  %v10977_v39 = vadd.f32 %v10713_v63, %v14220_v5  ;;  %v14222_v2 = vld [vmem:[#allocation34_spill] sm:$0xff]  ;;  %v14224_v24 = vld [vmem:[#allocation40_spill] sm:$0xff]  ;;  %v3820_v5 = vmax.f32 %v10785_v7, 0.0  ;;  %v3830_v7 = vmax.f32 %v10825_v42, 0.0 }
 0x345   :  { %14215 = vst [vmem:[#allocation74_spill] sm:$0xff] %v10965_v10  ;;  %14217 = vst [vmem:[#allocation80_spill] sm:$0xff] %v10969_v28  ;;  %v10981_v13 = vadd.f32 %v10713_v63, %v14222_v2  ;;  %v10985_v46 = vadd.f32 %v10713_v63, %v14224_v24  ;;  %v14226_v10 = vld [vmem:[#allocation44_spill] sm:$0xff]  ;;  %v14228_v28 = vld [vmem:[#allocation38_spill] sm:$0xff]  ;;  %v3814_v24 = vmax.f32 %v10761_v61, 0.0  ;;  %v3822_v2 = vmax.f32 %v10793_v3, 0.0 }
 0x346   :  { %14219 = vst [vmem:[#allocation84_spill] sm:$0xff] %v10973_v41  ;;  %14221 = vst [vmem:[#allocation78_spill] sm:$0xff] %v10977_v39  ;;  %v10989_v16 = vadd.f32 %v10713_v63, %v14226_v10  ;;  %v10993_v53 = vadd.f32 %v10713_v63, %v14228_v28  ;;  %v3816_v10 = vmax.f32 %v10769_v21, 0.0  ;;  %v3818_v28 = vmax.f32 %v10777_v56, 0.0 }
 0x347   :  { %14223 = vst [vmem:[#allocation82_spill] sm:$0xff] %v10981_v13  ;;  %14225 = vst [vmem:[#allocation88_spill] sm:$0xff] %v10985_v46  ;;  %v3815_v46 = vmax.f32 %v10765_v43, 0.0  ;;  %v3819_v41 = vmax.f32 %v10781_v0, 0.0  ;;  %v3821_v39 = vmax.f32 %v10789_v62, 0.0  ;;  %v3823_v13 = vmax.f32 %v10797_v17, 0.0 }
 0x348   :  { %14227 = vst [vmem:[#allocation92_spill] sm:$0xff] %v10989_v16  ;;  %14229 = vst [vmem:[#allocation86_spill] sm:$0xff] %v10993_v53  ;;  %v3817_v16 = vmax.f32 %v10773_v29, 0.0  ;;  %v3824_v61 = vmax.f32 %v10801_v27, 0.0  ;;  %v3825_v43 = vmax.f32 %v10805_v14, 0.0  ;;  %v3826_v21 = vmax.f32 %v10809_v22, 0.0 }
 0x349   :  { %v3827_v29 = vmax.f32 %v10813_v37, 0.0  ;;  %v3828_v56 = vmax.f32 %v10817_v47, 0.0  ;;  %v3829_v0 = vmax.f32 %v10821_v34, 0.0  ;;  %v3831_v62 = vmax.f32 %v10829_v4, 0.0 }
 0x34a   :  { %v3832_v3 = vmax.f32 %v10833_v26, 0.0  ;;  %v3833_v17 = vmax.f32 %v10837_v57, 0.0  ;;  %v3834_v27 = vmax.f32 %v10841_v18, 0.0  ;;  %v3835_v14 = vmax.f32 %v10845_v52, 0.0  ;;  %v14230_v63 = vld [vmem:[#allocation66_spill] sm:$0xff]  ;;  %v14231_v60 = vld [vmem:[#allocation72_spill] sm:$0xff] }
 0x34b   :  { %v3836_v22 = vmax.f32 %v10849_v36, 0.0  ;;  %v3837_v37 = vmax.f32 %v10853_v48, 0.0  ;;  %v3838_v47 = vmax.f32 %v10857_v31, 0.0  ;;  %v3839_v34 = vmax.f32 %v10861_v35, 0.0  ;;  %v14232_v12 = vld [vmem:[#allocation76_spill] sm:$0xff]  ;;  %v14233_v40 = vld [vmem:[#allocation70_spill] sm:$0xff] }
 0x34c   :  { %v3840_v42 = vmax.f32 %v10865_v58, 0.0  ;;  %v3841_v4 = vmax.f32 %v10869_v25, 0.0  ;;  %v3842_v26 = vmax.f32 %v10873_v19, 0.0  ;;  %v3843_v57 = vmax.f32 %v10877_v55, 0.0  ;;  %v14234_v50 = vld [vmem:[#allocation74_spill] sm:$0xff]  ;;  %v14235_v6 = vld [vmem:[#allocation80_spill] sm:$0xff] }
 0x34d   :  { %v3844_v18 = vmax.f32 %v10881_v30, 0.0  ;;  %v3845_v52 = vmax.f32 %v10885_v54, 0.0  ;;  %v3846_v36 = vmax.f32 %v10889_v59, 0.0  ;;  %v3847_v48 = vmax.f32 %v10893_v44, 0.0  ;;  %v14236_v53 = vld [vmem:[#allocation84_spill] sm:$0xff] }
 0x34e   :  { %v3848_v31 = vmax.f32 %v10897_v20, 0.0  ;;  %v3849_v35 = vmax.f32 %v10901_v33, 0.0  ;;  %v3850_v58 = vmax.f32 %v10905_v32, 0.0  ;;  %v3851_v25 = vmax.f32 %v10909_v9, 0.0 }
 0x34f   :  { %v3852_v19 = vmax.f32 %v10913_v15, 0.0  ;;  %v3853_v55 = vmax.f32 %v10917_v45, 0.0  ;;  %v3854_v30 = vmax.f32 %v10921_v38, 0.0  ;;  %v3855_v54 = vmax.f32 %v10925_v8, 0.0 }
 0x350   :  { %v3856_v59 = vmax.f32 %v10929_v11, 0.0  ;;  %v3857_v44 = vmax.f32 %v10933_v23, 0.0  ;;  %v3858_v20 = vmax.f32 %v10937_v1, 0.0  ;;  %v3859_v33 = vmax.f32 %v10941_v49, 0.0  ;;  %v14237_v1 = vld [vmem:[#allocation78_spill] sm:$0xff] }
 0x351   :  { %v3860_v32 = vmax.f32 %v10945_v51, 0.0  ;;  %v3861_v9 = vmax.f32 %v14230_v63, 0.0  ;;  %v3862_v15 = vmax.f32 %v14231_v60, 0.0  ;;  %v3863_v45 = vmax.f32 %v14232_v12, 0.0  ;;  %v14238_v51 = vld [vmem:[#allocation82_spill] sm:$0xff]  ;;  %v14239_v60 = vld [vmem:[#allocation88_spill] sm:$0xff] }
 0x352   :  { %v3864_v38 = vmax.f32 %v14233_v40, 0.0  ;;  %v3865_v8 = vmax.f32 %v14234_v50, 0.0  ;;  %v3866_v11 = vmax.f32 %v14235_v6, 0.0  ;;  %v3867_v23 = vmax.f32 %v14236_v53, 0.0  ;;  %v14240_v40 = vld [vmem:[#allocation92_spill] sm:$0xff]  ;;  %v14241_v6 = vld [vmem:[#allocation86_spill] sm:$0xff] }
 0x353   :  { %v3868_v49 = vmax.f32 %v14237_v1, 0.0  ;;  %v3869_v63 = vmax.f32 %v14238_v51, 0.0  ;;  %v3870_v12 = vmax.f32 %v14239_v60, 0.0  ;;  %v3871_v50 = vmax.f32 %v14240_v40, 0.0  ;;  %v14242_v1 = vld [vmem:[#allocation54_spill] sm:$0xff] }
 0x354   :  { %v3872_v53 = vmax.f32 %v14241_v6, 0.0  ;;  %v14243_v51 = vmax.f32 %v14242_v1, 0.0  ;;  %v14244_v60 = vld [vmem:[#allocation58_spill] sm:$0xff]  ;;  %v14246_v1 = vld [vmem:[#allocation64_spill] sm:$0xff] }
 0x355   :  { %v14245_v40 = vmax.f32 %v14244_v60, 0.0  ;;  %v14247_v60 = vmax.f32 %v14246_v1, 0.0 }
 0x357   :  { %v6931_v6 = vpack.c.bf16 %v14245_v40, %v14243_v51  ;;  %v14248_v40 = vld [vmem:[#allocation68_spill] sm:$0xff] }
 0x358   :  { %v14249_v51 = vmax.f32 %v14248_v40, 0.0  ;;  %v14250_v40 = vld [vmem:[#allocation62_spill] sm:$0xff] }
 0x359   :  { %6932 = vst [vmem:[%s13179_s4] sm:$0xff] %v6931_v6  }
 0x35a   :  { %v6936_v1 = vpack.c.bf16 %v14249_v51, %v14247_v60  ;;  %v14251_v51 = vmax.f32 %v14250_v40, 0.0  ;;  %v6946_v40 = vpack.c.bf16 %v3816_v10, %v3815_v46  ;;  %v6961_v10 = vpack.c.bf16 %v3822_v2, %v3821_v39 }
 0x35b   :  { %v6966_v46 = vpack.c.bf16 %v3824_v61, %v3823_v13  ;;  %v6981_v39 = vpack.c.bf16 %v3830_v7, %v3829_v0  ;;  %v6986_v13 = vpack.c.bf16 %v3832_v3, %v3831_v62  ;;  %v6996_v2 = vpack.c.bf16 %v3836_v22, %v3835_v14 }
 0x35c   :  { %v6941_v60 = vpack.c.bf16 %v3814_v24, %v14251_v51  ;;  %v6951_v24 = vpack.c.bf16 %v3818_v28, %v3817_v16  ;;  %v6956_v51 = vpack.c.bf16 %v3820_v5, %v3819_v41  ;;  %7568 = vst [vmem:[%s13179_s4 + $0x8] sm:$0xff] %v6936_v1   ;;  %7570 = vst [vmem:[%s13179_s4 + $0x18] sm:$0xff] %v6946_v40   ;;  %v14269_v1 = vld [vmem:[#allocation31_spill] sm:$0xff] }
 0x35d   :  { %v6971_v16 = vpack.c.bf16 %v3826_v21, %v3825_v43  ;;  %v6976_v41 = vpack.c.bf16 %v3828_v56, %v3827_v29  ;;  %7573 = vst [vmem:[%s13179_s4 + $0x30] sm:$0xff] %v6961_v10   ;;  %7574 = vst [vmem:[%s13179_s4 + $0x38] sm:$0xff] %v6966_v46   ;;  %v6991_v5 = vpack.c.bf16 %v3834_v27, %v3833_v17  ;;  %v14270_v40 = vld [vmem:[#allocation35_spill] sm:$0xff]  ;;  %v14272_v46 = vld [vmem:[#allocation45_spill] sm:$0xff] }
 0x35e   :  { %7569 = vst [vmem:[%s13179_s4 + $0x10] sm:$0xff] %v6941_v60   ;;  %7571 = vst [vmem:[%s13179_s4 + $0x20] sm:$0xff] %v6951_v24   ;;  %v7001_v28 = vpack.c.bf16 %v3838_v47, %v3837_v37  ;;  %v7006_v61 = vpack.c.bf16 %v3840_v42, %v3839_v34  ;;  %v7011_v43 = vpack.c.bf16 %v3842_v26, %v3841_v4  ;;  %v14252_v4 = vld [vmem:[#allocation246_spill] sm:$0xff] }
 0x35f   :  { %7572 = vst [vmem:[%s13179_s4 + $0x28] sm:$0xff] %v6956_v51   ;;  %7575 = vst [vmem:[%s13179_s4 + $0x40] sm:$0xff] %v6971_v16   ;;  %v7016_v21 = vpack.c.bf16 %v3844_v18, %v3843_v57  ;;  %v7021_v29 = vpack.c.bf16 %v3846_v36, %v3845_v52  ;;  %v7026_v56 = vpack.c.bf16 %v3848_v31, %v3847_v48  ;;  %v14253_v26 = vld [vmem:[#allocation6_spill] sm:$0xff]  ;;  %v14254_v18 = vld [vmem:[#allocation8_spill] sm:$0xff] }
 0x360   :  { %7576 = vst [vmem:[%s13179_s4 + $0x48] sm:$0xff] %v6976_v41   ;;  %7577 = vst [vmem:[%s13179_s4 + $0x50] sm:$0xff] %v6981_v39   ;;  %v7031_v0 = vpack.c.bf16 %v3850_v58, %v3849_v35  ;;  %v7036_v7 = vpack.c.bf16 %v3852_v19, %v3851_v25  ;;  %v7041_v62 = vpack.c.bf16 %v3854_v30, %v3853_v55  ;;  %v14255_v36 = vld [vmem:[#allocation11_spill] sm:$0xff]  ;;  %v14256_v31 = vld [vmem:[#allocation13_spill] sm:$0xff] }
 0x361   :  { %7578 = vst [vmem:[%s13179_s4 + $0x58] sm:$0xff] %v6986_v13   ;;  %7579 = vst [vmem:[%s13179_s4 + $0x60] sm:$0xff] %v6991_v5   ;;  %v7046_v3 = vpack.c.bf16 %v3856_v59, %v3855_v54  ;;  %v7051_v17 = vpack.c.bf16 %v3858_v20, %v3857_v44  ;;  %v7056_v27 = vpack.c.bf16 %v3860_v32, %v3859_v33  ;;  %v14257_v58 = vld [vmem:[#allocation10_spill] sm:$0xff]  ;;  %v14258_v19 = vld [vmem:[#allocation12_spill] sm:$0xff] }
 0x362   :  { %7580 = vst [vmem:[%s13179_s4 + $0x68] sm:$0xff] %v6996_v2   ;;  %7581 = vst [vmem:[%s13179_s4 + $0x70] sm:$0xff] %v7001_v28   ;;  %v7061_v14 = vpack.c.bf16 %v3862_v15, %v3861_v9  ;;  %v7066_v22 = vpack.c.bf16 %v3864_v38, %v3863_v45  ;;  %v7071_v37 = vpack.c.bf16 %v3866_v11, %v3865_v8  ;;  %v14259_v30 = vld [vmem:[#allocation17_spill] sm:$0xff]  ;;  %v14261_v20 = vld [vmem:[#allocation15_spill] sm:$0xff] }
 0x363   :  { %7582 = vst [vmem:[%s13179_s4 + $0x78] sm:$0xff] %v7006_v61   ;;  %7583 = vst [vmem:[%s13179_s4 + $0x80] sm:$0xff] %v7011_v43   ;;  %v7076_v47 = vpack.c.bf16 %v3868_v49, %v3867_v23  ;;  %v7081_v34 = vpack.c.bf16 %v3870_v12, %v3869_v63  ;;  %v7086_v42 = vpack.c.bf16 %v3872_v53, %v3871_v50  ;;  %v14260_v59 = vld [vmem:[#allocation21_spill] sm:$0xff]  ;;  %v14262_v32 = vld [vmem:[#allocation19_spill] sm:$0xff] }
 0x364   :  { %7584 = vst [vmem:[%s13179_s4 + $0x88] sm:$0xff] %v7016_v21   ;;  %7585 = vst [vmem:[%s13179_s4 + $0x90] sm:$0xff] %v7021_v29   ;;  %v11155_v57 = vmul.f32 %v14253_v26, %v14252_v4  ;;  %v11159_v52 = vmul.f32 %v14254_v18, %v14252_v4  ;;  %v11163_v48 = vmul.f32 %v14252_v4, %v14255_v36  ;;  %v14263_v15 = vld [vmem:[#allocation25_spill] sm:$0xff]  ;;  %v14265_v11 = vld [vmem:[#allocation23_spill] sm:$0xff] }
 0x365   :  { %7586 = vst [vmem:[%s13179_s4 + $0x98] sm:$0xff] %v7026_v56   ;;  %7587 = vst [vmem:[%s13179_s4 + $0xa0] sm:$0xff] %v7031_v0   ;;  %v11167_v35 = vmul.f32 %v14252_v4, %v14256_v31  ;;  %v11183_v25 = vmul.f32 %v14257_v58, %v14252_v4  ;;  %v11187_v55 = vmul.f32 %v14258_v19, %v14252_v4  ;;  %v14264_v38 = vld [vmem:[#allocation29_spill] sm:$0xff]  ;;  %v14266_v49 = vld [vmem:[#allocation27_spill] sm:$0xff] }
 0x366   :  { %7588 = vst [vmem:[%s13179_s4 + $0xa8] sm:$0xff] %v7036_v7   ;;  %7589 = vst [vmem:[%s13179_s4 + $0xb0] sm:$0xff] %v7041_v62   ;;  %v11191_v54 = vmul.f32 %v14252_v4, %v14259_v30  ;;  %v11195_v44 = vmul.f32 %v14252_v4, %v14260_v59  ;;  %v11199_v33 = vmul.f32 %v14261_v20, %v14252_v4  ;;  %v14267_v12 = vld [vmem:[#allocation33_spill] sm:$0xff]  ;;  %v14273_v41 = vld [vmem:[#allocation39_spill] sm:$0xff] }
 0x367   :  { %7590 = vst [vmem:[%s13179_s4 + $0xb8] sm:$0xff] %v7046_v3   ;;  %7591 = vst [vmem:[%s13179_s4 + $0xc0] sm:$0xff] %v7051_v17   ;;  %v11203_v9 = vmul.f32 %v14262_v32, %v14252_v4  ;;  %v11207_v45 = vmul.f32 %v14252_v4, %v14263_v15  ;;  %v11211_v8 = vmul.f32 %v14252_v4, %v14264_v38  ;;  %v14268_v53 = vld [vmem:[#allocation37_spill] sm:$0xff]  ;;  %v14274_v13 = vld [vmem:[#allocation43_spill] sm:$0xff] }
 0x368   :  { %7592 = vst [vmem:[%s13179_s4 + $0xc8] sm:$0xff] %v7056_v27   ;;  %7593 = vst [vmem:[%s13179_s4 + $0xd0] sm:$0xff] %v7061_v14   ;;  %v11215_v23 = vmul.f32 %v14265_v11, %v14252_v4  ;;  %v11219_v63 = vmul.f32 %v14266_v49, %v14252_v4  ;;  %v11223_v50 = vmul.f32 %v14252_v4, %v14267_v12  ;;  %v14271_v51 = vld [vmem:[#allocation41_spill] sm:$0xff]  ;;  %v14277_v21 = vld [vmem:[#allocation47_spill] sm:$0xff] }
 0x369   :  { %7594 = vst [vmem:[%s13179_s4 + $0xd8] sm:$0xff] %v7066_v22   ;;  %7595 = vst [vmem:[%s13179_s4 + $0xe0] sm:$0xff] %v7071_v37   ;;  %v11227_v6 = vmul.f32 %v14252_v4, %v14268_v53  ;;  %v11231_v60 = vmul.f32 %v14269_v1, %v14252_v4  ;;  %v11235_v24 = vmul.f32 %v14270_v40, %v14252_v4  ;;  %v14275_v2 = vld [vmem:[#allocation49_spill] sm:$0xff]  ;;  %v14278_v56 = vld [vmem:[#allocation51_spill] sm:$0xff] }
 0x36a   :  { %7596 = vst [vmem:[%s13179_s4 + $0xe8] sm:$0xff] %v7076_v47   ;;  %7597 = vst [vmem:[%s13179_s4 + $0xf0] sm:$0xff] %v7081_v34   ;;  %v11239_v10 = vmul.f32 %v14252_v4, %v14271_v51  ;;  %v11243_v16 = vmul.f32 %v14252_v4, %v14272_v46  ;;  %v11247_v39 = vmul.f32 %v14273_v41, %v14252_v4  ;;  %v14276_v61 = vld [vmem:[#allocation53_spill] sm:$0xff]  ;;  %v14281_v27 = vld [vmem:[#allocation55_spill] sm:$0xff] }
 0x36b   :  { %7598 = vst [vmem:[%s13179_s4 + $0xf8] sm:$0xff] %v7086_v42   ;;  %v11251_v5 = vmul.f32 %v14274_v13, %v14252_v4  ;;  %v11255_v28 = vmul.f32 %v14252_v4, %v14275_v2  ;;  %v11259_v43 = vmul.f32 %v14252_v4, %v14276_v61  ;;  %v11263_v29 = vmul.f32 %v14277_v21, %v14252_v4  ;;  %v14279_v7 = vld [vmem:[#allocation57_spill] sm:$0xff]  ;;  %v14282_v22 = vld [vmem:[#allocation59_spill] sm:$0xff] }
 0x36c   :  { %v11267_v0 = vmul.f32 %v14278_v56, %v14252_v4  ;;  %v11271_v62 = vmul.f32 %v14252_v4, %v14279_v7  ;;  %v14280_v3 = vld [vmem:[#allocation61_spill] sm:$0xff]  ;;  %v11279_v14 = vmul.f32 %v14281_v27, %v14252_v4  ;;  %v11283_v37 = vmul.f32 %v14282_v22, %v14252_v4  ;;  %v14285_v18 = vld [vmem:[#allocation63_spill] sm:$0xff] }
 0x36d   :  { %v11275_v17 = vmul.f32 %v14252_v4, %v14280_v3  ;;  %v14283_v47 = vld [vmem:[#allocation65_spill] sm:$0xff]  ;;  %v11295_v36 = vmul.f32 %v14285_v18, %v14252_v4  ;;  %v14286_v31 = vld [vmem:[#allocation67_spill] sm:$0xff] }
 0x36e   :  { %v11287_v34 = vmul.f32 %v14252_v4, %v14283_v47  ;;  %v14284_v42 = vld [vmem:[#allocation69_spill] sm:$0xff]  ;;  %v11299_v58 = vmul.f32 %v14286_v31, %v14252_v4  ;;  %v14289_v32 = vld [vmem:[#allocation71_spill] sm:$0xff] }
 0x36f   :  { %v11291_v26 = vmul.f32 %v14252_v4, %v14284_v42  ;;  %v14287_v19 = vld [vmem:[#allocation73_spill] sm:$0xff]  ;;  %v11311_v15 = vmul.f32 %v14289_v32, %v14252_v4  ;;  %v14290_v38 = vld [vmem:[#allocation75_spill] sm:$0xff] }
 0x370   :  { %v11303_v30 = vmul.f32 %v14252_v4, %v14287_v19  ;;  %v14288_v59 = vld [vmem:[#allocation77_spill] sm:$0xff]  ;;  %v11315_v11 = vmul.f32 %v14290_v38, %v14252_v4  ;;  %v14293_v40 = vld [vmem:[#allocation79_spill] sm:$0xff] }
 0x371   :  { %v11307_v20 = vmul.f32 %v14252_v4, %v14288_v59  ;;  %v14291_v49 = vld [vmem:[#allocation81_spill] sm:$0xff]  ;;  %v11327_v51 = vmul.f32 %v14293_v40, %v14252_v4  ;;  %v14294_v46 = vld [vmem:[#allocation83_spill] sm:$0xff] }
 0x372   :  { %v11319_v12 = vmul.f32 %v14252_v4, %v14291_v49  ;;  %v14292_v53 = vld [vmem:[#allocation85_spill] sm:$0xff]  ;;  %v11331_v41 = vmul.f32 %v14294_v46, %v14252_v4  ;;  %v14297_v56 = vld [vmem:[#allocation87_spill] sm:$0xff] }
 0x373   :  { %v11323_v1 = vmul.f32 %v14252_v4, %v14292_v53  ;;  %v14295_v13 = vld [vmem:[#allocation89_spill] sm:$0xff]  ;;  %v11343_v7 = vmul.f32 %v14297_v56, %v14252_v4  ;;  %v14298_v3 = vld [vmem:[#allocation91_spill] sm:$0xff] }
 0x374   :  { %v11335_v2 = vmul.f32 %v14252_v4, %v14295_v13  ;;  %v14296_v61 = vld [vmem:[#allocation93_spill] sm:$0xff]  ;;  %v11347_v27 = vmul.f32 %v14298_v3, %v14252_v4  ;;  %v14301_v31 = vld [vmem:[#allocation95_spill] sm:$0xff] }
 0x375   :  { %v11339_v21 = vmul.f32 %v14252_v4, %v14296_v61  ;;  %v14299_v22 = vld [vmem:[#allocation97_spill] sm:$0xff]  ;;  %v11359_v19 = vmul.f32 %v14301_v31, %v14252_v4  ;;  %v14302_v59 = vld [vmem:[#allocation99_spill] sm:$0xff] }
 0x376   :  { %v11351_v47 = vmul.f32 %v14252_v4, %v14299_v22  ;;  %v14300_v42 = vld [vmem:[#allocation101_spill] sm:$0xff]  ;;  %v11363_v32 = vmul.f32 %v14302_v59, %v14252_v4  ;;  %v14306_v46 = vld [vmem:[#allocation103_spill] sm:$0xff] }
 0x377   :  { %v11355_v18 = vmul.f32 %v14252_v4, %v14300_v42  ;;  %v14303_v38 = vld [vmem:[#allocation105_spill] sm:$0xff]  ;;  %v11375_v13 = vmul.f32 %v14306_v46, %v14252_v4  ;;  %v14308_v61 = vld [vmem:[#allocation107_spill] sm:$0xff] }
 0x378   :  { %v11367_v49 = vmul.f32 %v14252_v4, %v14303_v38  ;;  %v14304_v53 = vld [vmem:[#allocation109_spill] sm:$0xff]  ;;  %v11379_v56 = vmul.f32 %v14308_v61, %v14252_v4  ;;  %v14314_v59 = vld [vmem:[#allocation111_spill] sm:$0xff] }
 0x379   :  { %v11371_v40 = vmul.f32 %v14252_v4, %v14304_v53  ;;  %14307 = vst [vmem:[#allocation96_spill] sm:$0xff] %v11375_v13  ;;  %v14310_v3 = vld [vmem:[#allocation113_spill] sm:$0xff]  ;;  %v11391_v38 = vmul.f32 %v14314_v59, %v14252_v4  ;;  %v14316_v53 = vld [vmem:[#allocation115_spill] sm:$0xff]  ;;  %v14317_v13 = vld [vmem:[#allocation42_spill] sm:$0xff] }
 0x37a   :  { %14309 = vst [vmem:[#allocation100_spill] sm:$0xff] %v11379_v56  ;;  %v11383_v22 = vmul.f32 %v14252_v4, %v14310_v3  ;;  %v14312_v42 = vld [vmem:[#allocation117_spill] sm:$0xff]  ;;  %v11395_v46 = vmul.f32 %v14316_v53, %v14252_v4  ;;  %v14320_v56 = vld [vmem:[#allocation52_spill] sm:$0xff] }
 0x37b   :  { %14305 = vst [vmem:[#allocation90_spill] sm:$0xff] %v11371_v40  ;;  %v11387_v31 = vmul.f32 %v14252_v4, %v14312_v42  ;;  %14315 = vst [vmem:[#allocation104_spill] sm:$0xff] %v11391_v38  ;;  %v14318_v40 = vld [vmem:[#allocation48_spill] sm:$0xff]  ;;  %v11403_v3 = vadd.f32 %v14320_v56, %v14317_v13  ;;  %v11423_v56 = vadd.f32 %v11155_v57, %v14317_v13 }
 0x37c   :  { %14311 = vst [vmem:[#allocation94_spill] sm:$0xff] %v11383_v22  ;;  %v11399_v61 = vadd.f32 %v14318_v40, %v14317_v13  ;;  %v14322_v22 = vld [vmem:[#allocation46_spill] sm:$0xff]  ;;  %v14325_v38 = vld [vmem:[#allocation56_spill] sm:$0xff]  ;;  %v11443_v57 = vadd.f32 %v11187_v55, %v14317_v13  ;;  %v11463_v55 = vadd.f32 %v11207_v45, %v14317_v13  ;;  %v11483_v45 = vadd.f32 %v11227_v6, %v14317_v13 }
 0x37d   :  { %14313 = vst [vmem:[#allocation98_spill] sm:$0xff] %v11387_v31  ;;  %14321 = vst [vmem:[#allocation102_spill] sm:$0xff] %v11403_v3  ;;  %v11407_v42 = vadd.f32 %v14322_v22, %v14317_v13  ;;  %v14324_v31 = vld [vmem:[#allocation50_spill] sm:$0xff]  ;;  %v11415_v53 = vadd.f32 %v14325_v38, %v14317_v13  ;;  %v14326_v4 = vld [vmem:[#allocation60_spill] sm:$0xff]  ;;  %v11427_v22 = vadd.f32 %v11159_v52, %v14317_v13 }
 0x37e   :  { %14319 = vst [vmem:[#allocation108_spill] sm:$0xff] %v11399_v61  ;;  %v11411_v59 = vadd.f32 %v14324_v31, %v14317_v13  ;;  %v11419_v40 = vadd.f32 %v14326_v4, %v14317_v13  ;;  %v11431_v31 = vadd.f32 %v11163_v48, %v14317_v13  ;;  %v11435_v38 = vadd.f32 %v11167_v35, %v14317_v13 }
 0x37f   :  { %14323 = vst [vmem:[#allocation106_spill] sm:$0xff] %v11407_v42  ;;  %v11439_v4 = vadd.f32 %v11183_v25, %v14317_v13  ;;  %v11447_v52 = vadd.f32 %v11191_v54, %v14317_v13  ;;  %v11451_v48 = vadd.f32 %v11195_v44, %v14317_v13  ;;  %v11455_v35 = vadd.f32 %v11199_v33, %v14317_v13 }
 0x380   :  { %v11459_v25 = vadd.f32 %v11203_v9, %v14317_v13  ;;  %v11467_v54 = vadd.f32 %v11211_v8, %v14317_v13  ;;  %v11471_v44 = vadd.f32 %v11215_v23, %v14317_v13  ;;  %v11475_v33 = vadd.f32 %v11219_v63, %v14317_v13 }
 0x381   :  { %v11479_v9 = vadd.f32 %v11223_v50, %v14317_v13  ;;  %v11487_v8 = vadd.f32 %v11231_v60, %v14317_v13  ;;  %v11491_v23 = vadd.f32 %v11235_v24, %v14317_v13  ;;  %v11495_v63 = vadd.f32 %v11239_v10, %v14317_v13 }
 0x382   :  { %v11499_v50 = vadd.f32 %v11243_v16, %v14317_v13  ;;  %v11503_v6 = vadd.f32 %v11247_v39, %v14317_v13  ;;  %v11507_v60 = vadd.f32 %v11251_v5, %v14317_v13  ;;  %v11511_v24 = vadd.f32 %v11255_v28, %v14317_v13 }
 0x383   :  { %v11515_v10 = vadd.f32 %v11259_v43, %v14317_v13  ;;  %v11519_v16 = vadd.f32 %v11263_v29, %v14317_v13  ;;  %v11523_v39 = vadd.f32 %v11267_v0, %v14317_v13  ;;  %v11527_v5 = vadd.f32 %v11271_v62, %v14317_v13 }
 0x384   :  { %v11531_v28 = vadd.f32 %v11275_v17, %v14317_v13  ;;  %v11535_v43 = vadd.f32 %v11279_v14, %v14317_v13  ;;  %v11539_v29 = vadd.f32 %v11283_v37, %v14317_v13  ;;  %v11543_v0 = vadd.f32 %v11287_v34, %v14317_v13 }
 0x385   :  { %v11547_v62 = vadd.f32 %v11291_v26, %v14317_v13  ;;  %v11551_v17 = vadd.f32 %v11295_v36, %v14317_v13  ;;  %v11555_v14 = vadd.f32 %v11299_v58, %v14317_v13  ;;  %v11559_v37 = vadd.f32 %v11303_v30, %v14317_v13 }
 0x386   :  { %v11563_v34 = vadd.f32 %v11307_v20, %v14317_v13  ;;  %v11567_v26 = vadd.f32 %v11311_v15, %v14317_v13  ;;  %v11571_v36 = vadd.f32 %v11315_v11, %v14317_v13  ;;  %v11575_v58 = vadd.f32 %v11319_v12, %v14317_v13 }
 0x387   :  { %v11579_v30 = vadd.f32 %v11323_v1, %v14317_v13  ;;  %v11583_v20 = vadd.f32 %v11327_v51, %v14317_v13  ;;  %v11587_v15 = vadd.f32 %v11331_v41, %v14317_v13  ;;  %v11591_v11 = vadd.f32 %v11335_v2, %v14317_v13 }
 0x388   :  { %v11595_v12 = vadd.f32 %v11339_v21, %v14317_v13  ;;  %v11599_v1 = vadd.f32 %v11343_v7, %v14317_v13  ;;  %v11603_v51 = vadd.f32 %v11347_v27, %v14317_v13  ;;  %v11607_v41 = vadd.f32 %v11351_v47, %v14317_v13 }
 0x389   :  { %v11611_v2 = vadd.f32 %v11355_v18, %v14317_v13  ;;  %v11615_v21 = vadd.f32 %v11359_v19, %v14317_v13  ;;  %v11619_v7 = vadd.f32 %v11363_v32, %v14317_v13  ;;  %v11623_v27 = vadd.f32 %v11367_v49, %v14317_v13 }
 0x38a   :  { %14327 = vst [vmem:[#allocation112_spill] sm:$0xff] %v11603_v51  ;;  %14328 = vst [vmem:[#allocation116_spill] sm:$0xff] %v11607_v41  ;;  %v14333_v51 = vld [vmem:[#allocation90_spill] sm:$0xff]  ;;  %v14335_v41 = vld [vmem:[#allocation96_spill] sm:$0xff] }
 0x38b   :  { %14329 = vst [vmem:[#allocation110_spill] sm:$0xff] %v11611_v2  ;;  %14330 = vst [vmem:[#allocation114_spill] sm:$0xff] %v11615_v21  ;;  %v11627_v47 = vadd.f32 %v14333_v51, %v14317_v13  ;;  %v11631_v18 = vadd.f32 %v14335_v41, %v14317_v13  ;;  %v14337_v2 = vld [vmem:[#allocation100_spill] sm:$0xff]  ;;  %v14339_v21 = vld [vmem:[#allocation94_spill] sm:$0xff]  ;;  %v11651_v41 = vadd.f32 %v11395_v46, %v14317_v13  ;;  %v4330_v46 = vmax.f32 %v11435_v38, 0.0 }
 0x38c   :  { %14331 = vst [vmem:[#allocation3_spill] sm:$0xff] %v11619_v7  ;;  %14332 = vst [vmem:[#allocation5_spill] sm:$0xff] %v11623_v27  ;;  %v11635_v19 = vadd.f32 %v14337_v2, %v14317_v13  ;;  %v11639_v32 = vadd.f32 %v14339_v21, %v14317_v13  ;;  %v14341_v7 = vld [vmem:[#allocation98_spill] sm:$0xff]  ;;  %v14343_v27 = vld [vmem:[#allocation104_spill] sm:$0xff]  ;;  %v4324_v21 = vmax.f32 %v11411_v59, 0.0  ;;  %v4332_v2 = vmax.f32 %v11443_v57, 0.0 }
 0x38d   :  { %14334 = vst [vmem:[#allocation2_spill] sm:$0xff] %v11627_v47  ;;  %14336 = vst [vmem:[#allocation4_spill] sm:$0xff] %v11631_v18  ;;  %v11643_v49 = vadd.f32 %v14341_v7, %v14317_v13  ;;  %v11647_v51 = vadd.f32 %v14343_v27, %v14317_v13  ;;  %v4326_v7 = vmax.f32 %v11419_v40, 0.0  ;;  %v4328_v27 = vmax.f32 %v11427_v22, 0.0 }
 0x38e   :  { %14338 = vst [vmem:[#allocation7_spill] sm:$0xff] %v11635_v19  ;;  %14340 = vst [vmem:[#allocation9_spill] sm:$0xff] %v11639_v32  ;;  %v4325_v32 = vmax.f32 %v11415_v53, 0.0  ;;  %v4331_v18 = vmax.f32 %v11439_v4, 0.0  ;;  %v4333_v19 = vmax.f32 %v11447_v52, 0.0  ;;  %v4334_v59 = vmax.f32 %v11451_v48, 0.0 }
 0x38f   :  { %14342 = vst [vmem:[#allocation16_spill] sm:$0xff] %v11643_v49  ;;  %14344 = vst [vmem:[#allocation20_spill] sm:$0xff] %v11647_v51  ;;  %v4327_v49 = vmax.f32 %v11423_v56, 0.0  ;;  %v4329_v51 = vmax.f32 %v11431_v31, 0.0  ;;  %v4335_v53 = vmax.f32 %v11455_v35, 0.0  ;;  %v4336_v40 = vmax.f32 %v11459_v25, 0.0 }
 0x390   :  { %14345 = vst [vmem:[#allocation14_spill] sm:$0xff] %v11651_v41  ;;  %v4337_v56 = vmax.f32 %v11463_v55, 0.0  ;;  %v4338_v22 = vmax.f32 %v11467_v54, 0.0  ;;  %v4339_v31 = vmax.f32 %v11471_v44, 0.0  ;;  %v4340_v38 = vmax.f32 %v11475_v33, 0.0 }
 0x391   :  { %v4341_v4 = vmax.f32 %v11479_v9, 0.0  ;;  %v4342_v57 = vmax.f32 %v11483_v45, 0.0  ;;  %v4343_v52 = vmax.f32 %v11487_v8, 0.0  ;;  %v4344_v48 = vmax.f32 %v11491_v23, 0.0  ;;  %v14346_v13 = vld [vmem:[#allocation112_spill] sm:$0xff] }
 0x392   :  { %v4345_v35 = vmax.f32 %v11495_v63, 0.0  ;;  %v4346_v25 = vmax.f32 %v11499_v50, 0.0  ;;  %v4347_v55 = vmax.f32 %v11503_v6, 0.0  ;;  %v4348_v54 = vmax.f32 %v11507_v60, 0.0  ;;  %v14347_v42 = vld [vmem:[#allocation116_spill] sm:$0xff]  ;;  %v14348_v3 = vld [vmem:[#allocation110_spill] sm:$0xff] }
 0x393   :  { %v4349_v44 = vmax.f32 %v11511_v24, 0.0  ;;  %v4350_v33 = vmax.f32 %v11515_v10, 0.0  ;;  %v4351_v9 = vmax.f32 %v11519_v16, 0.0  ;;  %v4352_v45 = vmax.f32 %v11523_v39, 0.0  ;;  %v14349_v61 = vld [vmem:[#allocation114_spill] sm:$0xff]  ;;  %v14350_v41 = vld [vmem:[#allocation3_spill] sm:$0xff] }
 0x394   :  { %v4353_v8 = vmax.f32 %v11527_v5, 0.0  ;;  %v4354_v23 = vmax.f32 %v11531_v28, 0.0  ;;  %v4355_v63 = vmax.f32 %v11535_v43, 0.0  ;;  %v4356_v50 = vmax.f32 %v11539_v29, 0.0  ;;  %v14351_v47 = vld [vmem:[#allocation5_spill] sm:$0xff] }
 0x395   :  { %v4357_v6 = vmax.f32 %v11543_v0, 0.0  ;;  %v4358_v60 = vmax.f32 %v11547_v62, 0.0  ;;  %v4359_v24 = vmax.f32 %v11551_v17, 0.0  ;;  %v4360_v10 = vmax.f32 %v11555_v14, 0.0 }
 0x396   :  { %v4361_v16 = vmax.f32 %v11559_v37, 0.0  ;;  %v4362_v39 = vmax.f32 %v11563_v34, 0.0  ;;  %v4363_v5 = vmax.f32 %v11567_v26, 0.0  ;;  %v4364_v28 = vmax.f32 %v11571_v36, 0.0 }
 0x397   :  { %v4365_v43 = vmax.f32 %v11575_v58, 0.0  ;;  %v4366_v29 = vmax.f32 %v11579_v30, 0.0  ;;  %v4367_v0 = vmax.f32 %v11583_v20, 0.0  ;;  %v4368_v62 = vmax.f32 %v11587_v15, 0.0  ;;  %v14352_v15 = vld [vmem:[#allocation2_spill] sm:$0xff] }
 0x398   :  { %v4369_v17 = vmax.f32 %v11591_v11, 0.0  ;;  %v4370_v14 = vmax.f32 %v11595_v12, 0.0  ;;  %v4371_v37 = vmax.f32 %v11599_v1, 0.0  ;;  %v4372_v34 = vmax.f32 %v14346_v13, 0.0  ;;  %v14353_v12 = vld [vmem:[#allocation4_spill] sm:$0xff]  ;;  %v14354_v13 = vld [vmem:[#allocation7_spill] sm:$0xff] }
 0x399   :  { %v4373_v26 = vmax.f32 %v14347_v42, 0.0  ;;  %v4374_v36 = vmax.f32 %v14348_v3, 0.0  ;;  %v4375_v58 = vmax.f32 %v14349_v61, 0.0  ;;  %v4376_v30 = vmax.f32 %v14350_v41, 0.0  ;;  %v14355_v3 = vld [vmem:[#allocation9_spill] sm:$0xff]  ;;  %v14356_v41 = vld [vmem:[#allocation16_spill] sm:$0xff] }
 0x39a   :  { %v4377_v20 = vmax.f32 %v14351_v47, 0.0  ;;  %v4378_v11 = vmax.f32 %v14352_v15, 0.0  ;;  %v4379_v1 = vmax.f32 %v14353_v12, 0.0  ;;  %v4380_v42 = vmax.f32 %v14354_v13, 0.0  ;;  %v14357_v15 = vld [vmem:[#allocation20_spill] sm:$0xff]  ;;  %v14358_v13 = vld [vmem:[#allocation14_spill] sm:$0xff] }
 0x39b   :  { %v4381_v61 = vmax.f32 %v14355_v3, 0.0  ;;  %v4382_v47 = vmax.f32 %v14356_v41, 0.0  ;;  %v4383_v12 = vmax.f32 %v14357_v15, 0.0  ;;  %v4384_v3 = vmax.f32 %v14358_v13, 0.0  ;;  %v14359_v41 = vld [vmem:[#allocation108_spill] sm:$0xff]  ;;  %v14361_v13 = vld [vmem:[#allocation102_spill] sm:$0xff] }
 0x39c   :  { %v14360_v15 = vmax.f32 %v14359_v41, 0.0  ;;  %v14362_v41 = vmax.f32 %v14361_v13, 0.0 }
 0x39e   :  { %v7091_v13 = vpack.c.bf16 %v14362_v41, %v14360_v15  ;;  %v14363_v15 = vld [vmem:[#allocation106_spill] sm:$0xff] }
 0x39f   :  { %v14364_v41 = vmax.f32 %v14363_v15, 0.0 }
 0x3a0   :  { %7599 = vst [vmem:[%s13179_s4 + $0x100] sm:$0xff] %v7091_v13  }
 0x3a1   :  { %v7096_v15 = vpack.c.bf16 %v4324_v21, %v14364_v41  ;;  %v7101_v21 = vpack.c.bf16 %v4326_v7, %v4325_v32  ;;  %v7106_v41 = vpack.c.bf16 %v4328_v27, %v4327_v49  ;;  %v7111_v7 = vpack.c.bf16 %v4330_v46, %v4329_v51 }
 0x3a2   :  { %v7116_v32 = vpack.c.bf16 %v4332_v2, %v4331_v18  ;;  %v7121_v27 = vpack.c.bf16 %v4334_v59, %v4333_v19  ;;  %v7126_v49 = vpack.c.bf16 %v4336_v40, %v4335_v53  ;;  %v7131_v46 = vpack.c.bf16 %v4338_v22, %v4337_v56 }
 0x3a3   :  { %7600 = vst [vmem:[%s13179_s4 + $0x108] sm:$0xff] %v7096_v15   ;;  %v7136_v51 = vpack.c.bf16 %v4340_v38, %v4339_v31  ;;  %7601 = vst [vmem:[%s13179_s4 + $0x110] sm:$0xff] %v7101_v21   ;;  %v7141_v18 = vpack.c.bf16 %v4342_v57, %v4341_v4  ;;  %v7146_v19 = vpack.c.bf16 %v4344_v48, %v4343_v52  ;;  %v14382_v15 = vld [vmem:[#allocation152_spill] sm:$0xff] }
 0x3a4   :  { %7602 = vst [vmem:[%s13179_s4 + $0x118] sm:$0xff] %v7106_v41   ;;  %7603 = vst [vmem:[%s13179_s4 + $0x120] sm:$0xff] %v7111_v7   ;;  %v7151_v2 = vpack.c.bf16 %v4346_v25, %v4345_v35  ;;  %v7156_v59 = vpack.c.bf16 %v4348_v54, %v4347_v55  ;;  %v7161_v53 = vpack.c.bf16 %v4350_v33, %v4349_v44  ;;  %v14383_v41 = vld [vmem:[#allocation156_spill] sm:$0xff] }
 0x3a5   :  { %7604 = vst [vmem:[%s13179_s4 + $0x128] sm:$0xff] %v7116_v32   ;;  %7605 = vst [vmem:[%s13179_s4 + $0x130] sm:$0xff] %v7121_v27   ;;  %v7166_v40 = vpack.c.bf16 %v4352_v45, %v4351_v9  ;;  %v7171_v56 = vpack.c.bf16 %v4354_v23, %v4353_v8  ;;  %v7176_v22 = vpack.c.bf16 %v4356_v50, %v4355_v63  ;;  %v14365_v8 = vld [vmem:[#allocation120_spill] sm:$0xff]  ;;  %v14366_v23 = vld [vmem:[#allocation246_spill] sm:$0xff] }
 0x3a6   :  { %7606 = vst [vmem:[%s13179_s4 + $0x138] sm:$0xff] %v7126_v49   ;;  %7607 = vst [vmem:[%s13179_s4 + $0x140] sm:$0xff] %v7131_v46   ;;  %v7181_v31 = vpack.c.bf16 %v4358_v60, %v4357_v6  ;;  %v7186_v38 = vpack.c.bf16 %v4360_v10, %v4359_v24  ;;  %v7191_v4 = vpack.c.bf16 %v4362_v39, %v4361_v16  ;;  %v14367_v50 = vld [vmem:[#allocation124_spill] sm:$0xff]  ;;  %v14368_v60 = vld [vmem:[#allocation118_spill] sm:$0xff] }
 0x3a7   :  { %7608 = vst [vmem:[%s13179_s4 + $0x148] sm:$0xff] %v7136_v51   ;;  %7609 = vst [vmem:[%s13179_s4 + $0x150] sm:$0xff] %v7141_v18   ;;  %v7196_v57 = vpack.c.bf16 %v4364_v28, %v4363_v5  ;;  %v7201_v52 = vpack.c.bf16 %v4366_v29, %v4365_v43  ;;  %v7206_v48 = vpack.c.bf16 %v4368_v62, %v4367_v0  ;;  %v14369_v10 = vld [vmem:[#allocation122_spill] sm:$0xff]  ;;  %v14370_v39 = vld [vmem:[#allocation128_spill] sm:$0xff] }
 0x3a8   :  { %7610 = vst [vmem:[%s13179_s4 + $0x158] sm:$0xff] %v7146_v19   ;;  %7611 = vst [vmem:[%s13179_s4 + $0x160] sm:$0xff] %v7151_v2   ;;  %v7211_v35 = vpack.c.bf16 %v4370_v14, %v4369_v17  ;;  %v7216_v25 = vpack.c.bf16 %v4372_v34, %v4371_v37  ;;  %v7221_v55 = vpack.c.bf16 %v4374_v36, %v4373_v26  ;;  %v14371_v28 = vld [vmem:[#allocation132_spill] sm:$0xff]  ;;  %v14372_v29 = vld [vmem:[#allocation126_spill] sm:$0xff] }
 0x3a9   :  { %7612 = vst [vmem:[%s13179_s4 + $0x168] sm:$0xff] %v7156_v59   ;;  %7613 = vst [vmem:[%s13179_s4 + $0x170] sm:$0xff] %v7161_v53   ;;  %v7226_v54 = vpack.c.bf16 %v4376_v30, %v4375_v58  ;;  %v7231_v44 = vpack.c.bf16 %v4378_v11, %v4377_v20  ;;  %v7236_v33 = vpack.c.bf16 %v4380_v42, %v4379_v1  ;;  %v14373_v62 = vld [vmem:[#allocation130_spill] sm:$0xff]  ;;  %v14374_v14 = vld [vmem:[#allocation136_spill] sm:$0xff] }
 0x3aa   :  { %7614 = vst [vmem:[%s13179_s4 + $0x178] sm:$0xff] %v7166_v40   ;;  %7615 = vst [vmem:[%s13179_s4 + $0x180] sm:$0xff] %v7171_v56   ;;  %v7241_v9 = vpack.c.bf16 %v4382_v47, %v4381_v61  ;;  %v7246_v45 = vpack.c.bf16 %v4384_v3, %v4383_v12  ;;  %v11803_v63 = vmul.f32 %v14366_v23, %v14365_v8  ;;  %v14375_v34 = vld [vmem:[#allocation140_spill] sm:$0xff]  ;;  %v14376_v36 = vld [vmem:[#allocation134_spill] sm:$0xff] }
 0x3ab   :  { %7616 = vst [vmem:[%s13179_s4 + $0x188] sm:$0xff] %v7176_v22   ;;  %7617 = vst [vmem:[%s13179_s4 + $0x190] sm:$0xff] %v7181_v31   ;;  %v11807_v6 = vmul.f32 %v14366_v23, %v14367_v50  ;;  %v11823_v24 = vmul.f32 %v14368_v60, %v14366_v23  ;;  %v11827_v16 = vmul.f32 %v14369_v10, %v14366_v23  ;;  %v14377_v30 = vld [vmem:[#allocation138_spill] sm:$0xff]  ;;  %v14378_v11 = vld [vmem:[#allocation144_spill] sm:$0xff] }
 0x3ac   :  { %7618 = vst [vmem:[%s13179_s4 + $0x198] sm:$0xff] %v7186_v38   ;;  %7619 = vst [vmem:[%s13179_s4 + $0x1a0] sm:$0xff] %v7191_v4   ;;  %v11831_v5 = vmul.f32 %v14366_v23, %v14370_v39  ;;  %v11835_v43 = vmul.f32 %v14366_v23, %v14371_v28  ;;  %v11845_v0 = vmul.f32 %v14372_v29, %v14366_v23  ;;  %v14379_v42 = vld [vmem:[#allocation148_spill] sm:$0xff]  ;;  %v14380_v47 = vld [vmem:[#allocation142_spill] sm:$0xff] }
 0x3ad   :  { %7620 = vst [vmem:[%s13179_s4 + $0x1a8] sm:$0xff] %v7196_v57   ;;  %7621 = vst [vmem:[%s13179_s4 + $0x1b0] sm:$0xff] %v7201_v52   ;;  %v11849_v17 = vmul.f32 %v14373_v62, %v14366_v23  ;;  %v11853_v37 = vmul.f32 %v14366_v23, %v14374_v14  ;;  %v11857_v26 = vmul.f32 %v14366_v23, %v14375_v34  ;;  %v14381_v3 = vld [vmem:[#allocation146_spill] sm:$0xff]  ;;  %v14386_v51 = vld [vmem:[#allocation160_spill] sm:$0xff] }
 0x3ae   :  { %7622 = vst [vmem:[%s13179_s4 + $0x1b8] sm:$0xff] %v7206_v48   ;;  %7623 = vst [vmem:[%s13179_s4 + $0x1c0] sm:$0xff] %v7211_v35   ;;  %v11861_v58 = vmul.f32 %v14376_v36, %v14366_v23  ;;  %v11865_v20 = vmul.f32 %v14377_v30, %v14366_v23  ;;  %v11869_v1 = vmul.f32 %v14366_v23, %v14378_v11  ;;  %v14384_v32 = vld [vmem:[#allocation150_spill] sm:$0xff]  ;;  %v14387_v19 = vld [vmem:[#allocation164_spill] sm:$0xff] }
 0x3af   :  { %7624 = vst [vmem:[%s13179_s4 + $0x1c8] sm:$0xff] %v7216_v25   ;;  %7625 = vst [vmem:[%s13179_s4 + $0x1d0] sm:$0xff] %v7221_v55   ;;  %v11873_v61 = vmul.f32 %v14366_v23, %v14379_v42  ;;  %v11877_v12 = vmul.f32 %v14380_v47, %v14366_v23  ;;  %v11881_v13 = vmul.f32 %v14381_v3, %v14366_v23  ;;  %v14385_v49 = vld [vmem:[#allocation154_spill] sm:$0xff]  ;;  %v14390_v22 = vld [vmem:[#allocation168_spill] sm:$0xff] }
 0x3b0   :  { %7626 = vst [vmem:[%s13179_s4 + $0x1d8] sm:$0xff] %v7226_v54   ;;  %7627 = vst [vmem:[%s13179_s4 + $0x1e0] sm:$0xff] %v7231_v44   ;;  %v11885_v21 = vmul.f32 %v14366_v23, %v14382_v15  ;;  %v11889_v7 = vmul.f32 %v14366_v23, %v14383_v41  ;;  %v11893_v27 = vmul.f32 %v14384_v32, %v14366_v23  ;;  %v14388_v59 = vld [vmem:[#allocation158_spill] sm:$0xff]  ;;  %v14391_v38 = vld [vmem:[#allocation172_spill] sm:$0xff] }
 0x3b1   :  { %7628 = vst [vmem:[%s13179_s4 + $0x1e8] sm:$0xff] %v7236_v33   ;;  %7629 = vst [vmem:[%s13179_s4 + $0x1f0] sm:$0xff] %v7241_v9   ;;  %v11897_v46 = vmul.f32 %v14385_v49, %v14366_v23  ;;  %v11901_v18 = vmul.f32 %v14366_v23, %v14386_v51  ;;  %v11905_v2 = vmul.f32 %v14366_v23, %v14387_v19  ;;  %v14389_v40 = vld [vmem:[#allocation162_spill] sm:$0xff]  ;;  %v14394_v25 = vld [vmem:[#allocation176_spill] sm:$0xff] }
 0x3b2   :  { %7630 = vst [vmem:[%s13179_s4 + $0x1f8] sm:$0xff] %v7246_v45   ;;  %v11909_v53 = vmul.f32 %v14388_v59, %v14366_v23  ;;  %v11913_v56 = vmul.f32 %v14389_v40, %v14366_v23  ;;  %v11917_v31 = vmul.f32 %v14366_v23, %v14390_v22  ;;  %v11921_v4 = vmul.f32 %v14366_v23, %v14391_v38  ;;  %v14392_v57 = vld [vmem:[#allocation166_spill] sm:$0xff]  ;;  %v14395_v54 = vld [vmem:[#allocation180_spill] sm:$0xff] }
 0x3b3   :  { %v11925_v52 = vmul.f32 %v14392_v57, %v14366_v23  ;;  %v14393_v48 = vld [vmem:[#allocation170_spill] sm:$0xff]  ;;  %v11933_v55 = vmul.f32 %v14366_v23, %v14394_v25  ;;  %v11937_v44 = vmul.f32 %v14366_v23, %v14395_v54  ;;  %v14398_v50 = vld [vmem:[#allocation184_spill] sm:$0xff] }
 0x3b4   :  { %v11929_v35 = vmul.f32 %v14393_v48, %v14366_v23  ;;  %v14396_v33 = vld [vmem:[#allocation174_spill] sm:$0xff]  ;;  %v11949_v60 = vmul.f32 %v14366_v23, %v14398_v50  ;;  %v14399_v10 = vld [vmem:[#allocation188_spill] sm:$0xff] }
 0x3b5   :  { %v11941_v9 = vmul.f32 %v14396_v33, %v14366_v23  ;;  %v14397_v45 = vld [vmem:[#allocation178_spill] sm:$0xff]  ;;  %v11953_v39 = vmul.f32 %v14366_v23, %v14399_v10  ;;  %v14402_v34 = vld [vmem:[#allocation192_spill] sm:$0xff] }
 0x3b6   :  { %v11945_v8 = vmul.f32 %v14397_v45, %v14366_v23  ;;  %v14400_v28 = vld [vmem:[#allocation182_spill] sm:$0xff]  ;;  %v11965_v36 = vmul.f32 %v14366_v23, %v14402_v34  ;;  %v14403_v30 = vld [vmem:[#allocation196_spill] sm:$0xff] }
 0x3b7   :  { %v11957_v29 = vmul.f32 %v14400_v28, %v14366_v23  ;;  %v14401_v62 = vld [vmem:[#allocation186_spill] sm:$0xff]  ;;  %v11969_v11 = vmul.f32 %v14366_v23, %v14403_v30  ;;  %v14406_v41 = vld [vmem:[#allocation200_spill] sm:$0xff] }
 0x3b8   :  { %v11961_v14 = vmul.f32 %v14401_v62, %v14366_v23  ;;  %v14404_v42 = vld [vmem:[#allocation190_spill] sm:$0xff]  ;;  %v11981_v32 = vmul.f32 %v14366_v23, %v14406_v41  ;;  %v14407_v49 = vld [vmem:[#allocation204_spill] sm:$0xff] }
 0x3b9   :  { %v11973_v47 = vmul.f32 %v14404_v42, %v14366_v23  ;;  %v14405_v3 = vld [vmem:[#allocation194_spill] sm:$0xff]  ;;  %v11985_v51 = vmul.f32 %v14366_v23, %v14407_v49  ;;  %v14410_v38 = vld [vmem:[#allocation208_spill] sm:$0xff] }
 0x3ba   :  { %v11977_v15 = vmul.f32 %v14405_v3, %v14366_v23  ;;  %v14408_v19 = vld [vmem:[#allocation198_spill] sm:$0xff]  ;;  %v11997_v57 = vmul.f32 %v14366_v23, %v14410_v38  ;;  %v14411_v48 = vld [vmem:[#allocation212_spill] sm:$0xff] }
 0x3bb   :  { %v11989_v59 = vmul.f32 %v14408_v19, %v14366_v23  ;;  %v14409_v40 = vld [vmem:[#allocation202_spill] sm:$0xff]  ;;  %v12001_v25 = vmul.f32 %v14366_v23, %v14411_v48  ;;  %v14414_v10 = vld [vmem:[#allocation216_spill] sm:$0xff] }
 0x3bc   :  { %v11993_v22 = vmul.f32 %v14409_v40, %v14366_v23  ;;  %v14412_v54 = vld [vmem:[#allocation206_spill] sm:$0xff]  ;;  %v12013_v28 = vmul.f32 %v14366_v23, %v14414_v10  ;;  %v14415_v62 = vld [vmem:[#allocation220_spill] sm:$0xff] }
 0x3bd   :  { %v12005_v33 = vmul.f32 %v14412_v54, %v14366_v23  ;;  %v14413_v45 = vld [vmem:[#allocation210_spill] sm:$0xff]  ;;  %v12017_v34 = vmul.f32 %v14366_v23, %v14415_v62  ;;  %v14418_v49 = vld [vmem:[#allocation224_spill] sm:$0xff] }
 0x3be   :  { %v12009_v50 = vmul.f32 %v14413_v45, %v14366_v23  ;;  %v14416_v30 = vld [vmem:[#allocation214_spill] sm:$0xff]  ;;  %v12029_v19 = vmul.f32 %v14366_v23, %v14418_v49  ;;  %v14420_v40 = vld [vmem:[#allocation228_spill] sm:$0xff] }
 0x3bf   :  { %v12021_v42 = vmul.f32 %v14416_v30, %v14366_v23  ;;  %v14417_v3 = vld [vmem:[#allocation218_spill] sm:$0xff]  ;;  %v12033_v38 = vmul.f32 %v14366_v23, %v14420_v40  ;;  %v14426_v62 = vld [vmem:[#allocation232_spill] sm:$0xff] }
 0x3c0   :  { %v12025_v41 = vmul.f32 %v14417_v3, %v14366_v23  ;;  %14419 = vst [vmem:[#allocation18_spill] sm:$0xff] %v12029_v19  ;;  %v14422_v48 = vld [vmem:[#allocation222_spill] sm:$0xff]  ;;  %v12045_v30 = vmul.f32 %v14366_v23, %v14426_v62  ;;  %v14428_v3 = vld [vmem:[#allocation236_spill] sm:$0xff] }
 0x3c1   :  { %14421 = vst [vmem:[#allocation24_spill] sm:$0xff] %v12033_v38  ;;  %v12037_v54 = vmul.f32 %v14422_v48, %v14366_v23  ;;  %v14424_v45 = vld [vmem:[#allocation226_spill] sm:$0xff]  ;;  %v12049_v49 = vmul.f32 %v14366_v23, %v14428_v3 }
 0x3c2   :  { %v12041_v10 = vmul.f32 %v14424_v45, %v14366_v23  ;;  %14427 = vst [vmem:[#allocation26_spill] sm:$0xff] %v12045_v30  ;;  %v14430_v19 = vld [vmem:[#allocation230_spill] sm:$0xff] }
 0x3c3   :  { %14423 = vst [vmem:[#allocation28_spill] sm:$0xff] %v12037_v54  ;;  %14429 = vst [vmem:[#allocation32_spill] sm:$0xff] %v12049_v49  ;;  %v12053_v40 = vmul.f32 %v14430_v19, %v14366_v23  ;;  %v14432_v38 = vld [vmem:[#allocation234_spill] sm:$0xff]  ;;  %v14433_v54 = vld [vmem:[#allocation240_spill] sm:$0xff] }
 0x3c4   :  { %14425 = vst [vmem:[#allocation22_spill] sm:$0xff] %v12041_v10  ;;  %v12057_v48 = vmul.f32 %v14432_v38, %v14366_v23  ;;  %v12061_v45 = vmul.f32 %v14366_v23, %v14433_v54  ;;  %v14434_v10 = vld [vmem:[#allocation244_spill] sm:$0xff]  ;;  %v14435_v30 = vld [vmem:[#allocation238_spill] sm:$0xff] }
 0x3c5   :  { %14431 = vst [vmem:[#allocation36_spill] sm:$0xff] %v12053_v40  ;;  %v12065_v62 = vmul.f32 %v14366_v23, %v14434_v10  ;;  %v12069_v3 = vmul.f32 %v14435_v30, %v14366_v23  ;;  %v14436_v49 = vld [vmem:[#allocation242_spill] sm:$0xff] }
 0x3c6   :  { %v12073_v19 = vmul.f32 %v14436_v49, %v14366_v23  ;;  %v14437_v40 = vld [vmem:[#allocation42_spill] sm:$0xff] }
 0x3c7   :  { %v12077_v38 = vadd.f32 %v11803_v63, %v14437_v40  ;;  %v12081_v54 = vadd.f32 %v11807_v6, %v14437_v40  ;;  %v12085_v10 = vadd.f32 %v11823_v24, %v14437_v40  ;;  %v12089_v30 = vadd.f32 %v11827_v16, %v14437_v40  ;;  %v14446_v23 = vld [vmem:[#allocation18_spill] sm:$0xff] }
 0x3c8   :  { %v12093_v49 = vadd.f32 %v11831_v5, %v14437_v40  ;;  %v12097_v63 = vadd.f32 %v11835_v43, %v14437_v40  ;;  %v12101_v6 = vadd.f32 %v11845_v0, %v14437_v40  ;;  %v12105_v24 = vadd.f32 %v11849_v17, %v14437_v40 }
 0x3c9   :  { %14438 = vst [vmem:[#allocation30_spill] sm:$0xff] %v12077_v38  ;;  %14439 = vst [vmem:[#allocation34_spill] sm:$0xff] %v12081_v54  ;;  %v12109_v16 = vadd.f32 %v11853_v37, %v14437_v40  ;;  %v12113_v5 = vadd.f32 %v11857_v26, %v14437_v40  ;;  %v12117_v43 = vadd.f32 %v11861_v58, %v14437_v40 }
 0x3ca   :  { %14440 = vst [vmem:[#allocation40_spill] sm:$0xff] %v12085_v10  ;;  %v12121_v0 = vadd.f32 %v11865_v20, %v14437_v40  ;;  %v12125_v17 = vadd.f32 %v11869_v1, %v14437_v40  ;;  %v12129_v37 = vadd.f32 %v11873_v61, %v14437_v40  ;;  %v12133_v26 = vadd.f32 %v11877_v12, %v14437_v40 }
 0x3cb   :  { %v12137_v58 = vadd.f32 %v11881_v13, %v14437_v40  ;;  %v12141_v20 = vadd.f32 %v11885_v21, %v14437_v40  ;;  %v12145_v1 = vadd.f32 %v11889_v7, %v14437_v40  ;;  %v12149_v61 = vadd.f32 %v11893_v27, %v14437_v40 }
 0x3cc   :  { %v12153_v12 = vadd.f32 %v11897_v46, %v14437_v40  ;;  %v12157_v13 = vadd.f32 %v11901_v18, %v14437_v40  ;;  %v12161_v21 = vadd.f32 %v11905_v2, %v14437_v40  ;;  %v12165_v7 = vadd.f32 %v11909_v53, %v14437_v40 }
 0x3cd   :  { %v12169_v27 = vadd.f32 %v11913_v56, %v14437_v40  ;;  %v12173_v46 = vadd.f32 %v11917_v31, %v14437_v40  ;;  %v12177_v18 = vadd.f32 %v11921_v4, %v14437_v40  ;;  %v12181_v2 = vadd.f32 %v11925_v52, %v14437_v40 }
 0x3ce   :  { %v12185_v53 = vadd.f32 %v11929_v35, %v14437_v40  ;;  %v12189_v56 = vadd.f32 %v11933_v55, %v14437_v40  ;;  %v12193_v31 = vadd.f32 %v11937_v44, %v14437_v40  ;;  %v12197_v4 = vadd.f32 %v11941_v9, %v14437_v40 }
 0x3cf   :  { %v12201_v52 = vadd.f32 %v11945_v8, %v14437_v40  ;;  %v12205_v35 = vadd.f32 %v11949_v60, %v14437_v40  ;;  %v12209_v55 = vadd.f32 %v11953_v39, %v14437_v40  ;;  %v12213_v44 = vadd.f32 %v11957_v29, %v14437_v40 }
 0x3d0   :  { %v12217_v9 = vadd.f32 %v11961_v14, %v14437_v40  ;;  %v12221_v8 = vadd.f32 %v11965_v36, %v14437_v40  ;;  %v12225_v60 = vadd.f32 %v11969_v11, %v14437_v40  ;;  %v12229_v39 = vadd.f32 %v11973_v47, %v14437_v40 }
 0x3d1   :  { %v12233_v29 = vadd.f32 %v11977_v15, %v14437_v40  ;;  %v12237_v14 = vadd.f32 %v11981_v32, %v14437_v40  ;;  %v12241_v36 = vadd.f32 %v11985_v51, %v14437_v40  ;;  %v12245_v11 = vadd.f32 %v11989_v59, %v14437_v40 }
 0x3d2   :  { %v12249_v47 = vadd.f32 %v11993_v22, %v14437_v40  ;;  %v12253_v15 = vadd.f32 %v11997_v57, %v14437_v40  ;;  %v12257_v32 = vadd.f32 %v12001_v25, %v14437_v40  ;;  %v12261_v51 = vadd.f32 %v12005_v33, %v14437_v40 }
 0x3d3   :  { %v12265_v59 = vadd.f32 %v12009_v50, %v14437_v40  ;;  %v12269_v22 = vadd.f32 %v12013_v28, %v14437_v40  ;;  %v12273_v57 = vadd.f32 %v12017_v34, %v14437_v40  ;;  %v12277_v25 = vadd.f32 %v12021_v42, %v14437_v40 }
 0x3d4   :  { %v12281_v33 = vadd.f32 %v12025_v41, %v14437_v40  ;;  %v12285_v50 = vadd.f32 %v14446_v23, %v14437_v40 }
 0x3d5   :  { %14441 = vst [vmem:[#allocation44_spill] sm:$0xff] %v12265_v59  ;;  %14442 = vst [vmem:[#allocation38_spill] sm:$0xff] %v12269_v22  ;;  %v14448_v59 = vld [vmem:[#allocation24_spill] sm:$0xff] }
 0x3d6   :  { %14443 = vst [vmem:[#allocation66_spill] sm:$0xff] %v12273_v57  ;;  %14444 = vst [vmem:[#allocation72_spill] sm:$0xff] %v12277_v25  ;;  %v12289_v28 = vadd.f32 %v14448_v59, %v14437_v40  ;;  %v14449_v22 = vld [vmem:[#allocation28_spill] sm:$0xff]  ;;  %v14450_v57 = vld [vmem:[#allocation22_spill] sm:$0xff] }
 0x3d7   :  { %14445 = vst [vmem:[#allocation76_spill] sm:$0xff] %v12281_v33  ;;  %14447 = vst [vmem:[#allocation70_spill] sm:$0xff] %v12285_v50  ;;  %v12293_v34 = vadd.f32 %v14449_v22, %v14437_v40  ;;  %v12297_v42 = vadd.f32 %v14450_v57, %v14437_v40  ;;  %v14451_v25 = vld [vmem:[#allocation26_spill] sm:$0xff]  ;;  %v14452_v33 = vld [vmem:[#allocation32_spill] sm:$0xff]  ;;  %v12313_v22 = vadd.f32 %v12057_v48, %v14437_v40  ;;  %v4845_v48 = vmax.f32 %v12121_v0, 0.0 }
 0x3d8   :  { %v12301_v41 = vadd.f32 %v14451_v25, %v14437_v40  ;;  %v12305_v23 = vadd.f32 %v14452_v33, %v14437_v40  ;;  %v14454_v50 = vld [vmem:[#allocation36_spill] sm:$0xff]  ;;  %v12317_v57 = vadd.f32 %v12061_v45, %v14437_v40  ;;  %v12321_v25 = vadd.f32 %v12065_v62, %v14437_v40 }
 0x3d9   :  { %v12309_v59 = vadd.f32 %v14454_v50, %v14437_v40  ;;  %14456 = vst [vmem:[#allocation84_spill] sm:$0xff] %v12313_v22  ;;  %v12325_v33 = vadd.f32 %v12069_v3, %v14437_v40  ;;  %v12329_v50 = vadd.f32 %v12073_v19, %v14437_v40  ;;  %v4837_v45 = vmax.f32 %v12089_v30, 0.0 }
 0x3da   :  { %14453 = vst [vmem:[#allocation74_spill] sm:$0xff] %v12305_v23  ;;  %14457 = vst [vmem:[#allocation78_spill] sm:$0xff] %v12317_v57  ;;  %v4838_v57 = vmax.f32 %v12093_v49, 0.0  ;;  %v4839_v62 = vmax.f32 %v12097_v63, 0.0  ;;  %v4841_v3 = vmax.f32 %v12105_v24, 0.0  ;;  %v4843_v19 = vmax.f32 %v12113_v5, 0.0 }
 0x3db   :  { %14455 = vst [vmem:[#allocation80_spill] sm:$0xff] %v12309_v59  ;;  %14458 = vst [vmem:[#allocation82_spill] sm:$0xff] %v12321_v25  ;;  %v4840_v25 = vmax.f32 %v12101_v6, 0.0  ;;  %v4844_v59 = vmax.f32 %v12117_v43, 0.0  ;;  %v4846_v22 = vmax.f32 %v12125_v17, 0.0  ;;  %v4847_v30 = vmax.f32 %v12129_v37, 0.0 }
 0x3dc   :  { %14459 = vst [vmem:[#allocation88_spill] sm:$0xff] %v12325_v33  ;;  %14460 = vst [vmem:[#allocation92_spill] sm:$0xff] %v12329_v50  ;;  %v4842_v33 = vmax.f32 %v12109_v16, 0.0  ;;  %v4848_v49 = vmax.f32 %v12133_v26, 0.0  ;;  %v4849_v63 = vmax.f32 %v12137_v58, 0.0  ;;  %v4850_v6 = vmax.f32 %v12141_v20, 0.0 }
 0x3dd   :  { %v4851_v24 = vmax.f32 %v12145_v1, 0.0  ;;  %v4852_v16 = vmax.f32 %v12149_v61, 0.0  ;;  %v4853_v5 = vmax.f32 %v12153_v12, 0.0  ;;  %v4854_v43 = vmax.f32 %v12157_v13, 0.0  ;;  %v14461_v40 = vld [vmem:[#allocation44_spill] sm:$0xff]  ;;  %v14462_v10 = vld [vmem:[#allocation38_spill] sm:$0xff] }
 0x3de   :  { %v4855_v0 = vmax.f32 %v12161_v21, 0.0  ;;  %v4856_v17 = vmax.f32 %v12165_v7, 0.0  ;;  %v4857_v37 = vmax.f32 %v12169_v27, 0.0  ;;  %v4858_v26 = vmax.f32 %v12173_v46, 0.0  ;;  %v14463_v54 = vld [vmem:[#allocation66_spill] sm:$0xff]  ;;  %v14464_v38 = vld [vmem:[#allocation72_spill] sm:$0xff] }
 0x3df   :  { %v4859_v58 = vmax.f32 %v12177_v18, 0.0  ;;  %v4860_v20 = vmax.f32 %v12181_v2, 0.0  ;;  %v4861_v1 = vmax.f32 %v12185_v53, 0.0  ;;  %v4862_v61 = vmax.f32 %v12189_v56, 0.0  ;;  %v14465_v50 = vld [vmem:[#allocation76_spill] sm:$0xff]  ;;  %v14466_v23 = vld [vmem:[#allocation70_spill] sm:$0xff] }
 0x3e0   :  { %v4863_v12 = vmax.f32 %v12193_v31, 0.0  ;;  %v4864_v13 = vmax.f32 %v12197_v4, 0.0  ;;  %v4865_v21 = vmax.f32 %v12201_v52, 0.0  ;;  %v4866_v7 = vmax.f32 %v12205_v35, 0.0 }
 0x3e1   :  { %v4867_v27 = vmax.f32 %v12209_v55, 0.0  ;;  %v4868_v46 = vmax.f32 %v12213_v44, 0.0  ;;  %v4869_v18 = vmax.f32 %v12217_v9, 0.0  ;;  %v4870_v2 = vmax.f32 %v12221_v8, 0.0 }
 0x3e2   :  { %v4871_v53 = vmax.f32 %v12225_v60, 0.0  ;;  %v4872_v56 = vmax.f32 %v12229_v39, 0.0  ;;  %v4873_v31 = vmax.f32 %v12233_v29, 0.0  ;;  %v4874_v4 = vmax.f32 %v12237_v14, 0.0 }
 0x3e3   :  { %v4875_v52 = vmax.f32 %v12241_v36, 0.0  ;;  %v4876_v35 = vmax.f32 %v12245_v11, 0.0  ;;  %v4877_v55 = vmax.f32 %v12249_v47, 0.0  ;;  %v4878_v44 = vmax.f32 %v12253_v15, 0.0 }
 0x3e4   :  { %v4879_v9 = vmax.f32 %v12257_v32, 0.0  ;;  %v4880_v8 = vmax.f32 %v12261_v51, 0.0  ;;  %v4881_v60 = vmax.f32 %v14461_v40, 0.0  ;;  %v4882_v39 = vmax.f32 %v14462_v10, 0.0  ;;  %v14467_v40 = vld [vmem:[#allocation74_spill] sm:$0xff] }
 0x3e5   :  { %v4883_v29 = vmax.f32 %v14463_v54, 0.0  ;;  %v4884_v14 = vmax.f32 %v14464_v38, 0.0  ;;  %v4885_v36 = vmax.f32 %v14465_v50, 0.0  ;;  %v4886_v11 = vmax.f32 %v14466_v23, 0.0  ;;  %v14468_v54 = vld [vmem:[#allocation80_spill] sm:$0xff] }
 0x3e6   :  { %v4887_v47 = vmax.f32 %v12289_v28, 0.0  ;;  %v4888_v15 = vmax.f32 %v12293_v34, 0.0  ;;  %v4889_v32 = vmax.f32 %v12297_v42, 0.0  ;;  %v4890_v51 = vmax.f32 %v12301_v41, 0.0  ;;  %v14469_v50 = vld [vmem:[#allocation84_spill] sm:$0xff]  ;;  %v14470_v28 = vld [vmem:[#allocation78_spill] sm:$0xff] }
 0x3e7   :  { %v4891_v10 = vmax.f32 %v14467_v40, 0.0  ;;  %v4892_v38 = vmax.f32 %v14468_v54, 0.0  ;;  %v4893_v23 = vmax.f32 %v14469_v50, 0.0  ;;  %v4894_v34 = vmax.f32 %v14470_v28, 0.0  ;;  %v14471_v42 = vld [vmem:[#allocation82_spill] sm:$0xff]  ;;  %v14472_v40 = vld [vmem:[#allocation88_spill] sm:$0xff] }
 0x3e8   :  { %v4895_v41 = vmax.f32 %v14471_v42, 0.0  ;;  %v4896_v54 = vmax.f32 %v14472_v40, 0.0  ;;  %v14473_v50 = vld [vmem:[#allocation92_spill] sm:$0xff]  ;;  %v14474_v42 = vld [vmem:[#allocation30_spill] sm:$0xff] }
 0x3e9   :  { %v4897_v28 = vmax.f32 %v14473_v50, 0.0  ;;  %v14475_v40 = vmax.f32 %v14474_v42, 0.0  ;;  %v14476_v50 = vld [vmem:[#allocation34_spill] sm:$0xff] }
 0x3ea   :  { %v14477_v42 = vmax.f32 %v14476_v50, 0.0 }
 0x3ec   :  { %v7251_v50 = vpack.c.bf16 %v14477_v42, %v14475_v40  ;;  %v14478_v40 = vld [vmem:[#allocation40_spill] sm:$0xff] }
 0x3ed   :  { %v14479_v42 = vmax.f32 %v14478_v40, 0.0 }
 0x3ee   :  { %7631 = vst [vmem:[%s13179_s4 + $0x200] sm:$0xff] %v7251_v50  }
 0x3ef   :  { %v7256_v40 = vpack.c.bf16 %v4837_v45, %v14479_v42  ;;  %v7261_v42 = vpack.c.bf16 %v4839_v62, %v4838_v57  ;;  %v7266_v45 = vpack.c.bf16 %v4841_v3, %v4840_v25  ;;  %v7271_v57 = vpack.c.bf16 %v4843_v19, %v4842_v33 }
 0x3f0   :  { %v7276_v62 = vpack.c.bf16 %v4845_v48, %v4844_v59  ;;  %v7281_v3 = vpack.c.bf16 %v4847_v30, %v4846_v22  ;;  %v7286_v25 = vpack.c.bf16 %v4849_v63, %v4848_v49  ;;  %v7291_v19 = vpack.c.bf16 %v4851_v24, %v4850_v6 }
 0x3f1   :  { %7632 = vst [vmem:[%s13179_s4 + $0x208] sm:$0xff] %v7256_v40   ;;  %v7296_v33 = vpack.c.bf16 %v4853_v5, %v4852_v16  ;;  %7633 = vst [vmem:[%s13179_s4 + $0x210] sm:$0xff] %v7261_v42   ;;  %v7301_v59 = vpack.c.bf16 %v4855_v0, %v4854_v43  ;;  %v7306_v22 = vpack.c.bf16 %v4857_v37, %v4856_v17  ;;  %v14497_v40 = vld [vmem:[#allocation153_spill] sm:$0xff] }
 0x3f2   :  { %7634 = vst [vmem:[%s13179_s4 + $0x218] sm:$0xff] %v7266_v45   ;;  %7635 = vst [vmem:[%s13179_s4 + $0x220] sm:$0xff] %v7271_v57   ;;  %v7311_v48 = vpack.c.bf16 %v4859_v58, %v4858_v26  ;;  %v7316_v30 = vpack.c.bf16 %v4861_v1, %v4860_v20  ;;  %v7321_v49 = vpack.c.bf16 %v4863_v12, %v4862_v61  ;;  %v14498_v45 = vld [vmem:[#allocation157_spill] sm:$0xff] }
 0x3f3   :  { %7636 = vst [vmem:[%s13179_s4 + $0x228] sm:$0xff] %v7276_v62   ;;  %7637 = vst [vmem:[%s13179_s4 + $0x230] sm:$0xff] %v7281_v3   ;;  %v7326_v63 = vpack.c.bf16 %v4865_v21, %v4864_v13  ;;  %v7331_v6 = vpack.c.bf16 %v4867_v27, %v4866_v7  ;;  %v7336_v24 = vpack.c.bf16 %v4869_v18, %v4868_v46  ;;  %v14480_v7 = vld [vmem:[#allocation121_spill] sm:$0xff]  ;;  %v14481_v27 = vld [vmem:[#allocation246_spill] sm:$0xff] }
 0x3f4   :  { %7638 = vst [vmem:[%s13179_s4 + $0x238] sm:$0xff] %v7286_v25   ;;  %7639 = vst [vmem:[%s13179_s4 + $0x240] sm:$0xff] %v7291_v19   ;;  %v7341_v16 = vpack.c.bf16 %v4871_v53, %v4870_v2  ;;  %v7346_v5 = vpack.c.bf16 %v4873_v31, %v4872_v56  ;;  %v7351_v43 = vpack.c.bf16 %v4875_v52, %v4874_v4  ;;  %v14482_v18 = vld [vmem:[#allocation125_spill] sm:$0xff]  ;;  %v14483_v53 = vld [vmem:[#allocation119_spill] sm:$0xff] }
 0x3f5   :  { %7640 = vst [vmem:[%s13179_s4 + $0x248] sm:$0xff] %v7296_v33   ;;  %7641 = vst [vmem:[%s13179_s4 + $0x250] sm:$0xff] %v7301_v59   ;;  %v7356_v0 = vpack.c.bf16 %v4877_v55, %v4876_v35  ;;  %v7361_v17 = vpack.c.bf16 %v4879_v9, %v4878_v44  ;;  %v7366_v37 = vpack.c.bf16 %v4881_v60, %v4880_v8  ;;  %v14484_v31 = vld [vmem:[#allocation123_spill] sm:$0xff]  ;;  %v14485_v52 = vld [vmem:[#allocation129_spill] sm:$0xff] }
 0x3f6   :  { %7642 = vst [vmem:[%s13179_s4 + $0x258] sm:$0xff] %v7306_v22   ;;  %7643 = vst [vmem:[%s13179_s4 + $0x260] sm:$0xff] %v7311_v48   ;;  %v7371_v26 = vpack.c.bf16 %v4883_v29, %v4882_v39  ;;  %v7376_v58 = vpack.c.bf16 %v4885_v36, %v4884_v14  ;;  %v7381_v20 = vpack.c.bf16 %v4887_v47, %v4886_v11  ;;  %v14486_v55 = vld [vmem:[#allocation133_spill] sm:$0xff]  ;;  %v14487_v9 = vld [vmem:[#allocation127_spill] sm:$0xff] }
 0x3f7   :  { %7644 = vst [vmem:[%s13179_s4 + $0x268] sm:$0xff] %v7316_v30   ;;  %7645 = vst [vmem:[%s13179_s4 + $0x270] sm:$0xff] %v7321_v49   ;;  %v7386_v1 = vpack.c.bf16 %v4889_v32, %v4888_v15  ;;  %v7391_v61 = vpack.c.bf16 %v4891_v10, %v4890_v51  ;;  %v7396_v12 = vpack.c.bf16 %v4893_v23, %v4892_v38  ;;  %v14488_v60 = vld [vmem:[#allocation131_spill] sm:$0xff]  ;;  %v14489_v29 = vld [vmem:[#allocation137_spill] sm:$0xff] }
 0x3f8   :  { %7646 = vst [vmem:[%s13179_s4 + $0x278] sm:$0xff] %v7326_v63   ;;  %7647 = vst [vmem:[%s13179_s4 + $0x280] sm:$0xff] %v7331_v6   ;;  %v7401_v13 = vpack.c.bf16 %v4895_v41, %v4894_v34  ;;  %v7406_v21 = vpack.c.bf16 %v4897_v28, %v4896_v54  ;;  %v12481_v46 = vmul.f32 %v14481_v27, %v14480_v7  ;;  %v14490_v36 = vld [vmem:[#allocation141_spill] sm:$0xff]  ;;  %v14491_v47 = vld [vmem:[#allocation135_spill] sm:$0xff] }
 0x3f9   :  { %7648 = vst [vmem:[%s13179_s4 + $0x288] sm:$0xff] %v7336_v24   ;;  %7649 = vst [vmem:[%s13179_s4 + $0x290] sm:$0xff] %v7341_v16   ;;  %v12485_v2 = vmul.f32 %v14481_v27, %v14482_v18  ;;  %v12501_v56 = vmul.f32 %v14483_v53, %v14481_v27  ;;  %v12505_v4 = vmul.f32 %v14484_v31, %v14481_v27  ;;  %v14492_v32 = vld [vmem:[#allocation139_spill] sm:$0xff]  ;;  %v14493_v10 = vld [vmem:[#allocation145_spill] sm:$0xff] }
 0x3fa   :  { %7650 = vst [vmem:[%s13179_s4 + $0x298] sm:$0xff] %v7346_v5   ;;  %7651 = vst [vmem:[%s13179_s4 + $0x2a0] sm:$0xff] %v7351_v43   ;;  %v12509_v35 = vmul.f32 %v14481_v27, %v14485_v52  ;;  %v12513_v44 = vmul.f32 %v14481_v27, %v14486_v55  ;;  %v12523_v8 = vmul.f32 %v14487_v9, %v14481_v27  ;;  %v14494_v23 = vld [vmem:[#allocation149_spill] sm:$0xff]  ;;  %v14495_v41 = vld [vmem:[#allocation143_spill] sm:$0xff] }
 0x3fb   :  { %7652 = vst [vmem:[%s13179_s4 + $0x2a8] sm:$0xff] %v7356_v0   ;;  %7653 = vst [vmem:[%s13179_s4 + $0x2b0] sm:$0xff] %v7361_v17   ;;  %v12527_v39 = vmul.f32 %v14488_v60, %v14481_v27  ;;  %v12531_v14 = vmul.f32 %v14481_v27, %v14489_v29  ;;  %v12535_v11 = vmul.f32 %v14481_v27, %v14490_v36  ;;  %v14496_v28 = vld [vmem:[#allocation147_spill] sm:$0xff]  ;;  %v14501_v33 = vld [vmem:[#allocation161_spill] sm:$0xff] }
 0x3fc   :  { %7654 = vst [vmem:[%s13179_s4 + $0x2b8] sm:$0xff] %v7366_v37   ;;  %7655 = vst [vmem:[%s13179_s4 + $0x2c0] sm:$0xff] %v7371_v26   ;;  %v12539_v15 = vmul.f32 %v14491_v47, %v14481_v27  ;;  %v12543_v51 = vmul.f32 %v14492_v32, %v14481_v27  ;;  %v12547_v38 = vmul.f32 %v14481_v27, %v14493_v10  ;;  %v14499_v62 = vld [vmem:[#allocation151_spill] sm:$0xff]  ;;  %v14502_v22 = vld [vmem:[#allocation165_spill] sm:$0xff] }
 0x3fd   :  { %7656 = vst [vmem:[%s13179_s4 + $0x2c8] sm:$0xff] %v7376_v58   ;;  %7657 = vst [vmem:[%s13179_s4 + $0x2d0] sm:$0xff] %v7381_v20   ;;  %v12551_v34 = vmul.f32 %v14481_v27, %v14494_v23  ;;  %v12555_v54 = vmul.f32 %v14495_v41, %v14481_v27  ;;  %v12559_v50 = vmul.f32 %v14496_v28, %v14481_v27  ;;  %v14500_v25 = vld [vmem:[#allocation155_spill] sm:$0xff]  ;;  %v14505_v24 = vld [vmem:[#allocation169_spill] sm:$0xff] }
 0x3fe   :  { %7658 = vst [vmem:[%s13179_s4 + $0x2d8] sm:$0xff] %v7386_v1   ;;  %7659 = vst [vmem:[%s13179_s4 + $0x2e0] sm:$0xff] %v7391_v61   ;;  %v12563_v42 = vmul.f32 %v14481_v27, %v14497_v40  ;;  %v12567_v57 = vmul.f32 %v14481_v27, %v14498_v45  ;;  %v12571_v3 = vmul.f32 %v14499_v62, %v14481_v27  ;;  %v14503_v30 = vld [vmem:[#allocation159_spill] sm:$0xff]  ;;  %v14506_v5 = vld [vmem:[#allocation173_spill] sm:$0xff] }
 0x3ff   :  { %7660 = vst [vmem:[%s13179_s4 + $0x2e8] sm:$0xff] %v7396_v12   ;;  %7661 = vst [vmem:[%s13179_s4 + $0x2f0] sm:$0xff] %v7401_v13   ;;  %v12575_v19 = vmul.f32 %v14500_v25, %v14481_v27  ;;  %v12579_v59 = vmul.f32 %v14481_v27, %v14501_v33  ;;  %v12583_v48 = vmul.f32 %v14481_v27, %v14502_v22  ;;  %v14504_v63 = vld [vmem:[#allocation163_spill] sm:$0xff]  ;;  %v14509_v58 = vld [vmem:[#allocation177_spill] sm:$0xff] }
 0x400   :  { %7662 = vst [vmem:[%s13179_s4 + $0x2f8] sm:$0xff] %v7406_v21   ;;  %v12587_v49 = vmul.f32 %v14503_v30, %v14481_v27  ;;  %v12591_v6 = vmul.f32 %v14504_v63, %v14481_v27  ;;  %v12595_v16 = vmul.f32 %v14481_v27, %v14505_v24  ;;  %v12599_v43 = vmul.f32 %v14481_v27, %v14506_v5  ;;  %v14507_v0 = vld [vmem:[#allocation167_spill] sm:$0xff]  ;;  %v14510_v1 = vld [vmem:[#allocation181_spill] sm:$0xff] }
 0x401   :  { %v12603_v17 = vmul.f32 %v14507_v0, %v14481_v27  ;;  %v14508_v37 = vld [vmem:[#allocation171_spill] sm:$0xff]  ;;  %v12611_v20 = vmul.f32 %v14481_v27, %v14509_v58  ;;  %v12615_v61 = vmul.f32 %v14481_v27, %v14510_v1  ;;  %v14513_v18 = vld [vmem:[#allocation185_spill] sm:$0xff] }
 0x402   :  { %v12607_v26 = vmul.f32 %v14508_v37, %v14481_v27  ;;  %v14511_v12 = vld [vmem:[#allocation175_spill] sm:$0xff]  ;;  %v12627_v53 = vmul.f32 %v14481_v27, %v14513_v18  ;;  %v14514_v31 = vld [vmem:[#allocation189_spill] sm:$0xff] }
 0x403   :  { %v12619_v13 = vmul.f32 %v14511_v12, %v14481_v27  ;;  %v14512_v21 = vld [vmem:[#allocation179_spill] sm:$0xff]  ;;  %v12631_v52 = vmul.f32 %v14481_v27, %v14514_v31  ;;  %v14517_v36 = vld [vmem:[#allocation193_spill] sm:$0xff] }
 0x404   :  { %v12623_v7 = vmul.f32 %v14512_v21, %v14481_v27  ;;  %v14515_v55 = vld [vmem:[#allocation183_spill] sm:$0xff]  ;;  %v12643_v47 = vmul.f32 %v14481_v27, %v14517_v36  ;;  %v14518_v32 = vld [vmem:[#allocation197_spill] sm:$0xff] }
 0x405   :  { %v12635_v9 = vmul.f32 %v14515_v55, %v14481_v27  ;;  %v14516_v60 = vld [vmem:[#allocation187_spill] sm:$0xff]  ;;  %v12647_v10 = vmul.f32 %v14481_v27, %v14518_v32  ;;  %v14521_v45 = vld [vmem:[#allocation201_spill] sm:$0xff] }
 0x406   :  { %v12639_v29 = vmul.f32 %v14516_v60, %v14481_v27  ;;  %v14519_v23 = vld [vmem:[#allocation191_spill] sm:$0xff]  ;;  %v12659_v62 = vmul.f32 %v14481_v27, %v14521_v45  ;;  %v14522_v25 = vld [vmem:[#allocation205_spill] sm:$0xff] }
 0x407   :  { %v12651_v41 = vmul.f32 %v14519_v23, %v14481_v27  ;;  %v14520_v28 = vld [vmem:[#allocation195_spill] sm:$0xff]  ;;  %v12663_v33 = vmul.f32 %v14481_v27, %v14522_v25  ;;  %v14525_v5 = vld [vmem:[#allocation209_spill] sm:$0xff] }
 0x408   :  { %v12655_v40 = vmul.f32 %v14520_v28, %v14481_v27  ;;  %v14523_v22 = vld [vmem:[#allocation199_spill] sm:$0xff]  ;;  %v12675_v0 = vmul.f32 %v14481_v27, %v14525_v5  ;;  %v14526_v37 = vld [vmem:[#allocation213_spill] sm:$0xff] }
 0x409   :  { %v12667_v30 = vmul.f32 %v14523_v22, %v14481_v27  ;;  %v14524_v63 = vld [vmem:[#allocation203_spill] sm:$0xff]  ;;  %v12679_v58 = vmul.f32 %v14481_v27, %v14526_v37  ;;  %v14529_v31 = vld [vmem:[#allocation217_spill] sm:$0xff] }
 0x40a   :  { %v12671_v24 = vmul.f32 %v14524_v63, %v14481_v27  ;;  %v14527_v1 = vld [vmem:[#allocation207_spill] sm:$0xff]  ;;  %v12691_v55 = vmul.f32 %v14481_v27, %v14529_v31  ;;  %v14530_v60 = vld [vmem:[#allocation221_spill] sm:$0xff] }
 0x40b   :  { %v12683_v12 = vmul.f32 %v14527_v1, %v14481_v27  ;;  %v14528_v21 = vld [vmem:[#allocation211_spill] sm:$0xff]  ;;  %v12695_v36 = vmul.f32 %v14481_v27, %v14530_v60  ;;  %v14533_v25 = vld [vmem:[#allocation225_spill] sm:$0xff] }
 0x40c   :  { %v12687_v18 = vmul.f32 %v14528_v21, %v14481_v27  ;;  %v14531_v32 = vld [vmem:[#allocation215_spill] sm:$0xff]  ;;  %v12707_v22 = vmul.f32 %v14481_v27, %v14533_v25  ;;  %v14535_v63 = vld [vmem:[#allocation229_spill] sm:$0xff] }
 0x40d   :  { %v12699_v23 = vmul.f32 %v14531_v32, %v14481_v27  ;;  %v14532_v28 = vld [vmem:[#allocation219_spill] sm:$0xff]  ;;  %v12711_v5 = vmul.f32 %v14481_v27, %v14535_v63  ;;  %v14541_v60 = vld [vmem:[#allocation233_spill] sm:$0xff] }
 0x40e   :  { %v12703_v45 = vmul.f32 %v14532_v28, %v14481_v27  ;;  %14534 = vst [vmem:[#allocation86_spill] sm:$0xff] %v12707_v22  ;;  %v14537_v37 = vld [vmem:[#allocation223_spill] sm:$0xff]  ;;  %v12723_v32 = vmul.f32 %v14481_v27, %v14541_v60  ;;  %v14543_v28 = vld [vmem:[#allocation237_spill] sm:$0xff] }
 0x40f   :  { %14536 = vst [vmem:[#allocation54_spill] sm:$0xff] %v12711_v5  ;;  %v12715_v1 = vmul.f32 %v14537_v37, %v14481_v27  ;;  %v14539_v21 = vld [vmem:[#allocation227_spill] sm:$0xff]  ;;  %v12727_v25 = vmul.f32 %v14481_v27, %v14543_v28 }
 0x410   :  { %v12719_v31 = vmul.f32 %v14539_v21, %v14481_v27  ;;  %14542 = vst [vmem:[#allocation68_spill] sm:$0xff] %v12723_v32  ;;  %v14545_v22 = vld [vmem:[#allocation231_spill] sm:$0xff] }
 0x411   :  { %14538 = vst [vmem:[#allocation58_spill] sm:$0xff] %v12715_v1  ;;  %14544 = vst [vmem:[#allocation62_spill] sm:$0xff] %v12727_v25  ;;  %v12731_v63 = vmul.f32 %v14545_v22, %v14481_v27  ;;  %v14547_v5 = vld [vmem:[#allocation235_spill] sm:$0xff]  ;;  %v14548_v1 = vld [vmem:[#allocation241_spill] sm:$0xff] }
 0x412   :  { %14540 = vst [vmem:[#allocation64_spill] sm:$0xff] %v12719_v31  ;;  %v12735_v37 = vmul.f32 %v14547_v5, %v14481_v27  ;;  %v12739_v21 = vmul.f32 %v14481_v27, %v14548_v1  ;;  %v14549_v31 = vld [vmem:[#allocation245_spill] sm:$0xff]  ;;  %v14550_v32 = vld [vmem:[#allocation239_spill] sm:$0xff] }
 0x413   :  { %14546 = vst [vmem:[#allocation6_spill] sm:$0xff] %v12731_v63  ;;  %v12743_v60 = vmul.f32 %v14481_v27, %v14549_v31  ;;  %v12747_v28 = vmul.f32 %v14550_v32, %v14481_v27  ;;  %v14551_v25 = vld [vmem:[#allocation243_spill] sm:$0xff]  ;;  %v14552_v63 = vld [vmem:[#allocation42_spill] sm:$0xff] }
 0x414   :  { %v12751_v22 = vmul.f32 %v14551_v25, %v14481_v27  ;;  %v12755_v5 = vadd.f32 %v12481_v46, %v14552_v63  ;;  %v12759_v1 = vadd.f32 %v12485_v2, %v14552_v63  ;;  %v12763_v31 = vadd.f32 %v12501_v56, %v14552_v63 }
 0x415   :  { %v12767_v32 = vadd.f32 %v12505_v4, %v14552_v63  ;;  %v12771_v27 = vadd.f32 %v12509_v35, %v14552_v63  ;;  %v12775_v46 = vadd.f32 %v12513_v44, %v14552_v63  ;;  %v12779_v2 = vadd.f32 %v12523_v8, %v14552_v63  ;;  %v14561_v25 = vld [vmem:[#allocation86_spill] sm:$0xff] }
 0x416   :  { %14553 = vst [vmem:[#allocation8_spill] sm:$0xff] %v12755_v5  ;;  %14554 = vst [vmem:[#allocation11_spill] sm:$0xff] %v12759_v1  ;;  %v12783_v56 = vadd.f32 %v12527_v39, %v14552_v63  ;;  %v12787_v4 = vadd.f32 %v12531_v14, %v14552_v63  ;;  %v12791_v35 = vadd.f32 %v12535_v11, %v14552_v63 }
 0x417   :  { %14555 = vst [vmem:[#allocation13_spill] sm:$0xff] %v12763_v31  ;;  %v12795_v44 = vadd.f32 %v12539_v15, %v14552_v63  ;;  %v12799_v8 = vadd.f32 %v12543_v51, %v14552_v63  ;;  %v12803_v39 = vadd.f32 %v12547_v38, %v14552_v63  ;;  %v12807_v14 = vadd.f32 %v12551_v34, %v14552_v63 }
 0x418   :  { %v12811_v11 = vadd.f32 %v12555_v54, %v14552_v63  ;;  %v12815_v15 = vadd.f32 %v12559_v50, %v14552_v63  ;;  %v12819_v51 = vadd.f32 %v12563_v42, %v14552_v63  ;;  %v12823_v38 = vadd.f32 %v12567_v57, %v14552_v63 }
 0x419   :  { %v12827_v34 = vadd.f32 %v12571_v3, %v14552_v63  ;;  %v12831_v54 = vadd.f32 %v12575_v19, %v14552_v63  ;;  %v12835_v50 = vadd.f32 %v12579_v59, %v14552_v63  ;;  %v12839_v42 = vadd.f32 %v12583_v48, %v14552_v63 }
 0x41a   :  { %v12843_v57 = vadd.f32 %v12587_v49, %v14552_v63  ;;  %v12847_v3 = vadd.f32 %v12591_v6, %v14552_v63  ;;  %v12851_v19 = vadd.f32 %v12595_v16, %v14552_v63  ;;  %v12855_v59 = vadd.f32 %v12599_v43, %v14552_v63 }
 0x41b   :  { %v12859_v48 = vadd.f32 %v12603_v17, %v14552_v63  ;;  %v12863_v49 = vadd.f32 %v12607_v26, %v14552_v63  ;;  %v12867_v6 = vadd.f32 %v12611_v20, %v14552_v63  ;;  %v12871_v16 = vadd.f32 %v12615_v61, %v14552_v63 }
 0x41c   :  { %v12875_v43 = vadd.f32 %v12619_v13, %v14552_v63  ;;  %v12879_v17 = vadd.f32 %v12623_v7, %v14552_v63  ;;  %v12883_v26 = vadd.f32 %v12627_v53, %v14552_v63  ;;  %v12887_v20 = vadd.f32 %v12631_v52, %v14552_v63 }
 0x41d   :  { %v12891_v61 = vadd.f32 %v12635_v9, %v14552_v63  ;;  %v12895_v13 = vadd.f32 %v12639_v29, %v14552_v63  ;;  %v12899_v7 = vadd.f32 %v12643_v47, %v14552_v63  ;;  %v12903_v53 = vadd.f32 %v12647_v10, %v14552_v63 }
 0x41e   :  { %v12907_v52 = vadd.f32 %v12651_v41, %v14552_v63  ;;  %v12911_v9 = vadd.f32 %v12655_v40, %v14552_v63  ;;  %v12915_v29 = vadd.f32 %v12659_v62, %v14552_v63  ;;  %v12919_v47 = vadd.f32 %v12663_v33, %v14552_v63 }
 0x41f   :  { %v12923_v10 = vadd.f32 %v12667_v30, %v14552_v63  ;;  %v12927_v41 = vadd.f32 %v12671_v24, %v14552_v63  ;;  %v12931_v40 = vadd.f32 %v12675_v0, %v14552_v63  ;;  %v12935_v62 = vadd.f32 %v12679_v58, %v14552_v63 }
 0x420   :  { %v12939_v33 = vadd.f32 %v12683_v12, %v14552_v63  ;;  %v12943_v30 = vadd.f32 %v12687_v18, %v14552_v63  ;;  %v12947_v24 = vadd.f32 %v12691_v55, %v14552_v63  ;;  %v12951_v0 = vadd.f32 %v12695_v36, %v14552_v63 }
 0x421   :  { %v12955_v58 = vadd.f32 %v12699_v23, %v14552_v63  ;;  %v12959_v12 = vadd.f32 %v12703_v45, %v14552_v63  ;;  %v12963_v18 = vadd.f32 %v14561_v25, %v14552_v63 }
 0x422   :  { %14556 = vst [vmem:[#allocation10_spill] sm:$0xff] %v12943_v30  ;;  %14557 = vst [vmem:[#allocation12_spill] sm:$0xff] %v12947_v24  ;;  %v14563_v30 = vld [vmem:[#allocation54_spill] sm:$0xff] }
 0x423   :  { %14558 = vst [vmem:[#allocation17_spill] sm:$0xff] %v12951_v0  ;;  %14559 = vst [vmem:[#allocation21_spill] sm:$0xff] %v12955_v58  ;;  %v12967_v55 = vadd.f32 %v14563_v30, %v14552_v63  ;;  %v14564_v24 = vld [vmem:[#allocation58_spill] sm:$0xff]  ;;  %v14565_v0 = vld [vmem:[#allocation64_spill] sm:$0xff] }
 0x424   :  { %14560 = vst [vmem:[#allocation15_spill] sm:$0xff] %v12959_v12  ;;  %14562 = vst [vmem:[#allocation19_spill] sm:$0xff] %v12963_v18  ;;  %v12971_v36 = vadd.f32 %v14564_v24, %v14552_v63  ;;  %v12975_v23 = vadd.f32 %v14565_v0, %v14552_v63  ;;  %v14566_v58 = vld [vmem:[#allocation68_spill] sm:$0xff]  ;;  %v14567_v12 = vld [vmem:[#allocation62_spill] sm:$0xff]  ;;  %v12991_v24 = vadd.f32 %v12735_v37, %v14552_v63  ;;  %v5358_v37 = vmax.f32 %v12799_v8, 0.0 }
 0x425   :  { %v12979_v45 = vadd.f32 %v14566_v58, %v14552_v63  ;;  %v12983_v25 = vadd.f32 %v14567_v12, %v14552_v63  ;;  %v14569_v18 = vld [vmem:[#allocation6_spill] sm:$0xff]  ;;  %v12995_v0 = vadd.f32 %v12739_v21, %v14552_v63  ;;  %v12999_v58 = vadd.f32 %v12743_v60, %v14552_v63 }
 0x426   :  { %v12987_v30 = vadd.f32 %v14569_v18, %v14552_v63  ;;  %14571 = vst [vmem:[#allocation23_spill] sm:$0xff] %v12991_v24  ;;  %v13003_v12 = vadd.f32 %v12747_v28, %v14552_v63  ;;  %v13007_v18 = vadd.f32 %v12751_v22, %v14552_v63  ;;  %v5350_v21 = vmax.f32 %v12767_v32, 0.0 }
 0x427   :  { %14568 = vst [vmem:[#allocation25_spill] sm:$0xff] %v12983_v25  ;;  %14572 = vst [vmem:[#allocation27_spill] sm:$0xff] %v12995_v0  ;;  %v5351_v0 = vmax.f32 %v12771_v27, 0.0  ;;  %v5352_v60 = vmax.f32 %v12775_v46, 0.0  ;;  %v5354_v28 = vmax.f32 %v12783_v56, 0.0  ;;  %v5356_v63 = vmax.f32 %v12791_v35, 0.0 }
 0x428   :  { %14570 = vst [vmem:[#allocation29_spill] sm:$0xff] %v12987_v30  ;;  %14573 = vst [vmem:[#allocation33_spill] sm:$0xff] %v12999_v58  ;;  %v5353_v58 = vmax.f32 %v12779_v2, 0.0  ;;  %v5357_v22 = vmax.f32 %v12795_v44, 0.0  ;;  %v5359_v24 = vmax.f32 %v12803_v39, 0.0  ;;  %v5360_v32 = vmax.f32 %v12807_v14, 0.0 }
 0x429   :  { %14574 = vst [vmem:[#allocation37_spill] sm:$0xff] %v13003_v12  ;;  %14575 = vst [vmem:[#allocation31_spill] sm:$0xff] %v13007_v18  ;;  %v5355_v12 = vmax.f32 %v12787_v4, 0.0  ;;  %v5361_v27 = vmax.f32 %v12811_v11, 0.0  ;;  %v5362_v46 = vmax.f32 %v12815_v15, 0.0  ;;  %v5363_v2 = vmax.f32 %v12819_v51, 0.0 }
 0x42a   :  { %v5364_v56 = vmax.f32 %v12823_v38, 0.0  ;;  %v5365_v4 = vmax.f32 %v12827_v34, 0.0  ;;  %v5366_v35 = vmax.f32 %v12831_v54, 0.0  ;;  %v5367_v44 = vmax.f32 %v12835_v50, 0.0  ;;  %v14576_v30 = vld [vmem:[#allocation10_spill] sm:$0xff]  ;;  %v14577_v31 = vld [vmem:[#allocation12_spill] sm:$0xff] }
 0x42b   :  { %v5368_v8 = vmax.f32 %v12839_v42, 0.0  ;;  %v5369_v39 = vmax.f32 %v12843_v57, 0.0  ;;  %v5370_v14 = vmax.f32 %v12847_v3, 0.0  ;;  %v5371_v11 = vmax.f32 %v12851_v19, 0.0  ;;  %v14578_v1 = vld [vmem:[#allocation17_spill] sm:$0xff]  ;;  %v14580_v18 = vld [vmem:[#allocation15_spill] sm:$0xff] }
 0x42c   :  { %v5372_v15 = vmax.f32 %v12855_v59, 0.0  ;;  %v5373_v51 = vmax.f32 %v12859_v48, 0.0  ;;  %v5374_v38 = vmax.f32 %v12863_v49, 0.0  ;;  %v5375_v34 = vmax.f32 %v12867_v6, 0.0  ;;  %v14579_v5 = vld [vmem:[#allocation21_spill] sm:$0xff]  ;;  %v14581_v25 = vld [vmem:[#allocation19_spill] sm:$0xff] }
 0x42d   :  { %v5376_v54 = vmax.f32 %v12871_v16, 0.0  ;;  %v5377_v50 = vmax.f32 %v12875_v43, 0.0  ;;  %v5378_v42 = vmax.f32 %v12879_v17, 0.0  ;;  %v5379_v57 = vmax.f32 %v12883_v26, 0.0 }
 0x42e   :  { %v5380_v3 = vmax.f32 %v12887_v20, 0.0  ;;  %v5381_v19 = vmax.f32 %v12891_v61, 0.0  ;;  %v5382_v59 = vmax.f32 %v12895_v13, 0.0  ;;  %v5383_v48 = vmax.f32 %v12899_v7, 0.0 }
 0x42f   :  { %v5384_v49 = vmax.f32 %v12903_v53, 0.0  ;;  %v5385_v6 = vmax.f32 %v12907_v52, 0.0  ;;  %v5386_v16 = vmax.f32 %v12911_v9, 0.0  ;;  %v5387_v43 = vmax.f32 %v12915_v29, 0.0 }
 0x430   :  { %v5388_v17 = vmax.f32 %v12919_v47, 0.0  ;;  %v5389_v26 = vmax.f32 %v12923_v10, 0.0  ;;  %v5390_v20 = vmax.f32 %v12927_v41, 0.0  ;;  %v5391_v61 = vmax.f32 %v12931_v40, 0.0 }
 0x431   :  { %v5392_v13 = vmax.f32 %v12935_v62, 0.0  ;;  %v5393_v7 = vmax.f32 %v12939_v33, 0.0  ;;  %v5394_v53 = vmax.f32 %v14576_v30, 0.0  ;;  %v5395_v52 = vmax.f32 %v14577_v31, 0.0  ;;  %v14582_v30 = vld [vmem:[#allocation25_spill] sm:$0xff] }
 0x432   :  { %v5396_v9 = vmax.f32 %v14578_v1, 0.0  ;;  %v5397_v29 = vmax.f32 %v14579_v5, 0.0  ;;  %v5398_v47 = vmax.f32 %v14580_v18, 0.0  ;;  %v5399_v10 = vmax.f32 %v14581_v25, 0.0  ;;  %v14583_v1 = vld [vmem:[#allocation29_spill] sm:$0xff]  ;;  %v14584_v18 = vld [vmem:[#allocation23_spill] sm:$0xff] }
 0x433   :  { %v5400_v41 = vmax.f32 %v12967_v55, 0.0  ;;  %v5401_v40 = vmax.f32 %v12971_v36, 0.0  ;;  %v5402_v62 = vmax.f32 %v12975_v23, 0.0  ;;  %v5403_v33 = vmax.f32 %v12979_v45, 0.0  ;;  %v14585_v55 = vld [vmem:[#allocation27_spill] sm:$0xff]  ;;  %v14586_v23 = vld [vmem:[#allocation33_spill] sm:$0xff] }
 0x434   :  { %v5404_v31 = vmax.f32 %v14582_v30, 0.0  ;;  %v5405_v5 = vmax.f32 %v14583_v1, 0.0  ;;  %v5406_v25 = vmax.f32 %v14584_v18, 0.0  ;;  %v5407_v36 = vmax.f32 %v14585_v55, 0.0  ;;  %v14587_v30 = vld [vmem:[#allocation37_spill] sm:$0xff]  ;;  %v14588_v18 = vld [vmem:[#allocation31_spill] sm:$0xff] }
 0x435   :  { %v5408_v45 = vmax.f32 %v14586_v23, 0.0  ;;  %v5409_v1 = vmax.f32 %v14587_v30, 0.0  ;;  %v5410_v55 = vmax.f32 %v14588_v18, 0.0  ;;  %v14589_v23 = vld [vmem:[#allocation8_spill] sm:$0xff]  ;;  %v14591_v18 = vld [vmem:[#allocation11_spill] sm:$0xff] }
 0x436   :  { %v14590_v30 = vmax.f32 %v14589_v23, 0.0  ;;  %v14592_v23 = vmax.f32 %v14591_v18, 0.0 }
 0x438   :  { %v7411_v18 = vpack.c.bf16 %v14592_v23, %v14590_v30  ;;  %v14593_v23 = vld [vmem:[#allocation13_spill] sm:$0xff] }
 0x439   :  { %v14594_v30 = vmax.f32 %v14593_v23, 0.0 }
 0x43a   :  { %7663 = vst [vmem:[%s13179_s4 + $0x300] sm:$0xff] %v7411_v18  }
 0x43b   :  { %v7416_v23 = vpack.c.bf16 %v5350_v21, %v14594_v30  ;;  %v7421_v21 = vpack.c.bf16 %v5352_v60, %v5351_v0  ;;  %v7426_v30 = vpack.c.bf16 %v5354_v28, %v5353_v58  ;;  %v7431_v0 = vpack.c.bf16 %v5356_v63, %v5355_v12 }
 0x43c   :  { %v7436_v60 = vpack.c.bf16 %v5358_v37, %v5357_v22  ;;  %v7441_v28 = vpack.c.bf16 %v5360_v32, %v5359_v24  ;;  %v7446_v58 = vpack.c.bf16 %v5362_v46, %v5361_v27  ;;  %v7451_v12 = vpack.c.bf16 %v5364_v56, %v5363_v2 }
 0x43d   :  { %7664 = vst [vmem:[%s13179_s4 + $0x308] sm:$0xff] %v7416_v23   ;;  %v7456_v63 = vpack.c.bf16 %v5366_v35, %v5365_v4  ;;  %7665 = vst [vmem:[%s13179_s4 + $0x310] sm:$0xff] %v7421_v21   ;;  %v7461_v24 = vpack.c.bf16 %v5368_v8, %v5367_v44  ;;  %v7466_v37 = vpack.c.bf16 %v5370_v14, %v5369_v39 }
 0x43e   :  { %7666 = vst [vmem:[%s13179_s4 + $0x318] sm:$0xff] %v7426_v30   ;;  %7667 = vst [vmem:[%s13179_s4 + $0x320] sm:$0xff] %v7431_v0   ;;  %v7471_v22 = vpack.c.bf16 %v5372_v15, %v5371_v11  ;;  %v7476_v32 = vpack.c.bf16 %v5374_v38, %v5373_v51  ;;  %v7481_v27 = vpack.c.bf16 %v5376_v54, %v5375_v34 }
 0x43f   :  { %7668 = vst [vmem:[%s13179_s4 + $0x328] sm:$0xff] %v7436_v60   ;;  %7669 = vst [vmem:[%s13179_s4 + $0x330] sm:$0xff] %v7441_v28   ;;  %v7486_v46 = vpack.c.bf16 %v5378_v42, %v5377_v50  ;;  %v7491_v2 = vpack.c.bf16 %v5380_v3, %v5379_v57  ;;  %v7496_v56 = vpack.c.bf16 %v5382_v59, %v5381_v19 }
 0x440   :  { %7670 = vst [vmem:[%s13179_s4 + $0x338] sm:$0xff] %v7446_v58   ;;  %7671 = vst [vmem:[%s13179_s4 + $0x340] sm:$0xff] %v7451_v12   ;;  %v7501_v4 = vpack.c.bf16 %v5384_v49, %v5383_v48  ;;  %v7506_v35 = vpack.c.bf16 %v5386_v16, %v5385_v6  ;;  %v7511_v44 = vpack.c.bf16 %v5388_v17, %v5387_v43 }
 0x441   :  { %7672 = vst [vmem:[%s13179_s4 + $0x348] sm:$0xff] %v7456_v63   ;;  %7673 = vst [vmem:[%s13179_s4 + $0x350] sm:$0xff] %v7461_v24   ;;  %v7516_v8 = vpack.c.bf16 %v5390_v20, %v5389_v26  ;;  %v7521_v39 = vpack.c.bf16 %v5392_v13, %v5391_v61  ;;  %v7526_v14 = vpack.c.bf16 %v5394_v53, %v5393_v7 }
 0x442   :  { %7674 = vst [vmem:[%s13179_s4 + $0x358] sm:$0xff] %v7466_v37   ;;  %7675 = vst [vmem:[%s13179_s4 + $0x360] sm:$0xff] %v7471_v22   ;;  %v7531_v11 = vpack.c.bf16 %v5396_v9, %v5395_v52  ;;  %v7536_v15 = vpack.c.bf16 %v5398_v47, %v5397_v29  ;;  %v7541_v51 = vpack.c.bf16 %v5400_v41, %v5399_v10 }
 0x443   :  { %7676 = vst [vmem:[%s13179_s4 + $0x368] sm:$0xff] %v7476_v32   ;;  %7677 = vst [vmem:[%s13179_s4 + $0x370] sm:$0xff] %v7481_v27   ;;  %v7546_v38 = vpack.c.bf16 %v5402_v62, %v5401_v40  ;;  %v7551_v34 = vpack.c.bf16 %v5404_v31, %v5403_v33  ;;  %v7556_v54 = vpack.c.bf16 %v5406_v25, %v5405_v5 }
 0x444   :  { %7678 = vst [vmem:[%s13179_s4 + $0x378] sm:$0xff] %v7486_v46   ;;  %7679 = vst [vmem:[%s13179_s4 + $0x380] sm:$0xff] %v7491_v2   ;;  %v7561_v50 = vpack.c.bf16 %v5408_v45, %v5407_v36  ;;  %v7566_v42 = vpack.c.bf16 %v5410_v55, %v5409_v1 }
 0x445   :  { %7680 = vst [vmem:[%s13179_s4 + $0x388] sm:$0xff] %v7496_v56   ;;  %7681 = vst [vmem:[%s13179_s4 + $0x390] sm:$0xff] %v7501_v4  }
 0x446   :  { %7682 = vst [vmem:[%s13179_s4 + $0x398] sm:$0xff] %v7506_v35   ;;  %7683 = vst [vmem:[%s13179_s4 + $0x3a0] sm:$0xff] %v7511_v44  }
 0x447   :  { %7684 = vst [vmem:[%s13179_s4 + $0x3a8] sm:$0xff] %v7516_v8   ;;  %7685 = vst [vmem:[%s13179_s4 + $0x3b0] sm:$0xff] %v7521_v39  }
 0x448   :  { %7686 = vst [vmem:[%s13179_s4 + $0x3b8] sm:$0xff] %v7526_v14   ;;  %7687 = vst [vmem:[%s13179_s4 + $0x3c0] sm:$0xff] %v7531_v11  }
 0x449   :  { %7688 = vst [vmem:[%s13179_s4 + $0x3c8] sm:$0xff] %v7536_v15   ;;  %7689 = vst [vmem:[%s13179_s4 + $0x3d0] sm:$0xff] %v7541_v51  }
 0x44a   :  { %7690 = vst [vmem:[%s13179_s4 + $0x3d8] sm:$0xff] %v7546_v38   ;;  %7691 = vst [vmem:[%s13179_s4 + $0x3e0] sm:$0xff] %v7551_v34  }
 0x44b   :  { %7692 = vst [vmem:[%s13179_s4 + $0x3e8] sm:$0xff] %v7556_v54   ;;  %7693 = vst [vmem:[%s13179_s4 + $0x3f0] sm:$0xff] %v7561_v50  }
 0x44c   :  { %7694 = vst [vmem:[%s13179_s4 + $0x3f8] sm:$0xff] %v7566_v42  }

// kernel: _forward_jit.11
= control target key start
LH: loop header
LB: loop body
LE: loop exit
PB: predicated region body
PF: predicated region fallthrough
CT: control target
= control target key end

     0   :  { %v1031_v3 = vmov 0   ;;  %vm449_vm0 = vcmask 1043456   ;;  %vm445_vm1 = vcmask 588800   ;;  %s1332_s1 = inlined_call_operand.vmem [shape: bf16[72,2048], index: 1, kind: input, shape index: {}]   ;;  %s1333_s0 = inlined_call_operand.vmem [shape: bf16[3,72], index: 0, kind: input, shape index: {}]   ;;  %s1334_s2 = inlined_call_operand.vmem [shape: f32[3,2048], index: 2, kind: output, shape index: {}]  }
   0x1   :  { %v13_v0 = vld [vmem:[%s1332_s1] sm:$0xff]  ;;  %v14_v2 = vld [vmem:[%s1332_s1 + $0x8] sm:$0xff]  ;;  %530 = vmatprep.mubr.bf16.mxu0 %v1031_v3  ;;  %571 = vmatprep.mubr.bf16.mxu1 %v1031_v3  ;;  %v15_v39 = vld [vmem:[%s1332_s1 + $0x10] sm:$0xff] }
   0x2   :  { %v21_v1 = vld [vmem:[%s1332_s1 + $0x40] sm:$0xff]  ;;  %v22_v5 = vld [vmem:[%s1332_s1 + $0x48] sm:$0xff]  ;;  %v23_v40 = vld [vmem:[%s1332_s1 + $0x50] sm:$0xff] }
   0x3   :  { %v887_v4 = vcombine.high %v13_v0, %v21_v1  ;;  %v886_v6 = vcombine.low %v13_v0, %v21_v1  ;;  %v29_v7 = vld [vmem:[%s1332_s1 + $0x80] sm:$0xff]  ;;  %v889_v9 = vcombine.high %v14_v2, %v22_v5  ;;  %v888_v10 = vcombine.low %v14_v2, %v22_v5  ;;  %v30_v12 = vld [vmem:[%s1332_s1 + $0x88] sm:$0xff]  ;;  %v16_v41 = vld [vmem:[%s1332_s1 + $0x18] sm:$0xff] }
   0x4   :  { %v37_v8 = vld [vmem:[%s1332_s1 + $0xc0] sm:$0xff]  ;;  %v38_v13 = vld [vmem:[%s1332_s1 + $0xc8] sm:$0xff]  ;;  %v24_v42 = vld [vmem:[%s1332_s1 + $0x58] sm:$0xff]  ;;  %v891_v44 = vcombine.high %v15_v39, %v23_v40  ;;  %v890_v52 = vcombine.low %v15_v39, %v23_v40 }
   0x5   :  { %v903_v11 = vcombine.high %v29_v7, %v37_v8  ;;  %v45_v14 = vld [vmem:[%s1332_s1 + $0x100] sm:$0xff]  ;;  %498 = vmatprep.subr.bf16.mxu0 %v887_v4  ;;  %v905_v15 = vcombine.high %v30_v12, %v38_v13  ;;  %v46_v17 = vld [vmem:[%s1332_s1 + $0x108] sm:$0xff]  ;;  %539 = vmatprep.subr.bf16.mxu1 %v889_v9  ;;  %v902_v19 = vcombine.low %v29_v7, %v37_v8  ;;  %v31_v47 = vld [vmem:[%s1332_s1 + $0x90] sm:$0xff] }
   0x6   :  { %v53_v16 = vld [vmem:[%s1332_s1 + $0x140] sm:$0xff]  ;;  %v54_v18 = vld [vmem:[%s1332_s1 + $0x148] sm:$0xff]  ;;  %499 = vmatpush1.bf16.msra.mxu0 %v886_v6  ;;  %540 = vmatpush1.bf16.msra.mxu1 %v888_v10  ;;  %v904_v20 = vcombine.low %v30_v12, %v38_v13  ;;  %v893_v46 = vcombine.high %v16_v41, %v24_v42  ;;  %v39_v48 = vld [vmem:[%s1332_s1 + $0xd0] sm:$0xff]  ;;  %v892_v53 = vcombine.low %v16_v41, %v24_v42 }
   0x7   :  { %500 = vmatprep.subr.bf16.mxu0 %v903_v11  ;;  %v919_v21 = vcombine.high %v45_v14, %v53_v16  ;;  %541 = vmatprep.subr.bf16.mxu1 %v905_v15  ;;  %v921_v22 = vcombine.high %v46_v17, %v54_v18  ;;  %v61_v23 = vld [vmem:[%s1332_s1 + $0x180] sm:$0xff]  ;;  %v62_v25 = vld [vmem:[%s1332_s1 + $0x188] sm:$0xff]  ;;  %v918_v27 = vcombine.low %v45_v14, %v53_v16  ;;  %v32_v49 = vld [vmem:[%s1332_s1 + $0x98] sm:$0xff] }
   0x8   :  { %v69_v24 = vld [vmem:[%s1332_s1 + $0x1c0] sm:$0xff]  ;;  %v70_v26 = vld [vmem:[%s1332_s1 + $0x1c8] sm:$0xff]  ;;  %v920_v28 = vcombine.low %v46_v17, %v54_v18  ;;  %v40_v50 = vld [vmem:[%s1332_s1 + $0xd8] sm:$0xff]  ;;  %v907_v54 = vcombine.high %v31_v47, %v39_v48  ;;  %v906_v60 = vcombine.low %v31_v47, %v39_v48 }
   0x9   :  { %v935_v29 = vcombine.high %v61_v23, %v69_v24  ;;  %v937_v30 = vcombine.high %v62_v25, %v70_v26  ;;  %v77_v31 = vld [vmem:[%s1332_s1 + $0x200] sm:$0xff]  ;;  %v78_v32 = vld [vmem:[%s1332_s1 + $0x208] sm:$0xff]  ;;  %v934_v33 = vcombine.low %v61_v23, %v69_v24  ;;  %v936_v34 = vcombine.low %v62_v25, %v70_v26  ;;  %v47_v56 = vld [vmem:[%s1332_s1 + $0x110] sm:$0xff] }
   0xa   :  { %501 = vmatpush1.bf16.msra.mxu0 %v902_v19  ;;  %542 = vmatpush1.bf16.msra.mxu1 %v904_v20  ;;  %v951_v35 = vcombine.high %v77_v31, %v77_v31  ;;  %v950_v36 = vcombine.low %v77_v31, %v77_v31  ;;  %v953_v37 = vcombine.high %v78_v32, %v78_v32  ;;  %v1134_v51 = vld [vmem:[%s1333_s0] sm:$0x3]  ;;  %v55_v57 = vld [vmem:[%s1332_s1 + $0x150] sm:$0xff]  ;;  %v48_v58 = vld [vmem:[%s1332_s1 + $0x118] sm:$0xff] }
   0xb   :  { %502 = vmatprep.subr.bf16.mxu0 %v919_v21  ;;  %543 = vmatprep.subr.bf16.mxu1 %v921_v22  ;;  %v952_v38 = vcombine.low %v78_v32, %v78_v32  ;;  %v909_v55 = vcombine.high %v32_v49, %v40_v50  ;;  %v56_v59 = vld [vmem:[%s1332_s1 + $0x158] sm:$0xff]  ;;  %v908_v61 = vcombine.low %v32_v49, %v40_v50  ;;  %v63_v0 = vld [vmem:[%s1332_s1 + $0x190] sm:$0xff]  ;;  %v17_v17 = vld [vmem:[%s1332_s1 + $0x20] sm:$0xff] }
   0xc   :  { %v451_v43 = vsel %vm449_vm0, %v950_v36, 0  ;;  %v923_v62 = vcombine.high %v47_v56, %v55_v57  ;;  %v925_v63 = vcombine.high %v48_v58, %v56_v59  ;;  %v71_v1 = vld [vmem:[%s1332_s1 + $0x1d0] sm:$0xff]  ;;  %v64_v2 = vld [vmem:[%s1332_s1 + $0x198] sm:$0xff]  ;;  %v922_v5 = vcombine.low %v47_v56, %v55_v57  ;;  %v25_v18 = vld [vmem:[%s1332_s1 + $0x60] sm:$0xff] }
   0xd   :  { %v457_v45 = vsel %vm449_vm0, %v952_v38, 0  ;;  %v72_v4 = vld [vmem:[%s1332_s1 + $0x1d8] sm:$0xff]  ;;  %v924_v6 = vcombine.low %v48_v58, %v56_v59  ;;  %v939_v7 = vcombine.high %v63_v0, %v71_v1  ;;  %v79_v9 = vld [vmem:[%s1332_s1 + $0x210] sm:$0xff]  ;;  %v938_v11 = vcombine.low %v63_v0, %v71_v1  ;;  %v18_v19 = vld [vmem:[%s1332_s1 + $0x28] sm:$0xff] }
   0xe   :  { %503 = vmatpush1.bf16.msra.mxu0 %v918_v27  ;;  %544 = vmatpush1.bf16.msra.mxu1 %v920_v28  ;;  %v941_v8 = vcombine.high %v64_v2, %v72_v4  ;;  %v80_v10 = vld [vmem:[%s1332_s1 + $0x218] sm:$0xff]  ;;  %v940_v12 = vcombine.low %v64_v2, %v72_v4  ;;  %v955_v13 = vcombine.high %v79_v9, %v79_v9  ;;  %v26_v20 = vld [vmem:[%s1332_s1 + $0x68] sm:$0xff]  ;;  %v33_v25 = vld [vmem:[%s1332_s1 + $0xa0] sm:$0xff] }
   0xf   :  { %504 = vmatprep.subr.bf16.mxu0 %v935_v29  ;;  %545 = vmatprep.subr.bf16.mxu1 %v937_v30  ;;  %v954_v14 = vcombine.low %v79_v9, %v79_v9  ;;  %v957_v15 = vcombine.high %v80_v10, %v80_v10  ;;  %v956_v16 = vcombine.low %v80_v10, %v80_v10  ;;  %v41_v26 = vld [vmem:[%s1332_s1 + $0xe0] sm:$0xff]  ;;  %v34_v27 = vld [vmem:[%s1332_s1 + $0xa8] sm:$0xff]  ;;  %v19_v58 = vld [vmem:[%s1332_s1 + $0x30] sm:$0xff] }
  0x10   :  { %v895_v22 = vcombine.high %v17_v17, %v25_v18  ;;  %v897_v24 = vcombine.high %v18_v19, %v26_v20  ;;  %v42_v28 = vld [vmem:[%s1332_s1 + $0xe8] sm:$0xff]  ;;  %v894_v29 = vcombine.low %v17_v17, %v25_v18  ;;  %v896_v30 = vcombine.low %v18_v19, %v26_v20  ;;  %v65_v41 = vld [vmem:[%s1332_s1 + $0x1a0] sm:$0xff]  ;;  %v27_v59 = vld [vmem:[%s1332_s1 + $0x70] sm:$0xff] }
  0x11   :  { %v463_v21 = vsel %vm449_vm0, %v954_v14, 0  ;;  %v469_v23 = vsel %vm449_vm0, %v956_v16, 0  ;;  %v911_v31 = vcombine.high %v33_v25, %v41_v26  ;;  %v913_v32 = vcombine.high %v34_v27, %v42_v28  ;;  %v58_v36 = vld [vmem:[%s1332_s1 + $0x168] sm:$0xff]  ;;  %v73_v42 = vld [vmem:[%s1332_s1 + $0x1e0] sm:$0xff]  ;;  %v35_v2 = vld [vmem:[%s1332_s1 + $0xb0] sm:$0xff] }
  0x12   :  { %505 = vmatpush1.bf16.msra.mxu0 %v934_v33  ;;  %546 = vmatpush1.bf16.msra.mxu1 %v936_v34  ;;  %v49_v33 = vld [vmem:[%s1332_s1 + $0x120] sm:$0xff]  ;;  %v912_v38 = vcombine.low %v34_v27, %v42_v28  ;;  %v943_v47 = vcombine.high %v65_v41, %v73_v42  ;;  %v82_v50 = vld [vmem:[%s1332_s1 + $0x228] sm:$0xff]  ;;  %v43_v4 = vld [vmem:[%s1332_s1 + $0xf0] sm:$0xff] }
  0x13   :  { %966 = vmatprep.subr.msk.bf16.mxu0 %vm449_vm0, %v951_v35  ;;  %968 = vmatprep.subr.msk.bf16.mxu1 %vm449_vm0, %v953_v37  ;;  %v57_v34 = vld [vmem:[%s1332_s1 + $0x160] sm:$0xff]  ;;  %v50_v35 = vld [vmem:[%s1332_s1 + $0x128] sm:$0xff]  ;;  %v910_v37 = vcombine.low %v33_v25, %v41_v26  ;;  %v961_v56 = vcombine.high %v82_v50, %v82_v50  ;;  %v960_v57 = vcombine.low %v82_v50, %v82_v50  ;;  %v60_v14 = vld [vmem:[%s1332_s1 + $0x178] sm:$0xff] }
  0x14   :  { %v927_v39 = vcombine.high %v49_v33, %v57_v34  ;;  %v929_v40 = vcombine.high %v50_v35, %v58_v36  ;;  %v81_v49 = vld [vmem:[%s1332_s1 + $0x220] sm:$0xff]  ;;  %v915_v9 = vcombine.high %v35_v2, %v43_v4  ;;  %v67_v19 = vld [vmem:[%s1332_s1 + $0x1b0] sm:$0xff]  ;;  %v84_v28 = vld [vmem:[%s1332_s1 + $0x238] sm:$0xff] }
  0x15   :  { %v481_v0 = vsel %vm449_vm0, %v960_v57, 0  ;;  %v75_v20 = vld [vmem:[%s1332_s1 + $0x1f0] sm:$0xff] }
  0x16   :  { %507 = vmatpush1.bf16.msra.mxu0 %v451_v43  ;;  %548 = vmatpush1.bf16.msra.mxu1 %v457_v45  ;;  %v66_v43 = vld [vmem:[%s1332_s1 + $0x1a8] sm:$0xff]  ;;  %v926_v45 = vcombine.low %v49_v33, %v57_v34  ;;  %v947_v25 = vcombine.high %v67_v19, %v75_v20  ;;  %v83_v27 = vld [vmem:[%s1332_s1 + $0x230] sm:$0xff]  ;;  %v964_v33 = vcombine.low %v84_v28, %v84_v28 }
  0x17   :  { %580 = vmatprep.subr.bf16.mxu0 %v891_v44  ;;  %621 = vmatprep.subr.bf16.mxu1 %v893_v46  ;;  %v74_v44 = vld [vmem:[%s1332_s1 + $0x1e8] sm:$0xff]  ;;  %v928_v46 = vcombine.low %v50_v35, %v58_v36 }
  0x18   :  { %v945_v48 = vcombine.high %v66_v43, %v74_v44  ;;  %v493_v35 = vsel %vm449_vm0, %v964_v33, 0 }
  0x19   :  { %967 = vmatmul.mubr.msk.bf16.vlgmr.msra.gmra.mrb[0].mxu0 %vm445_vm1, %v1134_v51  ;;  %969 = vmatmul.mubr.msk.bf16.vlgmr.msra.gmra.mrb[0].mxu1 %vm445_vm1, %v1134_v51 }
  0x1a   :  { %581 = vmatpush1.bf16.msra.mxu0 %v890_v52  ;;  %622 = vmatpush1.bf16.msra.mxu1 %v892_v53  ;;  %v942_v52 = vcombine.low %v65_v41, %v73_v42  ;;  %v944_v53 = vcombine.low %v66_v43, %v74_v44 }
  0x1b   :  { %582 = vmatprep.subr.bf16.mxu0 %v907_v54  ;;  %623 = vmatprep.subr.bf16.mxu1 %v909_v55  ;;  %v959_v54 = vcombine.high %v81_v49, %v81_v49  ;;  %v958_v55 = vcombine.low %v81_v49, %v81_v49 }
  0x1c   :  { %612 = vmatprep.mubr.bf16.mxu0 %v1031_v3  ;;  %653 = vmatprep.mubr.bf16.mxu1 %v1031_v3 }
  0x1e   :  { %583 = vmatpush1.bf16.msra.mxu0 %v906_v60  ;;  %624 = vmatpush1.bf16.msra.mxu1 %v908_v61  ;;  %v20_v60 = vld [vmem:[%s1332_s1 + $0x38] sm:$0xff] }
  0x1f   :  { %584 = vmatprep.subr.bf16.mxu0 %v923_v62  ;;  %625 = vmatprep.subr.bf16.mxu1 %v925_v63  ;;  %v28_v61 = vld [vmem:[%s1332_s1 + $0x78] sm:$0xff]  ;;  %v475_v62 = vsel %vm449_vm0, %v958_v55, 0  ;;  %v899_v63 = vcombine.high %v19_v58, %v27_v59 }
  0x20   :  { %v901_v1 = vcombine.high %v20_v60, %v28_v61 }
  0x22   :  { %585 = vmatpush1.bf16.msra.mxu0 %v922_v5  ;;  %626 = vmatpush1.bf16.msra.mxu1 %v924_v6  ;;  %v36_v5 = vld [vmem:[%s1332_s1 + $0xb8] sm:$0xff] }
  0x23   :  { %586 = vmatprep.subr.bf16.mxu0 %v939_v7  ;;  %627 = vmatprep.subr.bf16.mxu1 %v941_v8  ;;  %v44_v6 = vld [vmem:[%s1332_s1 + $0xf8] sm:$0xff]  ;;  %v898_v7 = vcombine.low %v19_v58, %v27_v59  ;;  %v900_v8 = vcombine.low %v20_v60, %v28_v61 }
  0x24   :  { %v917_v10 = vcombine.high %v36_v5, %v44_v6  ;;  %v916_v16 = vcombine.low %v36_v5, %v44_v6 }
  0x26   :  { %587 = vmatpush1.bf16.msra.mxu0 %v938_v11  ;;  %628 = vmatpush1.bf16.msra.mxu1 %v940_v12  ;;  %v51_v11 = vld [vmem:[%s1332_s1 + $0x130] sm:$0xff] }
  0x27   :  { %970 = vmatprep.subr.msk.bf16.mxu0 %vm449_vm0, %v955_v13  ;;  %972 = vmatprep.subr.msk.bf16.mxu1 %vm449_vm0, %v957_v15  ;;  %v59_v12 = vld [vmem:[%s1332_s1 + $0x170] sm:$0xff]  ;;  %v52_v13 = vld [vmem:[%s1332_s1 + $0x138] sm:$0xff]  ;;  %v914_v15 = vcombine.low %v35_v2, %v43_v4 }
  0x28   :  { %v931_v17 = vcombine.high %v51_v11, %v59_v12  ;;  %v933_v18 = vcombine.high %v52_v13, %v60_v14 }
  0x2a   :  { %589 = vmatpush1.bf16.msra.mxu0 %v463_v21  ;;  %630 = vmatpush1.bf16.msra.mxu1 %v469_v23  ;;  %v68_v21 = vld [vmem:[%s1332_s1 + $0x1b8] sm:$0xff]  ;;  %v930_v23 = vcombine.low %v51_v11, %v59_v12 }
  0x2b   :  { %662 = vmatprep.subr.bf16.mxu0 %v895_v22  ;;  %703 = vmatprep.subr.bf16.mxu1 %v897_v24  ;;  %v76_v22 = vld [vmem:[%s1332_s1 + $0x1f8] sm:$0xff]  ;;  %v932_v24 = vcombine.low %v52_v13, %v60_v14 }
  0x2c   :  { %v949_v26 = vcombine.high %v68_v21, %v76_v22 }
  0x2d   :  { %971 = vmatmul.mubr.msk.bf16.vlgmr.msra.gmra.mrb[4].mxu0 %vm445_vm1, %v1134_v51  ;;  %973 = vmatmul.mubr.msk.bf16.vlgmr.msra.gmra.mrb[4].mxu1 %vm445_vm1, %v1134_v51 }
  0x2e   :  { %663 = vmatpush1.bf16.msra.mxu0 %v894_v29  ;;  %704 = vmatpush1.bf16.msra.mxu1 %v896_v30  ;;  %v946_v29 = vcombine.low %v67_v19, %v75_v20  ;;  %v963_v30 = vcombine.high %v83_v27, %v83_v27 }
  0x2f   :  { %664 = vmatprep.subr.bf16.mxu0 %v911_v31  ;;  %705 = vmatprep.subr.bf16.mxu1 %v913_v32  ;;  %v962_v31 = vcombine.low %v83_v27, %v83_v27  ;;  %v965_v32 = vcombine.high %v84_v28, %v84_v28 }
  0x30   :  { %694 = vmatprep.mubr.bf16.mxu0 %v1031_v3  ;;  %735 = vmatprep.mubr.bf16.mxu1 %v1031_v3 }
  0x31   :  { %v487_v34 = vsel %vm449_vm0, %v962_v31, 0 }
  0x32   :  { %665 = vmatpush1.bf16.msra.mxu0 %v910_v37  ;;  %706 = vmatpush1.bf16.msra.mxu1 %v912_v38 }
  0x33   :  { %666 = vmatprep.subr.bf16.mxu0 %v927_v39  ;;  %707 = vmatprep.subr.bf16.mxu1 %v929_v40 }
  0x36   :  { %667 = vmatpush1.bf16.msra.mxu0 %v926_v45  ;;  %708 = vmatpush1.bf16.msra.mxu1 %v928_v46 }
  0x37   :  { %668 = vmatprep.subr.bf16.mxu0 %v943_v47  ;;  %709 = vmatprep.subr.bf16.mxu1 %v945_v48 }
  0x3a   :  { %669 = vmatpush1.bf16.msra.mxu0 %v942_v52  ;;  %710 = vmatpush1.bf16.msra.mxu1 %v944_v53 }
  0x3b   :  { %974 = vmatprep.subr.msk.bf16.mxu0 %vm449_vm0, %v959_v54  ;;  %976 = vmatprep.subr.msk.bf16.mxu1 %vm449_vm0, %v961_v56 }
  0x3e   :  { %671 = vmatpush1.bf16.msra.mxu0 %v475_v62  ;;  %712 = vmatpush1.bf16.msra.mxu1 %v481_v0 }
  0x3f   :  { %744 = vmatprep.subr.bf16.mxu0 %v899_v63  ;;  %785 = vmatprep.subr.bf16.mxu1 %v901_v1 }
  0x41   :  { %975 = vmatmul.mubr.msk.bf16.vlgmr.msra.gmra.mrb[8].mxu0 %vm445_vm1, %v1134_v51  ;;  %977 = vmatmul.mubr.msk.bf16.vlgmr.msra.gmra.mrb[8].mxu1 %vm445_vm1, %v1134_v51 }
  0x42   :  { %745 = vmatpush1.bf16.msra.mxu0 %v898_v7  ;;  %786 = vmatpush1.bf16.msra.mxu1 %v900_v8 }
  0x43   :  { %746 = vmatprep.subr.bf16.mxu0 %v915_v9  ;;  %787 = vmatprep.subr.bf16.mxu1 %v917_v10 }
  0x44   :  { %776 = vmatprep.mubr.bf16.mxu0 %v1031_v3  ;;  %817 = vmatprep.mubr.bf16.mxu1 %v1031_v3  ;;  %v948_v3 = vcombine.low %v68_v21, %v76_v22 }
  0x46   :  { %747 = vmatpush1.bf16.msra.mxu0 %v914_v15  ;;  %788 = vmatpush1.bf16.msra.mxu1 %v916_v16 }
  0x47   :  { %748 = vmatprep.subr.bf16.mxu0 %v931_v17  ;;  %789 = vmatprep.subr.bf16.mxu1 %v933_v18 }
  0x4a   :  { %749 = vmatpush1.bf16.msra.mxu0 %v930_v23  ;;  %790 = vmatpush1.bf16.msra.mxu1 %v932_v24 }
  0x4b   :  { %750 = vmatprep.subr.bf16.mxu0 %v947_v25  ;;  %791 = vmatprep.subr.bf16.mxu1 %v949_v26 }
  0x4e   :  { %751 = vmatpush1.bf16.msra.mxu0 %v946_v29  ;;  %792 = vmatpush1.bf16.msra.mxu1 %v948_v3 }
  0x4f   :  { %978 = vmatprep.subr.msk.bf16.mxu0 %vm449_vm0, %v963_v30  ;;  %980 = vmatprep.subr.msk.bf16.mxu1 %vm449_vm0, %v965_v32 }
  0x52   :  { %753 = vmatpush1.bf16.msra.mxu0 %v487_v34  ;;  %794 = vmatpush1.bf16.msra.mxu1 %v493_v35 }
  0x55   :  { %979 = vmatmul.mubr.msk.bf16.vlgmr.msra.gmra.mrb[12].mxu0 %vm445_vm1, %v1134_v51  ;;  %981 = vmatmul.mubr.msk.bf16.vlgmr.msra.gmra.mrb[12].mxu1 %vm445_vm1, %v1134_v51 }
  0xec   :  { %v532_v36 = vpop.f32.mrb[0].mxu0  ;;  %v573_v37 = vpop.f32.mrb[0].mxu1 }
  0xed   :  { %999 = vtanh.f32 %v532_v36  ;;  %v534_v38 = vpop.f32.mrb[1].mxu0  ;;  %v575_v39 = vpop.f32.mrb[1].mxu1 }
  0xee   :  { %1001 = vtanh.f32 %v573_v37  ;;  %v536_v40 = vpop.f32.mrb[2].mxu0  ;;  %v577_v41 = vpop.f32.mrb[2].mxu1 }
  0xef   :  { %1003 = vtanh.f32 %v534_v38  ;;  %v537_v42 = vpop.f32.mrb[3].mxu0  ;;  %v578_v43 = vpop.f32.mrb[3].mxu1 }
  0xf0   :  { %1005 = vtanh.f32 %v575_v39 }
  0xf7   :  { %v1000_v44 = vpop.eup %999 }
  0xf8   :  { %v1002_v45 = vpop.eup %1001 }
  0xf9   :  { %v1004_v46 = vpop.eup %1003 }
  0xfa   :  { %v1006_v47 = vpop.eup %1005  ;;  %v858_v48 = vcombine.low %v1000_v44, %v1004_v46 }
  0xfb   :  { %v859_v49 = vcombine.low %v1002_v45, %v1006_v47 }
  0xfc   :  { %874 = vst [vmem:[%s1334_s2] sm:$0x77] %v858_v48 }
  0xfd   :  { %875 = vst [vmem:[%s1334_s2 + $0x8] sm:$0x77] %v859_v49 }
 0x100   :  { %v614_v51 = vpop.f32.mrb[4].mxu0  ;;  %v655_v50 = vpop.f32.mrb[4].mxu1 }
 0x101   :  { %1007 = vtanh.f32 %v614_v51  ;;  %v616_v52 = vpop.f32.mrb[5].mxu0  ;;  %v657_v53 = vpop.f32.mrb[5].mxu1 }
 0x102   :  { %1009 = vtanh.f32 %v655_v50  ;;  %v618_v54 = vpop.f32.mrb[6].mxu0  ;;  %v659_v55 = vpop.f32.mrb[6].mxu1 }
 0x103   :  { %1011 = vtanh.f32 %v616_v52  ;;  %v619_v56 = vpop.f32.mrb[7].mxu0  ;;  %v660_v57 = vpop.f32.mrb[7].mxu1 }
 0x104   :  { %1013 = vtanh.f32 %v657_v53 }
 0x10b   :  { %v1008_v58 = vpop.eup %1007 }
 0x10c   :  { %v1010_v59 = vpop.eup %1009 }
 0x10d   :  { %v1012_v60 = vpop.eup %1011 }
 0x10e   :  { %v1014_v61 = vpop.eup %1013  ;;  %v860_v62 = vcombine.low %v1008_v58, %v1012_v60 }
 0x10f   :  { %v861_v63 = vcombine.low %v1010_v59, %v1014_v61 }
 0x110   :  { %876 = vst [vmem:[%s1334_s2 + $0x10] sm:$0x77] %v860_v62 }
 0x111   :  { %877 = vst [vmem:[%s1334_s2 + $0x18] sm:$0x77] %v861_v63 }
 0x114   :  { %v696_v0 = vpop.f32.mrb[8].mxu0  ;;  %v737_v1 = vpop.f32.mrb[8].mxu1 }
 0x115   :  { %1015 = vtanh.f32 %v696_v0  ;;  %v698_v2 = vpop.f32.mrb[9].mxu0  ;;  %v739_v4 = vpop.f32.mrb[9].mxu1 }
 0x116   :  { %1017 = vtanh.f32 %v737_v1  ;;  %v700_v5 = vpop.f32.mrb[10].mxu0  ;;  %v741_v6 = vpop.f32.mrb[10].mxu1 }
 0x117   :  { %1019 = vtanh.f32 %v698_v2  ;;  %v701_v7 = vpop.f32.mrb[11].mxu0  ;;  %v742_v8 = vpop.f32.mrb[11].mxu1 }
 0x118   :  { %1021 = vtanh.f32 %v739_v4 }
 0x11f   :  { %v1016_v9 = vpop.eup %1015 }
 0x120   :  { %v1018_v10 = vpop.eup %1017 }
 0x121   :  { %v1020_v11 = vpop.eup %1019 }
 0x122   :  { %v1022_v12 = vpop.eup %1021  ;;  %v862_v13 = vcombine.low %v1016_v9, %v1020_v11 }
 0x123   :  { %v863_v14 = vcombine.low %v1018_v10, %v1022_v12 }
 0x124   :  { %878 = vst [vmem:[%s1334_s2 + $0x20] sm:$0x77] %v862_v13 }
 0x125   :  { %879 = vst [vmem:[%s1334_s2 + $0x28] sm:$0x77] %v863_v14 }
 0x128   :  { %v778_v15 = vpop.f32.mrb[12].mxu0  ;;  %v819_v16 = vpop.f32.mrb[12].mxu1 }
 0x129   :  { %1023 = vtanh.f32 %v778_v15  ;;  %v780_v17 = vpop.f32.mrb[13].mxu0  ;;  %v821_v18 = vpop.f32.mrb[13].mxu1 }
 0x12a   :  { %1025 = vtanh.f32 %v819_v16  ;;  %v782_v19 = vpop.f32.mrb[14].mxu0  ;;  %v823_v20 = vpop.f32.mrb[14].mxu1 }
 0x12b   :  { %1027 = vtanh.f32 %v780_v17  ;;  %v783_v21 = vpop.f32.mrb[15].mxu0  ;;  %v824_v22 = vpop.f32.mrb[15].mxu1 }
 0x12c   :  { %1029 = vtanh.f32 %v821_v18 }
 0x133   :  { %v1024_v23 = vpop.eup %1023 }
 0x134   :  { %v1026_v24 = vpop.eup %1025 }
 0x135   :  { %v1028_v25 = vpop.eup %1027 }
 0x136   :  { %v1030_v26 = vpop.eup %1029  ;;  %v864_v27 = vcombine.low %v1024_v23, %v1028_v25 }
 0x137   :  { %v865_v28 = vcombine.low %v1026_v24, %v1030_v26 }
 0x138   :  { %880 = vst [vmem:[%s1334_s2 + $0x30] sm:$0x77] %v864_v27 }
 0x139   :  { %881 = vst [vmem:[%s1334_s2 + $0x38] sm:$0x77] %v865_v28 }

</bundles_post_ra>
